<compile_context>
chip_gen: v7x
topology: tpu7x:2x2x1
jax: 0.10.0
libtpu: 0.0.40
codegen_flags: <defaults>
</compile_context>

<pallas_src>
import jax
import jax.numpy as jnp
from jax.experimental import pallas as pl
from jax.experimental.pallas import tpu as pltpu

BOARD = 8                         # Reversi board is 8x8
ALL_FIELDS_SIZE = BOARD * BOARD   # 64
NUM_HIDDEN = 16
BATCH = 2

C_PAD = 32                        # every conv padded to 32 in/out channels
K_IM2COL = 9 * C_PAD              # 288
M_ROWS = BATCH * ALL_FIELDS_SIZE  # 128 = B*H*W rows -> fills an MXU pass
F_HEAD = ALL_FIELDS_SIZE * C_PAD  # 2048 flattened features feeding the fused heads
N_HEAD = ALL_FIELDS_SIZE + 1      # 65 = 64 policy logits + 1 value column
WOFF = 6                          # sublane offset so the interior starts at sublane 8


# ----------------------------------------------------------------------------
# The single fused kernel.
# ----------------------------------------------------------------------------
def _net_kernel(x_ref, wc_ref, bc_ref, wh_ref, bh_ref,   # inputs
                p_ref, v_ref,                            # outputs
                pad_ref, col_ref, ypv_ref, flat_ref):    # VMEM scratch
    # pad_ref : (10, 32, 32)  zero-padded activations, sublane = WOFF + 2*w_pad + b
    # col_ref : (128, 288)    im2col patches, row = 2*(h*8+w) + b, lane = tap*32 + cin
    # ypv_ref : (128, 32)     merged policy/value conv features
    # flat_ref: (2, 2048)     flattened head input, lane = (h*8+w)*32 + c

    # Zero once; the padding ring (and unused channels) stay zero for every conv.
    pad_ref[...] = jnp.zeros_like(pad_ref)
    # Load the input (pre-laid-out (H, 2*W, 3) by the wrapper) into the interior.
    pad_ref[1:9, 8:24, 0:3] = x_ref[...]

    def conv(i):
        # im2col: 9 shifted taps -> col_ref, then one K=288 MXU matmul (+bias, ReLU).
        for ky in range(3):
            for kx in range(3):
                t = ky * 3 + kx
                tap = pad_ref[ky:ky + 8, WOFF + 2 * kx: WOFF + 2 * kx + 16, :]
                col_ref[:, t * C_PAD:(t + 1) * C_PAD] = tap.reshape(M_ROWS, C_PAD)
        y = jnp.dot(col_ref[...], wc_ref[i], preferred_element_type=jnp.float32)
        return jnp.maximum(y + bc_ref[i:i + 1, :], 0.0)       # (128, 32)

    # startBlock conv (3->16) and the three sharedConv convs (16->32, 32->32, 32->32).
    # Outputs are written back into the padded scratch row-group by row-group
    # (avoids any sublane-splitting reshape).
    for i in range(4):
        y = conv(i)
        for h in range(8):
            pad_ref[1 + h, 8:24, :] = y[h * 16:(h + 1) * 16, :]

    # Merged policy/value conv (32 -> 16+16 channels).
    ypv_ref[...] = conv(4)

    # PyTorch-equivalent flatten: flat[b, s*32 + c] = ypv[2*s + b, c].
    for s in range(ALL_FIELDS_SIZE):
        flat_ref[:, s * C_PAD:(s + 1) * C_PAD] = ypv_ref[2 * s:2 * s + 2, :]

    # Fused FC heads: one (2, 2048) @ (2048, 65) matmul; column 64 is the value head.
    out = jnp.dot(flat_ref[...], wh_ref[...],
                  preferred_element_type=jnp.float32) + bh_ref[...]
    p_ref[...] = out[:, :ALL_FIELDS_SIZE]
    v_ref[...] = jnp.tanh(out[:, ALL_FIELDS_SIZE:])


def _full_spec(shape):
    ndim = len(shape)
    return pl.BlockSpec(shape, lambda *_: (0,) * ndim)


def net_forward(x_nchw, packed):
    """x_nchw: (B, 3, 8, 8) like PyTorch; packed: dict from pack_params()."""
    # (B, 3, H, W) -> (H, W, B, C) -> (H, 2*W, 3): row h, sublane 2*w+b, lane c.
    x_k = jnp.transpose(x_nchw, (2, 3, 0, 1)).reshape(BOARD, BOARD * BATCH, 3)

    in_shapes = (
        (BOARD, BOARD * BATCH, 3),        # x
        (5, K_IM2COL, C_PAD),             # packed conv weights
        (5, C_PAD),                       # packed conv biases
        (F_HEAD, N_HEAD),                 # fused head weight
        (1, N_HEAD),                      # fused head bias
    )
    policy, value = pl.pallas_call(
        _net_kernel,
        out_shape=(jax.ShapeDtypeStruct((BATCH, ALL_FIELDS_SIZE), jnp.float32),
                   jax.ShapeDtypeStruct((BATCH, 1), jnp.float32)),
        grid=(1,),
        in_specs=[_full_spec(s) for s in in_shapes],
        out_specs=(_full_spec((BATCH, ALL_FIELDS_SIZE)),
                   _full_spec((BATCH, 1))),
        scratch_shapes=[
            pltpu.VMEM((10, 32, C_PAD), jnp.float32),    # padded activations
            pltpu.VMEM((M_ROWS, K_IM2COL), jnp.float32),  # im2col patches
            pltpu.VMEM((M_ROWS, C_PAD), jnp.float32),     # policy/value features
            pltpu.VMEM((BATCH, F_HEAD), jnp.float32),     # flattened head input
        ],
    )(x_k, packed["wc"], packed["bc"], packed["wh"], packed["bh"])
    return policy, value


# ----------------------------------------------------------------------------
# Parameters: PyTorch-semantics tensors (conv HWIO, linear (in, out) with the
# C-major flatten order of nn.Flatten on NCHW), plus host-side packing into the
# kernel's fused/padded layout.
# ----------------------------------------------------------------------------
def init_params(key, num_hidden):
    def conv_p(key, cin, cout):
        k1, k2 = jax.random.split(key)
        scale = 1.0 / jnp.sqrt(9.0 * cin)
        w = jax.random.normal(k1, (3, 3, cin, cout), jnp.float32) * scale
        b = jax.random.normal(k2, (cout,), jnp.float32) * scale
        return w, b

    def lin_p(key, fin, fout):
        k1, k2 = jax.random.split(key)
        scale = 1.0 / jnp.sqrt(float(fin))
        w = jax.random.normal(k1, (fin, fout), jnp.float32) * scale
        b = jax.random.normal(k2, (fout,), jnp.float32) * scale
        return w, b

    keys = jax.random.split(key, 8)
    F = num_hidden * ALL_FIELDS_SIZE
    return {
        "start": conv_p(keys[0], 3, num_hidden),
        "shared0": conv_p(keys[1], num_hidden, 2 * num_hidden),
        "shared1": conv_p(keys[2], 2 * num_hidden, 2 * num_hidden),
        "shared2": conv_p(keys[3], 2 * num_hidden, 2 * num_hidden),
        "policy_conv": conv_p(keys[4], 2 * num_hidden, num_hidden),
        "value_conv": conv_p(keys[5], 2 * num_hidden, num_hidden),
        "policy_fc": lin_p(keys[6], F, ALL_FIELDS_SIZE),
        "value_fc": lin_p(keys[7], F, 1),
    }


def pack_params(params):
    """One-time host-side repack into the fused kernel's layouts."""
    def pack_conv(w_hwio):
        _, _, cin, cout = w_hwio.shape
        w = jnp.zeros((3, 3, C_PAD, C_PAD), jnp.float32)
        w = w.at[:, :, :cin, :cout].set(w_hwio)
        return w.reshape(K_IM2COL, C_PAD)      # row = (3*ky+kx)*32 + cin

    def pack_bias(b):
        return jnp.zeros((C_PAD,), jnp.float32).at[:b.shape[0]].set(b)

    w_st, b_st = params["start"]
    w0, b0 = params["shared0"]
    w1, b1 = params["shared1"]
    w2, b2 = params["shared2"]
    wpc, bpc = params["policy_conv"]
    wvc, bvc = params["value_conv"]
    w_pv = jnp.concatenate([wpc, wvc], axis=-1)       # policy ch 0..15, value ch 16..31
    b_pv = jnp.concatenate([bpc, bvc])

    wc = jnp.stack([pack_conv(w_st), pack_conv(w0), pack_conv(w1),
                    pack_conv(w2), pack_conv(w_pv)])          # (5, 288, 32)
    bc = jnp.stack([pack_bias(b_st), pack_bias(b0), pack_bias(b1),
                    pack_bias(b2), pack_bias(b_pv)])          # (5, 32)

    # Fused FC head weight: row = s*32 + c (NHWC-ish flatten used inside the kernel),
    # columns 0..63 = policy logits, column 64 = value.
    wp, bp = params["policy_fc"]    # (1024, 64), row index = c*64 + s  (PyTorch flatten)
    wv, bv = params["value_fc"]     # (1024, 1)
    nh = NUM_HIDDEN
    wp3 = jnp.transpose(wp.reshape(nh, ALL_FIELDS_SIZE, ALL_FIELDS_SIZE), (1, 0, 2))
    wv3 = jnp.transpose(wv.reshape(nh, ALL_FIELDS_SIZE, 1), (1, 0, 2))
    wh4 = jnp.zeros((ALL_FIELDS_SIZE, C_PAD, N_HEAD), jnp.float32)
    wh4 = wh4.at[:, :nh, :ALL_FIELDS_SIZE].set(wp3)
    wh4 = wh4.at[:, nh:, ALL_FIELDS_SIZE:].set(wv3)
    wh = wh4.reshape(F_HEAD, N_HEAD)                          # (2048, 65)
    bh = jnp.concatenate([bp, bv]).reshape(1, N_HEAD)
    return {"wc": wc, "bc": bc, "wh": wh, "bh": bh}


# ----------------------------------------------------------------------------
# Pure-JAX reference (identical PyTorch semantics) for the correctness check.
# ----------------------------------------------------------------------------
def flatten_chw(x_nhwc):
    B = x_nhwc.shape[0]
    return jnp.transpose(x_nhwc, (0, 3, 1, 2)).reshape(B, -1)


def ref_forward(x_nchw, params):
    x = jnp.transpose(x_nchw, (0, 2, 3, 1))

    def conv(x, wb):
        w, b = wb
        y = jax.lax.conv_general_dilated(
            x, w, window_strides=(1, 1), padding="SAME",
            dimension_numbers=("NHWC", "HWIO", "NHWC")) + b
        return jnp.maximum(y, 0.0)

    x = conv(x, params["start"])
    x = conv(x, params["shared0"])
    x = conv(x, params["shared1"])
    shared = conv(x, params["shared2"])
    p_feat = conv(shared, params["policy_conv"])
    v_feat = conv(shared, params["value_conv"])
    wp, bp = params["policy_fc"]
    wv, bv = params["value_fc"]
    policy = flatten_chw(p_feat) @ wp + bp
    value = jnp.tanh(flatten_chw(v_feat) @ wv + bv)
    return policy, value


if __name__ == "__main__":
    key = jax.random.PRNGKey(0)
    k_x, k_p = jax.random.split(key)

    x = jax.random.normal(k_x, (BATCH, 3, BOARD, BOARD), jnp.float32)  # NCHW like PyTorch
    params = init_params(k_p, NUM_HIDDEN)
    packed = pack_params(params)       # one-time host-side repack

    fwd = jax.jit(net_forward)
    policy, value = fwd(x, packed)
    policy = jax.block_until_ready(policy)
    value = jax.block_until_ready(value)

    ref_policy, ref_value = ref_forward(x, params)
    assert policy.shape == (BATCH, ALL_FIELDS_SIZE) and value.shape == (BATCH, 1)
    assert jnp.allclose(policy, ref_policy, rtol=5e-3, atol=5e-3), \
        float(jnp.max(jnp.abs(policy - ref_policy)))
    assert jnp.allclose(value, ref_value, rtol=5e-3, atol=5e-3), \
        float(jnp.max(jnp.abs(value - ref_value)))

    print("KERNEL_OK")
</pallas_src>

<mosaic_0001>
module attributes {stable_mosaic.version = 11 : i64} {
  func.func @_net_kernel(%arg0: i32, %arg1: memref<8x16x3xf32, #tpu.memory_space<vmem>>, %arg2: memref<5x288x32xf32, #tpu.memory_space<vmem>>, %arg3: memref<5x32xf32, #tpu.memory_space<vmem>>, %arg4: memref<2048x65xf32, #tpu.memory_space<vmem>>, %arg5: memref<1x65xf32, #tpu.memory_space<vmem>>, %arg6: memref<2x64xf32, #tpu.memory_space<vmem>>, %arg7: memref<2x1xf32, #tpu.memory_space<vmem>>, %arg8: memref<10x32x32xf32, #tpu.memory_space<vmem>>, %arg9: memref<128x288xf32, #tpu.memory_space<vmem>>, %arg10: memref<128x32xf32, #tpu.memory_space<vmem>>, %arg11: memref<2x2048xf32, #tpu.memory_space<vmem>>) attributes {dimension_semantics = [#tpu.dimension_semantics<arbitrary>], iteration_bounds = array<i64: 1>, scalar_prefetch = 0 : i64, scratch_operands = 4 : i64, tpu.core_type = #tpu.core_type<tc>, window_params = [{pipeline_mode = #tpu.pipeline_mode<synchronous>, transform_indices = @transform_0, window_bounds = array<i64: 8, 16, 3>}, {pipeline_mode = #tpu.pipeline_mode<synchronous>, transform_indices = @transform_1, window_bounds = array<i64: 5, 288, 32>}, {pipeline_mode = #tpu.pipeline_mode<synchronous>, transform_indices = @transform_2, window_bounds = array<i64: 5, 32>}, {pipeline_mode = #tpu.pipeline_mode<synchronous>, transform_indices = @transform_3, window_bounds = array<i64: 2048, 65>}, {pipeline_mode = #tpu.pipeline_mode<synchronous>, transform_indices = @transform_4, window_bounds = array<i64: 1, 65>}, {pipeline_mode = #tpu.pipeline_mode<synchronous>, transform_indices = @transform_5, window_bounds = array<i64: 2, 64>}, {pipeline_mode = #tpu.pipeline_mode<synchronous>, transform_indices = @transform_6, window_bounds = array<i64: 2, 1>}]} {
    %cst = arith.constant 0.000000e+00 : f32
    %0 = vector.broadcast %cst : f32 to vector<10x32x32xf32>
    %c0 = arith.constant 0 : index
    %c0_0 = arith.constant 0 : index
    %c0_1 = arith.constant 0 : index
    %1 = vector.load %arg8[%c0, %c0_0, %c0_1] : memref<10x32x32xf32, #tpu.memory_space<vmem>>, vector<10x32x32xf32>
    tpu.vector_store %arg8[%c0, %c0_0, %c0_1], %0 {strides = array<i32>} : memref<10x32x32xf32, #tpu.memory_space<vmem>>, vector<10x32x32xf32>,
    %c0_2 = arith.constant 0 : index
    %c0_3 = arith.constant 0 : index
    %c0_4 = arith.constant 0 : index
    %2 = vector.load %arg1[%c0_2, %c0_3, %c0_4] : memref<8x16x3xf32, #tpu.memory_space<vmem>>, vector<8x16x3xf32>
    %c1 = arith.constant 1 : index
    %c8 = arith.constant 8 : index
    %c0_5 = arith.constant 0 : index
    %3 = vector.load %arg8[%c1, %c8, %c0_5] : memref<10x32x32xf32, #tpu.memory_space<vmem>>, vector<8x16x3xf32>
    tpu.vector_store %arg8[%c1, %c8, %c0_5], %2 {strides = array<i32>} : memref<10x32x32xf32, #tpu.memory_space<vmem>>, vector<8x16x3xf32>,
    %c0_6 = arith.constant 0 : index
    %c6 = arith.constant 6 : index
    %c0_7 = arith.constant 0 : index
    %4 = vector.load %arg8[%c0_6, %c6, %c0_7] : memref<10x32x32xf32, #tpu.memory_space<vmem>>, vector<8x16x32xf32>
    %5 = vector.shape_cast %4 : vector<8x16x32xf32> to vector<128x32xf32>
    %c0_8 = arith.constant 0 : index
    %c0_9 = arith.constant 0 : index
    %6 = vector.load %arg9[%c0_8, %c0_9] : memref<128x288xf32, #tpu.memory_space<vmem>>, vector<128x32xf32>
    tpu.vector_store %arg9[%c0_8, %c0_9], %5 {strides = array<i32>} : memref<128x288xf32, #tpu.memory_space<vmem>>, vector<128x32xf32>,
    %c0_10 = arith.constant 0 : index
    %c8_11 = arith.constant 8 : index
    %c0_12 = arith.constant 0 : index
    %7 = vector.load %arg8[%c0_10, %c8_11, %c0_12] : memref<10x32x32xf32, #tpu.memory_space<vmem>>, vector<8x16x32xf32>
    %8 = vector.shape_cast %7 : vector<8x16x32xf32> to vector<128x32xf32>
    %c0_13 = arith.constant 0 : index
    %c32 = arith.constant 32 : index
    %9 = vector.load %arg9[%c0_13, %c32] : memref<128x288xf32, #tpu.memory_space<vmem>>, vector<128x32xf32>
    tpu.vector_store %arg9[%c0_13, %c32], %8 {strides = array<i32>} : memref<128x288xf32, #tpu.memory_space<vmem>>, vector<128x32xf32>,
    %c0_14 = arith.constant 0 : index
    %c10 = arith.constant 10 : index
    %c0_15 = arith.constant 0 : index
    %10 = vector.load %arg8[%c0_14, %c10, %c0_15] : memref<10x32x32xf32, #tpu.memory_space<vmem>>, vector<8x16x32xf32>
    %11 = vector.shape_cast %10 : vector<8x16x32xf32> to vector<128x32xf32>
    %c0_16 = arith.constant 0 : index
    %c64 = arith.constant 64 : index
    %12 = vector.load %arg9[%c0_16, %c64] : memref<128x288xf32, #tpu.memory_space<vmem>>, vector<128x32xf32>
    tpu.vector_store %arg9[%c0_16, %c64], %11 {strides = array<i32>} : memref<128x288xf32, #tpu.memory_space<vmem>>, vector<128x32xf32>,
    %c1_17 = arith.constant 1 : index
    %c6_18 = arith.constant 6 : index
    %c0_19 = arith.constant 0 : index
    %13 = vector.load %arg8[%c1_17, %c6_18, %c0_19] : memref<10x32x32xf32, #tpu.memory_space<vmem>>, vector<8x16x32xf32>
    %14 = vector.shape_cast %13 : vector<8x16x32xf32> to vector<128x32xf32>
    %c0_20 = arith.constant 0 : index
    %c96 = arith.constant 96 : index
    %15 = vector.load %arg9[%c0_20, %c96] : memref<128x288xf32, #tpu.memory_space<vmem>>, vector<128x32xf32>
    tpu.vector_store %arg9[%c0_20, %c96], %14 {strides = array<i32>} : memref<128x288xf32, #tpu.memory_space<vmem>>, vector<128x32xf32>,
    %c1_21 = arith.constant 1 : index
    %c8_22 = arith.constant 8 : index
    %c0_23 = arith.constant 0 : index
    %16 = vector.load %arg8[%c1_21, %c8_22, %c0_23] : memref<10x32x32xf32, #tpu.memory_space<vmem>>, vector<8x16x32xf32>
    %17 = vector.shape_cast %16 : vector<8x16x32xf32> to vector<128x32xf32>
    %c0_24 = arith.constant 0 : index
    %c128 = arith.constant 128 : index
    %18 = vector.load %arg9[%c0_24, %c128] : memref<128x288xf32, #tpu.memory_space<vmem>>, vector<128x32xf32>
    tpu.vector_store %arg9[%c0_24, %c128], %17 {strides = array<i32>} : memref<128x288xf32, #tpu.memory_space<vmem>>, vector<128x32xf32>,
    %c1_25 = arith.constant 1 : index
    %c10_26 = arith.constant 10 : index
    %c0_27 = arith.constant 0 : index
    %19 = vector.load %arg8[%c1_25, %c10_26, %c0_27] : memref<10x32x32xf32, #tpu.memory_space<vmem>>, vector<8x16x32xf32>
    %20 = vector.shape_cast %19 : vector<8x16x32xf32> to vector<128x32xf32>
    %c0_28 = arith.constant 0 : index
    %c160 = arith.constant 160 : index
    %21 = vector.load %arg9[%c0_28, %c160] : memref<128x288xf32, #tpu.memory_space<vmem>>, vector<128x32xf32>
    tpu.vector_store %arg9[%c0_28, %c160], %20 {strides = array<i32>} : memref<128x288xf32, #tpu.memory_space<vmem>>, vector<128x32xf32>,
    %c2 = arith.constant 2 : index
    %c6_29 = arith.constant 6 : index
    %c0_30 = arith.constant 0 : index
    %22 = vector.load %arg8[%c2, %c6_29, %c0_30] : memref<10x32x32xf32, #tpu.memory_space<vmem>>, vector<8x16x32xf32>
    %23 = vector.shape_cast %22 : vector<8x16x32xf32> to vector<128x32xf32>
    %c0_31 = arith.constant 0 : index
    %c192 = arith.constant 192 : index
    %24 = vector.load %arg9[%c0_31, %c192] : memref<128x288xf32, #tpu.memory_space<vmem>>, vector<128x32xf32>
    tpu.vector_store %arg9[%c0_31, %c192], %23 {strides = array<i32>} : memref<128x288xf32, #tpu.memory_space<vmem>>, vector<128x32xf32>,
    %c2_32 = arith.constant 2 : index
    %c8_33 = arith.constant 8 : index
    %c0_34 = arith.constant 0 : index
    %25 = vector.load %arg8[%c2_32, %c8_33, %c0_34] : memref<10x32x32xf32, #tpu.memory_space<vmem>>, vector<8x16x32xf32>
    %26 = vector.shape_cast %25 : vector<8x16x32xf32> to vector<128x32xf32>
    %c0_35 = arith.constant 0 : index
    %c224 = arith.constant 224 : index
    %27 = vector.load %arg9[%c0_35, %c224] : memref<128x288xf32, #tpu.memory_space<vmem>>, vector<128x32xf32>
    tpu.vector_store %arg9[%c0_35, %c224], %26 {strides = array<i32>} : memref<128x288xf32, #tpu.memory_space<vmem>>, vector<128x32xf32>,
    %c2_36 = arith.constant 2 : index
    %c10_37 = arith.constant 10 : index
    %c0_38 = arith.constant 0 : index
    %28 = vector.load %arg8[%c2_36, %c10_37, %c0_38] : memref<10x32x32xf32, #tpu.memory_space<vmem>>, vector<8x16x32xf32>
    %29 = vector.shape_cast %28 : vector<8x16x32xf32> to vector<128x32xf32>
    %c0_39 = arith.constant 0 : index
    %c256 = arith.constant 256 : index
    %30 = vector.load %arg9[%c0_39, %c256] : memref<128x288xf32, #tpu.memory_space<vmem>>, vector<128x32xf32>
    tpu.vector_store %arg9[%c0_39, %c256], %29 {strides = array<i32>} : memref<128x288xf32, #tpu.memory_space<vmem>>, vector<128x32xf32>,
    %c0_40 = arith.constant 0 : index
    %c0_41 = arith.constant 0 : index
    %31 = vector.load %arg9[%c0_40, %c0_41] : memref<128x288xf32, #tpu.memory_space<vmem>>, vector<128x288xf32>
    %c0_42 = arith.constant 0 : index
    %c0_43 = arith.constant 0 : index
    %c0_44 = arith.constant 0 : index
    %32 = vector.load %arg2[%c0_42, %c0_43, %c0_44] : memref<5x288x32xf32, #tpu.memory_space<vmem>>, vector<1x288x32xf32>
    %33 = vector.shape_cast %32 : vector<1x288x32xf32> to vector<288x32xf32>
    %cst_45 = arith.constant dense<0.000000e+00> : vector<128x32xf32>
    %34 = tpu.matmul %31, %33, %cst_45 {dimension_numbers = #tpu.dot_dimension_numbers<[1], [0], [0], [1], [0, 0, 1, 1], [], []>} : vector<128x288xf32>, vector<288x32xf32>, vector<128x32xf32> -> vector<128x32xf32>
    %c0_46 = arith.constant 0 : index
    %c0_47 = arith.constant 0 : index
    %35 = vector.load %arg3[%c0_46, %c0_47] : memref<5x32xf32, #tpu.memory_space<vmem>>, vector<1x32xf32>
    %36 = vector.broadcast %35 : vector<1x32xf32> to vector<128x32xf32>
    %37 = arith.addf %34, %36 : vector<128x32xf32>
    %cst_48 = arith.constant 0.000000e+00 : f32
    %38 = vector.broadcast %cst_48 : f32 to vector<128x32xf32>
    %39 = arith.maximumf %37, %38 : vector<128x32xf32>
    %40 = vector.extract_strided_slice %39 {offsets = [0, 0], sizes = [16, 32], strides = [1, 1]} : vector<128x32xf32> to vector<16x32xf32>
    %c1_49 = arith.constant 1 : index
    %c8_50 = arith.constant 8 : index
    %c0_51 = arith.constant 0 : index
    %41 = vector.load %arg8[%c1_49, %c8_50, %c0_51] : memref<10x32x32xf32, #tpu.memory_space<vmem>>, vector<1x16x32xf32>
    %42 = vector.shape_cast %41 : vector<1x16x32xf32> to vector<16x32xf32>
    %43 = vector.shape_cast %40 : vector<16x32xf32> to vector<1x16x32xf32>
    tpu.vector_store %arg8[%c1_49, %c8_50, %c0_51], %43 {strides = array<i32>} : memref<10x32x32xf32, #tpu.memory_space<vmem>>, vector<1x16x32xf32>,
    %44 = vector.extract_strided_slice %39 {offsets = [16, 0], sizes = [16, 32], strides = [1, 1]} : vector<128x32xf32> to vector<16x32xf32>
    %c2_52 = arith.constant 2 : index
    %c8_53 = arith.constant 8 : index
    %c0_54 = arith.constant 0 : index
    %45 = vector.load %arg8[%c2_52, %c8_53, %c0_54] : memref<10x32x32xf32, #tpu.memory_space<vmem>>, vector<1x16x32xf32>
    %46 = vector.shape_cast %45 : vector<1x16x32xf32> to vector<16x32xf32>
    %47 = vector.shape_cast %44 : vector<16x32xf32> to vector<1x16x32xf32>
    tpu.vector_store %arg8[%c2_52, %c8_53, %c0_54], %47 {strides = array<i32>} : memref<10x32x32xf32, #tpu.memory_space<vmem>>, vector<1x16x32xf32>,
    %48 = vector.extract_strided_slice %39 {offsets = [32, 0], sizes = [16, 32], strides = [1, 1]} : vector<128x32xf32> to vector<16x32xf32>
    %c3 = arith.constant 3 : index
    %c8_55 = arith.constant 8 : index
    %c0_56 = arith.constant 0 : index
    %49 = vector.load %arg8[%c3, %c8_55, %c0_56] : memref<10x32x32xf32, #tpu.memory_space<vmem>>, vector<1x16x32xf32>
    %50 = vector.shape_cast %49 : vector<1x16x32xf32> to vector<16x32xf32>
    %51 = vector.shape_cast %48 : vector<16x32xf32> to vector<1x16x32xf32>
    tpu.vector_store %arg8[%c3, %c8_55, %c0_56], %51 {strides = array<i32>} : memref<10x32x32xf32, #tpu.memory_space<vmem>>, vector<1x16x32xf32>,
    %52 = vector.extract_strided_slice %39 {offsets = [48, 0], sizes = [16, 32], strides = [1, 1]} : vector<128x32xf32> to vector<16x32xf32>
    %c4 = arith.constant 4 : index
    %c8_57 = arith.constant 8 : index
    %c0_58 = arith.constant 0 : index
    %53 = vector.load %arg8[%c4, %c8_57, %c0_58] : memref<10x32x32xf32, #tpu.memory_space<vmem>>, vector<1x16x32xf32>
    %54 = vector.shape_cast %53 : vector<1x16x32xf32> to vector<16x32xf32>
    %55 = vector.shape_cast %52 : vector<16x32xf32> to vector<1x16x32xf32>
    tpu.vector_store %arg8[%c4, %c8_57, %c0_58], %55 {strides = array<i32>} : memref<10x32x32xf32, #tpu.memory_space<vmem>>, vector<1x16x32xf32>,
    %56 = vector.extract_strided_slice %39 {offsets = [64, 0], sizes = [16, 32], strides = [1, 1]} : vector<128x32xf32> to vector<16x32xf32>
    %c5 = arith.constant 5 : index
    %c8_59 = arith.constant 8 : index
    %c0_60 = arith.constant 0 : index
    %57 = vector.load %arg8[%c5, %c8_59, %c0_60] : memref<10x32x32xf32, #tpu.memory_space<vmem>>, vector<1x16x32xf32>
    %58 = vector.shape_cast %57 : vector<1x16x32xf32> to vector<16x32xf32>
    %59 = vector.shape_cast %56 : vector<16x32xf32> to vector<1x16x32xf32>
    tpu.vector_store %arg8[%c5, %c8_59, %c0_60], %59 {strides = array<i32>} : memref<10x32x32xf32, #tpu.memory_space<vmem>>, vector<1x16x32xf32>,
    %60 = vector.extract_strided_slice %39 {offsets = [80, 0], sizes = [16, 32], strides = [1, 1]} : vector<128x32xf32> to vector<16x32xf32>
    %c6_61 = arith.constant 6 : index
    %c8_62 = arith.constant 8 : index
    %c0_63 = arith.constant 0 : index
    %61 = vector.load %arg8[%c6_61, %c8_62, %c0_63] : memref<10x32x32xf32, #tpu.memory_space<vmem>>, vector<1x16x32xf32>
    %62 = vector.shape_cast %61 : vector<1x16x32xf32> to vector<16x32xf32>
    %63 = vector.shape_cast %60 : vector<16x32xf32> to vector<1x16x32xf32>
    tpu.vector_store %arg8[%c6_61, %c8_62, %c0_63], %63 {strides = array<i32>} : memref<10x32x32xf32, #tpu.memory_space<vmem>>, vector<1x16x32xf32>,
    %64 = vector.extract_strided_slice %39 {offsets = [96, 0], sizes = [16, 32], strides = [1, 1]} : vector<128x32xf32> to vector<16x32xf32>
    %c7 = arith.constant 7 : index
    %c8_64 = arith.constant 8 : index
    %c0_65 = arith.constant 0 : index
    %65 = vector.load %arg8[%c7, %c8_64, %c0_65] : memref<10x32x32xf32, #tpu.memory_space<vmem>>, vector<1x16x32xf32>
    %66 = vector.shape_cast %65 : vector<1x16x32xf32> to vector<16x32xf32>
    %67 = vector.shape_cast %64 : vector<16x32xf32> to vector<1x16x32xf32>
    tpu.vector_store %arg8[%c7, %c8_64, %c0_65], %67 {strides = array<i32>} : memref<10x32x32xf32, #tpu.memory_space<vmem>>, vector<1x16x32xf32>,
    %68 = vector.extract_strided_slice %39 {offsets = [112, 0], sizes = [16, 32], strides = [1, 1]} : vector<128x32xf32> to vector<16x32xf32>
    %c8_66 = arith.constant 8 : index
    %c8_67 = arith.constant 8 : index
    %c0_68 = arith.constant 0 : index
    %69 = vector.load %arg8[%c8_66, %c8_67, %c0_68] : memref<10x32x32xf32, #tpu.memory_space<vmem>>, vector<1x16x32xf32>
    %70 = vector.shape_cast %69 : vector<1x16x32xf32> to vector<16x32xf32>
    %71 = vector.shape_cast %68 : vector<16x32xf32> to vector<1x16x32xf32>
    tpu.vector_store %arg8[%c8_66, %c8_67, %c0_68], %71 {strides = array<i32>} : memref<10x32x32xf32, #tpu.memory_space<vmem>>, vector<1x16x32xf32>,
    %c0_69 = arith.constant 0 : index
    %c6_70 = arith.constant 6 : index
    %c0_71 = arith.constant 0 : index
    %72 = vector.load %arg8[%c0_69, %c6_70, %c0_71] : memref<10x32x32xf32, #tpu.memory_space<vmem>>, vector<8x16x32xf32>
    %73 = vector.shape_cast %72 : vector<8x16x32xf32> to vector<128x32xf32>
    %c0_72 = arith.constant 0 : index
    %c0_73 = arith.constant 0 : index
    %74 = vector.load %arg9[%c0_72, %c0_73] : memref<128x288xf32, #tpu.memory_space<vmem>>, vector<128x32xf32>
    tpu.vector_store %arg9[%c0_72, %c0_73], %73 {strides = array<i32>} : memref<128x288xf32, #tpu.memory_space<vmem>>, vector<128x32xf32>,
    %c0_74 = arith.constant 0 : index
    %c8_75 = arith.constant 8 : index
    %c0_76 = arith.constant 0 : index
    %75 = vector.load %arg8[%c0_74, %c8_75, %c0_76] : memref<10x32x32xf32, #tpu.memory_space<vmem>>, vector<8x16x32xf32>
    %76 = vector.shape_cast %75 : vector<8x16x32xf32> to vector<128x32xf32>
    %c0_77 = arith.constant 0 : index
    %c32_78 = arith.constant 32 : index
    %77 = vector.load %arg9[%c0_77, %c32_78] : memref<128x288xf32, #tpu.memory_space<vmem>>, vector<128x32xf32>
    tpu.vector_store %arg9[%c0_77, %c32_78], %76 {strides = array<i32>} : memref<128x288xf32, #tpu.memory_space<vmem>>, vector<128x32xf32>,
    %c0_79 = arith.constant 0 : index
    %c10_80 = arith.constant 10 : index
    %c0_81 = arith.constant 0 : index
    %78 = vector.load %arg8[%c0_79, %c10_80, %c0_81] : memref<10x32x32xf32, #tpu.memory_space<vmem>>, vector<8x16x32xf32>
    %79 = vector.shape_cast %78 : vector<8x16x32xf32> to vector<128x32xf32>
    %c0_82 = arith.constant 0 : index
    %c64_83 = arith.constant 64 : index
    %80 = vector.load %arg9[%c0_82, %c64_83] : memref<128x288xf32, #tpu.memory_space<vmem>>, vector<128x32xf32>
    tpu.vector_store %arg9[%c0_82, %c64_83], %79 {strides = array<i32>} : memref<128x288xf32, #tpu.memory_space<vmem>>, vector<128x32xf32>,
    %c1_84 = arith.constant 1 : index
    %c6_85 = arith.constant 6 : index
    %c0_86 = arith.constant 0 : index
    %81 = vector.load %arg8[%c1_84, %c6_85, %c0_86] : memref<10x32x32xf32, #tpu.memory_space<vmem>>, vector<8x16x32xf32>
    %82 = vector.shape_cast %81 : vector<8x16x32xf32> to vector<128x32xf32>
    %c0_87 = arith.constant 0 : index
    %c96_88 = arith.constant 96 : index
    %83 = vector.load %arg9[%c0_87, %c96_88] : memref<128x288xf32, #tpu.memory_space<vmem>>, vector<128x32xf32>
    tpu.vector_store %arg9[%c0_87, %c96_88], %82 {strides = array<i32>} : memref<128x288xf32, #tpu.memory_space<vmem>>, vector<128x32xf32>,
    %c1_89 = arith.constant 1 : index
    %c8_90 = arith.constant 8 : index
    %c0_91 = arith.constant 0 : index
    %84 = vector.load %arg8[%c1_89, %c8_90, %c0_91] : memref<10x32x32xf32, #tpu.memory_space<vmem>>, vector<8x16x32xf32>
    %85 = vector.shape_cast %84 : vector<8x16x32xf32> to vector<128x32xf32>
    %c0_92 = arith.constant 0 : index
    %c128_93 = arith.constant 128 : index
    %86 = vector.load %arg9[%c0_92, %c128_93] : memref<128x288xf32, #tpu.memory_space<vmem>>, vector<128x32xf32>
    tpu.vector_store %arg9[%c0_92, %c128_93], %85 {strides = array<i32>} : memref<128x288xf32, #tpu.memory_space<vmem>>, vector<128x32xf32>,
    %c1_94 = arith.constant 1 : index
    %c10_95 = arith.constant 10 : index
    %c0_96 = arith.constant 0 : index
    %87 = vector.load %arg8[%c1_94, %c10_95, %c0_96] : memref<10x32x32xf32, #tpu.memory_space<vmem>>, vector<8x16x32xf32>
    %88 = vector.shape_cast %87 : vector<8x16x32xf32> to vector<128x32xf32>
    %c0_97 = arith.constant 0 : index
    %c160_98 = arith.constant 160 : index
    %89 = vector.load %arg9[%c0_97, %c160_98] : memref<128x288xf32, #tpu.memory_space<vmem>>, vector<128x32xf32>
    tpu.vector_store %arg9[%c0_97, %c160_98], %88 {strides = array<i32>} : memref<128x288xf32, #tpu.memory_space<vmem>>, vector<128x32xf32>,
    %c2_99 = arith.constant 2 : index
    %c6_100 = arith.constant 6 : index
    %c0_101 = arith.constant 0 : index
    %90 = vector.load %arg8[%c2_99, %c6_100, %c0_101] : memref<10x32x32xf32, #tpu.memory_space<vmem>>, vector<8x16x32xf32>
    %91 = vector.shape_cast %90 : vector<8x16x32xf32> to vector<128x32xf32>
    %c0_102 = arith.constant 0 : index
    %c192_103 = arith.constant 192 : index
    %92 = vector.load %arg9[%c0_102, %c192_103] : memref<128x288xf32, #tpu.memory_space<vmem>>, vector<128x32xf32>
    tpu.vector_store %arg9[%c0_102, %c192_103], %91 {strides = array<i32>} : memref<128x288xf32, #tpu.memory_space<vmem>>, vector<128x32xf32>,
    %c2_104 = arith.constant 2 : index
    %c8_105 = arith.constant 8 : index
    %c0_106 = arith.constant 0 : index
    %93 = vector.load %arg8[%c2_104, %c8_105, %c0_106] : memref<10x32x32xf32, #tpu.memory_space<vmem>>, vector<8x16x32xf32>
    %94 = vector.shape_cast %93 : vector<8x16x32xf32> to vector<128x32xf32>
    %c0_107 = arith.constant 0 : index
    %c224_108 = arith.constant 224 : index
    %95 = vector.load %arg9[%c0_107, %c224_108] : memref<128x288xf32, #tpu.memory_space<vmem>>, vector<128x32xf32>
    tpu.vector_store %arg9[%c0_107, %c224_108], %94 {strides = array<i32>} : memref<128x288xf32, #tpu.memory_space<vmem>>, vector<128x32xf32>,
    %c2_109 = arith.constant 2 : index
    %c10_110 = arith.constant 10 : index
    %c0_111 = arith.constant 0 : index
    %96 = vector.load %arg8[%c2_109, %c10_110, %c0_111] : memref<10x32x32xf32, #tpu.memory_space<vmem>>, vector<8x16x32xf32>
    %97 = vector.shape_cast %96 : vector<8x16x32xf32> to vector<128x32xf32>
    %c0_112 = arith.constant 0 : index
    %c256_113 = arith.constant 256 : index
    %98 = vector.load %arg9[%c0_112, %c256_113] : memref<128x288xf32, #tpu.memory_space<vmem>>, vector<128x32xf32>
    tpu.vector_store %arg9[%c0_112, %c256_113], %97 {strides = array<i32>} : memref<128x288xf32, #tpu.memory_space<vmem>>, vector<128x32xf32>,
    %c0_114 = arith.constant 0 : index
    %c0_115 = arith.constant 0 : index
    %99 = vector.load %arg9[%c0_114, %c0_115] : memref<128x288xf32, #tpu.memory_space<vmem>>, vector<128x288xf32>
    %c1_116 = arith.constant 1 : index
    %c0_117 = arith.constant 0 : index
    %c0_118 = arith.constant 0 : index
    %100 = vector.load %arg2[%c1_116, %c0_117, %c0_118] : memref<5x288x32xf32, #tpu.memory_space<vmem>>, vector<1x288x32xf32>
    %101 = vector.shape_cast %100 : vector<1x288x32xf32> to vector<288x32xf32>
    %cst_119 = arith.constant dense<0.000000e+00> : vector<128x32xf32>
    %102 = tpu.matmul %99, %101, %cst_119 {dimension_numbers = #tpu.dot_dimension_numbers<[1], [0], [0], [1], [0, 0, 1, 1], [], []>} : vector<128x288xf32>, vector<288x32xf32>, vector<128x32xf32> -> vector<128x32xf32>
    %c1_120 = arith.constant 1 : index
    %c0_121 = arith.constant 0 : index
    %103 = vector.load %arg3[%c1_120, %c0_121] : memref<5x32xf32, #tpu.memory_space<vmem>>, vector<1x32xf32>
    %104 = vector.broadcast %103 : vector<1x32xf32> to vector<128x32xf32>
    %105 = arith.addf %102, %104 : vector<128x32xf32>
    %cst_122 = arith.constant 0.000000e+00 : f32
    %106 = vector.broadcast %cst_122 : f32 to vector<128x32xf32>
    %107 = arith.maximumf %105, %106 : vector<128x32xf32>
    %108 = vector.extract_strided_slice %107 {offsets = [0, 0], sizes = [16, 32], strides = [1, 1]} : vector<128x32xf32> to vector<16x32xf32>
    %c1_123 = arith.constant 1 : index
    %c8_124 = arith.constant 8 : index
    %c0_125 = arith.constant 0 : index
    %109 = vector.load %arg8[%c1_123, %c8_124, %c0_125] : memref<10x32x32xf32, #tpu.memory_space<vmem>>, vector<1x16x32xf32>
    %110 = vector.shape_cast %109 : vector<1x16x32xf32> to vector<16x32xf32>
    %111 = vector.shape_cast %108 : vector<16x32xf32> to vector<1x16x32xf32>
    tpu.vector_store %arg8[%c1_123, %c8_124, %c0_125], %111 {strides = array<i32>} : memref<10x32x32xf32, #tpu.memory_space<vmem>>, vector<1x16x32xf32>,
    %112 = vector.extract_strided_slice %107 {offsets = [16, 0], sizes = [16, 32], strides = [1, 1]} : vector<128x32xf32> to vector<16x32xf32>
    %c2_126 = arith.constant 2 : index
    %c8_127 = arith.constant 8 : index
    %c0_128 = arith.constant 0 : index
    %113 = vector.load %arg8[%c2_126, %c8_127, %c0_128] : memref<10x32x32xf32, #tpu.memory_space<vmem>>, vector<1x16x32xf32>
    %114 = vector.shape_cast %113 : vector<1x16x32xf32> to vector<16x32xf32>
    %115 = vector.shape_cast %112 : vector<16x32xf32> to vector<1x16x32xf32>
    tpu.vector_store %arg8[%c2_126, %c8_127, %c0_128], %115 {strides = array<i32>} : memref<10x32x32xf32, #tpu.memory_space<vmem>>, vector<1x16x32xf32>,
    %116 = vector.extract_strided_slice %107 {offsets = [32, 0], sizes = [16, 32], strides = [1, 1]} : vector<128x32xf32> to vector<16x32xf32>
    %c3_129 = arith.constant 3 : index
    %c8_130 = arith.constant 8 : index
    %c0_131 = arith.constant 0 : index
    %117 = vector.load %arg8[%c3_129, %c8_130, %c0_131] : memref<10x32x32xf32, #tpu.memory_space<vmem>>, vector<1x16x32xf32>
    %118 = vector.shape_cast %117 : vector<1x16x32xf32> to vector<16x32xf32>
    %119 = vector.shape_cast %116 : vector<16x32xf32> to vector<1x16x32xf32>
    tpu.vector_store %arg8[%c3_129, %c8_130, %c0_131], %119 {strides = array<i32>} : memref<10x32x32xf32, #tpu.memory_space<vmem>>, vector<1x16x32xf32>,
    %120 = vector.extract_strided_slice %107 {offsets = [48, 0], sizes = [16, 32], strides = [1, 1]} : vector<128x32xf32> to vector<16x32xf32>
    %c4_132 = arith.constant 4 : index
    %c8_133 = arith.constant 8 : index
    %c0_134 = arith.constant 0 : index
    %121 = vector.load %arg8[%c4_132, %c8_133, %c0_134] : memref<10x32x32xf32, #tpu.memory_space<vmem>>, vector<1x16x32xf32>
    %122 = vector.shape_cast %121 : vector<1x16x32xf32> to vector<16x32xf32>
    %123 = vector.shape_cast %120 : vector<16x32xf32> to vector<1x16x32xf32>
    tpu.vector_store %arg8[%c4_132, %c8_133, %c0_134], %123 {strides = array<i32>} : memref<10x32x32xf32, #tpu.memory_space<vmem>>, vector<1x16x32xf32>,
    %124 = vector.extract_strided_slice %107 {offsets = [64, 0], sizes = [16, 32], strides = [1, 1]} : vector<128x32xf32> to vector<16x32xf32>
    %c5_135 = arith.constant 5 : index
    %c8_136 = arith.constant 8 : index
    %c0_137 = arith.constant 0 : index
    %125 = vector.load %arg8[%c5_135, %c8_136, %c0_137] : memref<10x32x32xf32, #tpu.memory_space<vmem>>, vector<1x16x32xf32>
    %126 = vector.shape_cast %125 : vector<1x16x32xf32> to vector<16x32xf32>
    %127 = vector.shape_cast %124 : vector<16x32xf32> to vector<1x16x32xf32>
    tpu.vector_store %arg8[%c5_135, %c8_136, %c0_137], %127 {strides = array<i32>} : memref<10x32x32xf32, #tpu.memory_space<vmem>>, vector<1x16x32xf32>,
    %128 = vector.extract_strided_slice %107 {offsets = [80, 0], sizes = [16, 32], strides = [1, 1]} : vector<128x32xf32> to vector<16x32xf32>
    %c6_138 = arith.constant 6 : index
    %c8_139 = arith.constant 8 : index
    %c0_140 = arith.constant 0 : index
    %129 = vector.load %arg8[%c6_138, %c8_139, %c0_140] : memref<10x32x32xf32, #tpu.memory_space<vmem>>, vector<1x16x32xf32>
    %130 = vector.shape_cast %129 : vector<1x16x32xf32> to vector<16x32xf32>
    %131 = vector.shape_cast %128 : vector<16x32xf32> to vector<1x16x32xf32>
    tpu.vector_store %arg8[%c6_138, %c8_139, %c0_140], %131 {strides = array<i32>} : memref<10x32x32xf32, #tpu.memory_space<vmem>>, vector<1x16x32xf32>,
    %132 = vector.extract_strided_slice %107 {offsets = [96, 0], sizes = [16, 32], strides = [1, 1]} : vector<128x32xf32> to vector<16x32xf32>
    %c7_141 = arith.constant 7 : index
    %c8_142 = arith.constant 8 : index
    %c0_143 = arith.constant 0 : index
    %133 = vector.load %arg8[%c7_141, %c8_142, %c0_143] : memref<10x32x32xf32, #tpu.memory_space<vmem>>, vector<1x16x32xf32>
    %134 = vector.shape_cast %133 : vector<1x16x32xf32> to vector<16x32xf32>
    %135 = vector.shape_cast %132 : vector<16x32xf32> to vector<1x16x32xf32>
    tpu.vector_store %arg8[%c7_141, %c8_142, %c0_143], %135 {strides = array<i32>} : memref<10x32x32xf32, #tpu.memory_space<vmem>>, vector<1x16x32xf32>,
    %136 = vector.extract_strided_slice %107 {offsets = [112, 0], sizes = [16, 32], strides = [1, 1]} : vector<128x32xf32> to vector<16x32xf32>
    %c8_144 = arith.constant 8 : index
    %c8_145 = arith.constant 8 : index
    %c0_146 = arith.constant 0 : index
    %137 = vector.load %arg8[%c8_144, %c8_145, %c0_146] : memref<10x32x32xf32, #tpu.memory_space<vmem>>, vector<1x16x32xf32>
    %138 = vector.shape_cast %137 : vector<1x16x32xf32> to vector<16x32xf32>
    %139 = vector.shape_cast %136 : vector<16x32xf32> to vector<1x16x32xf32>
    tpu.vector_store %arg8[%c8_144, %c8_145, %c0_146], %139 {strides = array<i32>} : memref<10x32x32xf32, #tpu.memory_space<vmem>>, vector<1x16x32xf32>,
    %c0_147 = arith.constant 0 : index
    %c6_148 = arith.constant 6 : index
    %c0_149 = arith.constant 0 : index
    %140 = vector.load %arg8[%c0_147, %c6_148, %c0_149] : memref<10x32x32xf32, #tpu.memory_space<vmem>>, vector<8x16x32xf32>
    %141 = vector.shape_cast %140 : vector<8x16x32xf32> to vector<128x32xf32>
    %c0_150 = arith.constant 0 : index
    %c0_151 = arith.constant 0 : index
    %142 = vector.load %arg9[%c0_150, %c0_151] : memref<128x288xf32, #tpu.memory_space<vmem>>, vector<128x32xf32>
    tpu.vector_store %arg9[%c0_150, %c0_151], %141 {strides = array<i32>} : memref<128x288xf32, #tpu.memory_space<vmem>>, vector<128x32xf32>,
    %c0_152 = arith.constant 0 : index
    %c8_153 = arith.constant 8 : index
    %c0_154 = arith.constant 0 : index
    %143 = vector.load %arg8[%c0_152, %c8_153, %c0_154] : memref<10x32x32xf32, #tpu.memory_space<vmem>>, vector<8x16x32xf32>
    %144 = vector.shape_cast %143 : vector<8x16x32xf32> to vector<128x32xf32>
    %c0_155 = arith.constant 0 : index
    %c32_156 = arith.constant 32 : index
    %145 = vector.load %arg9[%c0_155, %c32_156] : memref<128x288xf32, #tpu.memory_space<vmem>>, vector<128x32xf32>
    tpu.vector_store %arg9[%c0_155, %c32_156], %144 {strides = array<i32>} : memref<128x288xf32, #tpu.memory_space<vmem>>, vector<128x32xf32>,
    %c0_157 = arith.constant 0 : index
    %c10_158 = arith.constant 10 : index
    %c0_159 = arith.constant 0 : index
    %146 = vector.load %arg8[%c0_157, %c10_158, %c0_159] : memref<10x32x32xf32, #tpu.memory_space<vmem>>, vector<8x16x32xf32>
    %147 = vector.shape_cast %146 : vector<8x16x32xf32> to vector<128x32xf32>
    %c0_160 = arith.constant 0 : index
    %c64_161 = arith.constant 64 : index
    %148 = vector.load %arg9[%c0_160, %c64_161] : memref<128x288xf32, #tpu.memory_space<vmem>>, vector<128x32xf32>
    tpu.vector_store %arg9[%c0_160, %c64_161], %147 {strides = array<i32>} : memref<128x288xf32, #tpu.memory_space<vmem>>, vector<128x32xf32>,
    %c1_162 = arith.constant 1 : index
    %c6_163 = arith.constant 6 : index
    %c0_164 = arith.constant 0 : index
    %149 = vector.load %arg8[%c1_162, %c6_163, %c0_164] : memref<10x32x32xf32, #tpu.memory_space<vmem>>, vector<8x16x32xf32>
    %150 = vector.shape_cast %149 : vector<8x16x32xf32> to vector<128x32xf32>
    %c0_165 = arith.constant 0 : index
    %c96_166 = arith.constant 96 : index
    %151 = vector.load %arg9[%c0_165, %c96_166] : memref<128x288xf32, #tpu.memory_space<vmem>>, vector<128x32xf32>
    tpu.vector_store %arg9[%c0_165, %c96_166], %150 {strides = array<i32>} : memref<128x288xf32, #tpu.memory_space<vmem>>, vector<128x32xf32>,
    %c1_167 = arith.constant 1 : index
    %c8_168 = arith.constant 8 : index
    %c0_169 = arith.constant 0 : index
    %152 = vector.load %arg8[%c1_167, %c8_168, %c0_169] : memref<10x32x32xf32, #tpu.memory_space<vmem>>, vector<8x16x32xf32>
    %153 = vector.shape_cast %152 : vector<8x16x32xf32> to vector<128x32xf32>
    %c0_170 = arith.constant 0 : index
    %c128_171 = arith.constant 128 : index
    %154 = vector.load %arg9[%c0_170, %c128_171] : memref<128x288xf32, #tpu.memory_space<vmem>>, vector<128x32xf32>
    tpu.vector_store %arg9[%c0_170, %c128_171], %153 {strides = array<i32>} : memref<128x288xf32, #tpu.memory_space<vmem>>, vector<128x32xf32>,
    %c1_172 = arith.constant 1 : index
    %c10_173 = arith.constant 10 : index
    %c0_174 = arith.constant 0 : index
    %155 = vector.load %arg8[%c1_172, %c10_173, %c0_174] : memref<10x32x32xf32, #tpu.memory_space<vmem>>, vector<8x16x32xf32>
    %156 = vector.shape_cast %155 : vector<8x16x32xf32> to vector<128x32xf32>
    %c0_175 = arith.constant 0 : index
    %c160_176 = arith.constant 160 : index
    %157 = vector.load %arg9[%c0_175, %c160_176] : memref<128x288xf32, #tpu.memory_space<vmem>>, vector<128x32xf32>
    tpu.vector_store %arg9[%c0_175, %c160_176], %156 {strides = array<i32>} : memref<128x288xf32, #tpu.memory_space<vmem>>, vector<128x32xf32>,
    %c2_177 = arith.constant 2 : index
    %c6_178 = arith.constant 6 : index
    %c0_179 = arith.constant 0 : index
    %158 = vector.load %arg8[%c2_177, %c6_178, %c0_179] : memref<10x32x32xf32, #tpu.memory_space<vmem>>, vector<8x16x32xf32>
    %159 = vector.shape_cast %158 : vector<8x16x32xf32> to vector<128x32xf32>
    %c0_180 = arith.constant 0 : index
    %c192_181 = arith.constant 192 : index
    %160 = vector.load %arg9[%c0_180, %c192_181] : memref<128x288xf32, #tpu.memory_space<vmem>>, vector<128x32xf32>
    tpu.vector_store %arg9[%c0_180, %c192_181], %159 {strides = array<i32>} : memref<128x288xf32, #tpu.memory_space<vmem>>, vector<128x32xf32>,
    %c2_182 = arith.constant 2 : index
    %c8_183 = arith.constant 8 : index
    %c0_184 = arith.constant 0 : index
    %161 = vector.load %arg8[%c2_182, %c8_183, %c0_184] : memref<10x32x32xf32, #tpu.memory_space<vmem>>, vector<8x16x32xf32>
    %162 = vector.shape_cast %161 : vector<8x16x32xf32> to vector<128x32xf32>
    %c0_185 = arith.constant 0 : index
    %c224_186 = arith.constant 224 : index
    %163 = vector.load %arg9[%c0_185, %c224_186] : memref<128x288xf32, #tpu.memory_space<vmem>>, vector<128x32xf32>
    tpu.vector_store %arg9[%c0_185, %c224_186], %162 {strides = array<i32>} : memref<128x288xf32, #tpu.memory_space<vmem>>, vector<128x32xf32>,
    %c2_187 = arith.constant 2 : index
    %c10_188 = arith.constant 10 : index
    %c0_189 = arith.constant 0 : index
    %164 = vector.load %arg8[%c2_187, %c10_188, %c0_189] : memref<10x32x32xf32, #tpu.memory_space<vmem>>, vector<8x16x32xf32>
    %165 = vector.shape_cast %164 : vector<8x16x32xf32> to vector<128x32xf32>
    %c0_190 = arith.constant 0 : index
    %c256_191 = arith.constant 256 : index
    %166 = vector.load %arg9[%c0_190, %c256_191] : memref<128x288xf32, #tpu.memory_space<vmem>>, vector<128x32xf32>
    tpu.vector_store %arg9[%c0_190, %c256_191], %165 {strides = array<i32>} : memref<128x288xf32, #tpu.memory_space<vmem>>, vector<128x32xf32>,
    %c0_192 = arith.constant 0 : index
    %c0_193 = arith.constant 0 : index
    %167 = vector.load %arg9[%c0_192, %c0_193] : memref<128x288xf32, #tpu.memory_space<vmem>>, vector<128x288xf32>
    %c2_194 = arith.constant 2 : index
    %c0_195 = arith.constant 0 : index
    %c0_196 = arith.constant 0 : index
    %168 = vector.load %arg2[%c2_194, %c0_195, %c0_196] : memref<5x288x32xf32, #tpu.memory_space<vmem>>, vector<1x288x32xf32>
    %169 = vector.shape_cast %168 : vector<1x288x32xf32> to vector<288x32xf32>
    %cst_197 = arith.constant dense<0.000000e+00> : vector<128x32xf32>
    %170 = tpu.matmul %167, %169, %cst_197 {dimension_numbers = #tpu.dot_dimension_numbers<[1], [0], [0], [1], [0, 0, 1, 1], [], []>} : vector<128x288xf32>, vector<288x32xf32>, vector<128x32xf32> -> vector<128x32xf32>
    %c2_198 = arith.constant 2 : index
    %c0_199 = arith.constant 0 : index
    %171 = vector.load %arg3[%c2_198, %c0_199] : memref<5x32xf32, #tpu.memory_space<vmem>>, vector<1x32xf32>
    %172 = vector.broadcast %171 : vector<1x32xf32> to vector<128x32xf32>
    %173 = arith.addf %170, %172 : vector<128x32xf32>
    %cst_200 = arith.constant 0.000000e+00 : f32
    %174 = vector.broadcast %cst_200 : f32 to vector<128x32xf32>
    %175 = arith.maximumf %173, %174 : vector<128x32xf32>
    %176 = vector.extract_strided_slice %175 {offsets = [0, 0], sizes = [16, 32], strides = [1, 1]} : vector<128x32xf32> to vector<16x32xf32>
    %c1_201 = arith.constant 1 : index
    %c8_202 = arith.constant 8 : index
    %c0_203 = arith.constant 0 : index
    %177 = vector.load %arg8[%c1_201, %c8_202, %c0_203] : memref<10x32x32xf32, #tpu.memory_space<vmem>>, vector<1x16x32xf32>
    %178 = vector.shape_cast %177 : vector<1x16x32xf32> to vector<16x32xf32>
    %179 = vector.shape_cast %176 : vector<16x32xf32> to vector<1x16x32xf32>
    tpu.vector_store %arg8[%c1_201, %c8_202, %c0_203], %179 {strides = array<i32>} : memref<10x32x32xf32, #tpu.memory_space<vmem>>, vector<1x16x32xf32>,
    %180 = vector.extract_strided_slice %175 {offsets = [16, 0], sizes = [16, 32], strides = [1, 1]} : vector<128x32xf32> to vector<16x32xf32>
    %c2_204 = arith.constant 2 : index
    %c8_205 = arith.constant 8 : index
    %c0_206 = arith.constant 0 : index
    %181 = vector.load %arg8[%c2_204, %c8_205, %c0_206] : memref<10x32x32xf32, #tpu.memory_space<vmem>>, vector<1x16x32xf32>
    %182 = vector.shape_cast %181 : vector<1x16x32xf32> to vector<16x32xf32>
    %183 = vector.shape_cast %180 : vector<16x32xf32> to vector<1x16x32xf32>
    tpu.vector_store %arg8[%c2_204, %c8_205, %c0_206], %183 {strides = array<i32>} : memref<10x32x32xf32, #tpu.memory_space<vmem>>, vector<1x16x32xf32>,
    %184 = vector.extract_strided_slice %175 {offsets = [32, 0], sizes = [16, 32], strides = [1, 1]} : vector<128x32xf32> to vector<16x32xf32>
    %c3_207 = arith.constant 3 : index
    %c8_208 = arith.constant 8 : index
    %c0_209 = arith.constant 0 : index
    %185 = vector.load %arg8[%c3_207, %c8_208, %c0_209] : memref<10x32x32xf32, #tpu.memory_space<vmem>>, vector<1x16x32xf32>
    %186 = vector.shape_cast %185 : vector<1x16x32xf32> to vector<16x32xf32>
    %187 = vector.shape_cast %184 : vector<16x32xf32> to vector<1x16x32xf32>
    tpu.vector_store %arg8[%c3_207, %c8_208, %c0_209], %187 {strides = array<i32>} : memref<10x32x32xf32, #tpu.memory_space<vmem>>, vector<1x16x32xf32>,
    %188 = vector.extract_strided_slice %175 {offsets = [48, 0], sizes = [16, 32], strides = [1, 1]} : vector<128x32xf32> to vector<16x32xf32>
    %c4_210 = arith.constant 4 : index
    %c8_211 = arith.constant 8 : index
    %c0_212 = arith.constant 0 : index
    %189 = vector.load %arg8[%c4_210, %c8_211, %c0_212] : memref<10x32x32xf32, #tpu.memory_space<vmem>>, vector<1x16x32xf32>
    %190 = vector.shape_cast %189 : vector<1x16x32xf32> to vector<16x32xf32>
    %191 = vector.shape_cast %188 : vector<16x32xf32> to vector<1x16x32xf32>
    tpu.vector_store %arg8[%c4_210, %c8_211, %c0_212], %191 {strides = array<i32>} : memref<10x32x32xf32, #tpu.memory_space<vmem>>, vector<1x16x32xf32>,
    %192 = vector.extract_strided_slice %175 {offsets = [64, 0], sizes = [16, 32], strides = [1, 1]} : vector<128x32xf32> to vector<16x32xf32>
    %c5_213 = arith.constant 5 : index
    %c8_214 = arith.constant 8 : index
    %c0_215 = arith.constant 0 : index
    %193 = vector.load %arg8[%c5_213, %c8_214, %c0_215] : memref<10x32x32xf32, #tpu.memory_space<vmem>>, vector<1x16x32xf32>
    %194 = vector.shape_cast %193 : vector<1x16x32xf32> to vector<16x32xf32>
    %195 = vector.shape_cast %192 : vector<16x32xf32> to vector<1x16x32xf32>
    tpu.vector_store %arg8[%c5_213, %c8_214, %c0_215], %195 {strides = array<i32>} : memref<10x32x32xf32, #tpu.memory_space<vmem>>, vector<1x16x32xf32>,
    %196 = vector.extract_strided_slice %175 {offsets = [80, 0], sizes = [16, 32], strides = [1, 1]} : vector<128x32xf32> to vector<16x32xf32>
    %c6_216 = arith.constant 6 : index
    %c8_217 = arith.constant 8 : index
    %c0_218 = arith.constant 0 : index
    %197 = vector.load %arg8[%c6_216, %c8_217, %c0_218] : memref<10x32x32xf32, #tpu.memory_space<vmem>>, vector<1x16x32xf32>
    %198 = vector.shape_cast %197 : vector<1x16x32xf32> to vector<16x32xf32>
    %199 = vector.shape_cast %196 : vector<16x32xf32> to vector<1x16x32xf32>
    tpu.vector_store %arg8[%c6_216, %c8_217, %c0_218], %199 {strides = array<i32>} : memref<10x32x32xf32, #tpu.memory_space<vmem>>, vector<1x16x32xf32>,
    %200 = vector.extract_strided_slice %175 {offsets = [96, 0], sizes = [16, 32], strides = [1, 1]} : vector<128x32xf32> to vector<16x32xf32>
    %c7_219 = arith.constant 7 : index
    %c8_220 = arith.constant 8 : index
    %c0_221 = arith.constant 0 : index
    %201 = vector.load %arg8[%c7_219, %c8_220, %c0_221] : memref<10x32x32xf32, #tpu.memory_space<vmem>>, vector<1x16x32xf32>
    %202 = vector.shape_cast %201 : vector<1x16x32xf32> to vector<16x32xf32>
    %203 = vector.shape_cast %200 : vector<16x32xf32> to vector<1x16x32xf32>
    tpu.vector_store %arg8[%c7_219, %c8_220, %c0_221], %203 {strides = array<i32>} : memref<10x32x32xf32, #tpu.memory_space<vmem>>, vector<1x16x32xf32>,
    %204 = vector.extract_strided_slice %175 {offsets = [112, 0], sizes = [16, 32], strides = [1, 1]} : vector<128x32xf32> to vector<16x32xf32>
    %c8_222 = arith.constant 8 : index
    %c8_223 = arith.constant 8 : index
    %c0_224 = arith.constant 0 : index
    %205 = vector.load %arg8[%c8_222, %c8_223, %c0_224] : memref<10x32x32xf32, #tpu.memory_space<vmem>>, vector<1x16x32xf32>
    %206 = vector.shape_cast %205 : vector<1x16x32xf32> to vector<16x32xf32>
    %207 = vector.shape_cast %204 : vector<16x32xf32> to vector<1x16x32xf32>
    tpu.vector_store %arg8[%c8_222, %c8_223, %c0_224], %207 {strides = array<i32>} : memref<10x32x32xf32, #tpu.memory_space<vmem>>, vector<1x16x32xf32>,
    %c0_225 = arith.constant 0 : index
    %c6_226 = arith.constant 6 : index
    %c0_227 = arith.constant 0 : index
    %208 = vector.load %arg8[%c0_225, %c6_226, %c0_227] : memref<10x32x32xf32, #tpu.memory_space<vmem>>, vector<8x16x32xf32>
    %209 = vector.shape_cast %208 : vector<8x16x32xf32> to vector<128x32xf32>
    %c0_228 = arith.constant 0 : index
    %c0_229 = arith.constant 0 : index
    %210 = vector.load %arg9[%c0_228, %c0_229] : memref<128x288xf32, #tpu.memory_space<vmem>>, vector<128x32xf32>
    tpu.vector_store %arg9[%c0_228, %c0_229], %209 {strides = array<i32>} : memref<128x288xf32, #tpu.memory_space<vmem>>, vector<128x32xf32>,
    %c0_230 = arith.constant 0 : index
    %c8_231 = arith.constant 8 : index
    %c0_232 = arith.constant 0 : index
    %211 = vector.load %arg8[%c0_230, %c8_231, %c0_232] : memref<10x32x32xf32, #tpu.memory_space<vmem>>, vector<8x16x32xf32>
    %212 = vector.shape_cast %211 : vector<8x16x32xf32> to vector<128x32xf32>
    %c0_233 = arith.constant 0 : index
    %c32_234 = arith.constant 32 : index
    %213 = vector.load %arg9[%c0_233, %c32_234] : memref<128x288xf32, #tpu.memory_space<vmem>>, vector<128x32xf32>
    tpu.vector_store %arg9[%c0_233, %c32_234], %212 {strides = array<i32>} : memref<128x288xf32, #tpu.memory_space<vmem>>, vector<128x32xf32>,
    %c0_235 = arith.constant 0 : index
    %c10_236 = arith.constant 10 : index
    %c0_237 = arith.constant 0 : index
    %214 = vector.load %arg8[%c0_235, %c10_236, %c0_237] : memref<10x32x32xf32, #tpu.memory_space<vmem>>, vector<8x16x32xf32>
    %215 = vector.shape_cast %214 : vector<8x16x32xf32> to vector<128x32xf32>
    %c0_238 = arith.constant 0 : index
    %c64_239 = arith.constant 64 : index
    %216 = vector.load %arg9[%c0_238, %c64_239] : memref<128x288xf32, #tpu.memory_space<vmem>>, vector<128x32xf32>
    tpu.vector_store %arg9[%c0_238, %c64_239], %215 {strides = array<i32>} : memref<128x288xf32, #tpu.memory_space<vmem>>, vector<128x32xf32>,
    %c1_240 = arith.constant 1 : index
    %c6_241 = arith.constant 6 : index
    %c0_242 = arith.constant 0 : index
    %217 = vector.load %arg8[%c1_240, %c6_241, %c0_242] : memref<10x32x32xf32, #tpu.memory_space<vmem>>, vector<8x16x32xf32>
    %218 = vector.shape_cast %217 : vector<8x16x32xf32> to vector<128x32xf32>
    %c0_243 = arith.constant 0 : index
    %c96_244 = arith.constant 96 : index
    %219 = vector.load %arg9[%c0_243, %c96_244] : memref<128x288xf32, #tpu.memory_space<vmem>>, vector<128x32xf32>
    tpu.vector_store %arg9[%c0_243, %c96_244], %218 {strides = array<i32>} : memref<128x288xf32, #tpu.memory_space<vmem>>, vector<128x32xf32>,
    %c1_245 = arith.constant 1 : index
    %c8_246 = arith.constant 8 : index
    %c0_247 = arith.constant 0 : index
    %220 = vector.load %arg8[%c1_245, %c8_246, %c0_247] : memref<10x32x32xf32, #tpu.memory_space<vmem>>, vector<8x16x32xf32>
    %221 = vector.shape_cast %220 : vector<8x16x32xf32> to vector<128x32xf32>
    %c0_248 = arith.constant 0 : index
    %c128_249 = arith.constant 128 : index
    %222 = vector.load %arg9[%c0_248, %c128_249] : memref<128x288xf32, #tpu.memory_space<vmem>>, vector<128x32xf32>
    tpu.vector_store %arg9[%c0_248, %c128_249], %221 {strides = array<i32>} : memref<128x288xf32, #tpu.memory_space<vmem>>, vector<128x32xf32>,
    %c1_250 = arith.constant 1 : index
    %c10_251 = arith.constant 10 : index
    %c0_252 = arith.constant 0 : index
    %223 = vector.load %arg8[%c1_250, %c10_251, %c0_252] : memref<10x32x32xf32, #tpu.memory_space<vmem>>, vector<8x16x32xf32>
    %224 = vector.shape_cast %223 : vector<8x16x32xf32> to vector<128x32xf32>
    %c0_253 = arith.constant 0 : index
    %c160_254 = arith.constant 160 : index
    %225 = vector.load %arg9[%c0_253, %c160_254] : memref<128x288xf32, #tpu.memory_space<vmem>>, vector<128x32xf32>
    tpu.vector_store %arg9[%c0_253, %c160_254], %224 {strides = array<i32>} : memref<128x288xf32, #tpu.memory_space<vmem>>, vector<128x32xf32>,
    %c2_255 = arith.constant 2 : index
    %c6_256 = arith.constant 6 : index
    %c0_257 = arith.constant 0 : index
    %226 = vector.load %arg8[%c2_255, %c6_256, %c0_257] : memref<10x32x32xf32, #tpu.memory_space<vmem>>, vector<8x16x32xf32>
    %227 = vector.shape_cast %226 : vector<8x16x32xf32> to vector<128x32xf32>
    %c0_258 = arith.constant 0 : index
    %c192_259 = arith.constant 192 : index
    %228 = vector.load %arg9[%c0_258, %c192_259] : memref<128x288xf32, #tpu.memory_space<vmem>>, vector<128x32xf32>
    tpu.vector_store %arg9[%c0_258, %c192_259], %227 {strides = array<i32>} : memref<128x288xf32, #tpu.memory_space<vmem>>, vector<128x32xf32>,
    %c2_260 = arith.constant 2 : index
    %c8_261 = arith.constant 8 : index
    %c0_262 = arith.constant 0 : index
    %229 = vector.load %arg8[%c2_260, %c8_261, %c0_262] : memref<10x32x32xf32, #tpu.memory_space<vmem>>, vector<8x16x32xf32>
    %230 = vector.shape_cast %229 : vector<8x16x32xf32> to vector<128x32xf32>
    %c0_263 = arith.constant 0 : index
    %c224_264 = arith.constant 224 : index
    %231 = vector.load %arg9[%c0_263, %c224_264] : memref<128x288xf32, #tpu.memory_space<vmem>>, vector<128x32xf32>
    tpu.vector_store %arg9[%c0_263, %c224_264], %230 {strides = array<i32>} : memref<128x288xf32, #tpu.memory_space<vmem>>, vector<128x32xf32>,
    %c2_265 = arith.constant 2 : index
    %c10_266 = arith.constant 10 : index
    %c0_267 = arith.constant 0 : index
    %232 = vector.load %arg8[%c2_265, %c10_266, %c0_267] : memref<10x32x32xf32, #tpu.memory_space<vmem>>, vector<8x16x32xf32>
    %233 = vector.shape_cast %232 : vector<8x16x32xf32> to vector<128x32xf32>
    %c0_268 = arith.constant 0 : index
    %c256_269 = arith.constant 256 : index
    %234 = vector.load %arg9[%c0_268, %c256_269] : memref<128x288xf32, #tpu.memory_space<vmem>>, vector<128x32xf32>
    tpu.vector_store %arg9[%c0_268, %c256_269], %233 {strides = array<i32>} : memref<128x288xf32, #tpu.memory_space<vmem>>, vector<128x32xf32>,
    %c0_270 = arith.constant 0 : index
    %c0_271 = arith.constant 0 : index
    %235 = vector.load %arg9[%c0_270, %c0_271] : memref<128x288xf32, #tpu.memory_space<vmem>>, vector<128x288xf32>
    %c3_272 = arith.constant 3 : index
    %c0_273 = arith.constant 0 : index
    %c0_274 = arith.constant 0 : index
    %236 = vector.load %arg2[%c3_272, %c0_273, %c0_274] : memref<5x288x32xf32, #tpu.memory_space<vmem>>, vector<1x288x32xf32>
    %237 = vector.shape_cast %236 : vector<1x288x32xf32> to vector<288x32xf32>
    %cst_275 = arith.constant dense<0.000000e+00> : vector<128x32xf32>
    %238 = tpu.matmul %235, %237, %cst_275 {dimension_numbers = #tpu.dot_dimension_numbers<[1], [0], [0], [1], [0, 0, 1, 1], [], []>} : vector<128x288xf32>, vector<288x32xf32>, vector<128x32xf32> -> vector<128x32xf32>
    %c3_276 = arith.constant 3 : index
    %c0_277 = arith.constant 0 : index
    %239 = vector.load %arg3[%c3_276, %c0_277] : memref<5x32xf32, #tpu.memory_space<vmem>>, vector<1x32xf32>
    %240 = vector.broadcast %239 : vector<1x32xf32> to vector<128x32xf32>
    %241 = arith.addf %238, %240 : vector<128x32xf32>
    %cst_278 = arith.constant 0.000000e+00 : f32
    %242 = vector.broadcast %cst_278 : f32 to vector<128x32xf32>
    %243 = arith.maximumf %241, %242 : vector<128x32xf32>
    %244 = vector.extract_strided_slice %243 {offsets = [0, 0], sizes = [16, 32], strides = [1, 1]} : vector<128x32xf32> to vector<16x32xf32>
    %c1_279 = arith.constant 1 : index
    %c8_280 = arith.constant 8 : index
    %c0_281 = arith.constant 0 : index
    %245 = vector.load %arg8[%c1_279, %c8_280, %c0_281] : memref<10x32x32xf32, #tpu.memory_space<vmem>>, vector<1x16x32xf32>
    %246 = vector.shape_cast %245 : vector<1x16x32xf32> to vector<16x32xf32>
    %247 = vector.shape_cast %244 : vector<16x32xf32> to vector<1x16x32xf32>
    tpu.vector_store %arg8[%c1_279, %c8_280, %c0_281], %247 {strides = array<i32>} : memref<10x32x32xf32, #tpu.memory_space<vmem>>, vector<1x16x32xf32>,
    %248 = vector.extract_strided_slice %243 {offsets = [16, 0], sizes = [16, 32], strides = [1, 1]} : vector<128x32xf32> to vector<16x32xf32>
    %c2_282 = arith.constant 2 : index
    %c8_283 = arith.constant 8 : index
    %c0_284 = arith.constant 0 : index
    %249 = vector.load %arg8[%c2_282, %c8_283, %c0_284] : memref<10x32x32xf32, #tpu.memory_space<vmem>>, vector<1x16x32xf32>
    %250 = vector.shape_cast %249 : vector<1x16x32xf32> to vector<16x32xf32>
    %251 = vector.shape_cast %248 : vector<16x32xf32> to vector<1x16x32xf32>
    tpu.vector_store %arg8[%c2_282, %c8_283, %c0_284], %251 {strides = array<i32>} : memref<10x32x32xf32, #tpu.memory_space<vmem>>, vector<1x16x32xf32>,
    %252 = vector.extract_strided_slice %243 {offsets = [32, 0], sizes = [16, 32], strides = [1, 1]} : vector<128x32xf32> to vector<16x32xf32>
    %c3_285 = arith.constant 3 : index
    %c8_286 = arith.constant 8 : index
    %c0_287 = arith.constant 0 : index
    %253 = vector.load %arg8[%c3_285, %c8_286, %c0_287] : memref<10x32x32xf32, #tpu.memory_space<vmem>>, vector<1x16x32xf32>
    %254 = vector.shape_cast %253 : vector<1x16x32xf32> to vector<16x32xf32>
    %255 = vector.shape_cast %252 : vector<16x32xf32> to vector<1x16x32xf32>
    tpu.vector_store %arg8[%c3_285, %c8_286, %c0_287], %255 {strides = array<i32>} : memref<10x32x32xf32, #tpu.memory_space<vmem>>, vector<1x16x32xf32>,
    %256 = vector.extract_strided_slice %243 {offsets = [48, 0], sizes = [16, 32], strides = [1, 1]} : vector<128x32xf32> to vector<16x32xf32>
    %c4_288 = arith.constant 4 : index
    %c8_289 = arith.constant 8 : index
    %c0_290 = arith.constant 0 : index
    %257 = vector.load %arg8[%c4_288, %c8_289, %c0_290] : memref<10x32x32xf32, #tpu.memory_space<vmem>>, vector<1x16x32xf32>
    %258 = vector.shape_cast %257 : vector<1x16x32xf32> to vector<16x32xf32>
    %259 = vector.shape_cast %256 : vector<16x32xf32> to vector<1x16x32xf32>
    tpu.vector_store %arg8[%c4_288, %c8_289, %c0_290], %259 {strides = array<i32>} : memref<10x32x32xf32, #tpu.memory_space<vmem>>, vector<1x16x32xf32>,
    %260 = vector.extract_strided_slice %243 {offsets = [64, 0], sizes = [16, 32], strides = [1, 1]} : vector<128x32xf32> to vector<16x32xf32>
    %c5_291 = arith.constant 5 : index
    %c8_292 = arith.constant 8 : index
    %c0_293 = arith.constant 0 : index
    %261 = vector.load %arg8[%c5_291, %c8_292, %c0_293] : memref<10x32x32xf32, #tpu.memory_space<vmem>>, vector<1x16x32xf32>
    %262 = vector.shape_cast %261 : vector<1x16x32xf32> to vector<16x32xf32>
    %263 = vector.shape_cast %260 : vector<16x32xf32> to vector<1x16x32xf32>
    tpu.vector_store %arg8[%c5_291, %c8_292, %c0_293], %263 {strides = array<i32>} : memref<10x32x32xf32, #tpu.memory_space<vmem>>, vector<1x16x32xf32>,
    %264 = vector.extract_strided_slice %243 {offsets = [80, 0], sizes = [16, 32], strides = [1, 1]} : vector<128x32xf32> to vector<16x32xf32>
    %c6_294 = arith.constant 6 : index
    %c8_295 = arith.constant 8 : index
    %c0_296 = arith.constant 0 : index
    %265 = vector.load %arg8[%c6_294, %c8_295, %c0_296] : memref<10x32x32xf32, #tpu.memory_space<vmem>>, vector<1x16x32xf32>
    %266 = vector.shape_cast %265 : vector<1x16x32xf32> to vector<16x32xf32>
    %267 = vector.shape_cast %264 : vector<16x32xf32> to vector<1x16x32xf32>
    tpu.vector_store %arg8[%c6_294, %c8_295, %c0_296], %267 {strides = array<i32>} : memref<10x32x32xf32, #tpu.memory_space<vmem>>, vector<1x16x32xf32>,
    %268 = vector.extract_strided_slice %243 {offsets = [96, 0], sizes = [16, 32], strides = [1, 1]} : vector<128x32xf32> to vector<16x32xf32>
    %c7_297 = arith.constant 7 : index
    %c8_298 = arith.constant 8 : index
    %c0_299 = arith.constant 0 : index
    %269 = vector.load %arg8[%c7_297, %c8_298, %c0_299] : memref<10x32x32xf32, #tpu.memory_space<vmem>>, vector<1x16x32xf32>
    %270 = vector.shape_cast %269 : vector<1x16x32xf32> to vector<16x32xf32>
    %271 = vector.shape_cast %268 : vector<16x32xf32> to vector<1x16x32xf32>
    tpu.vector_store %arg8[%c7_297, %c8_298, %c0_299], %271 {strides = array<i32>} : memref<10x32x32xf32, #tpu.memory_space<vmem>>, vector<1x16x32xf32>,
    %272 = vector.extract_strided_slice %243 {offsets = [112, 0], sizes = [16, 32], strides = [1, 1]} : vector<128x32xf32> to vector<16x32xf32>
    %c8_300 = arith.constant 8 : index
    %c8_301 = arith.constant 8 : index
    %c0_302 = arith.constant 0 : index
    %273 = vector.load %arg8[%c8_300, %c8_301, %c0_302] : memref<10x32x32xf32, #tpu.memory_space<vmem>>, vector<1x16x32xf32>
    %274 = vector.shape_cast %273 : vector<1x16x32xf32> to vector<16x32xf32>
    %275 = vector.shape_cast %272 : vector<16x32xf32> to vector<1x16x32xf32>
    tpu.vector_store %arg8[%c8_300, %c8_301, %c0_302], %275 {strides = array<i32>} : memref<10x32x32xf32, #tpu.memory_space<vmem>>, vector<1x16x32xf32>,
    %c0_303 = arith.constant 0 : index
    %c6_304 = arith.constant 6 : index
    %c0_305 = arith.constant 0 : index
    %276 = vector.load %arg8[%c0_303, %c6_304, %c0_305] : memref<10x32x32xf32, #tpu.memory_space<vmem>>, vector<8x16x32xf32>
    %277 = vector.shape_cast %276 : vector<8x16x32xf32> to vector<128x32xf32>
    %c0_306 = arith.constant 0 : index
    %c0_307 = arith.constant 0 : index
    %278 = vector.load %arg9[%c0_306, %c0_307] : memref<128x288xf32, #tpu.memory_space<vmem>>, vector<128x32xf32>
    tpu.vector_store %arg9[%c0_306, %c0_307], %277 {strides = array<i32>} : memref<128x288xf32, #tpu.memory_space<vmem>>, vector<128x32xf32>,
    %c0_308 = arith.constant 0 : index
    %c8_309 = arith.constant 8 : index
    %c0_310 = arith.constant 0 : index
    %279 = vector.load %arg8[%c0_308, %c8_309, %c0_310] : memref<10x32x32xf32, #tpu.memory_space<vmem>>, vector<8x16x32xf32>
    %280 = vector.shape_cast %279 : vector<8x16x32xf32> to vector<128x32xf32>
    %c0_311 = arith.constant 0 : index
    %c32_312 = arith.constant 32 : index
    %281 = vector.load %arg9[%c0_311, %c32_312] : memref<128x288xf32, #tpu.memory_space<vmem>>, vector<128x32xf32>
    tpu.vector_store %arg9[%c0_311, %c32_312], %280 {strides = array<i32>} : memref<128x288xf32, #tpu.memory_space<vmem>>, vector<128x32xf32>,
    %c0_313 = arith.constant 0 : index
    %c10_314 = arith.constant 10 : index
    %c0_315 = arith.constant 0 : index
    %282 = vector.load %arg8[%c0_313, %c10_314, %c0_315] : memref<10x32x32xf32, #tpu.memory_space<vmem>>, vector<8x16x32xf32>
    %283 = vector.shape_cast %282 : vector<8x16x32xf32> to vector<128x32xf32>
    %c0_316 = arith.constant 0 : index
    %c64_317 = arith.constant 64 : index
    %284 = vector.load %arg9[%c0_316, %c64_317] : memref<128x288xf32, #tpu.memory_space<vmem>>, vector<128x32xf32>
    tpu.vector_store %arg9[%c0_316, %c64_317], %283 {strides = array<i32>} : memref<128x288xf32, #tpu.memory_space<vmem>>, vector<128x32xf32>,
    %c1_318 = arith.constant 1 : index
    %c6_319 = arith.constant 6 : index
    %c0_320 = arith.constant 0 : index
    %285 = vector.load %arg8[%c1_318, %c6_319, %c0_320] : memref<10x32x32xf32, #tpu.memory_space<vmem>>, vector<8x16x32xf32>
    %286 = vector.shape_cast %285 : vector<8x16x32xf32> to vector<128x32xf32>
    %c0_321 = arith.constant 0 : index
    %c96_322 = arith.constant 96 : index
    %287 = vector.load %arg9[%c0_321, %c96_322] : memref<128x288xf32, #tpu.memory_space<vmem>>, vector<128x32xf32>
    tpu.vector_store %arg9[%c0_321, %c96_322], %286 {strides = array<i32>} : memref<128x288xf32, #tpu.memory_space<vmem>>, vector<128x32xf32>,
    %c1_323 = arith.constant 1 : index
    %c8_324 = arith.constant 8 : index
    %c0_325 = arith.constant 0 : index
    %288 = vector.load %arg8[%c1_323, %c8_324, %c0_325] : memref<10x32x32xf32, #tpu.memory_space<vmem>>, vector<8x16x32xf32>
    %289 = vector.shape_cast %288 : vector<8x16x32xf32> to vector<128x32xf32>
    %c0_326 = arith.constant 0 : index
    %c128_327 = arith.constant 128 : index
    %290 = vector.load %arg9[%c0_326, %c128_327] : memref<128x288xf32, #tpu.memory_space<vmem>>, vector<128x32xf32>
    tpu.vector_store %arg9[%c0_326, %c128_327], %289 {strides = array<i32>} : memref<128x288xf32, #tpu.memory_space<vmem>>, vector<128x32xf32>,
    %c1_328 = arith.constant 1 : index
    %c10_329 = arith.constant 10 : index
    %c0_330 = arith.constant 0 : index
    %291 = vector.load %arg8[%c1_328, %c10_329, %c0_330] : memref<10x32x32xf32, #tpu.memory_space<vmem>>, vector<8x16x32xf32>
    %292 = vector.shape_cast %291 : vector<8x16x32xf32> to vector<128x32xf32>
    %c0_331 = arith.constant 0 : index
    %c160_332 = arith.constant 160 : index
    %293 = vector.load %arg9[%c0_331, %c160_332] : memref<128x288xf32, #tpu.memory_space<vmem>>, vector<128x32xf32>
    tpu.vector_store %arg9[%c0_331, %c160_332], %292 {strides = array<i32>} : memref<128x288xf32, #tpu.memory_space<vmem>>, vector<128x32xf32>,
    %c2_333 = arith.constant 2 : index
    %c6_334 = arith.constant 6 : index
    %c0_335 = arith.constant 0 : index
    %294 = vector.load %arg8[%c2_333, %c6_334, %c0_335] : memref<10x32x32xf32, #tpu.memory_space<vmem>>, vector<8x16x32xf32>
    %295 = vector.shape_cast %294 : vector<8x16x32xf32> to vector<128x32xf32>
    %c0_336 = arith.constant 0 : index
    %c192_337 = arith.constant 192 : index
    %296 = vector.load %arg9[%c0_336, %c192_337] : memref<128x288xf32, #tpu.memory_space<vmem>>, vector<128x32xf32>
    tpu.vector_store %arg9[%c0_336, %c192_337], %295 {strides = array<i32>} : memref<128x288xf32, #tpu.memory_space<vmem>>, vector<128x32xf32>,
    %c2_338 = arith.constant 2 : index
    %c8_339 = arith.constant 8 : index
    %c0_340 = arith.constant 0 : index
    %297 = vector.load %arg8[%c2_338, %c8_339, %c0_340] : memref<10x32x32xf32, #tpu.memory_space<vmem>>, vector<8x16x32xf32>
    %298 = vector.shape_cast %297 : vector<8x16x32xf32> to vector<128x32xf32>
    %c0_341 = arith.constant 0 : index
    %c224_342 = arith.constant 224 : index
    %299 = vector.load %arg9[%c0_341, %c224_342] : memref<128x288xf32, #tpu.memory_space<vmem>>, vector<128x32xf32>
    tpu.vector_store %arg9[%c0_341, %c224_342], %298 {strides = array<i32>} : memref<128x288xf32, #tpu.memory_space<vmem>>, vector<128x32xf32>,
    %c2_343 = arith.constant 2 : index
    %c10_344 = arith.constant 10 : index
    %c0_345 = arith.constant 0 : index
    %300 = vector.load %arg8[%c2_343, %c10_344, %c0_345] : memref<10x32x32xf32, #tpu.memory_space<vmem>>, vector<8x16x32xf32>
    %301 = vector.shape_cast %300 : vector<8x16x32xf32> to vector<128x32xf32>
    %c0_346 = arith.constant 0 : index
    %c256_347 = arith.constant 256 : index
    %302 = vector.load %arg9[%c0_346, %c256_347] : memref<128x288xf32, #tpu.memory_space<vmem>>, vector<128x32xf32>
    tpu.vector_store %arg9[%c0_346, %c256_347], %301 {strides = array<i32>} : memref<128x288xf32, #tpu.memory_space<vmem>>, vector<128x32xf32>,
    %c0_348 = arith.constant 0 : index
    %c0_349 = arith.constant 0 : index
    %303 = vector.load %arg9[%c0_348, %c0_349] : memref<128x288xf32, #tpu.memory_space<vmem>>, vector<128x288xf32>
    %c4_350 = arith.constant 4 : index
    %c0_351 = arith.constant 0 : index
    %c0_352 = arith.constant 0 : index
    %304 = vector.load %arg2[%c4_350, %c0_351, %c0_352] : memref<5x288x32xf32, #tpu.memory_space<vmem>>, vector<1x288x32xf32>
    %305 = vector.shape_cast %304 : vector<1x288x32xf32> to vector<288x32xf32>
    %cst_353 = arith.constant dense<0.000000e+00> : vector<128x32xf32>
    %306 = tpu.matmul %303, %305, %cst_353 {dimension_numbers = #tpu.dot_dimension_numbers<[1], [0], [0], [1], [0, 0, 1, 1], [], []>} : vector<128x288xf32>, vector<288x32xf32>, vector<128x32xf32> -> vector<128x32xf32>
    %c4_354 = arith.constant 4 : index
    %c0_355 = arith.constant 0 : index
    %307 = vector.load %arg3[%c4_354, %c0_355] : memref<5x32xf32, #tpu.memory_space<vmem>>, vector<1x32xf32>
    %308 = vector.broadcast %307 : vector<1x32xf32> to vector<128x32xf32>
    %309 = arith.addf %306, %308 : vector<128x32xf32>
    %cst_356 = arith.constant 0.000000e+00 : f32
    %310 = vector.broadcast %cst_356 : f32 to vector<128x32xf32>
    %311 = arith.maximumf %309, %310 : vector<128x32xf32>
    %c0_357 = arith.constant 0 : index
    %c0_358 = arith.constant 0 : index
    %312 = vector.load %arg10[%c0_357, %c0_358] : memref<128x32xf32, #tpu.memory_space<vmem>>, vector<128x32xf32>
    tpu.vector_store %arg10[%c0_357, %c0_358], %311 {strides = array<i32>} : memref<128x32xf32, #tpu.memory_space<vmem>>, vector<128x32xf32>,
    %c0_359 = arith.constant 0 : index
    %c0_360 = arith.constant 0 : index
    %313 = vector.load %arg10[%c0_359, %c0_360] : memref<128x32xf32, #tpu.memory_space<vmem>>, vector<2x32xf32>
    %c0_361 = arith.constant 0 : index
    %c0_362 = arith.constant 0 : index
    %314 = vector.load %arg11[%c0_361, %c0_362] : memref<2x2048xf32, #tpu.memory_space<vmem>>, vector<2x32xf32>
    tpu.vector_store %arg11[%c0_361, %c0_362], %313 {strides = array<i32>} : memref<2x2048xf32, #tpu.memory_space<vmem>>, vector<2x32xf32>,
    %c2_363 = arith.constant 2 : index
    %c0_364 = arith.constant 0 : index
    %315 = vector.load %arg10[%c2_363, %c0_364] : memref<128x32xf32, #tpu.memory_space<vmem>>, vector<2x32xf32>
    %c0_365 = arith.constant 0 : index
    %c32_366 = arith.constant 32 : index
    %316 = vector.load %arg11[%c0_365, %c32_366] : memref<2x2048xf32, #tpu.memory_space<vmem>>, vector<2x32xf32>
    tpu.vector_store %arg11[%c0_365, %c32_366], %315 {strides = array<i32>} : memref<2x2048xf32, #tpu.memory_space<vmem>>, vector<2x32xf32>,
    %c4_367 = arith.constant 4 : index
    %c0_368 = arith.constant 0 : index
    %317 = vector.load %arg10[%c4_367, %c0_368] : memref<128x32xf32, #tpu.memory_space<vmem>>, vector<2x32xf32>
    %c0_369 = arith.constant 0 : index
    %c64_370 = arith.constant 64 : index
    %318 = vector.load %arg11[%c0_369, %c64_370] : memref<2x2048xf32, #tpu.memory_space<vmem>>, vector<2x32xf32>
    tpu.vector_store %arg11[%c0_369, %c64_370], %317 {strides = array<i32>} : memref<2x2048xf32, #tpu.memory_space<vmem>>, vector<2x32xf32>,
    %c6_371 = arith.constant 6 : index
    %c0_372 = arith.constant 0 : index
    %319 = vector.load %arg10[%c6_371, %c0_372] : memref<128x32xf32, #tpu.memory_space<vmem>>, vector<2x32xf32>
    %c0_373 = arith.constant 0 : index
    %c96_374 = arith.constant 96 : index
    %320 = vector.load %arg11[%c0_373, %c96_374] : memref<2x2048xf32, #tpu.memory_space<vmem>>, vector<2x32xf32>
    tpu.vector_store %arg11[%c0_373, %c96_374], %319 {strides = array<i32>} : memref<2x2048xf32, #tpu.memory_space<vmem>>, vector<2x32xf32>,
    %c8_375 = arith.constant 8 : index
    %c0_376 = arith.constant 0 : index
    %321 = vector.load %arg10[%c8_375, %c0_376] : memref<128x32xf32, #tpu.memory_space<vmem>>, vector<2x32xf32>
    %c0_377 = arith.constant 0 : index
    %c128_378 = arith.constant 128 : index
    %322 = vector.load %arg11[%c0_377, %c128_378] : memref<2x2048xf32, #tpu.memory_space<vmem>>, vector<2x32xf32>
    tpu.vector_store %arg11[%c0_377, %c128_378], %321 {strides = array<i32>} : memref<2x2048xf32, #tpu.memory_space<vmem>>, vector<2x32xf32>,
    %c10_379 = arith.constant 10 : index
    %c0_380 = arith.constant 0 : index
    %323 = vector.load %arg10[%c10_379, %c0_380] : memref<128x32xf32, #tpu.memory_space<vmem>>, vector<2x32xf32>
    %c0_381 = arith.constant 0 : index
    %c160_382 = arith.constant 160 : index
    %324 = vector.load %arg11[%c0_381, %c160_382] : memref<2x2048xf32, #tpu.memory_space<vmem>>, vector<2x32xf32>
    tpu.vector_store %arg11[%c0_381, %c160_382], %323 {strides = array<i32>} : memref<2x2048xf32, #tpu.memory_space<vmem>>, vector<2x32xf32>,
    %c12 = arith.constant 12 : index
    %c0_383 = arith.constant 0 : index
    %325 = vector.load %arg10[%c12, %c0_383] : memref<128x32xf32, #tpu.memory_space<vmem>>, vector<2x32xf32>
    %c0_384 = arith.constant 0 : index
    %c192_385 = arith.constant 192 : index
    %326 = vector.load %arg11[%c0_384, %c192_385] : memref<2x2048xf32, #tpu.memory_space<vmem>>, vector<2x32xf32>
    tpu.vector_store %arg11[%c0_384, %c192_385], %325 {strides = array<i32>} : memref<2x2048xf32, #tpu.memory_space<vmem>>, vector<2x32xf32>,
    %c14 = arith.constant 14 : index
    %c0_386 = arith.constant 0 : index
    %327 = vector.load %arg10[%c14, %c0_386] : memref<128x32xf32, #tpu.memory_space<vmem>>, vector<2x32xf32>
    %c0_387 = arith.constant 0 : index
    %c224_388 = arith.constant 224 : index
    %328 = vector.load %arg11[%c0_387, %c224_388] : memref<2x2048xf32, #tpu.memory_space<vmem>>, vector<2x32xf32>
    tpu.vector_store %arg11[%c0_387, %c224_388], %327 {strides = array<i32>} : memref<2x2048xf32, #tpu.memory_space<vmem>>, vector<2x32xf32>,
    %c16 = arith.constant 16 : index
    %c0_389 = arith.constant 0 : index
    %329 = vector.load %arg10[%c16, %c0_389] : memref<128x32xf32, #tpu.memory_space<vmem>>, vector<2x32xf32>
    %c0_390 = arith.constant 0 : index
    %c256_391 = arith.constant 256 : index
    %330 = vector.load %arg11[%c0_390, %c256_391] : memref<2x2048xf32, #tpu.memory_space<vmem>>, vector<2x32xf32>
    tpu.vector_store %arg11[%c0_390, %c256_391], %329 {strides = array<i32>} : memref<2x2048xf32, #tpu.memory_space<vmem>>, vector<2x32xf32>,
    %c18 = arith.constant 18 : index
    %c0_392 = arith.constant 0 : index
    %331 = vector.load %arg10[%c18, %c0_392] : memref<128x32xf32, #tpu.memory_space<vmem>>, vector<2x32xf32>
    %c0_393 = arith.constant 0 : index
    %c288 = arith.constant 288 : index
    %332 = vector.load %arg11[%c0_393, %c288] : memref<2x2048xf32, #tpu.memory_space<vmem>>, vector<2x32xf32>
    tpu.vector_store %arg11[%c0_393, %c288], %331 {strides = array<i32>} : memref<2x2048xf32, #tpu.memory_space<vmem>>, vector<2x32xf32>,
    %c20 = arith.constant 20 : index
    %c0_394 = arith.constant 0 : index
    %333 = vector.load %arg10[%c20, %c0_394] : memref<128x32xf32, #tpu.memory_space<vmem>>, vector<2x32xf32>
    %c0_395 = arith.constant 0 : index
    %c320 = arith.constant 320 : index
    %334 = vector.load %arg11[%c0_395, %c320] : memref<2x2048xf32, #tpu.memory_space<vmem>>, vector<2x32xf32>
    tpu.vector_store %arg11[%c0_395, %c320], %333 {strides = array<i32>} : memref<2x2048xf32, #tpu.memory_space<vmem>>, vector<2x32xf32>,
    %c22 = arith.constant 22 : index
    %c0_396 = arith.constant 0 : index
    %335 = vector.load %arg10[%c22, %c0_396] : memref<128x32xf32, #tpu.memory_space<vmem>>, vector<2x32xf32>
    %c0_397 = arith.constant 0 : index
    %c352 = arith.constant 352 : index
    %336 = vector.load %arg11[%c0_397, %c352] : memref<2x2048xf32, #tpu.memory_space<vmem>>, vector<2x32xf32>
    tpu.vector_store %arg11[%c0_397, %c352], %335 {strides = array<i32>} : memref<2x2048xf32, #tpu.memory_space<vmem>>, vector<2x32xf32>,
    %c24 = arith.constant 24 : index
    %c0_398 = arith.constant 0 : index
    %337 = vector.load %arg10[%c24, %c0_398] : memref<128x32xf32, #tpu.memory_space<vmem>>, vector<2x32xf32>
    %c0_399 = arith.constant 0 : index
    %c384 = arith.constant 384 : index
    %338 = vector.load %arg11[%c0_399, %c384] : memref<2x2048xf32, #tpu.memory_space<vmem>>, vector<2x32xf32>
    tpu.vector_store %arg11[%c0_399, %c384], %337 {strides = array<i32>} : memref<2x2048xf32, #tpu.memory_space<vmem>>, vector<2x32xf32>,
    %c26 = arith.constant 26 : index
    %c0_400 = arith.constant 0 : index
    %339 = vector.load %arg10[%c26, %c0_400] : memref<128x32xf32, #tpu.memory_space<vmem>>, vector<2x32xf32>
    %c0_401 = arith.constant 0 : index
    %c416 = arith.constant 416 : index
    %340 = vector.load %arg11[%c0_401, %c416] : memref<2x2048xf32, #tpu.memory_space<vmem>>, vector<2x32xf32>
    tpu.vector_store %arg11[%c0_401, %c416], %339 {strides = array<i32>} : memref<2x2048xf32, #tpu.memory_space<vmem>>, vector<2x32xf32>,
    %c28 = arith.constant 28 : index
    %c0_402 = arith.constant 0 : index
    %341 = vector.load %arg10[%c28, %c0_402] : memref<128x32xf32, #tpu.memory_space<vmem>>, vector<2x32xf32>
    %c0_403 = arith.constant 0 : index
    %c448 = arith.constant 448 : index
    %342 = vector.load %arg11[%c0_403, %c448] : memref<2x2048xf32, #tpu.memory_space<vmem>>, vector<2x32xf32>
    tpu.vector_store %arg11[%c0_403, %c448], %341 {strides = array<i32>} : memref<2x2048xf32, #tpu.memory_space<vmem>>, vector<2x32xf32>,
    %c30 = arith.constant 30 : index
    %c0_404 = arith.constant 0 : index
    %343 = vector.load %arg10[%c30, %c0_404] : memref<128x32xf32, #tpu.memory_space<vmem>>, vector<2x32xf32>
    %c0_405 = arith.constant 0 : index
    %c480 = arith.constant 480 : index
    %344 = vector.load %arg11[%c0_405, %c480] : memref<2x2048xf32, #tpu.memory_space<vmem>>, vector<2x32xf32>
    tpu.vector_store %arg11[%c0_405, %c480], %343 {strides = array<i32>} : memref<2x2048xf32, #tpu.memory_space<vmem>>, vector<2x32xf32>,
    %c32_406 = arith.constant 32 : index
    %c0_407 = arith.constant 0 : index
    %345 = vector.load %arg10[%c32_406, %c0_407] : memref<128x32xf32, #tpu.memory_space<vmem>>, vector<2x32xf32>
    %c0_408 = arith.constant 0 : index
    %c512 = arith.constant 512 : index
    %346 = vector.load %arg11[%c0_408, %c512] : memref<2x2048xf32, #tpu.memory_space<vmem>>, vector<2x32xf32>
    tpu.vector_store %arg11[%c0_408, %c512], %345 {strides = array<i32>} : memref<2x2048xf32, #tpu.memory_space<vmem>>, vector<2x32xf32>,
    %c34 = arith.constant 34 : index
    %c0_409 = arith.constant 0 : index
    %347 = vector.load %arg10[%c34, %c0_409] : memref<128x32xf32, #tpu.memory_space<vmem>>, vector<2x32xf32>
    %c0_410 = arith.constant 0 : index
    %c544 = arith.constant 544 : index
    %348 = vector.load %arg11[%c0_410, %c544] : memref<2x2048xf32, #tpu.memory_space<vmem>>, vector<2x32xf32>
    tpu.vector_store %arg11[%c0_410, %c544], %347 {strides = array<i32>} : memref<2x2048xf32, #tpu.memory_space<vmem>>, vector<2x32xf32>,
    %c36 = arith.constant 36 : index
    %c0_411 = arith.constant 0 : index
    %349 = vector.load %arg10[%c36, %c0_411] : memref<128x32xf32, #tpu.memory_space<vmem>>, vector<2x32xf32>
    %c0_412 = arith.constant 0 : index
    %c576 = arith.constant 576 : index
    %350 = vector.load %arg11[%c0_412, %c576] : memref<2x2048xf32, #tpu.memory_space<vmem>>, vector<2x32xf32>
    tpu.vector_store %arg11[%c0_412, %c576], %349 {strides = array<i32>} : memref<2x2048xf32, #tpu.memory_space<vmem>>, vector<2x32xf32>,
    %c38 = arith.constant 38 : index
    %c0_413 = arith.constant 0 : index
    %351 = vector.load %arg10[%c38, %c0_413] : memref<128x32xf32, #tpu.memory_space<vmem>>, vector<2x32xf32>
    %c0_414 = arith.constant 0 : index
    %c608 = arith.constant 608 : index
    %352 = vector.load %arg11[%c0_414, %c608] : memref<2x2048xf32, #tpu.memory_space<vmem>>, vector<2x32xf32>
    tpu.vector_store %arg11[%c0_414, %c608], %351 {strides = array<i32>} : memref<2x2048xf32, #tpu.memory_space<vmem>>, vector<2x32xf32>,
    %c40 = arith.constant 40 : index
    %c0_415 = arith.constant 0 : index
    %353 = vector.load %arg10[%c40, %c0_415] : memref<128x32xf32, #tpu.memory_space<vmem>>, vector<2x32xf32>
    %c0_416 = arith.constant 0 : index
    %c640 = arith.constant 640 : index
    %354 = vector.load %arg11[%c0_416, %c640] : memref<2x2048xf32, #tpu.memory_space<vmem>>, vector<2x32xf32>
    tpu.vector_store %arg11[%c0_416, %c640], %353 {strides = array<i32>} : memref<2x2048xf32, #tpu.memory_space<vmem>>, vector<2x32xf32>,
    %c42 = arith.constant 42 : index
    %c0_417 = arith.constant 0 : index
    %355 = vector.load %arg10[%c42, %c0_417] : memref<128x32xf32, #tpu.memory_space<vmem>>, vector<2x32xf32>
    %c0_418 = arith.constant 0 : index
    %c672 = arith.constant 672 : index
    %356 = vector.load %arg11[%c0_418, %c672] : memref<2x2048xf32, #tpu.memory_space<vmem>>, vector<2x32xf32>
    tpu.vector_store %arg11[%c0_418, %c672], %355 {strides = array<i32>} : memref<2x2048xf32, #tpu.memory_space<vmem>>, vector<2x32xf32>,
    %c44 = arith.constant 44 : index
    %c0_419 = arith.constant 0 : index
    %357 = vector.load %arg10[%c44, %c0_419] : memref<128x32xf32, #tpu.memory_space<vmem>>, vector<2x32xf32>
    %c0_420 = arith.constant 0 : index
    %c704 = arith.constant 704 : index
    %358 = vector.load %arg11[%c0_420, %c704] : memref<2x2048xf32, #tpu.memory_space<vmem>>, vector<2x32xf32>
    tpu.vector_store %arg11[%c0_420, %c704], %357 {strides = array<i32>} : memref<2x2048xf32, #tpu.memory_space<vmem>>, vector<2x32xf32>,
    %c46 = arith.constant 46 : index
    %c0_421 = arith.constant 0 : index
    %359 = vector.load %arg10[%c46, %c0_421] : memref<128x32xf32, #tpu.memory_space<vmem>>, vector<2x32xf32>
    %c0_422 = arith.constant 0 : index
    %c736 = arith.constant 736 : index
    %360 = vector.load %arg11[%c0_422, %c736] : memref<2x2048xf32, #tpu.memory_space<vmem>>, vector<2x32xf32>
    tpu.vector_store %arg11[%c0_422, %c736], %359 {strides = array<i32>} : memref<2x2048xf32, #tpu.memory_space<vmem>>, vector<2x32xf32>,
    %c48 = arith.constant 48 : index
    %c0_423 = arith.constant 0 : index
    %361 = vector.load %arg10[%c48, %c0_423] : memref<128x32xf32, #tpu.memory_space<vmem>>, vector<2x32xf32>
    %c0_424 = arith.constant 0 : index
    %c768 = arith.constant 768 : index
    %362 = vector.load %arg11[%c0_424, %c768] : memref<2x2048xf32, #tpu.memory_space<vmem>>, vector<2x32xf32>
    tpu.vector_store %arg11[%c0_424, %c768], %361 {strides = array<i32>} : memref<2x2048xf32, #tpu.memory_space<vmem>>, vector<2x32xf32>,
    %c50 = arith.constant 50 : index
    %c0_425 = arith.constant 0 : index
    %363 = vector.load %arg10[%c50, %c0_425] : memref<128x32xf32, #tpu.memory_space<vmem>>, vector<2x32xf32>
    %c0_426 = arith.constant 0 : index
    %c800 = arith.constant 800 : index
    %364 = vector.load %arg11[%c0_426, %c800] : memref<2x2048xf32, #tpu.memory_space<vmem>>, vector<2x32xf32>
    tpu.vector_store %arg11[%c0_426, %c800], %363 {strides = array<i32>} : memref<2x2048xf32, #tpu.memory_space<vmem>>, vector<2x32xf32>,
    %c52 = arith.constant 52 : index
    %c0_427 = arith.constant 0 : index
    %365 = vector.load %arg10[%c52, %c0_427] : memref<128x32xf32, #tpu.memory_space<vmem>>, vector<2x32xf32>
    %c0_428 = arith.constant 0 : index
    %c832 = arith.constant 832 : index
    %366 = vector.load %arg11[%c0_428, %c832] : memref<2x2048xf32, #tpu.memory_space<vmem>>, vector<2x32xf32>
    tpu.vector_store %arg11[%c0_428, %c832], %365 {strides = array<i32>} : memref<2x2048xf32, #tpu.memory_space<vmem>>, vector<2x32xf32>,
    %c54 = arith.constant 54 : index
    %c0_429 = arith.constant 0 : index
    %367 = vector.load %arg10[%c54, %c0_429] : memref<128x32xf32, #tpu.memory_space<vmem>>, vector<2x32xf32>
    %c0_430 = arith.constant 0 : index
    %c864 = arith.constant 864 : index
    %368 = vector.load %arg11[%c0_430, %c864] : memref<2x2048xf32, #tpu.memory_space<vmem>>, vector<2x32xf32>
    tpu.vector_store %arg11[%c0_430, %c864], %367 {strides = array<i32>} : memref<2x2048xf32, #tpu.memory_space<vmem>>, vector<2x32xf32>,
    %c56 = arith.constant 56 : index
    %c0_431 = arith.constant 0 : index
    %369 = vector.load %arg10[%c56, %c0_431] : memref<128x32xf32, #tpu.memory_space<vmem>>, vector<2x32xf32>
    %c0_432 = arith.constant 0 : index
    %c896 = arith.constant 896 : index
    %370 = vector.load %arg11[%c0_432, %c896] : memref<2x2048xf32, #tpu.memory_space<vmem>>, vector<2x32xf32>
    tpu.vector_store %arg11[%c0_432, %c896], %369 {strides = array<i32>} : memref<2x2048xf32, #tpu.memory_space<vmem>>, vector<2x32xf32>,
    %c58 = arith.constant 58 : index
    %c0_433 = arith.constant 0 : index
    %371 = vector.load %arg10[%c58, %c0_433] : memref<128x32xf32, #tpu.memory_space<vmem>>, vector<2x32xf32>
    %c0_434 = arith.constant 0 : index
    %c928 = arith.constant 928 : index
    %372 = vector.load %arg11[%c0_434, %c928] : memref<2x2048xf32, #tpu.memory_space<vmem>>, vector<2x32xf32>
    tpu.vector_store %arg11[%c0_434, %c928], %371 {strides = array<i32>} : memref<2x2048xf32, #tpu.memory_space<vmem>>, vector<2x32xf32>,
    %c60 = arith.constant 60 : index
    %c0_435 = arith.constant 0 : index
    %373 = vector.load %arg10[%c60, %c0_435] : memref<128x32xf32, #tpu.memory_space<vmem>>, vector<2x32xf32>
    %c0_436 = arith.constant 0 : index
    %c960 = arith.constant 960 : index
    %374 = vector.load %arg11[%c0_436, %c960] : memref<2x2048xf32, #tpu.memory_space<vmem>>, vector<2x32xf32>
    tpu.vector_store %arg11[%c0_436, %c960], %373 {strides = array<i32>} : memref<2x2048xf32, #tpu.memory_space<vmem>>, vector<2x32xf32>,
    %c62 = arith.constant 62 : index
    %c0_437 = arith.constant 0 : index
    %375 = vector.load %arg10[%c62, %c0_437] : memref<128x32xf32, #tpu.memory_space<vmem>>, vector<2x32xf32>
    %c0_438 = arith.constant 0 : index
    %c992 = arith.constant 992 : index
    %376 = vector.load %arg11[%c0_438, %c992] : memref<2x2048xf32, #tpu.memory_space<vmem>>, vector<2x32xf32>
    tpu.vector_store %arg11[%c0_438, %c992], %375 {strides = array<i32>} : memref<2x2048xf32, #tpu.memory_space<vmem>>, vector<2x32xf32>,
    %c64_439 = arith.constant 64 : index
    %c0_440 = arith.constant 0 : index
    %377 = vector.load %arg10[%c64_439, %c0_440] : memref<128x32xf32, #tpu.memory_space<vmem>>, vector<2x32xf32>
    %c0_441 = arith.constant 0 : index
    %c1024 = arith.constant 1024 : index
    %378 = vector.load %arg11[%c0_441, %c1024] : memref<2x2048xf32, #tpu.memory_space<vmem>>, vector<2x32xf32>
    tpu.vector_store %arg11[%c0_441, %c1024], %377 {strides = array<i32>} : memref<2x2048xf32, #tpu.memory_space<vmem>>, vector<2x32xf32>,
    %c66 = arith.constant 66 : index
    %c0_442 = arith.constant 0 : index
    %379 = vector.load %arg10[%c66, %c0_442] : memref<128x32xf32, #tpu.memory_space<vmem>>, vector<2x32xf32>
    %c0_443 = arith.constant 0 : index
    %c1056 = arith.constant 1056 : index
    %380 = vector.load %arg11[%c0_443, %c1056] : memref<2x2048xf32, #tpu.memory_space<vmem>>, vector<2x32xf32>
    tpu.vector_store %arg11[%c0_443, %c1056], %379 {strides = array<i32>} : memref<2x2048xf32, #tpu.memory_space<vmem>>, vector<2x32xf32>,
    %c68 = arith.constant 68 : index
    %c0_444 = arith.constant 0 : index
    %381 = vector.load %arg10[%c68, %c0_444] : memref<128x32xf32, #tpu.memory_space<vmem>>, vector<2x32xf32>
    %c0_445 = arith.constant 0 : index
    %c1088 = arith.constant 1088 : index
    %382 = vector.load %arg11[%c0_445, %c1088] : memref<2x2048xf32, #tpu.memory_space<vmem>>, vector<2x32xf32>
    tpu.vector_store %arg11[%c0_445, %c1088], %381 {strides = array<i32>} : memref<2x2048xf32, #tpu.memory_space<vmem>>, vector<2x32xf32>,
    %c70 = arith.constant 70 : index
    %c0_446 = arith.constant 0 : index
    %383 = vector.load %arg10[%c70, %c0_446] : memref<128x32xf32, #tpu.memory_space<vmem>>, vector<2x32xf32>
    %c0_447 = arith.constant 0 : index
    %c1120 = arith.constant 1120 : index
    %384 = vector.load %arg11[%c0_447, %c1120] : memref<2x2048xf32, #tpu.memory_space<vmem>>, vector<2x32xf32>
    tpu.vector_store %arg11[%c0_447, %c1120], %383 {strides = array<i32>} : memref<2x2048xf32, #tpu.memory_space<vmem>>, vector<2x32xf32>,
    %c72 = arith.constant 72 : index
    %c0_448 = arith.constant 0 : index
    %385 = vector.load %arg10[%c72, %c0_448] : memref<128x32xf32, #tpu.memory_space<vmem>>, vector<2x32xf32>
    %c0_449 = arith.constant 0 : index
    %c1152 = arith.constant 1152 : index
    %386 = vector.load %arg11[%c0_449, %c1152] : memref<2x2048xf32, #tpu.memory_space<vmem>>, vector<2x32xf32>
    tpu.vector_store %arg11[%c0_449, %c1152], %385 {strides = array<i32>} : memref<2x2048xf32, #tpu.memory_space<vmem>>, vector<2x32xf32>,
    %c74 = arith.constant 74 : index
    %c0_450 = arith.constant 0 : index
    %387 = vector.load %arg10[%c74, %c0_450] : memref<128x32xf32, #tpu.memory_space<vmem>>, vector<2x32xf32>
    %c0_451 = arith.constant 0 : index
    %c1184 = arith.constant 1184 : index
    %388 = vector.load %arg11[%c0_451, %c1184] : memref<2x2048xf32, #tpu.memory_space<vmem>>, vector<2x32xf32>
    tpu.vector_store %arg11[%c0_451, %c1184], %387 {strides = array<i32>} : memref<2x2048xf32, #tpu.memory_space<vmem>>, vector<2x32xf32>,
    %c76 = arith.constant 76 : index
    %c0_452 = arith.constant 0 : index
    %389 = vector.load %arg10[%c76, %c0_452] : memref<128x32xf32, #tpu.memory_space<vmem>>, vector<2x32xf32>
    %c0_453 = arith.constant 0 : index
    %c1216 = arith.constant 1216 : index
    %390 = vector.load %arg11[%c0_453, %c1216] : memref<2x2048xf32, #tpu.memory_space<vmem>>, vector<2x32xf32>
    tpu.vector_store %arg11[%c0_453, %c1216], %389 {strides = array<i32>} : memref<2x2048xf32, #tpu.memory_space<vmem>>, vector<2x32xf32>,
    %c78 = arith.constant 78 : index
    %c0_454 = arith.constant 0 : index
    %391 = vector.load %arg10[%c78, %c0_454] : memref<128x32xf32, #tpu.memory_space<vmem>>, vector<2x32xf32>
    %c0_455 = arith.constant 0 : index
    %c1248 = arith.constant 1248 : index
    %392 = vector.load %arg11[%c0_455, %c1248] : memref<2x2048xf32, #tpu.memory_space<vmem>>, vector<2x32xf32>
    tpu.vector_store %arg11[%c0_455, %c1248], %391 {strides = array<i32>} : memref<2x2048xf32, #tpu.memory_space<vmem>>, vector<2x32xf32>,
    %c80 = arith.constant 80 : index
    %c0_456 = arith.constant 0 : index
    %393 = vector.load %arg10[%c80, %c0_456] : memref<128x32xf32, #tpu.memory_space<vmem>>, vector<2x32xf32>
    %c0_457 = arith.constant 0 : index
    %c1280 = arith.constant 1280 : index
    %394 = vector.load %arg11[%c0_457, %c1280] : memref<2x2048xf32, #tpu.memory_space<vmem>>, vector<2x32xf32>
    tpu.vector_store %arg11[%c0_457, %c1280], %393 {strides = array<i32>} : memref<2x2048xf32, #tpu.memory_space<vmem>>, vector<2x32xf32>,
    %c82 = arith.constant 82 : index
    %c0_458 = arith.constant 0 : index
    %395 = vector.load %arg10[%c82, %c0_458] : memref<128x32xf32, #tpu.memory_space<vmem>>, vector<2x32xf32>
    %c0_459 = arith.constant 0 : index
    %c1312 = arith.constant 1312 : index
    %396 = vector.load %arg11[%c0_459, %c1312] : memref<2x2048xf32, #tpu.memory_space<vmem>>, vector<2x32xf32>
    tpu.vector_store %arg11[%c0_459, %c1312], %395 {strides = array<i32>} : memref<2x2048xf32, #tpu.memory_space<vmem>>, vector<2x32xf32>,
    %c84 = arith.constant 84 : index
    %c0_460 = arith.constant 0 : index
    %397 = vector.load %arg10[%c84, %c0_460] : memref<128x32xf32, #tpu.memory_space<vmem>>, vector<2x32xf32>
    %c0_461 = arith.constant 0 : index
    %c1344 = arith.constant 1344 : index
    %398 = vector.load %arg11[%c0_461, %c1344] : memref<2x2048xf32, #tpu.memory_space<vmem>>, vector<2x32xf32>
    tpu.vector_store %arg11[%c0_461, %c1344], %397 {strides = array<i32>} : memref<2x2048xf32, #tpu.memory_space<vmem>>, vector<2x32xf32>,
    %c86 = arith.constant 86 : index
    %c0_462 = arith.constant 0 : index
    %399 = vector.load %arg10[%c86, %c0_462] : memref<128x32xf32, #tpu.memory_space<vmem>>, vector<2x32xf32>
    %c0_463 = arith.constant 0 : index
    %c1376 = arith.constant 1376 : index
    %400 = vector.load %arg11[%c0_463, %c1376] : memref<2x2048xf32, #tpu.memory_space<vmem>>, vector<2x32xf32>
    tpu.vector_store %arg11[%c0_463, %c1376], %399 {strides = array<i32>} : memref<2x2048xf32, #tpu.memory_space<vmem>>, vector<2x32xf32>,
    %c88 = arith.constant 88 : index
    %c0_464 = arith.constant 0 : index
    %401 = vector.load %arg10[%c88, %c0_464] : memref<128x32xf32, #tpu.memory_space<vmem>>, vector<2x32xf32>
    %c0_465 = arith.constant 0 : index
    %c1408 = arith.constant 1408 : index
    %402 = vector.load %arg11[%c0_465, %c1408] : memref<2x2048xf32, #tpu.memory_space<vmem>>, vector<2x32xf32>
    tpu.vector_store %arg11[%c0_465, %c1408], %401 {strides = array<i32>} : memref<2x2048xf32, #tpu.memory_space<vmem>>, vector<2x32xf32>,
    %c90 = arith.constant 90 : index
    %c0_466 = arith.constant 0 : index
    %403 = vector.load %arg10[%c90, %c0_466] : memref<128x32xf32, #tpu.memory_space<vmem>>, vector<2x32xf32>
    %c0_467 = arith.constant 0 : index
    %c1440 = arith.constant 1440 : index
    %404 = vector.load %arg11[%c0_467, %c1440] : memref<2x2048xf32, #tpu.memory_space<vmem>>, vector<2x32xf32>
    tpu.vector_store %arg11[%c0_467, %c1440], %403 {strides = array<i32>} : memref<2x2048xf32, #tpu.memory_space<vmem>>, vector<2x32xf32>,
    %c92 = arith.constant 92 : index
    %c0_468 = arith.constant 0 : index
    %405 = vector.load %arg10[%c92, %c0_468] : memref<128x32xf32, #tpu.memory_space<vmem>>, vector<2x32xf32>
    %c0_469 = arith.constant 0 : index
    %c1472 = arith.constant 1472 : index
    %406 = vector.load %arg11[%c0_469, %c1472] : memref<2x2048xf32, #tpu.memory_space<vmem>>, vector<2x32xf32>
    tpu.vector_store %arg11[%c0_469, %c1472], %405 {strides = array<i32>} : memref<2x2048xf32, #tpu.memory_space<vmem>>, vector<2x32xf32>,
    %c94 = arith.constant 94 : index
    %c0_470 = arith.constant 0 : index
    %407 = vector.load %arg10[%c94, %c0_470] : memref<128x32xf32, #tpu.memory_space<vmem>>, vector<2x32xf32>
    %c0_471 = arith.constant 0 : index
    %c1504 = arith.constant 1504 : index
    %408 = vector.load %arg11[%c0_471, %c1504] : memref<2x2048xf32, #tpu.memory_space<vmem>>, vector<2x32xf32>
    tpu.vector_store %arg11[%c0_471, %c1504], %407 {strides = array<i32>} : memref<2x2048xf32, #tpu.memory_space<vmem>>, vector<2x32xf32>,
    %c96_472 = arith.constant 96 : index
    %c0_473 = arith.constant 0 : index
    %409 = vector.load %arg10[%c96_472, %c0_473] : memref<128x32xf32, #tpu.memory_space<vmem>>, vector<2x32xf32>
    %c0_474 = arith.constant 0 : index
    %c1536 = arith.constant 1536 : index
    %410 = vector.load %arg11[%c0_474, %c1536] : memref<2x2048xf32, #tpu.memory_space<vmem>>, vector<2x32xf32>
    tpu.vector_store %arg11[%c0_474, %c1536], %409 {strides = array<i32>} : memref<2x2048xf32, #tpu.memory_space<vmem>>, vector<2x32xf32>,
    %c98 = arith.constant 98 : index
    %c0_475 = arith.constant 0 : index
    %411 = vector.load %arg10[%c98, %c0_475] : memref<128x32xf32, #tpu.memory_space<vmem>>, vector<2x32xf32>
    %c0_476 = arith.constant 0 : index
    %c1568 = arith.constant 1568 : index
    %412 = vector.load %arg11[%c0_476, %c1568] : memref<2x2048xf32, #tpu.memory_space<vmem>>, vector<2x32xf32>
    tpu.vector_store %arg11[%c0_476, %c1568], %411 {strides = array<i32>} : memref<2x2048xf32, #tpu.memory_space<vmem>>, vector<2x32xf32>,
    %c100 = arith.constant 100 : index
    %c0_477 = arith.constant 0 : index
    %413 = vector.load %arg10[%c100, %c0_477] : memref<128x32xf32, #tpu.memory_space<vmem>>, vector<2x32xf32>
    %c0_478 = arith.constant 0 : index
    %c1600 = arith.constant 1600 : index
    %414 = vector.load %arg11[%c0_478, %c1600] : memref<2x2048xf32, #tpu.memory_space<vmem>>, vector<2x32xf32>
    tpu.vector_store %arg11[%c0_478, %c1600], %413 {strides = array<i32>} : memref<2x2048xf32, #tpu.memory_space<vmem>>, vector<2x32xf32>,
    %c102 = arith.constant 102 : index
    %c0_479 = arith.constant 0 : index
    %415 = vector.load %arg10[%c102, %c0_479] : memref<128x32xf32, #tpu.memory_space<vmem>>, vector<2x32xf32>
    %c0_480 = arith.constant 0 : index
    %c1632 = arith.constant 1632 : index
    %416 = vector.load %arg11[%c0_480, %c1632] : memref<2x2048xf32, #tpu.memory_space<vmem>>, vector<2x32xf32>
    tpu.vector_store %arg11[%c0_480, %c1632], %415 {strides = array<i32>} : memref<2x2048xf32, #tpu.memory_space<vmem>>, vector<2x32xf32>,
    %c104 = arith.constant 104 : index
    %c0_481 = arith.constant 0 : index
    %417 = vector.load %arg10[%c104, %c0_481] : memref<128x32xf32, #tpu.memory_space<vmem>>, vector<2x32xf32>
    %c0_482 = arith.constant 0 : index
    %c1664 = arith.constant 1664 : index
    %418 = vector.load %arg11[%c0_482, %c1664] : memref<2x2048xf32, #tpu.memory_space<vmem>>, vector<2x32xf32>
    tpu.vector_store %arg11[%c0_482, %c1664], %417 {strides = array<i32>} : memref<2x2048xf32, #tpu.memory_space<vmem>>, vector<2x32xf32>,
    %c106 = arith.constant 106 : index
    %c0_483 = arith.constant 0 : index
    %419 = vector.load %arg10[%c106, %c0_483] : memref<128x32xf32, #tpu.memory_space<vmem>>, vector<2x32xf32>
    %c0_484 = arith.constant 0 : index
    %c1696 = arith.constant 1696 : index
    %420 = vector.load %arg11[%c0_484, %c1696] : memref<2x2048xf32, #tpu.memory_space<vmem>>, vector<2x32xf32>
    tpu.vector_store %arg11[%c0_484, %c1696], %419 {strides = array<i32>} : memref<2x2048xf32, #tpu.memory_space<vmem>>, vector<2x32xf32>,
    %c108 = arith.constant 108 : index
    %c0_485 = arith.constant 0 : index
    %421 = vector.load %arg10[%c108, %c0_485] : memref<128x32xf32, #tpu.memory_space<vmem>>, vector<2x32xf32>
    %c0_486 = arith.constant 0 : index
    %c1728 = arith.constant 1728 : index
    %422 = vector.load %arg11[%c0_486, %c1728] : memref<2x2048xf32, #tpu.memory_space<vmem>>, vector<2x32xf32>
    tpu.vector_store %arg11[%c0_486, %c1728], %421 {strides = array<i32>} : memref<2x2048xf32, #tpu.memory_space<vmem>>, vector<2x32xf32>,
    %c110 = arith.constant 110 : index
    %c0_487 = arith.constant 0 : index
    %423 = vector.load %arg10[%c110, %c0_487] : memref<128x32xf32, #tpu.memory_space<vmem>>, vector<2x32xf32>
    %c0_488 = arith.constant 0 : index
    %c1760 = arith.constant 1760 : index
    %424 = vector.load %arg11[%c0_488, %c1760] : memref<2x2048xf32, #tpu.memory_space<vmem>>, vector<2x32xf32>
    tpu.vector_store %arg11[%c0_488, %c1760], %423 {strides = array<i32>} : memref<2x2048xf32, #tpu.memory_space<vmem>>, vector<2x32xf32>,
    %c112 = arith.constant 112 : index
    %c0_489 = arith.constant 0 : index
    %425 = vector.load %arg10[%c112, %c0_489] : memref<128x32xf32, #tpu.memory_space<vmem>>, vector<2x32xf32>
    %c0_490 = arith.constant 0 : index
    %c1792 = arith.constant 1792 : index
    %426 = vector.load %arg11[%c0_490, %c1792] : memref<2x2048xf32, #tpu.memory_space<vmem>>, vector<2x32xf32>
    tpu.vector_store %arg11[%c0_490, %c1792], %425 {strides = array<i32>} : memref<2x2048xf32, #tpu.memory_space<vmem>>, vector<2x32xf32>,
    %c114 = arith.constant 114 : index
    %c0_491 = arith.constant 0 : index
    %427 = vector.load %arg10[%c114, %c0_491] : memref<128x32xf32, #tpu.memory_space<vmem>>, vector<2x32xf32>
    %c0_492 = arith.constant 0 : index
    %c1824 = arith.constant 1824 : index
    %428 = vector.load %arg11[%c0_492, %c1824] : memref<2x2048xf32, #tpu.memory_space<vmem>>, vector<2x32xf32>
    tpu.vector_store %arg11[%c0_492, %c1824], %427 {strides = array<i32>} : memref<2x2048xf32, #tpu.memory_space<vmem>>, vector<2x32xf32>,
    %c116 = arith.constant 116 : index
    %c0_493 = arith.constant 0 : index
    %429 = vector.load %arg10[%c116, %c0_493] : memref<128x32xf32, #tpu.memory_space<vmem>>, vector<2x32xf32>
    %c0_494 = arith.constant 0 : index
    %c1856 = arith.constant 1856 : index
    %430 = vector.load %arg11[%c0_494, %c1856] : memref<2x2048xf32, #tpu.memory_space<vmem>>, vector<2x32xf32>
    tpu.vector_store %arg11[%c0_494, %c1856], %429 {strides = array<i32>} : memref<2x2048xf32, #tpu.memory_space<vmem>>, vector<2x32xf32>,
    %c118 = arith.constant 118 : index
    %c0_495 = arith.constant 0 : index
    %431 = vector.load %arg10[%c118, %c0_495] : memref<128x32xf32, #tpu.memory_space<vmem>>, vector<2x32xf32>
    %c0_496 = arith.constant 0 : index
    %c1888 = arith.constant 1888 : index
    %432 = vector.load %arg11[%c0_496, %c1888] : memref<2x2048xf32, #tpu.memory_space<vmem>>, vector<2x32xf32>
    tpu.vector_store %arg11[%c0_496, %c1888], %431 {strides = array<i32>} : memref<2x2048xf32, #tpu.memory_space<vmem>>, vector<2x32xf32>,
    %c120 = arith.constant 120 : index
    %c0_497 = arith.constant 0 : index
    %433 = vector.load %arg10[%c120, %c0_497] : memref<128x32xf32, #tpu.memory_space<vmem>>, vector<2x32xf32>
    %c0_498 = arith.constant 0 : index
    %c1920 = arith.constant 1920 : index
    %434 = vector.load %arg11[%c0_498, %c1920] : memref<2x2048xf32, #tpu.memory_space<vmem>>, vector<2x32xf32>
    tpu.vector_store %arg11[%c0_498, %c1920], %433 {strides = array<i32>} : memref<2x2048xf32, #tpu.memory_space<vmem>>, vector<2x32xf32>,
    %c122 = arith.constant 122 : index
    %c0_499 = arith.constant 0 : index
    %435 = vector.load %arg10[%c122, %c0_499] : memref<128x32xf32, #tpu.memory_space<vmem>>, vector<2x32xf32>
    %c0_500 = arith.constant 0 : index
    %c1952 = arith.constant 1952 : index
    %436 = vector.load %arg11[%c0_500, %c1952] : memref<2x2048xf32, #tpu.memory_space<vmem>>, vector<2x32xf32>
    tpu.vector_store %arg11[%c0_500, %c1952], %435 {strides = array<i32>} : memref<2x2048xf32, #tpu.memory_space<vmem>>, vector<2x32xf32>,
    %c124 = arith.constant 124 : index
    %c0_501 = arith.constant 0 : index
    %437 = vector.load %arg10[%c124, %c0_501] : memref<128x32xf32, #tpu.memory_space<vmem>>, vector<2x32xf32>
    %c0_502 = arith.constant 0 : index
    %c1984 = arith.constant 1984 : index
    %438 = vector.load %arg11[%c0_502, %c1984] : memref<2x2048xf32, #tpu.memory_space<vmem>>, vector<2x32xf32>
    tpu.vector_store %arg11[%c0_502, %c1984], %437 {strides = array<i32>} : memref<2x2048xf32, #tpu.memory_space<vmem>>, vector<2x32xf32>,
    %c126 = arith.constant 126 : index
    %c0_503 = arith.constant 0 : index
    %439 = vector.load %arg10[%c126, %c0_503] : memref<128x32xf32, #tpu.memory_space<vmem>>, vector<2x32xf32>
    %c0_504 = arith.constant 0 : index
    %c2016 = arith.constant 2016 : index
    %440 = vector.load %arg11[%c0_504, %c2016] : memref<2x2048xf32, #tpu.memory_space<vmem>>, vector<2x32xf32>
    tpu.vector_store %arg11[%c0_504, %c2016], %439 {strides = array<i32>} : memref<2x2048xf32, #tpu.memory_space<vmem>>, vector<2x32xf32>,
    %c0_505 = arith.constant 0 : index
    %c0_506 = arith.constant 0 : index
    %441 = vector.load %arg11[%c0_505, %c0_506] : memref<2x2048xf32, #tpu.memory_space<vmem>>, vector<2x2048xf32>
    %c0_507 = arith.constant 0 : index
    %c0_508 = arith.constant 0 : index
    %442 = vector.load %arg4[%c0_507, %c0_508] : memref<2048x65xf32, #tpu.memory_space<vmem>>, vector<2048x65xf32>
    %cst_509 = arith.constant dense<0.000000e+00> : vector<2x65xf32>
    %443 = tpu.matmul %441, %442, %cst_509 {dimension_numbers = #tpu.dot_dimension_numbers<[1], [0], [0], [1], [0, 0, 1, 1], [], []>} : vector<2x2048xf32>, vector<2048x65xf32>, vector<2x65xf32> -> vector<2x65xf32>
    %c0_510 = arith.constant 0 : index
    %c0_511 = arith.constant 0 : index
    %444 = vector.load %arg5[%c0_510, %c0_511] : memref<1x65xf32, #tpu.memory_space<vmem>>, vector<1x65xf32>
    %445 = vector.broadcast %444 : vector<1x65xf32> to vector<2x65xf32>
    %446 = arith.addf %443, %445 : vector<2x65xf32>
    %447 = vector.extract_strided_slice %446 {offsets = [0, 0], sizes = [2, 64], strides = [1, 1]} : vector<2x65xf32> to vector<2x64xf32>
    %c0_512 = arith.constant 0 : index
    %c0_513 = arith.constant 0 : index
    %448 = vector.load %arg6[%c0_512, %c0_513] : memref<2x64xf32, #tpu.memory_space<vmem>>, vector<2x64xf32>
    tpu.vector_store %arg6[%c0_512, %c0_513], %447 {strides = array<i32>} : memref<2x64xf32, #tpu.memory_space<vmem>>, vector<2x64xf32>,
    %449 = vector.extract_strided_slice %446 {offsets = [0, 64], sizes = [2, 1], strides = [1, 1]} : vector<2x65xf32> to vector<2x1xf32>
    %450 = math.tanh %449 : vector<2x1xf32>
    %c0_514 = arith.constant 0 : index
    %c0_515 = arith.constant 0 : index
    %451 = vector.load %arg7[%c0_514, %c0_515] : memref<2x1xf32, #tpu.memory_space<vmem>>, vector<2x1xf32>
    tpu.vector_store %arg7[%c0_514, %c0_515], %450 {strides = array<i32>} : memref<2x1xf32, #tpu.memory_space<vmem>>, vector<2x1xf32>,
    return
  }
  func.func @transform_0(%arg0: i32) -> (i32, i32, i32) {
    %c0_i32 = arith.constant 0 : i32
    %c0_i32_0 = arith.constant 0 : i32
    %c0_i32_1 = arith.constant 0 : i32
    %c0_i32_2 = arith.constant 0 : i32
    return %c0_i32, %c0_i32_0, %c0_i32_1 : i32, i32, i32
  }
  func.func @transform_1(%arg0: i32) -> (i32, i32, i32) {
    %c0_i32 = arith.constant 0 : i32
    %c0_i32_0 = arith.constant 0 : i32
    %c0_i32_1 = arith.constant 0 : i32
    %c0_i32_2 = arith.constant 0 : i32
    return %c0_i32, %c0_i32_0, %c0_i32_1 : i32, i32, i32
  }
  func.func @transform_2(%arg0: i32) -> (i32, i32) {
    %c0_i32 = arith.constant 0 : i32
    %c0_i32_0 = arith.constant 0 : i32
    %c0_i32_1 = arith.constant 0 : i32
    return %c0_i32, %c0_i32_0 : i32, i32
  }
  func.func @transform_3(%arg0: i32) -> (i32, i32) {
    %c0_i32 = arith.constant 0 : i32
    %c0_i32_0 = arith.constant 0 : i32
    %c0_i32_1 = arith.constant 0 : i32
    return %c0_i32, %c0_i32_0 : i32, i32
  }
  func.func @transform_4(%arg0: i32) -> (i32, i32) {
    %c0_i32 = arith.constant 0 : i32
    %c0_i32_0 = arith.constant 0 : i32
    %c0_i32_1 = arith.constant 0 : i32
    return %c0_i32, %c0_i32_0 : i32, i32
  }
  func.func @transform_5(%arg0: i32) -> (i32, i32) {
    %c0_i32 = arith.constant 0 : i32
    %c0_i32_0 = arith.constant 0 : i32
    %c0_i32_1 = arith.constant 0 : i32
    return %c0_i32, %c0_i32_0 : i32, i32
  }
  func.func @transform_6(%arg0: i32) -> (i32, i32) {
    %c0_i32 = arith.constant 0 : i32
    %c0_i32_0 = arith.constant 0 : i32
    %c0_i32_1 = arith.constant 0 : i32
    return %c0_i32, %c0_i32_0 : i32, i32
  }
}

</mosaic_0001>

<bundles_post_ra>
// kernel: net_forward.1
= control target key start
LH: loop header
LB: loop body
LE: loop exit
PB: predicated region body
PF: predicated region fallthrough
CT: control target
= control target key end

     0   :  { %vm23_vm0 = vcmask 261120   ;;  %v9077_v2 = vmov 0.0   ;;  %vm81_vm1 = vcmask 23552   ;;  %s9078_s17 = smov 32   ;;  %s9079_s18 = smov 64   ;;  %s12626_s0 = inlined_call_operand.vmem [shape: f32[8,16,3], index: 0, kind: input, shape index: {}]   ;;  %s12627_s1 = inlined_call_operand.vmem [shape: f32[5,288,32], index: 1, kind: input, shape index: {}]   ;;  %s12628_s2 = inlined_call_operand.vmem [shape: f32[5,32], index: 2, kind: input, shape index: {}]   ;;  %s12629_s3 = inlined_call_operand.vmem [shape: f32[2048,65], index: 3, kind: input, shape index: {}]   ;;  %s12630_s4 = inlined_call_operand.vmem [shape: f32[1,65], index: 4, kind: input, shape index: {}]   ;;  %s12631_s5 = inlined_call_operand.hbm [shape: f32[2,64], index: 5, kind: output, shape index: {0}]   ;;  %s12632_s6 = inlined_call_operand.vmem [shape: f32[2,1], index: 6, kind: output, shape index: {1}]  }
   0x1   :  { %v64_v0 = vld [vmem:[%s12626_s0] sm:$0xff]  ;;  %v65_v1 = vld [vmem:[%s12626_s0 + $0x8] sm:$0xff]  ;;  %25 = vst.msk [vmem:[#allocation2 + $0x8] sm:$0xff] %vm23_vm0, %v9077_v2  ;;  %24 = vst.msk [vmem:[#allocation2] sm:$0xff] %vm23_vm0, %v9077_v2  ;;  %s9080_s21 = smov 96  }
   0x2   :  { %26 = vst.msk [vmem:[#allocation2 + $0x10] sm:$0xff] %vm23_vm0, %v9077_v2  ;;  %27 = vst.msk [vmem:[#allocation2 + $0x18] sm:$0xff] %vm23_vm0, %v9077_v2  ;;  %v66_v3 = vld [vmem:[%s12626_s0 + $0x10] sm:$0xff]  ;;  %v67_v4 = vld [vmem:[%s12626_s0 + $0x18] sm:$0xff] }
   0x3   :  { %28 = vst.msk [vmem:[#allocation2 + $0x20] sm:$0xff] %vm23_vm0, %v9077_v2  ;;  %29 = vst.msk [vmem:[#allocation2 + $0x28] sm:$0xff] %vm23_vm0, %v9077_v2  ;;  %v68_v5 = vld [vmem:[%s12626_s0 + $0x20] sm:$0xff]  ;;  %v69_v6 = vld [vmem:[%s12626_s0 + $0x28] sm:$0xff] }
   0x4   :  { %30 = vst.msk [vmem:[#allocation2 + $0x30] sm:$0xff] %vm23_vm0, %v9077_v2  ;;  %31 = vst.msk [vmem:[#allocation2 + $0x38] sm:$0xff] %vm23_vm0, %v9077_v2  ;;  %v70_v7 = vld [vmem:[%s12626_s0 + $0x30] sm:$0xff]  ;;  %v71_v8 = vld [vmem:[%s12626_s0 + $0x38] sm:$0xff] }
   0x5   :  { %32 = vst.msk [vmem:[#allocation2 + $0x40] sm:$0xff] %vm23_vm0, %v9077_v2  ;;  %33 = vst.msk [vmem:[#allocation2 + $0x48] sm:$0xff] %vm23_vm0, %v9077_v2  ;;  %v72_v9 = vld [vmem:[%s12626_s0 + $0x40] sm:$0xff]  ;;  %v73_v10 = vld [vmem:[%s12626_s0 + $0x48] sm:$0xff] }
   0x6   :  { %34 = vst.msk [vmem:[#allocation2 + $0x50] sm:$0xff] %vm23_vm0, %v9077_v2  ;;  %35 = vst.msk [vmem:[#allocation2 + $0x58] sm:$0xff] %vm23_vm0, %v9077_v2  ;;  %v838_v11 = vld [vmem:[%s12627_s1 + $0x80] sm:$0xff]  ;;  %v839_v12 = vld [vmem:[%s12627_s1 + $0x88] sm:$0xff] }
   0x7   :  { %36 = vst.msk [vmem:[#allocation2 + $0x60] sm:$0xff] %vm23_vm0, %v9077_v2  ;;  %37 = vst.msk [vmem:[#allocation2 + $0x68] sm:$0xff] %vm23_vm0, %v9077_v2  ;;  %v74_v13 = vld [vmem:[%s12626_s0 + $0x50] sm:$0xff]  ;;  %v822_v14 = vld [vmem:[%s12627_s1] sm:$0xff]  ;;  %v8587_v15 = vpack.c.bf16 %v839_v12, %v838_v11 }
   0x8   :  { %38 = vst.msk [vmem:[#allocation2 + $0x70] sm:$0xff] %vm23_vm0, %v9077_v2  ;;  %39 = vst.msk [vmem:[#allocation2 + $0x78] sm:$0xff] %vm23_vm0, %v9077_v2  ;;  %v823_v16 = vld [vmem:[%s12627_s1 + $0x8] sm:$0xff]  ;;  %v840_v17 = vld [vmem:[%s12627_s1 + $0x90] sm:$0xff] }
   0x9   :  { %40 = vst.msk [vmem:[#allocation2 + $0x80] sm:$0xff] %vm23_vm0, %v9077_v2  ;;  %41 = vst.msk [vmem:[#allocation2 + $0x88] sm:$0xff] %vm23_vm0, %v9077_v2  ;;  %v841_v18 = vld [vmem:[%s12627_s1 + $0x98] sm:$0xff]  ;;  %v8589_v19 = vpack.c.bf16 %v823_v16, %v822_v14  ;;  %v824_v21 = vld [vmem:[%s12627_s1 + $0x10] sm:$0xff]  ;;  %8588 = vmatprep.subr.bf16.mxu0 %v8587_v15 }
   0xa   :  { %42 = vst.msk [vmem:[#allocation2 + $0x90] sm:$0xff] %vm23_vm0, %v9077_v2  ;;  %43 = vst.msk [vmem:[#allocation2 + $0x98] sm:$0xff] %vm23_vm0, %v9077_v2  ;;  %v8591_v20 = vpack.c.bf16 %v841_v18, %v840_v17  ;;  %v825_v22 = vld [vmem:[%s12627_s1 + $0x18] sm:$0xff]  ;;  %v842_v23 = vld [vmem:[%s12627_s1 + $0xa0] sm:$0xff] }
   0xb   :  { %44 = vst.msk [vmem:[#allocation2 + $0xa0] sm:$0xff] %vm23_vm0, %v9077_v2  ;;  %45 = vst.msk [vmem:[#allocation2 + $0xa8] sm:$0xff] %vm23_vm0, %v9077_v2  ;;  %v843_v24 = vld [vmem:[%s12627_s1 + $0xa8] sm:$0xff]  ;;  %8590 = vmatpush3.bf16.msra.mxu0 %v8589_v19  ;;  %v8593_v27 = vpack.c.bf16 %v825_v22, %v824_v21  ;;  %v826_v28 = vld [vmem:[%s12627_s1 + $0x20] sm:$0xff] }
   0xc   :  { %46 = vst.msk [vmem:[#allocation2 + $0xb0] sm:$0xff] %vm23_vm0, %v9077_v2  ;;  %47 = vst.msk [vmem:[#allocation2 + $0xb8] sm:$0xff] %vm23_vm0, %v9077_v2  ;;  %v130_v25 = vld [vmem:[#allocation2 + $0x8] sm:$0xff]  ;;  %8592 = vmatprep.subr.bf16.mxu0 %v8591_v20  ;;  %v8595_v35 = vpack.c.bf16 %v843_v24, %v842_v23  ;;  %v131_v52 = vld [vmem:[#allocation2 + $0x10] sm:$0xff] }
   0xd   :  { %48 = vst.msk [vmem:[#allocation2 + $0xc0] sm:$0xff] %vm23_vm0, %v9077_v2  ;;  %49 = vst.msk [vmem:[#allocation2 + $0xc8] sm:$0xff] %vm23_vm0, %v9077_v2  ;;  %v227_v26 = vld [vmem:[#allocation2 + $0xa] sm:$0xff]  ;;  %162 = vrot.lane.b32.xlu0 %v130_v25, %s9078_s17  ;;  %v830_v12 = vld [vmem:[%s12627_s1 + $0x40] sm:$0xff] }
   0xe   :  { %50 = vst.msk [vmem:[#allocation2 + $0xd0] sm:$0xff] %vm23_vm0, %v9077_v2  ;;  %51 = vst.msk [vmem:[#allocation2 + $0xd8] sm:$0xff] %vm23_vm0, %v9077_v2  ;;  %259 = vrot.lane.b32.xlu1 %v227_v26, %s9079_s18  ;;  %v827_v31 = vld [vmem:[%s12627_s1 + $0x28] sm:$0xff]  ;;  %v848_v15 = vld [vmem:[%s12627_s1 + $0xd0] sm:$0xff] }
   0xf   :  { %52 = vst.msk [vmem:[#allocation2 + $0xe0] sm:$0xff] %vm23_vm0, %v9077_v2  ;;  %53 = vst.msk [vmem:[#allocation2 + $0xe8] sm:$0xff] %vm23_vm0, %v9077_v2  ;;  %8594 = vmatpush3.bf16.msra.mxu0 %v8593_v27  ;;  %v8597_v41 = vpack.c.bf16 %v827_v31, %v826_v28  ;;  %v847_v11 = vld [vmem:[%s12627_s1 + $0xc8] sm:$0xff]  ;;  %v849_v16 = vld [vmem:[%s12627_s1 + $0xd8] sm:$0xff] }
  0x10   :  { %54 = vst.msk [vmem:[#allocation2 + $0xf0] sm:$0xff] %vm23_vm0, %v9077_v2  ;;  %55 = vst.msk [vmem:[#allocation2 + $0xf8] sm:$0xff] %vm23_vm0, %v9077_v2  ;;  %8596 = vmatprep.subr.bf16.mxu0 %v8595_v35  ;;  %v831_v14 = vld [vmem:[%s12627_s1 + $0x48] sm:$0xff]  ;;  %v832_v18 = vld [vmem:[%s12627_s1 + $0x50] sm:$0xff]  ;;  %v8607_v22 = vpack.c.bf16 %v849_v16, %v848_v15 }
  0x11   :  { %56 = vst.msk [vmem:[#allocation2 + $0x100] sm:$0xff] %vm23_vm0, %v9077_v2  ;;  %57 = vst.msk [vmem:[#allocation2 + $0x108] sm:$0xff] %vm23_vm0, %v9077_v2  ;;  %v8605_v17 = vpack.c.bf16 %v831_v14, %v830_v12  ;;  %v833_v19 = vld [vmem:[%s12627_s1 + $0x58] sm:$0xff]  ;;  %v76_v20 = vld [vmem:[%s12626_s0 + $0x60] sm:$0xff] }
  0x12   :  { %58 = vst.msk [vmem:[#allocation2 + $0x110] sm:$0xff] %vm23_vm0, %v9077_v2  ;;  %59 = vst.msk [vmem:[#allocation2 + $0x118] sm:$0xff] %vm23_vm0, %v9077_v2  ;;  %v99_v21 = vld [vmem:[#allocation2 + $0xe] sm:$0xff]  ;;  %v850_v23 = vld [vmem:[%s12627_s1 + $0xe0] sm:$0xff]  ;;  %v8609_v35 = vpack.c.bf16 %v833_v19, %v832_v18 }
  0x13   :  { %60 = vst.msk [vmem:[#allocation2 + $0x120] sm:$0xff] %vm23_vm0, %v9077_v2  ;;  %61 = vst.msk [vmem:[#allocation2 + $0x128] sm:$0xff] %vm23_vm0, %v9077_v2  ;;  %8598 = vmatpush3.bf16.msra.mxu0 %v8597_v41  ;;  %v851_v24 = vld [vmem:[%s12627_s1 + $0xe8] sm:$0xff]  ;;  %v834_v25 = vld [vmem:[%s12627_s1 + $0x60] sm:$0xff] }
  0x14   :  { %62 = vst.msk [vmem:[#allocation2 + $0x130] sm:$0xff] %vm23_vm0, %v9077_v2  ;;  %63 = vst.msk [vmem:[#allocation2 + $0x138] sm:$0xff] %vm23_vm0, %v9077_v2  ;;  %v844_v2 = vld [vmem:[%s12627_s1 + $0xb0] sm:$0xff]  ;;  %v854_v26 = vld [vmem:[%s12627_s1 + $0x100] sm:$0xff] }
  0x15   :  { %82 = vst.msk [vmem:[#allocation2 + $0x28] sm:$0xff] %vm81_vm1, %v64_v0  ;;  %83 = vst.msk [vmem:[#allocation2 + $0x30] sm:$0xff] %vm81_vm1, %v65_v1  ;;  %v228_v1 = vld [vmem:[#allocation2 + $0x12] sm:$0xff]  ;;  %v855_v27 = vld [vmem:[%s12627_s1 + $0x108] sm:$0xff] }
  0x16   :  { %84 = vst.msk [vmem:[#allocation2 + $0x48] sm:$0xff] %vm81_vm1, %v66_v3  ;;  %85 = vst.msk [vmem:[#allocation2 + $0x50] sm:$0xff] %vm81_vm1, %v67_v4  ;;  %v845_v3 = vld [vmem:[%s12627_s1 + $0xb8] sm:$0xff]  ;;  %v8619_v41 = vpack.c.bf16 %v855_v27, %v854_v26 }
  0x17   :  { %86 = vst.msk [vmem:[#allocation2 + $0x68] sm:$0xff] %vm81_vm1, %v68_v5  ;;  %87 = vst.msk [vmem:[#allocation2 + $0x70] sm:$0xff] %vm81_vm1, %v69_v6  ;;  %v75_v4 = vld [vmem:[%s12626_s0 + $0x58] sm:$0xff]  ;;  %v8599_v5 = vpack.c.bf16 %v845_v3, %v844_v2  ;;  %v828_v6 = vld [vmem:[%s12627_s1 + $0x30] sm:$0xff] }
  0x18   :  { %88 = vst.msk [vmem:[#allocation2 + $0x88] sm:$0xff] %vm81_vm1, %v70_v7  ;;  %89 = vst.msk [vmem:[#allocation2 + $0x90] sm:$0xff] %vm81_vm1, %v71_v8  ;;  %v829_v7 = vld [vmem:[%s12627_s1 + $0x38] sm:$0xff]  ;;  %v98_v8 = vld [vmem:[#allocation2 + $0x6] sm:$0xff]  ;;  %8620 = vmatprep.subr.bf16.mxu1 %v8619_v41 }
  0x19   :  { %90 = vst.msk [vmem:[#allocation2 + $0xa8] sm:$0xff] %vm81_vm1, %v72_v9  ;;  %91 = vst.msk [vmem:[#allocation2 + $0xb0] sm:$0xff] %vm81_vm1, %v73_v10  ;;  %v8601_v9 = vpack.c.bf16 %v829_v7, %v828_v6  ;;  %v846_v10 = vld [vmem:[%s12627_s1 + $0xc0] sm:$0xff]  ;;  %8600 = vmatprep.subr.bf16.mxu0 %v8599_v5  ;;  %v856_v3 = vld [vmem:[%s12627_s1 + $0x110] sm:$0xff]  ;;  %8622 = vmatpush3.bf16.msra.mxu1 %v8619_v41 }
  0x1a   :  { %92 = vst.msk [vmem:[#allocation2 + $0xc8] sm:$0xff] %vm81_vm1, %v74_v13  ;;  %93 = vst.msk [vmem:[#allocation2 + $0xd0] sm:$0xff] %vm81_vm1, %v75_v4  ;;  %v8603_v13 = vpack.c.bf16 %v847_v11, %v846_v10  ;;  %v857_v4 = vld [vmem:[%s12627_s1 + $0x118] sm:$0xff]  ;;  %v836_v11 = vld [vmem:[%s12627_s1 + $0x70] sm:$0xff] }
  0x1b   :  { %114 = vst.msk [vmem:[#allocation3] sm:$0xff] %vm23_vm0, %v98_v8  ;;  %8602 = vmatpush3.bf16.msra.mxu0 %v8601_v9  ;;  %115 = vst.msk [vmem:[#allocation3 + $0x18] sm:$0xff] %vm23_vm0, %v99_v21  ;;  %v853_v6 = vld [vmem:[%s12627_s1 + $0xf8] sm:$0xff]  ;;  %v8623_v7 = vpack.c.bf16 %v857_v4, %v856_v3  ;;  %v77_v8 = vld [vmem:[%s12626_s0 + $0x68] sm:$0xff] }
  0x1c   :  { %v9244_v32 = vld [vmem:[#allocation2 + $0x2a] sm:$0xff]  ;;  %v9309_v51 = vld [vmem:[#allocation2 + $0x32] sm:$0xff]  ;;  %8604 = vmatprep.subr.bf16.mxu0 %v8603_v13  ;;  %94 = vst.msk [vmem:[#allocation2 + $0xe8] sm:$0xff] %vm81_vm1, %v76_v20  ;;  %95 = vst.msk [vmem:[#allocation2 + $0xf0] sm:$0xff] %vm81_vm1, %v77_v8 }
  0x1d   :  { %v9237_v29 = vld [vmem:[#allocation2 + $0x46] sm:$0xff]  ;;  %v9246_v34 = vld [vmem:[#allocation2 + $0x4e] sm:$0xff]  ;;  %485 = vrot.lane.b32.xlu0 %v9244_v32, %s9078_s17  ;;  %v79_v12 = vld [vmem:[%s12626_s0 + $0x78] sm:$0xff] }
  0x1e   :  { %v9239_v30 = vld [vmem:[#allocation2 + $0x48] sm:$0xff]  ;;  %118 = vst.msk [vmem:[#allocation3 + $0x60] sm:$0xff] %vm23_vm0, %v9237_v29  ;;  %v9252_v36 = vld [vmem:[#allocation2 + $0x50] sm:$0xff]  ;;  %119 = vst.msk [vmem:[#allocation3 + $0x78] sm:$0xff] %vm23_vm0, %v9246_v34  ;;  %582 = vrot.lane.b32.xlu1 %v9237_v29, %s9079_s18 }
  0x1f   :  { %v324_v33 = vld [vmem:[#allocation2 + $0x26] sm:$0xff]  ;;  %439 = vst.msk [vmem:[#allocation3 + $0x38] sm:$0xff] %vm23_vm0, %v9239_v30  ;;  %v9254_v37 = vld [vmem:[#allocation2 + $0x2e] sm:$0xff]  ;;  %440 = vst.msk [vmem:[#allocation3 + $0x50] sm:$0xff] %vm23_vm0, %v9252_v36  ;;  %8606 = vmatpush3.bf16.msra.mxu0 %v8605_v17 }
  0x20   :  { %116 = vst.msk [vmem:[#allocation3 + $0x30] sm:$0xff] %vm23_vm0, %v324_v33  ;;  %v9259_v38 = vld [vmem:[#allocation2 + $0x4a] sm:$0xff]  ;;  %117 = vst.msk [vmem:[#allocation3 + $0x48] sm:$0xff] %vm23_vm0, %v9254_v37  ;;  %v9275_v43 = vld [vmem:[#allocation2 + $0x52] sm:$0xff]  ;;  %8608 = vmatprep.subr.bf16.mxu0 %v8607_v22 }
  0x21   :  { %v9261_v39 = vld [vmem:[#allocation2 + $0x28] sm:$0xff]  ;;  %v9277_v44 = vld [vmem:[#allocation2 + $0x30] sm:$0xff]  ;;  %758 = vst.msk [vmem:[#allocation3 + $0x10] sm:$0xff] %vm23_vm0, %v9259_v38  ;;  %759 = vst.msk [vmem:[#allocation3 + $0x28] sm:$0xff] %vm23_vm0, %v9275_v43  ;;  %678 = vrot.lane.b32.xlu0 %v9239_v30, %s9080_s21 }
  0x22   :  { %v9263_v40 = vld [vmem:[#allocation2 + $0x66] sm:$0xff]  ;;  %437 = vst.msk [vmem:[#allocation3 + $0x8] sm:$0xff] %vm23_vm0, %v9261_v39  ;;  %v9285_v45 = vld [vmem:[#allocation2 + $0x6e] sm:$0xff]  ;;  %438 = vst.msk [vmem:[#allocation3 + $0x20] sm:$0xff] %vm23_vm0, %v9277_v44  ;;  %356 = vrot.lane.b32.xlu1 %v324_v33, %s9080_s21 }
  0x23   :  { %v9273_v42 = vld [vmem:[#allocation2 + $0x68] sm:$0xff]  ;;  %120 = vst.msk [vmem:[#allocation3 + $0x90] sm:$0xff] %vm23_vm0, %v9263_v40  ;;  %v9287_v46 = vld [vmem:[#allocation2 + $0x70] sm:$0xff]  ;;  %121 = vst.msk [vmem:[#allocation3 + $0xa8] sm:$0xff] %vm23_vm0, %v9285_v45  ;;  %8610 = vmatpush3.bf16.msra.mxu0 %v8609_v35 }
  0x24   :  { %v9289_v47 = vld [vmem:[#allocation2 + $0x6a] sm:$0xff]  ;;  %441 = vst.msk [vmem:[#allocation3 + $0x68] sm:$0xff] %vm23_vm0, %v9273_v42  ;;  %v9301_v50 = vld [vmem:[#allocation2 + $0x72] sm:$0xff]  ;;  %442 = vst.msk [vmem:[#allocation3 + $0x80] sm:$0xff] %vm23_vm0, %v9287_v46 }
  0x25   :  { %v9297_v48 = vld [vmem:[#allocation2 + $0x86] sm:$0xff]  ;;  %760 = vst.msk [vmem:[#allocation3 + $0x40] sm:$0xff] %vm23_vm0, %v9289_v47  ;;  %v9311_v53 = vld [vmem:[#allocation2 + $0x8e] sm:$0xff]  ;;  %761 = vst.msk [vmem:[#allocation3 + $0x58] sm:$0xff] %vm23_vm0, %v9301_v50  ;;  %487 = vrot.lane.b32.xlu0 %v9309_v51, %s9078_s17 }
  0x26   :  { %v9299_v49 = vld [vmem:[#allocation2 + $0x88] sm:$0xff]  ;;  %v9313_v54 = vld [vmem:[#allocation2 + $0x90] sm:$0xff]  ;;  %122 = vst.msk [vmem:[#allocation3 + $0xc0] sm:$0xff] %vm23_vm0, %v9297_v48  ;;  %123 = vst.msk [vmem:[#allocation3 + $0xd8] sm:$0xff] %vm23_vm0, %v9311_v53  ;;  %164 = vrot.lane.b32.xlu1 %v131_v52, %s9078_s17 }
  0x27   :  { %v9315_v55 = vld [vmem:[#allocation2 + $0x8a] sm:$0xff]  ;;  %443 = vst.msk [vmem:[#allocation3 + $0x98] sm:$0xff] %vm23_vm0, %v9299_v49  ;;  %v9330_v58 = vld [vmem:[#allocation2 + $0x92] sm:$0xff]  ;;  %444 = vst.msk [vmem:[#allocation3 + $0xb0] sm:$0xff] %vm23_vm0, %v9313_v54 }
  0x28   :  { %v9326_v56 = vld [vmem:[#allocation2 + $0xa6] sm:$0xff]  ;;  %762 = vst.msk [vmem:[#allocation3 + $0x70] sm:$0xff] %vm23_vm0, %v9315_v55  ;;  %v9338_v59 = vld [vmem:[#allocation2 + $0xae] sm:$0xff]  ;;  %763 = vst.msk [vmem:[#allocation3 + $0x88] sm:$0xff] %vm23_vm0, %v9330_v58 }
  0x29   :  { %v9328_v57 = vld [vmem:[#allocation2 + $0xa8] sm:$0xff]  ;;  %v9340_v60 = vld [vmem:[#allocation2 + $0xb0] sm:$0xff]  ;;  %124 = vst.msk [vmem:[#allocation3 + $0xf0] sm:$0xff] %vm23_vm0, %v9326_v56  ;;  %125 = vst.msk [vmem:[#allocation3 + $0x108] sm:$0xff] %vm23_vm0, %v9338_v59  ;;  %584 = vrot.lane.b32.xlu0 %v9246_v34, %s9079_s18 }
  0x2a   :  { %v9342_v61 = vld [vmem:[#allocation2 + $0xaa] sm:$0xff]  ;;  %445 = vst.msk [vmem:[#allocation3 + $0xc8] sm:$0xff] %vm23_vm0, %v9328_v57  ;;  %v9354_v0 = vld [vmem:[#allocation2 + $0xb2] sm:$0xff]  ;;  %446 = vst.msk [vmem:[#allocation3 + $0xe0] sm:$0xff] %vm23_vm0, %v9340_v60  ;;  %261 = vrot.lane.b32.xlu1 %v228_v1, %s9079_s18 }
  0x2b   :  { %v9350_v62 = vld [vmem:[#allocation2 + $0xc6] sm:$0xff]  ;;  %764 = vst.msk [vmem:[#allocation3 + $0xa0] sm:$0xff] %vm23_vm0, %v9342_v61  ;;  %765 = vst.msk [vmem:[#allocation3 + $0xb8] sm:$0xff] %vm23_vm0, %v9354_v0  ;;  %v9435_v28 = vld [vmem:[#allocation2 + $0xce] sm:$0xff] }
  0x2c   :  { %v9352_v63 = vld [vmem:[#allocation2 + $0xc8] sm:$0xff]  ;;  %126 = vst.msk [vmem:[#allocation3 + $0x120] sm:$0xff] %vm23_vm0, %v9350_v62  ;;  %v9437_v31 = vld [vmem:[#allocation2 + $0xd0] sm:$0xff]  ;;  %127 = vst.msk [vmem:[#allocation3 + $0x138] sm:$0xff] %vm23_vm0, %v9435_v28 }
  0x2d   :  { %447 = vst.msk [vmem:[#allocation3 + $0xf8] sm:$0xff] %vm23_vm0, %v9352_v63  ;;  %v9439_v33 = vld [vmem:[#allocation2 + $0xca] sm:$0xff]  ;;  %680 = vrot.lane.b32.xlu0 %v9252_v36, %s9080_s21  ;;  %v9451_v2 = vld [vmem:[#allocation2 + $0xd2] sm:$0xff]  ;;  %448 = vst.msk [vmem:[#allocation3 + $0x110] sm:$0xff] %vm23_vm0, %v9437_v31 }
  0x2e   :  { %358 = vrot.lane.b32.xlu1 %v9254_v37, %s9080_s21  ;;  %v835_v52 = vld [vmem:[%s12627_s1 + $0x68] sm:$0xff]  ;;  %v852_v1 = vld [vmem:[%s12627_s1 + $0xf0] sm:$0xff]  ;;  %766 = vst.msk [vmem:[#allocation3 + $0xd0] sm:$0xff] %vm23_vm0, %v9439_v33  ;;  %v8611_v37 = vpack.c.bf16 %v851_v24, %v850_v23  ;;  %767 = vst.msk [vmem:[#allocation3 + $0xe8] sm:$0xff] %vm23_vm0, %v9451_v2 }
  0x2f   :  { %v776_v5 = vld [vmem:[#allocation3 + $0x10] sm:$0xff]  ;;  %v8613_v10 = vpack.c.bf16 %v835_v52, %v834_v25 }
  0x30   :  { %8435 = vmatprep.mubr.msk.f32.mxu1 %vm23_vm0, %v776_v5  ;;  %v78_v9 = vld [vmem:[%s12626_s0 + $0x70] sm:$0xff] }
  0x31   :  { %96 = vst.msk [vmem:[#allocation2 + $0x108] sm:$0xff] %vm81_vm1, %v78_v9 }
  0x32   :  { %12 = vsyncpa [#allocation7], 0  ;;  %489 = vrot.lane.b32.xlu0 %v9259_v38, %s9078_s17  ;;  %166 = vrot.lane.b32.xlu1 %v9261_v39, %s9078_s17  ;;  %v9489_v13 = vld [vmem:[#allocation2 + $0xe6] sm:$0xff]  ;;  %v837_v15 = vld [vmem:[%s12627_s1 + $0x78] sm:$0xff]  ;;  %97 = vst.msk [vmem:[#allocation2 + $0x110] sm:$0xff] %vm81_vm1, %v79_v12  ;;  %v8615_v16 = vpack.c.bf16 %v853_v6, %v852_v1  ;;  %vm210_vm2 = vcmask 523520  }
  0x33   :  { %v9491_v14 = vld [vmem:[#allocation2 + $0xe8] sm:$0xff]  ;;  %8612 = vmatprep.subr.bf16.mxu0 %v8611_v37  ;;  %8624 = vmatprep.subr.bf16.mxu1 %v8623_v7  ;;  %128 = vst.msk [vmem:[#allocation3 + $0x150] sm:$0xff] %vm23_vm0, %v9489_v13  ;;  %v8617_v17 = vpack.c.bf16 %v837_v15, %v836_v11  ;;  %v9508_v19 = vld [vmem:[#allocation2 + $0xf0] sm:$0xff]  ;;  %v785_v23 = vld [vmem:[#allocation3 + $0x58] sm:$0xff]  ;;  %vm307_vm3 = vcmask 785920   ;;  %vm404_vm4 = vcmask 1048320  }
  0x34   :  { %449 = vst.msk [vmem:[#allocation3 + $0x128] sm:$0xff] %vm23_vm0, %v9491_v14  ;;  %8626 = vmatpush3.bf16.msra.mxu1 %v8623_v7  ;;  %v779_v39 = vld [vmem:[#allocation3 + $0x28] sm:$0xff]  ;;  %8614 = vmatpush3.bf16.msra.mxu0 %v8613_v10  ;;  %v9514_v22 = vld [vmem:[#allocation2 + $0xf2] sm:$0xff]  ;;  %450 = vst.msk [vmem:[#allocation3 + $0x140] sm:$0xff] %vm23_vm0, %v9508_v19  ;;  %vm5768_vm5 = vcmask 254976   ;;  %vm5782_vm6 = vcmask 517376  }
  0x35   :  { %8616 = vmatprep.subr.bf16.mxu0 %v8615_v16  ;;  %v9506_v18 = vld [vmem:[#allocation2 + $0xee] sm:$0xff]  ;;  %769 = vst.msk [vmem:[#allocation3 + $0x118] sm:$0xff] %vm23_vm0, %v9514_v22  ;;  %v564_v16 = vld [vmem:[#allocation2 + $0x126] sm:$0xff]  ;;  %vm5796_vm7 = vcmask 779776   ;;  %vm5810_vm8 = vcmask 1042176   ;;  %vm7342_vm9 = vcmask 517120  }
  0x36   :  { %586 = vrot.lane.b32.xlu0 %v9263_v40, %s9079_s18  ;;  %263 = vrot.lane.b32.xlu1 %v9244_v32, %s9079_s18  ;;  %v9510_v20 = vld [vmem:[#allocation2 + $0xea] sm:$0xff]  ;;  %129 = vst.msk [vmem:[#allocation3 + $0x168] sm:$0xff] %vm23_vm0, %v9506_v18  ;;  %v782_v32 = vld [vmem:[#allocation3 + $0x40] sm:$0xff] }
  0x37   :  { %8436 = vmatmul.mubr.msk.f32.vlgmr.msra.gmra.mrb[0].mxu1 %vm23_vm0, %v779_v39  ;;  %768 = vst.msk [vmem:[#allocation3 + $0x100] sm:$0xff] %vm23_vm0, %v9510_v20  ;;  %v756_v15 = vld [vmem:[#allocation2 + $0x12a] sm:$0xff] }
  0x38   :  { %8618 = vmatpush3.bf16.msra.mxu0 %v8617_v17  ;;  %v9512_v21 = vld [vmem:[#allocation2 + $0x108] sm:$0xff]  ;;  %8438 = vmatprep.mubr.msk.f32.mxu1 %vm23_vm0, %v782_v32  ;;  %772 = vst.msk [vmem:[#allocation3 + $0x160] sm:$0xff] %vm23_vm0, %v756_v15 }
  0x39   :  { %451 = vst.msk [vmem:[#allocation3 + $0x158] sm:$0xff] %vm23_vm0, %v9512_v21  ;;  %v9532_v24 = vld [vmem:[#allocation2 + $0x110] sm:$0xff] }
  0x3a   :  { %682 = vrot.lane.b32.xlu0 %v9273_v42, %s9080_s21  ;;  %360 = vrot.lane.b32.xlu1 %v9237_v29, %s9080_s21  ;;  %452 = vst.msk [vmem:[#allocation3 + $0x170] sm:$0xff] %vm23_vm0, %v9532_v24  ;;  %v9540_v29 = vld [vmem:[#allocation2 + $0x10a] sm:$0xff] }
  0x3b   :  { %8439 = vmatmul.mubr.msk.f32.gmra.mrb[2].mxu1 %vm23_vm0, %v785_v23  ;;  %770 = vst.msk [vmem:[#allocation3 + $0x130] sm:$0xff] %vm23_vm0, %v9540_v29  ;;  %v9702_v6 = vld [vmem:[#allocation2 + $0x10e] sm:$0xff] }
  0x3e   :  { %491 = vrot.lane.b32.xlu0 %v9275_v43, %s9078_s17  ;;  %168 = vrot.lane.b32.xlu1 %v9277_v44, %s9078_s17  ;;  %v9556_v44 = vld [vmem:[#allocation2 + $0x112] sm:$0xff] }
  0x3f   :  { %771 = vst.msk [vmem:[#allocation3 + $0x148] sm:$0xff] %vm23_vm0, %v9556_v44  ;;  %v818_v23 = vld [vmem:[#allocation3 + $0x160] sm:$0xff] }
  0x40   :  { %1909 = vst.msk [vmem:[#allocation3 + $0x160] sm:$0xff] %vm23_vm0, %v756_v15 }
  0x42   :  { %588 = vrot.lane.b32.xlu0 %v9285_v45, %s9079_s18  ;;  %265 = vrot.lane.b32.xlu1 %v9309_v51, %s9079_s18  ;;  %v788_v51 = vld [vmem:[#allocation3 + $0x70] sm:$0xff] }
  0x43   :  { %8441 = vmatprep.mubr.msk.f32.mxu1 %vm23_vm0, %v788_v51  ;;  %v812_v37 = vld [vmem:[#allocation3 + $0x130] sm:$0xff] }
  0x46   :  { %684 = vrot.lane.b32.xlu0 %v9287_v46, %s9080_s21  ;;  %362 = vrot.lane.b32.xlu1 %v9246_v34, %s9080_s21  ;;  %v791_v34 = vld [vmem:[#allocation3 + $0x88] sm:$0xff] }
  0x47   :  { %8442 = vmatmul.mubr.msk.f32.gmra.mrb[4].mxu1 %vm23_vm0, %v791_v34  ;;  %v565_v34 = vld [vmem:[#allocation2 + $0x12e] sm:$0xff] }
  0x4a   :  { %493 = vrot.lane.b32.xlu0 %v9289_v47, %s9078_s17  ;;  %170 = vrot.lane.b32.xlu1 %v9239_v30, %s9078_s17  ;;  %v794_v30 = vld [vmem:[#allocation3 + $0xa0] sm:$0xff] }
  0x4b   :  { %8444 = vmatprep.mubr.msk.f32.mxu1 %vm23_vm0, %v794_v30 }
  0x4e   :  { %590 = vrot.lane.b32.xlu0 %v9297_v48, %s9079_s18  ;;  %267 = vrot.lane.b32.xlu1 %v9259_v38, %s9079_s18  ;;  %v800_v38 = vld [vmem:[#allocation3 + $0xd0] sm:$0xff] }
  0x52   :  { %686 = vrot.lane.b32.xlu0 %v9299_v49, %s9080_s21  ;;  %364 = vrot.lane.b32.xlu1 %v9263_v40, %s9080_s21  ;;  %v803_v40 = vld [vmem:[#allocation3 + $0xe8] sm:$0xff] }
  0x56   :  { %495 = vrot.lane.b32.xlu0 %v9301_v50, %s9078_s17  ;;  %172 = vrot.lane.b32.xlu1 %v9252_v36, %s9078_s17  ;;  %v797_v36 = vld [vmem:[#allocation3 + $0xb8] sm:$0xff] }
  0x57   :  { %8445 = vmatmul.mubr.msk.f32.gmra.mrb[6].mxu1 %vm23_vm0, %v797_v36 }
  0x58   :  { %8447 = vmatprep.mubr.msk.f32.mxu1 %vm23_vm0, %v800_v38  ;;  %v661_v38 = vld [vmem:[#allocation2 + $0x130] sm:$0xff] }
  0x5a   :  { %592 = vrot.lane.b32.xlu0 %v9311_v53, %s9079_s18  ;;  %269 = vrot.lane.b32.xlu1 %v9275_v43, %s9079_s18 }
  0x5b   :  { %8448 = vmatmul.mubr.msk.f32.gmra.mrb[8].mxu1 %vm23_vm0, %v803_v40 }
  0x5e   :  { %688 = vrot.lane.b32.xlu0 %v9313_v54, %s9080_s21  ;;  %366 = vrot.lane.b32.xlu1 %v9285_v45, %s9080_s21 }
  0x62   :  { %497 = vrot.lane.b32.xlu0 %v9315_v55, %s9078_s17  ;;  %174 = vrot.lane.b32.xlu1 %v9273_v42, %s9078_s17 }
  0x66   :  { %594 = vrot.lane.b32.xlu0 %v9326_v56, %s9079_s18  ;;  %271 = vrot.lane.b32.xlu1 %v9289_v47, %s9079_s18 }
  0x6a   :  { %690 = vrot.lane.b32.xlu0 %v9328_v57, %s9080_s21  ;;  %368 = vrot.lane.b32.xlu1 %v9297_v48, %s9080_s21 }
  0x6e   :  { %499 = vrot.lane.b32.xlu0 %v9330_v58, %s9078_s17  ;;  %176 = vrot.lane.b32.xlu1 %v9287_v46, %s9078_s17 }
  0x72   :  { %596 = vrot.lane.b32.xlu0 %v9338_v59, %s9079_s18  ;;  %273 = vrot.lane.b32.xlu1 %v9301_v50, %s9079_s18 }
  0x76   :  { %692 = vrot.lane.b32.xlu0 %v9340_v60, %s9080_s21  ;;  %370 = vrot.lane.b32.xlu1 %v9311_v53, %s9080_s21  ;;  %v806_v53 = vld [vmem:[#allocation3 + $0x100] sm:$0xff] }
  0x77   :  { %8450 = vmatprep.mubr.msk.f32.mxu1 %vm23_vm0, %v806_v53 }
  0x7a   :  { %501 = vrot.lane.b32.xlu0 %v9342_v61, %s9078_s17  ;;  %178 = vrot.lane.b32.xlu1 %v9299_v49, %s9078_s17 }
  0x7e   :  { %598 = vrot.lane.b32.xlu0 %v9350_v62, %s9079_s18  ;;  %275 = vrot.lane.b32.xlu1 %v9315_v55, %s9079_s18 }
  0x7f   :  { %v163_v42 = vpop.permute.xlu0 %162 }
  0x80   :  { %v260_v43 = vpop.permute.xlu1 %259  ;;  %211 = vst.msk [vmem:[#allocation3] sm:$0xff] %vm210_vm2, %v163_v42 }
  0x81   :  { %308 = vst.msk [vmem:[#allocation3] sm:$0xff] %vm307_vm3, %v260_v43 }
  0x82   :  { %694 = vrot.lane.b32.xlu0 %v9352_v63, %s9080_s21  ;;  %372 = vrot.lane.b32.xlu1 %v9326_v56, %s9080_s21 }
  0x86   :  { %503 = vrot.lane.b32.xlu0 %v9354_v0, %s9078_s17  ;;  %180 = vrot.lane.b32.xlu1 %v9313_v54, %s9078_s17  ;;  %v809_v54 = vld [vmem:[#allocation3 + $0x118] sm:$0xff] }
  0x87   :  { %8451 = vmatmul.mubr.msk.f32.gmra.mrb[10].mxu1 %vm23_vm0, %v809_v54 }
  0x88   :  { %8453 = vmatprep.mubr.msk.f32.mxu1 %vm23_vm0, %v812_v37 }
  0x8a   :  { %600 = vrot.lane.b32.xlu0 %v9435_v28, %s9079_s18  ;;  %277 = vrot.lane.b32.xlu1 %v9330_v58, %s9079_s18 }
  0x8e   :  { %696 = vrot.lane.b32.xlu0 %v9437_v31, %s9080_s21  ;;  %374 = vrot.lane.b32.xlu1 %v9338_v59, %s9080_s21 }
  0x8f   :  { %v486_v45 = vpop.permute.xlu0 %485 }
  0x90   :  { %v583_v46 = vpop.permute.xlu1 %582  ;;  %533 = vst.msk [vmem:[#allocation3 + $0x8] sm:$0xff] %vm210_vm2, %v486_v45 }
  0x91   :  { %630 = vst.msk [vmem:[#allocation3 + $0x8] sm:$0xff] %vm307_vm3, %v583_v46 }
  0x92   :  { %505 = vrot.lane.b32.xlu0 %v9439_v33, %s9078_s17  ;;  %182 = vrot.lane.b32.xlu1 %v9328_v57, %s9078_s17 }
  0x93   :  { %v679_v47 = vpop.permute.xlu0 %678 }
  0x94   :  { %v357_v48 = vpop.permute.xlu1 %356  ;;  %726 = vst.msk [vmem:[#allocation3 + $0x8] sm:$0xff] %vm404_vm4, %v679_v47 }
  0x95   :  { %405 = vst.msk [vmem:[#allocation3] sm:$0xff] %vm404_vm4, %v357_v48 }
  0x96   :  { %602 = vrot.lane.b32.xlu0 %v9489_v13, %s9079_s18  ;;  %279 = vrot.lane.b32.xlu1 %v9342_v61, %s9079_s18 }
  0x97   :  { %v488_v49 = vpop.permute.xlu0 %487 }
  0x98   :  { %v165_v50 = vpop.permute.xlu1 %164  ;;  %534 = vst.msk [vmem:[#allocation3 + $0x20] sm:$0xff] %vm210_vm2, %v488_v49 }
  0x99   :  { %212 = vst.msk [vmem:[#allocation3 + $0x18] sm:$0xff] %vm210_vm2, %v165_v50 }
  0x9a   :  { %698 = vrot.lane.b32.xlu0 %v9491_v14, %s9080_s21  ;;  %376 = vrot.lane.b32.xlu1 %v9350_v62, %s9080_s21 }
  0x9b   :  { %v585_v55 = vpop.permute.xlu0 %584  ;;  %v775_v57 = vld [vmem:[#allocation3 + $0x8] sm:$0xff] }
  0x9c   :  { %v262_v56 = vpop.permute.xlu1 %261  ;;  %v774_v58 = vld [vmem:[#allocation3] sm:$0xff]  ;;  %631 = vst.msk [vmem:[#allocation3 + $0x20] sm:$0xff] %vm307_vm3, %v585_v55  ;;  %975 = vmatprep.mubr.f32.mxu0 %v775_v57 }
  0x9d   :  { %309 = vst.msk [vmem:[#allocation3 + $0x18] sm:$0xff] %vm307_vm3, %v262_v56  ;;  %976 = vmatmul.mubr.f32.vlgmr.msra.gmra.mrb[0].mxu0 %v774_v58 }
  0x9e   :  { %507 = vrot.lane.b32.xlu0 %v9451_v2, %s9078_s17  ;;  %184 = vrot.lane.b32.xlu1 %v9340_v60, %s9078_s17 }
  0x9f   :  { %v681_v59 = vpop.permute.xlu0 %680 }
  0xa0   :  { %v359_v61 = vpop.permute.xlu1 %358  ;;  %727 = vst.msk [vmem:[#allocation3 + $0x20] sm:$0xff] %vm404_vm4, %v681_v59 }
  0xa1   :  { %406 = vst.msk [vmem:[#allocation3 + $0x18] sm:$0xff] %vm404_vm4, %v359_v61 }
  0xa2   :  { %604 = vrot.lane.b32.xlu0 %v9506_v18, %s9079_s18  ;;  %281 = vrot.lane.b32.xlu1 %v9354_v0, %s9079_s18  ;;  %v9680_v0 = vld [vmem:[#allocation2 + $0x106] sm:$0xff] }
  0xa4   :  { %v490_v62 = vpop.permute.xlu0 %489  ;;  %v167_v25 = vpop.permute.xlu1 %166 }
  0xa5   :  { %535 = vst.msk [vmem:[#allocation3 + $0x38] sm:$0xff] %vm210_vm2, %v490_v62  ;;  %213 = vst.msk [vmem:[#allocation3 + $0x30] sm:$0xff] %vm210_vm2, %v167_v25 }
  0xa6   :  { %700 = vrot.lane.b32.xlu0 %v9508_v19, %s9080_s21  ;;  %378 = vrot.lane.b32.xlu1 %v9435_v28, %s9080_s21 }
  0xa7   :  { %v778_v27 = vld [vmem:[#allocation3 + $0x20] sm:$0xff] }
  0xa8   :  { %v587_v60 = vpop.permute.xlu0 %586  ;;  %v264_v26 = vpop.permute.xlu1 %263  ;;  %v777_v35 = vld [vmem:[#allocation3 + $0x18] sm:$0xff]  ;;  %980 = vmatprep.mubr.f32.mxu0 %v778_v27 }
  0xa9   :  { %632 = vst.msk [vmem:[#allocation3 + $0x38] sm:$0xff] %vm307_vm3, %v587_v60  ;;  %310 = vst.msk [vmem:[#allocation3 + $0x30] sm:$0xff] %vm307_vm3, %v264_v26  ;;  %981 = vmatmul.mubr.f32.gmra.mrb[2].mxu0 %v777_v35  ;;  %v1271_v60 = vld [vmem:[#allocation2 + $0x8] sm:$0xff] }
  0xaa   :  { %509 = vrot.lane.b32.xlu0 %v9510_v20, %s9078_s17  ;;  %186 = vrot.lane.b32.xlu1 %v9352_v63, %s9078_s17  ;;  %v815_v63 = vld [vmem:[#allocation3 + $0x148] sm:$0xff] }
  0xab   :  { %8454 = vmatmul.mubr.msk.f32.gmra.mrb[12].mxu1 %vm23_vm0, %v815_v63  ;;  %v1367_v35 = vld [vmem:[#allocation2 + $0xa] sm:$0xff] }
  0xac   :  { %v683_v41 = vpop.permute.xlu0 %682  ;;  %v361_v28 = vpop.permute.xlu1 %360  ;;  %8456 = vmatprep.mubr.msk.f32.mxu1 %vm23_vm0, %v818_v23 }
  0xad   :  { %728 = vst.msk [vmem:[#allocation3 + $0x38] sm:$0xff] %vm404_vm4, %v683_v41  ;;  %407 = vst.msk [vmem:[#allocation3 + $0x30] sm:$0xff] %vm404_vm4, %v361_v28  ;;  %v1272_v28 = vld [vmem:[#allocation2 + $0x10] sm:$0xff] }
  0xae   :  { %606 = vrot.lane.b32.xlu0 %v9680_v0, %s9079_s18  ;;  %283 = vrot.lane.b32.xlu1 %v9439_v33, %s9079_s18 }
  0xb0   :  { %v492_v52 = vpop.permute.xlu0 %491  ;;  %v169_v1 = vpop.permute.xlu1 %168 }
  0xb1   :  { %536 = vst.msk [vmem:[#allocation3 + $0x50] sm:$0xff] %vm210_vm2, %v492_v52  ;;  %214 = vst.msk [vmem:[#allocation3 + $0x48] sm:$0xff] %vm210_vm2, %v169_v1 }
  0xb2   :  { %702 = vrot.lane.b32.xlu0 %v9512_v21, %s9080_s21  ;;  %380 = vrot.lane.b32.xlu1 %v9489_v13, %s9080_s21 }
  0xb4   :  { %v589_v3 = vpop.permute.xlu0 %588  ;;  %v266_v33 = vpop.permute.xlu1 %265  ;;  %v781_v4 = vld [vmem:[#allocation3 + $0x38] sm:$0xff]  ;;  %v780_v5 = vld [vmem:[#allocation3 + $0x30] sm:$0xff] }
  0xb5   :  { %633 = vst.msk [vmem:[#allocation3 + $0x50] sm:$0xff] %vm307_vm3, %v589_v3  ;;  %311 = vst.msk [vmem:[#allocation3 + $0x48] sm:$0xff] %vm307_vm3, %v266_v33  ;;  %985 = vmatprep.mubr.f32.mxu0 %v781_v4  ;;  %v1368_v3 = vld [vmem:[#allocation2 + $0x12] sm:$0xff] }
  0xb6   :  { %511 = vrot.lane.b32.xlu0 %v9514_v22, %s9078_s17  ;;  %986 = vmatmul.mubr.f32.gmra.mrb[4].mxu0 %v780_v5 }
  0xb7   :  { %188 = vrot.lane.b32.xlu1 %v9437_v31, %s9078_s17 }
  0xb8   :  { %v685_v7 = vpop.permute.xlu0 %684  ;;  %v363_v8 = vpop.permute.xlu1 %362 }
  0xb9   :  { %729 = vst.msk [vmem:[#allocation3 + $0x50] sm:$0xff] %vm404_vm4, %v685_v7  ;;  %408 = vst.msk [vmem:[#allocation3 + $0x48] sm:$0xff] %vm404_vm4, %v363_v8 }
  0xba   :  { %608 = vrot.lane.b32.xlu0 %v9702_v6, %s9079_s18 }
  0xbb   :  { %285 = vrot.lane.b32.xlu1 %v9451_v2, %s9079_s18  ;;  %v757_v2 = vld [vmem:[#allocation2 + $0x132] sm:$0xff] }
  0xbc   :  { %v494_v9 = vpop.permute.xlu0 %493  ;;  %v171_v10 = vpop.permute.xlu1 %170  ;;  %773 = vst.msk [vmem:[#allocation3 + $0x178] sm:$0xff] %vm23_vm0, %v757_v2 }
  0xbd   :  { %537 = vst.msk [vmem:[#allocation3 + $0x68] sm:$0xff] %vm210_vm2, %v494_v9  ;;  %215 = vst.msk [vmem:[#allocation3 + $0x60] sm:$0xff] %vm210_vm2, %v171_v10 }
  0xbe   :  { %704 = vrot.lane.b32.xlu0 %v9532_v24, %s9080_s21 }
  0xbf   :  { %382 = vrot.lane.b32.xlu1 %v9506_v18, %s9080_s21  ;;  %v660_v18 = vld [vmem:[#allocation2 + $0x128] sm:$0xff] }
  0xc0   :  { %v591_v31 = vpop.permute.xlu0 %590  ;;  %v268_v11 = vpop.permute.xlu1 %267  ;;  %v784_v12 = vld [vmem:[#allocation3 + $0x50] sm:$0xff]  ;;  %v783_v13 = vld [vmem:[#allocation3 + $0x48] sm:$0xff] }
  0xc1   :  { %634 = vst.msk [vmem:[#allocation3 + $0x68] sm:$0xff] %vm307_vm3, %v591_v31  ;;  %312 = vst.msk [vmem:[#allocation3 + $0x60] sm:$0xff] %vm307_vm3, %v268_v11  ;;  %990 = vmatprep.mubr.f32.mxu0 %v784_v12 }
  0xc2   :  { %513 = vrot.lane.b32.xlu0 %v9540_v29, %s9078_s17  ;;  %991 = vmatmul.mubr.f32.gmra.mrb[6].mxu0 %v783_v13 }
  0xc3   :  { %190 = vrot.lane.b32.xlu1 %v9491_v14, %s9078_s17  ;;  %v821_v14 = vld [vmem:[#allocation3 + $0x178] sm:$0xff] }
  0xc4   :  { %v687_v39 = vpop.permute.xlu0 %686  ;;  %v365_v17 = vpop.permute.xlu1 %364  ;;  %8457 = vmatmul.mubr.msk.f32.gmra.mrb[14].mxu1 %vm23_vm0, %v821_v14  ;;  %1910 = vst.msk [vmem:[#allocation3 + $0x178] sm:$0xff] %vm23_vm0, %v757_v2 }
  0xc5   :  { %730 = vst.msk [vmem:[#allocation3 + $0x68] sm:$0xff] %vm404_vm4, %v687_v39  ;;  %409 = vst.msk [vmem:[#allocation3 + $0x60] sm:$0xff] %vm404_vm4, %v365_v17 }
  0xc6   :  { %610 = vrot.lane.b32.xlu0 %v564_v16, %s9079_s18 }
  0xc7   :  { %287 = vrot.lane.b32.xlu1 %v9510_v20, %s9079_s18 }
  0xc8   :  { %v496_v21 = vpop.permute.xlu0 %495  ;;  %v173_v32 = vpop.permute.xlu1 %172 }
  0xc9   :  { %538 = vst.msk [vmem:[#allocation3 + $0x80] sm:$0xff] %vm210_vm2, %v496_v21  ;;  %216 = vst.msk [vmem:[#allocation3 + $0x78] sm:$0xff] %vm210_vm2, %v173_v32 }
  0xca   :  { %706 = vrot.lane.b32.xlu0 %v660_v18, %s9080_s21 }
  0xcb   :  { %384 = vrot.lane.b32.xlu1 %v9680_v0, %s9080_s21 }
  0xcc   :  { %v593_v20 = vpop.permute.xlu0 %592  ;;  %v270_v24 = vpop.permute.xlu1 %269  ;;  %v787_v29 = vld [vmem:[#allocation3 + $0x68] sm:$0xff]  ;;  %v786_v51 = vld [vmem:[#allocation3 + $0x60] sm:$0xff] }
  0xcd   :  { %635 = vst.msk [vmem:[#allocation3 + $0x80] sm:$0xff] %vm307_vm3, %v593_v20  ;;  %313 = vst.msk [vmem:[#allocation3 + $0x78] sm:$0xff] %vm307_vm3, %v270_v24  ;;  %995 = vmatprep.mubr.f32.mxu0 %v787_v29 }
  0xce   :  { %515 = vrot.lane.b32.xlu0 %v9556_v44, %s9078_s17  ;;  %996 = vmatmul.mubr.f32.gmra.mrb[8].mxu0 %v786_v51 }
  0xcf   :  { %192 = vrot.lane.b32.xlu1 %v9508_v19, %s9078_s17 }
  0xd0   :  { %v689_v30 = vpop.permute.xlu0 %688  ;;  %v367_v36 = vpop.permute.xlu1 %366 }
  0xd1   :  { %731 = vst.msk [vmem:[#allocation3 + $0x80] sm:$0xff] %vm404_vm4, %v689_v30  ;;  %410 = vst.msk [vmem:[#allocation3 + $0x78] sm:$0xff] %vm404_vm4, %v367_v36 }
  0xd2   :  { %612 = vrot.lane.b32.xlu0 %v565_v34, %s9079_s18 }
  0xd3   :  { %289 = vrot.lane.b32.xlu1 %v9514_v22, %s9079_s18 }
  0xd4   :  { %v498_v40 = vpop.permute.xlu0 %497  ;;  %v175_v42 = vpop.permute.xlu1 %174 }
  0xd5   :  { %539 = vst.msk [vmem:[#allocation3 + $0x98] sm:$0xff] %vm210_vm2, %v498_v40  ;;  %217 = vst.msk [vmem:[#allocation3 + $0x90] sm:$0xff] %vm210_vm2, %v175_v42  ;;  %v7418_v42 = vld [vmem:[%s12627_s1 + $0x220] sm:$0xff] }
  0xd6   :  { %708 = vrot.lane.b32.xlu0 %v661_v38, %s9080_s21 }
  0xd7   :  { %386 = vrot.lane.b32.xlu1 %v9702_v6, %s9080_s21 }
  0xd8   :  { %v595_v19 = vpop.permute.xlu0 %594  ;;  %v272_v44 = vpop.permute.xlu1 %271  ;;  %v790_v43 = vld [vmem:[#allocation3 + $0x80] sm:$0xff]  ;;  %v789_v45 = vld [vmem:[#allocation3 + $0x78] sm:$0xff] }
  0xd9   :  { %636 = vst.msk [vmem:[#allocation3 + $0x98] sm:$0xff] %vm307_vm3, %v595_v19  ;;  %314 = vst.msk [vmem:[#allocation3 + $0x90] sm:$0xff] %vm307_vm3, %v272_v44  ;;  %1000 = vmatprep.mubr.f32.mxu0 %v790_v43  ;;  %v7419_v19 = vld [vmem:[%s12627_s1 + $0x228] sm:$0xff] }
  0xda   :  { %1001 = vmatmul.mubr.f32.gmra.mrb[10].mxu0 %v789_v45  ;;  %v8659_v43 = vpack.c.bf16 %v7419_v19, %v7418_v42  ;;  %v7405_v42 = vld [vmem:[%s12627_s1 + $0x1b8] sm:$0xff] }
  0xdb   :  { %1303 = vrot.lane.b32.xlu1 %v1271_v60, %s9078_s17 }
  0xdc   :  { %v691_v22 = vpop.permute.xlu0 %690  ;;  %v369_v46 = vpop.permute.xlu1 %368  ;;  %8660 = vmatprep.subr.bf16.mxu0 %v8659_v43 }
  0xdd   :  { %732 = vst.msk [vmem:[#allocation3 + $0x98] sm:$0xff] %vm404_vm4, %v691_v22  ;;  %411 = vst.msk [vmem:[#allocation3 + $0x90] sm:$0xff] %vm404_vm4, %v369_v46  ;;  %8662 = vmatpush3.bf16.msra.mxu0 %v8659_v43  ;;  %v7420_v46 = vld [vmem:[%s12627_s1 + $0x230] sm:$0xff] }
  0xdf   :  { %1399 = vrot.lane.b32.xlu1 %v1367_v35, %s9079_s18 }
  0xe0   :  { %v500_v47 = vpop.permute.xlu0 %499  ;;  %v177_v48 = vpop.permute.xlu1 %176 }
  0xe1   :  { %540 = vst.msk [vmem:[#allocation3 + $0xb0] sm:$0xff] %vm210_vm2, %v500_v47  ;;  %218 = vst.msk [vmem:[#allocation3 + $0xa8] sm:$0xff] %vm210_vm2, %v177_v48  ;;  %v7421_v47 = vld [vmem:[%s12627_s1 + $0x238] sm:$0xff] }
  0xe2   :  { %v8663_v48 = vpack.c.bf16 %v7421_v47, %v7420_v46 }
  0xe3   :  { %1305 = vrot.lane.b32.xlu1 %v1272_v28, %s9078_s17 }
  0xe4   :  { %v597_v49 = vpop.permute.xlu0 %596  ;;  %v274_v50 = vpop.permute.xlu1 %273  ;;  %v793_v53 = vld [vmem:[#allocation3 + $0x98] sm:$0xff]  ;;  %v792_v54 = vld [vmem:[#allocation3 + $0x90] sm:$0xff]  ;;  %8664 = vmatprep.subr.bf16.mxu0 %v8663_v48 }
  0xe5   :  { %637 = vst.msk [vmem:[#allocation3 + $0xb0] sm:$0xff] %vm307_vm3, %v597_v49  ;;  %315 = vst.msk [vmem:[#allocation3 + $0xa8] sm:$0xff] %vm307_vm3, %v274_v50  ;;  %1005 = vmatprep.mubr.f32.mxu0 %v793_v53  ;;  %8666 = vmatpush3.bf16.msra.mxu0 %v8663_v48 }
  0xe6   :  { %1006 = vmatmul.mubr.f32.gmra.mrb[12].mxu0 %v792_v54 }
  0xe7   :  { %1401 = vrot.lane.b32.xlu1 %v1368_v3, %s9079_s18 }
  0xe8   :  { %v693_v55 = vpop.permute.xlu0 %692  ;;  %v371_v56 = vpop.permute.xlu1 %370 }
  0xe9   :  { %733 = vst.msk [vmem:[#allocation3 + $0xb0] sm:$0xff] %vm404_vm4, %v693_v55  ;;  %412 = vst.msk [vmem:[#allocation3 + $0xa8] sm:$0xff] %vm404_vm4, %v371_v56 }
  0xec   :  { %v502_v57 = vpop.permute.xlu0 %501  ;;  %v179_v58 = vpop.permute.xlu1 %178 }
  0xed   :  { %541 = vst.msk [vmem:[#allocation3 + $0xc8] sm:$0xff] %vm210_vm2, %v502_v57  ;;  %219 = vst.msk [vmem:[#allocation3 + $0xc0] sm:$0xff] %vm210_vm2, %v179_v58 }
  0xf0   :  { %v599_v59 = vpop.permute.xlu0 %598  ;;  %v276_v61 = vpop.permute.xlu1 %275  ;;  %v796_v62 = vld [vmem:[#allocation3 + $0xb0] sm:$0xff]  ;;  %v795_v25 = vld [vmem:[#allocation3 + $0xa8] sm:$0xff] }
  0xf1   :  { %638 = vst.msk [vmem:[#allocation3 + $0xc8] sm:$0xff] %vm307_vm3, %v599_v59  ;;  %316 = vst.msk [vmem:[#allocation3 + $0xc0] sm:$0xff] %vm307_vm3, %v276_v61  ;;  %1010 = vmatprep.mubr.f32.mxu0 %v796_v62 }
  0xf2   :  { %1011 = vmatmul.mubr.f32.gmra.mrb[14].mxu0 %v795_v25 }
  0xf4   :  { %v695_v26 = vpop.permute.xlu0 %694  ;;  %v373_v27 = vpop.permute.xlu1 %372 }
  0xf5   :  { %734 = vst.msk [vmem:[#allocation3 + $0xc8] sm:$0xff] %vm404_vm4, %v695_v26  ;;  %413 = vst.msk [vmem:[#allocation3 + $0xc0] sm:$0xff] %vm404_vm4, %v373_v27 }
  0xf8   :  { %v504_v0 = vpop.permute.xlu0 %503  ;;  %v181_v41 = vpop.permute.xlu1 %180 }
  0xf9   :  { %542 = vst.msk [vmem:[#allocation3 + $0xe0] sm:$0xff] %vm210_vm2, %v504_v0  ;;  %220 = vst.msk [vmem:[#allocation3 + $0xd8] sm:$0xff] %vm210_vm2, %v181_v41 }
  0xfc   :  { %v601_v52 = vpop.permute.xlu0 %600  ;;  %v278_v1 = vpop.permute.xlu1 %277  ;;  %v799_v37 = vld [vmem:[#allocation3 + $0xc8] sm:$0xff]  ;;  %v798_v63 = vld [vmem:[#allocation3 + $0xc0] sm:$0xff] }
  0xfd   :  { %639 = vst.msk [vmem:[#allocation3 + $0xe0] sm:$0xff] %vm307_vm3, %v601_v52  ;;  %317 = vst.msk [vmem:[#allocation3 + $0xd8] sm:$0xff] %vm307_vm3, %v278_v1  ;;  %1015 = vmatprep.mubr.f32.mxu0 %v799_v37 }
  0xfe   :  { %1016 = vmatmul.mubr.f32.gmra.mrb[16].mxu0 %v798_v63 }
 0x100   :  { %v697_v33 = vpop.permute.xlu0 %696  ;;  %v375_v4 = vpop.permute.xlu1 %374 }
 0x101   :  { %735 = vst.msk [vmem:[#allocation3 + $0xe0] sm:$0xff] %vm404_vm4, %v697_v33  ;;  %414 = vst.msk [vmem:[#allocation3 + $0xd8] sm:$0xff] %vm404_vm4, %v375_v4 }
 0x104   :  { %v506_v5 = vpop.permute.xlu0 %505  ;;  %v183_v6 = vpop.permute.xlu1 %182 }
 0x105   :  { %543 = vst.msk [vmem:[#allocation3 + $0xf8] sm:$0xff] %vm210_vm2, %v506_v5  ;;  %221 = vst.msk [vmem:[#allocation3 + $0xf0] sm:$0xff] %vm210_vm2, %v183_v6 }
 0x108   :  { %v603_v7 = vpop.permute.xlu0 %602  ;;  %v280_v8 = vpop.permute.xlu1 %279  ;;  %v802_v9 = vld [vmem:[#allocation3 + $0xe0] sm:$0xff]  ;;  %v801_v10 = vld [vmem:[#allocation3 + $0xd8] sm:$0xff] }
 0x109   :  { %640 = vst.msk [vmem:[#allocation3 + $0xf8] sm:$0xff] %vm307_vm3, %v603_v7  ;;  %318 = vst.msk [vmem:[#allocation3 + $0xf0] sm:$0xff] %vm307_vm3, %v280_v8  ;;  %1020 = vmatprep.mubr.f32.mxu0 %v802_v9  ;;  %v1239_v8 = vld [vmem:[#allocation2 + $0x6] sm:$0xff] }
 0x10a   :  { %1021 = vmatmul.mubr.f32.gmra.mrb[18].mxu0 %v801_v10  ;;  %v9784_v31 = vpop.f32.mrb[0].mxu1  ;;  %1255 = vst.msk [vmem:[#allocation3] sm:$0xff] %vm23_vm0, %v1239_v8  ;;  %v1240_v10 = vld [vmem:[#allocation2 + $0xe] sm:$0xff] }
 0x10b   :  { %v9786_v11 = vpop.f32.mrb[1].mxu1  ;;  %1256 = vst.msk [vmem:[#allocation3 + $0x18] sm:$0xff] %vm23_vm0, %v1240_v10  ;;  %v7412_v10 = vld [vmem:[%s12627_s1 + $0x1f0] sm:$0xff] }
 0x10c   :  { %v699_v12 = vpop.permute.xlu0 %698  ;;  %v377_v13 = vpop.permute.xlu1 %376 }
 0x10d   :  { %736 = vst.msk [vmem:[#allocation3 + $0xf8] sm:$0xff] %vm404_vm4, %v699_v12  ;;  %415 = vst.msk [vmem:[#allocation3 + $0xf0] sm:$0xff] %vm404_vm4, %v377_v13 }
 0x10e   :  { %v9790_v15 = vpop.f32.mrb[2].mxu1 }
 0x10f   :  { %v9792_v16 = vpop.f32.mrb[3].mxu1 }
 0x110   :  { %v508_v2 = vpop.permute.xlu0 %507  ;;  %v185_v39 = vpop.permute.xlu1 %184 }
 0x111   :  { %544 = vst.msk [vmem:[#allocation3 + $0x110] sm:$0xff] %vm210_vm2, %v508_v2  ;;  %222 = vst.msk [vmem:[#allocation3 + $0x108] sm:$0xff] %vm210_vm2, %v185_v39 }
 0x114   :  { %v605_v17 = vpop.permute.xlu0 %604  ;;  %v805_v18 = vld [vmem:[#allocation3 + $0xf8] sm:$0xff]  ;;  %v804_v21 = vld [vmem:[#allocation3 + $0xf0] sm:$0xff]  ;;  %v282_v32 = vpop.permute.xlu1 %281 }
 0x115   :  { %641 = vst.msk [vmem:[#allocation3 + $0x110] sm:$0xff] %vm307_vm3, %v605_v17  ;;  %1025 = vmatprep.mubr.f32.mxu0 %v805_v18  ;;  %319 = vst.msk [vmem:[#allocation3 + $0x108] sm:$0xff] %vm307_vm3, %v282_v32  ;;  %v9860_v18 = vld [vmem:[%s12628_s2] ss:$0 sm:$0xff] }
 0x116   :  { %1026 = vmatmul.mubr.f32.gmra.mrb[20].mxu0 %v804_v21 }
 0x118   :  { %v701_v23 = vpop.permute.xlu0 %700  ;;  %v379_v14 = vpop.permute.xlu1 %378 }
 0x119   :  { %737 = vst.msk [vmem:[#allocation3 + $0x110] sm:$0xff] %vm404_vm4, %v701_v23  ;;  %416 = vst.msk [vmem:[#allocation3 + $0x108] sm:$0xff] %vm404_vm4, %v379_v14 }
 0x11a   :  { %v9806_v40 = vpop.f32.mrb[4].mxu1 }
 0x11b   :  { %v9814_v44 = vpop.f32.mrb[5].mxu1 }
 0x11c   :  { %v510_v20 = vpop.permute.xlu0 %509  ;;  %v187_v24 = vpop.permute.xlu1 %186 }
 0x11d   :  { %545 = vst.msk [vmem:[#allocation3 + $0x128] sm:$0xff] %vm210_vm2, %v510_v20  ;;  %223 = vst.msk [vmem:[#allocation3 + $0x120] sm:$0xff] %vm210_vm2, %v187_v24  ;;  %v7402_v24 = vld [vmem:[%s12627_s1 + $0x1a0] sm:$0xff] }
 0x120   :  { %v607_v29 = vpop.permute.xlu0 %606  ;;  %v808_v51 = vld [vmem:[#allocation3 + $0x110] sm:$0xff]  ;;  %v284_v34 = vpop.permute.xlu1 %283  ;;  %v807_v30 = vld [vmem:[#allocation3 + $0x108] sm:$0xff] }
 0x121   :  { %642 = vst.msk [vmem:[#allocation3 + $0x128] sm:$0xff] %vm307_vm3, %v607_v29  ;;  %1030 = vmatprep.mubr.f32.mxu0 %v808_v51  ;;  %320 = vst.msk [vmem:[#allocation3 + $0x120] sm:$0xff] %vm307_vm3, %v284_v34  ;;  %v7403_v29 = vld [vmem:[%s12627_s1 + $0x1a8] sm:$0xff]  ;;  %v7386_v34 = vld [vmem:[%s12627_s1 + $0x120] sm:$0xff] }
 0x122   :  { %1031 = vmatmul.mubr.f32.gmra.mrb[22].mxu0 %v807_v30  ;;  %v8627_v51 = vpack.c.bf16 %v7403_v29, %v7402_v24  ;;  %v7387_v30 = vld [vmem:[%s12627_s1 + $0x128] sm:$0xff]  ;;  %v7414_v29 = vld [vmem:[%s12627_s1 + $0x200] sm:$0xff] }
 0x124   :  { %v703_v36 = vpop.permute.xlu0 %702  ;;  %v381_v38 = vpop.permute.xlu1 %380  ;;  %8628 = vmatprep.subr.bf16.mxu1 %v8627_v51  ;;  %v7415_v51 = vld [vmem:[%s12627_s1 + $0x208] sm:$0xff] }
 0x125   :  { %738 = vst.msk [vmem:[#allocation3 + $0x128] sm:$0xff] %vm404_vm4, %v703_v36  ;;  %417 = vst.msk [vmem:[#allocation3 + $0x120] sm:$0xff] %vm404_vm4, %v381_v38  ;;  %v7404_v38 = vld [vmem:[%s12627_s1 + $0x1b0] sm:$0xff] }
 0x126   :  { %v8631_v43 = vpack.c.bf16 %v7405_v42, %v7404_v38 }
 0x128   :  { %v512_v45 = vpop.permute.xlu0 %511 }
 0x129   :  { %546 = vst.msk [vmem:[#allocation3 + $0x140] sm:$0xff] %vm210_vm2, %v512_v45  ;;  %v189_v22 = vpop.permute.xlu1 %188  ;;  %v7388_v45 = vld [vmem:[%s12627_s1 + $0x130] sm:$0xff] }
 0x12a   :  { %224 = vst.msk [vmem:[#allocation3 + $0x138] sm:$0xff] %vm210_vm2, %v189_v22  ;;  %v9834_v27 = vpop.f32.mrb[6].mxu1  ;;  %v7389_v22 = vld [vmem:[%s12627_s1 + $0x138] sm:$0xff] }
 0x12b   :  { %v9836_v35 = vpop.f32.mrb[7].mxu1  ;;  %v8633_v47 = vpack.c.bf16 %v7389_v22, %v7388_v45 }
 0x12c   :  { %v609_v49 = vpop.permute.xlu0 %608  ;;  %v811_v50 = vld [vmem:[#allocation3 + $0x128] sm:$0xff]  ;;  %v810_v54 = vld [vmem:[#allocation3 + $0x120] sm:$0xff] }
 0x12d   :  { %643 = vst.msk [vmem:[#allocation3 + $0x140] sm:$0xff] %vm307_vm3, %v609_v49  ;;  %v286_v53 = vpop.permute.xlu1 %285  ;;  %1035 = vmatprep.mubr.f32.mxu0 %v811_v50  ;;  %v7406_v49 = vld [vmem:[%s12627_s1 + $0x1c0] sm:$0xff]  ;;  %v7407_v50 = vld [vmem:[%s12627_s1 + $0x1c8] sm:$0xff] }
 0x12e   :  { %321 = vst.msk [vmem:[#allocation3 + $0x138] sm:$0xff] %vm307_vm3, %v286_v53  ;;  %1036 = vmatmul.mubr.f32.gmra.mrb[24].mxu0 %v810_v54  ;;  %v9844_v5 = vpop.f32.mrb[8].mxu1 }
 0x12f   :  { %v9846_v6 = vpop.f32.mrb[9].mxu1 }
 0x130   :  { %v705_v55 = vpop.permute.xlu0 %704 }
 0x131   :  { %739 = vst.msk [vmem:[#allocation3 + $0x140] sm:$0xff] %vm404_vm4, %v705_v55  ;;  %v383_v56 = vpop.permute.xlu1 %382  ;;  %v8635_v55 = vpack.c.bf16 %v7407_v50, %v7406_v49 }
 0x132   :  { %418 = vst.msk [vmem:[#allocation3 + $0x138] sm:$0xff] %vm404_vm4, %v383_v56  ;;  %v7390_v56 = vld [vmem:[%s12627_s1 + $0x140] sm:$0xff] }
 0x134   :  { %v514_v57 = vpop.permute.xlu0 %513 }
 0x135   :  { %547 = vst.msk [vmem:[#allocation3 + $0x158] sm:$0xff] %vm210_vm2, %v514_v57  ;;  %v191_v58 = vpop.permute.xlu1 %190 }
 0x136   :  { %225 = vst.msk [vmem:[#allocation3 + $0x150] sm:$0xff] %vm210_vm2, %v191_v58  ;;  %v7391_v58 = vld [vmem:[%s12627_s1 + $0x148] sm:$0xff] }
 0x138   :  { %v611_v59 = vpop.permute.xlu0 %610  ;;  %v814_v61 = vld [vmem:[#allocation3 + $0x140] sm:$0xff] }
 0x139   :  { %644 = vst.msk [vmem:[#allocation3 + $0x158] sm:$0xff] %vm307_vm3, %v611_v59  ;;  %v288_v62 = vpop.permute.xlu1 %287  ;;  %1040 = vmatprep.mubr.f32.mxu0 %v814_v61  ;;  %v813_v25 = vld [vmem:[#allocation3 + $0x138] sm:$0xff]  ;;  %v8637_v59 = vpack.c.bf16 %v7391_v58, %v7390_v56 }
 0x13a   :  { %322 = vst.msk [vmem:[#allocation3 + $0x150] sm:$0xff] %vm307_vm3, %v288_v62  ;;  %1041 = vmatmul.mubr.f32.gmra.mrb[26].mxu0 %v813_v25  ;;  %v7408_v25 = vld [vmem:[%s12627_s1 + $0x1d0] sm:$0xff] }
 0x13c   :  { %v707_v60 = vpop.permute.xlu0 %706 }
 0x13d   :  { %740 = vst.msk [vmem:[#allocation3 + $0x158] sm:$0xff] %vm404_vm4, %v707_v60  ;;  %v385_v26 = vpop.permute.xlu1 %384 }
 0x13e   :  { %419 = vst.msk [vmem:[#allocation3 + $0x150] sm:$0xff] %vm404_vm4, %v385_v26  ;;  %v7392_v26 = vld [vmem:[%s12627_s1 + $0x150] sm:$0xff] }
 0x140   :  { %v516_v0 = vpop.permute.xlu0 %515 }
 0x141   :  { %548 = vst.msk [vmem:[#allocation3 + $0x170] sm:$0xff] %vm210_vm2, %v516_v0  ;;  %v193_v41 = vpop.permute.xlu1 %192  ;;  %v7393_v0 = vld [vmem:[%s12627_s1 + $0x158] sm:$0xff] }
 0x142   :  { %226 = vst.msk [vmem:[#allocation3 + $0x168] sm:$0xff] %vm210_vm2, %v193_v41 }
 0x144   :  { %v613_v28 = vpop.permute.xlu0 %612  ;;  %v817_v52 = vld [vmem:[#allocation3 + $0x158] sm:$0xff] }
 0x145   :  { %645 = vst.msk [vmem:[#allocation3 + $0x170] sm:$0xff] %vm307_vm3, %v613_v28  ;;  %v290_v1 = vpop.permute.xlu1 %289  ;;  %1045 = vmatprep.mubr.f32.mxu0 %v817_v52  ;;  %v816_v37 = vld [vmem:[#allocation3 + $0x150] sm:$0xff]  ;;  %v8641_v28 = vpack.c.bf16 %v7393_v0, %v7392_v26 }
 0x146   :  { %323 = vst.msk [vmem:[#allocation3 + $0x168] sm:$0xff] %vm307_vm3, %v290_v1  ;;  %1046 = vmatmul.mubr.f32.gmra.mrb[28].mxu0 %v816_v37  ;;  %v7410_v1 = vld [vmem:[%s12627_s1 + $0x1e0] sm:$0xff]  ;;  %v7411_v37 = vld [vmem:[%s12627_s1 + $0x1e8] sm:$0xff] }
 0x148   :  { %v709_v63 = vpop.permute.xlu0 %708 }
 0x149   :  { %741 = vst.msk [vmem:[#allocation3 + $0x170] sm:$0xff] %vm404_vm4, %v709_v63  ;;  %v387_v3 = vpop.permute.xlu1 %386 }
 0x14a   :  { %420 = vst.msk [vmem:[#allocation3 + $0x168] sm:$0xff] %vm404_vm4, %v387_v3  ;;  %v8643_v3 = vpack.c.bf16 %v7411_v37, %v7410_v1 }
 0x14d   :  { %v1304_v7 = vpop.permute.xlu1 %1303 }
 0x14e   :  { %1351 = vst.msk [vmem:[#allocation3] sm:$0xff] %vm210_vm2, %v1304_v7 }
 0x150   :  { %v820_v33 = vld [vmem:[#allocation3 + $0x170] sm:$0xff] }
 0x151   :  { %1050 = vmatprep.mubr.f32.mxu0 %v820_v33  ;;  %v819_v4 = vld [vmem:[#allocation3 + $0x168] sm:$0xff]  ;;  %v1400_v9 = vpop.permute.xlu1 %1399  ;;  %v7394_v33 = vld [vmem:[%s12627_s1 + $0x160] sm:$0xff] }
 0x152   :  { %1051 = vmatmul.mubr.f32.gmra.mrb[30].mxu0 %v819_v4  ;;  %1447 = vst.msk [vmem:[#allocation3] sm:$0xff] %vm307_vm3, %v1400_v9  ;;  %v7395_v4 = vld [vmem:[%s12627_s1 + $0x168] sm:$0xff] }
 0x153   :  { %v8645_v8 = vpack.c.bf16 %v7395_v4, %v7394_v33 }
 0x155   :  { %v1306_v13 = vpop.permute.xlu1 %1305 }
 0x156   :  { %1352 = vst.msk [vmem:[#allocation3 + $0x18] sm:$0xff] %vm210_vm2, %v1306_v13  ;;  %v7413_v13 = vld [vmem:[%s12627_s1 + $0x1f8] sm:$0xff] }
 0x159   :  { %v1402_v21 = vpop.permute.xlu1 %1401 }
 0x15a   :  { %v9852_v12 = vpop.f32.mrb[10].mxu1  ;;  %1448 = vst.msk [vmem:[#allocation3 + $0x18] sm:$0xff] %vm307_vm3, %v1402_v21  ;;  %v8647_v21 = vpack.c.bf16 %v7413_v13, %v7412_v10 }
 0x15b   :  { %v9855_v2 = vpop.f32.mrb[11].mxu1 }
 0x170   :  { %v7679_v39 = vpop.f32.mrb[0].mxu0 }
 0x171   :  { %v7680_v17 = vpop.f32.mrb[1].mxu0 }
 0x172   :  { %v7681_v32 = vadd.f32 %v7680_v17, %v7679_v39 }
 0x174   :  { %v978_v23 = vadd.f32 %v7681_v32, %v9860_v18 }
 0x176   :  { %v1123_v14 = vadd.f32 %v9786_v11, %v978_v23  ;;  %v8629_v11 = vpack.c.bf16 %v7387_v30, %v7386_v34  ;;  %v8651_v30 = vpack.c.bf16 %v7415_v51, %v7414_v29 }
 0x178   :  { %v1201_v20 = vmax.f32 %v1123_v14, 0.0  ;;  %8630 = vmatpush3.bf16.msra.mxu1 %v8629_v11  ;;  %v7396_v14 = vld [vmem:[%s12627_s1 + $0x170] sm:$0xff]  ;;  %v7398_v11 = vld [vmem:[%s12627_s1 + $0x180] sm:$0xff] }
 0x179   :  { %8632 = vmatprep.subr.bf16.mxu1 %v8631_v43  ;;  %v7417_v43 = vld [vmem:[%s12627_s1 + $0x218] sm:$0xff] }
 0x17a   :  { %1217 = vst.msk [vmem:[#allocation2 + $0x28] sm:$0xff] %vm23_vm0, %v1201_v20  ;;  %v7397_v20 = vld [vmem:[%s12627_s1 + $0x178] sm:$0xff] }
 0x17b   :  { %v8649_v24 = vpack.c.bf16 %v7397_v20, %v7396_v14 }
 0x17c   :  { %v7682_v36 = vpop.f32.mrb[2].mxu0  ;;  %8634 = vmatpush3.bf16.msra.mxu1 %v8633_v47  ;;  %v7401_v47 = vld [vmem:[%s12627_s1 + $0x198] sm:$0xff] }
 0x17d   :  { %v7683_v19 = vpop.f32.mrb[3].mxu0  ;;  %8636 = vmatprep.subr.bf16.mxu1 %v8635_v55 }
 0x17e   :  { %v7684_v46 = vadd.f32 %v7683_v19, %v7682_v36  ;;  %v9907_v62 = vpop.f32.mrb[12].mxu1  ;;  %v7399_v36 = vld [vmem:[%s12627_s1 + $0x188] sm:$0xff]  ;;  %v7416_v19 = vld [vmem:[%s12627_s1 + $0x210] sm:$0xff] }
 0x17f   :  { %v9923_v41 = vpop.f32.mrb[13].mxu1  ;;  %v8653_v38 = vpack.c.bf16 %v7399_v36, %v7398_v11  ;;  %v8655_v22 = vpack.c.bf16 %v7417_v43, %v7416_v19 }
 0x180   :  { %v983_v48 = vadd.f32 %v7684_v46, %v9860_v18  ;;  %8638 = vmatpush3.bf16.msra.mxu1 %v8637_v59  ;;  %v7400_v46 = vld [vmem:[%s12627_s1 + $0x190] sm:$0xff] }
 0x181   :  { %v1463_v53 = vld [vmem:[#allocation2 + $0x26] sm:$0xff]  ;;  %v8657_v49 = vpack.c.bf16 %v7401_v47, %v7400_v46 }
 0x182   :  { %v1273_v54 = vld [vmem:[#allocation2 + $0x28] sm:$0xff]  ;;  %v1128_v57 = vadd.f32 %v9784_v31, %v983_v48  ;;  %1495 = vrot.lane.b32.xlu1 %v1463_v53, %s9080_s21  ;;  %1257 = vst.msk [vmem:[#allocation3 + $0x30] sm:$0xff] %vm23_vm0, %v1463_v53  ;;  %v7409_v31 = vld [vmem:[%s12627_s1 + $0x1d8] sm:$0xff] }
 0x183   :  { %1575 = vst.msk [vmem:[#allocation3 + $0x8] sm:$0xff] %vm23_vm0, %v1273_v54  ;;  %v8639_v60 = vpack.c.bf16 %v7409_v31, %v7408_v25 }
 0x184   :  { %v1202_v61 = vmax.f32 %v1128_v57, 0.0 }
 0x185   :  { %8640 = vmatprep.subr.bf16.mxu1 %v8639_v60 }
 0x186   :  { %1218 = vst.msk [vmem:[#allocation2 + $0x30] sm:$0xff] %vm23_vm0, %v1202_v61  ;;  %1307 = vrot.lane.b32.xlu1 %v1273_v54, %s9078_s17  ;;  %8642 = vmatpush3.bf16.msra.mxu1 %v8641_v28 }
 0x187   :  { %8644 = vmatprep.subr.bf16.mxu1 %v8643_v3 }
 0x189   :  { %v7685_v52 = vpop.f32.mrb[4].mxu0 }
 0x18a   :  { %v7686_v63 = vpop.f32.mrb[5].mxu0  ;;  %8646 = vmatpush3.bf16.msra.mxu1 %v8645_v8 }
 0x18b   :  { %v7687_v7 = vadd.f32 %v7686_v63, %v7685_v52  ;;  %8648 = vmatprep.subr.bf16.mxu1 %v8647_v21 }
 0x18d   :  { %v988_v9 = vadd.f32 %v7687_v7, %v9860_v18  ;;  %v1591_v39 = vld [vmem:[#allocation2 + $0x2a] sm:$0xff]  ;;  %v1592_v34 = vld [vmem:[#allocation2 + $0x32] sm:$0xff] }
 0x18e   :  { %v1464_v17 = vld [vmem:[#allocation2 + $0x2e] sm:$0xff]  ;;  %1623 = vrot.lane.b32.xlu0 %v1591_v39, %s9078_s17  ;;  %8650 = vmatpush3.bf16.msra.mxu1 %v8649_v24 }
 0x18f   :  { %v1133_v32 = vadd.f32 %v9792_v16, %v988_v9  ;;  %1497 = vrot.lane.b32.xlu1 %v1464_v17, %s9080_s21  ;;  %v1274_v23 = vld [vmem:[#allocation2 + $0x30] sm:$0xff]  ;;  %1258 = vst.msk [vmem:[#allocation3 + $0x48] sm:$0xff] %vm23_vm0, %v1464_v17  ;;  %8652 = vmatprep.subr.bf16.mxu1 %v8651_v30 }
 0x190   :  { %1576 = vst.msk [vmem:[#allocation3 + $0x20] sm:$0xff] %vm23_vm0, %v1274_v23 }
 0x191   :  { %v1203_v16 = vmax.f32 %v1133_v32, 0.0 }
 0x192   :  { %1625 = vrot.lane.b32.xlu0 %v1592_v34, %s9078_s17  ;;  %8654 = vmatpush3.bf16.msra.mxu1 %v8653_v38 }
 0x193   :  { %1219 = vst.msk [vmem:[#allocation2 + $0x48] sm:$0xff] %vm23_vm0, %v1203_v16  ;;  %1403 = vrot.lane.b32.xlu1 %v1591_v39, %s9079_s18  ;;  %8656 = vmatprep.subr.bf16.mxu1 %v8655_v22 }
 0x195   :  { %v7688_v42 = vpop.f32.mrb[6].mxu0 }
 0x196   :  { %v7689_v45 = vpop.f32.mrb[7].mxu0  ;;  %8658 = vmatpush3.bf16.msra.mxu1 %v8657_v49 }
 0x197   :  { %v7690_v48 = vadd.f32 %v7689_v45, %v7688_v42  ;;  %1309 = vrot.lane.b32.xlu1 %v1274_v23, %s9078_s17  ;;  %v9989_v57 = vpop.f32.mrb[14].mxu1 }
 0x198   :  { %v9994_v58 = vpop.f32.mrb[15].mxu1 }
 0x199   :  { %v993_v50 = vadd.f32 %v7690_v48, %v9860_v18 }
 0x19a   :  { %v1687_v53 = vld [vmem:[#allocation2 + $0x46] sm:$0xff] }
 0x19b   :  { %v1783_v54 = vld [vmem:[#allocation2 + $0x48] sm:$0xff]  ;;  %v1138_v55 = vadd.f32 %v9790_v15, %v993_v50  ;;  %1719 = vrot.lane.b32.xlu0 %v1687_v53, %s9079_s18  ;;  %1405 = vrot.lane.b32.xlu1 %v1592_v34, %s9079_s18  ;;  %1259 = vst.msk [vmem:[#allocation3 + $0x60] sm:$0xff] %vm23_vm0, %v1687_v53 }
 0x19c   :  { %1577 = vst.msk [vmem:[#allocation3 + $0x38] sm:$0xff] %vm23_vm0, %v1783_v54 }
 0x19d   :  { %v1204_v56 = vmax.f32 %v1138_v55, 0.0 }
 0x19f   :  { %1220 = vst.msk [vmem:[#allocation2 + $0x50] sm:$0xff] %vm23_vm0, %v1204_v56  ;;  %1815 = vrot.lane.b32.xlu0 %v1783_v54, %s9080_s21  ;;  %1499 = vrot.lane.b32.xlu1 %v1687_v53, %s9080_s21 }
 0x1a1   :  { %v7691_v15 = vpop.f32.mrb[8].mxu0 }
 0x1a2   :  { %v7692_v59 = vpop.f32.mrb[9].mxu0 }
 0x1a3   :  { %v7693_v61 = vadd.f32 %v7692_v59, %v7691_v15  ;;  %1311 = vrot.lane.b32.xlu1 %v1783_v54, %s9078_s17 }
 0x1a5   :  { %v998_v25 = vadd.f32 %v7693_v61, %v9860_v18 }
 0x1a6   :  { %v1688_v31 = vld [vmem:[#allocation2 + $0x4e] sm:$0xff] }
 0x1a7   :  { %v1784_v60 = vld [vmem:[#allocation2 + $0x50] sm:$0xff]  ;;  %v1143_v0 = vadd.f32 %v9814_v44, %v998_v25  ;;  %1721 = vrot.lane.b32.xlu0 %v1688_v31, %s9079_s18  ;;  %1501 = vrot.lane.b32.xlu1 %v1688_v31, %s9080_s21  ;;  %1260 = vst.msk [vmem:[#allocation3 + $0x78] sm:$0xff] %vm23_vm0, %v1688_v31 }
 0x1a8   :  { %v1371_v26 = vld [vmem:[#allocation2 + $0x4a] sm:$0xff]  ;;  %v1880_v28 = vld [vmem:[#allocation2 + $0x52] sm:$0xff]  ;;  %1578 = vst.msk [vmem:[#allocation3 + $0x50] sm:$0xff] %vm23_vm0, %v1784_v60 }
 0x1a9   :  { %1895 = vst.msk [vmem:[#allocation3 + $0x10] sm:$0xff] %vm23_vm0, %v1371_v26  ;;  %1896 = vst.msk [vmem:[#allocation3 + $0x28] sm:$0xff] %vm23_vm0, %v1880_v28  ;;  %v1205_v52 = vmax.f32 %v1143_v0, 0.0 }
 0x1ab   :  { %1222 = vst.msk [vmem:[#allocation2 + $0x68] sm:$0xff] %vm23_vm0, %v1205_v52  ;;  %1817 = vrot.lane.b32.xlu0 %v1784_v60, %s9080_s21  ;;  %1407 = vrot.lane.b32.xlu1 %v1371_v26, %s9079_s18 }
 0x1ad   :  { %v7694_v44 = vpop.f32.mrb[10].mxu0 }
 0x1ae   :  { %v7695_v1 = vpop.f32.mrb[11].mxu0 }
 0x1af   :  { %v7696_v63 = vadd.f32 %v7695_v1, %v7694_v44  ;;  %1627 = vrot.lane.b32.xlu0 %v1371_v26, %s9078_s17  ;;  %1313 = vrot.lane.b32.xlu1 %v1784_v60, %s9078_s17 }
 0x1b0   :  { %v1913_v37 = vld [vmem:[#allocation3 + $0x10] sm:$0xff]  ;;  %v1916_v3 = vld [vmem:[#allocation3 + $0x28] sm:$0xff] }
 0x1b1   :  { %8467 = vmatprep.mubr.msk.f32.mxu0 %vm23_vm0, %v1913_v37  ;;  %v1003_v33 = vadd.f32 %v7696_v63, %v9860_v18 }
 0x1b2   :  { %8468 = vmatmul.mubr.msk.f32.vlgmr.msra.gmra.mrb[32].mxu0 %vm23_vm0, %v1916_v3  ;;  %v1689_v4 = vld [vmem:[#allocation2 + $0x66] sm:$0xff] }
 0x1b3   :  { %v1785_v7 = vld [vmem:[#allocation2 + $0x68] sm:$0xff]  ;;  %v1148_v8 = vadd.f32 %v9806_v40, %v1003_v33  ;;  %1629 = vrot.lane.b32.xlu0 %v1880_v28, %s9078_s17  ;;  %1261 = vst.msk [vmem:[#allocation3 + $0x90] sm:$0xff] %vm23_vm0, %v1689_v4  ;;  %1409 = vrot.lane.b32.xlu1 %v1880_v28, %s9079_s18 }
 0x1b4   :  { %1579 = vst.msk [vmem:[#allocation3 + $0x68] sm:$0xff] %vm23_vm0, %v1785_v7 }
 0x1b5   :  { %v1206_v9 = vmax.f32 %v1148_v8, 0.0 }
 0x1b7   :  { %1223 = vst.msk [vmem:[#allocation2 + $0x70] sm:$0xff] %vm23_vm0, %v1206_v9  ;;  %1723 = vrot.lane.b32.xlu0 %v1689_v4, %s9079_s18  ;;  %1503 = vrot.lane.b32.xlu1 %v1689_v4, %s9080_s21 }
 0x1b9   :  { %v7697_v10 = vpop.f32.mrb[12].mxu0 }
 0x1ba   :  { %v7698_v13 = vpop.f32.mrb[13].mxu0 }
 0x1bb   :  { %v7699_v39 = vadd.f32 %v7698_v13, %v7697_v10  ;;  %1819 = vrot.lane.b32.xlu0 %v1785_v7, %s9080_s21  ;;  %1315 = vrot.lane.b32.xlu1 %v1785_v7, %s9078_s17 }
 0x1bd   :  { %v1008_v40 = vadd.f32 %v7699_v39, %v9860_v18 }
 0x1be   :  { %v1690_v17 = vld [vmem:[#allocation2 + $0x6e] sm:$0xff] }
 0x1bf   :  { %v1786_v21 = vld [vmem:[#allocation2 + $0x70] sm:$0xff]  ;;  %v1153_v23 = vadd.f32 %v9836_v35, %v1008_v40  ;;  %1725 = vrot.lane.b32.xlu0 %v1690_v17, %s9079_s18  ;;  %1262 = vst.msk [vmem:[#allocation3 + $0xa8] sm:$0xff] %vm23_vm0, %v1690_v17  ;;  %1505 = vrot.lane.b32.xlu1 %v1690_v17, %s9080_s21 }
 0x1c0   :  { %v1373_v32 = vld [vmem:[#allocation2 + $0x6a] sm:$0xff]  ;;  %v1882_v14 = vld [vmem:[#allocation2 + $0x72] sm:$0xff]  ;;  %1580 = vst.msk [vmem:[#allocation3 + $0x80] sm:$0xff] %vm23_vm0, %v1786_v21 }
 0x1c1   :  { %1897 = vst.msk [vmem:[#allocation3 + $0x40] sm:$0xff] %vm23_vm0, %v1373_v32  ;;  %1898 = vst.msk [vmem:[#allocation3 + $0x58] sm:$0xff] %vm23_vm0, %v1882_v14  ;;  %v1207_v20 = vmax.f32 %v1153_v23, 0.0 }
 0x1c3   :  { %1225 = vst.msk [vmem:[#allocation2 + $0x88] sm:$0xff] %vm23_vm0, %v1207_v20  ;;  %1821 = vrot.lane.b32.xlu0 %v1786_v21, %s9080_s21  ;;  %1411 = vrot.lane.b32.xlu1 %v1373_v32, %s9079_s18 }
 0x1c5   :  { %v7700_v35 = vpop.f32.mrb[14].mxu0 }
 0x1c6   :  { %v7701_v24 = vpop.f32.mrb[15].mxu0 }
 0x1c7   :  { %v7702_v29 = vadd.f32 %v7701_v24, %v7700_v35  ;;  %1631 = vrot.lane.b32.xlu0 %v1373_v32, %s9078_s17  ;;  %1317 = vrot.lane.b32.xlu1 %v1786_v21, %s9078_s17 }
 0x1c8   :  { %v1919_v16 = vld [vmem:[#allocation3 + $0x40] sm:$0xff]  ;;  %v1922_v51 = vld [vmem:[#allocation3 + $0x58] sm:$0xff] }
 0x1c9   :  { %8470 = vmatprep.mubr.msk.f32.mxu0 %vm23_vm0, %v1919_v16  ;;  %v1013_v34 = vadd.f32 %v7702_v29, %v9860_v18 }
 0x1ca   :  { %8471 = vmatmul.mubr.msk.f32.gmra.mrb[34].mxu0 %vm23_vm0, %v1922_v51  ;;  %v1691_v30 = vld [vmem:[#allocation2 + $0x86] sm:$0xff] }
 0x1cb   :  { %v1787_v11 = vld [vmem:[#allocation2 + $0x88] sm:$0xff]  ;;  %v1158_v36 = vadd.f32 %v9834_v27, %v1013_v34  ;;  %1633 = vrot.lane.b32.xlu0 %v1882_v14, %s9078_s17  ;;  %1263 = vst.msk [vmem:[#allocation3 + $0xc0] sm:$0xff] %vm23_vm0, %v1691_v30  ;;  %1413 = vrot.lane.b32.xlu1 %v1882_v14, %s9079_s18 }
 0x1cc   :  { %1581 = vst.msk [vmem:[#allocation3 + $0x98] sm:$0xff] %vm23_vm0, %v1787_v11 }
 0x1cd   :  { %v1208_v38 = vmax.f32 %v1158_v36, 0.0 }
 0x1cf   :  { %1226 = vst.msk [vmem:[#allocation2 + $0x90] sm:$0xff] %vm23_vm0, %v1208_v38  ;;  %1727 = vrot.lane.b32.xlu0 %v1691_v30, %s9079_s18  ;;  %1507 = vrot.lane.b32.xlu1 %v1691_v30, %s9080_s21 }
 0x1d1   :  { %v7703_v42 = vpop.f32.mrb[16].mxu0 }
 0x1d2   :  { %v7704_v19 = vpop.f32.mrb[17].mxu0 }
 0x1d3   :  { %v7705_v43 = vadd.f32 %v7704_v19, %v7703_v42  ;;  %1823 = vrot.lane.b32.xlu0 %v1787_v11, %s9080_s21  ;;  %1319 = vrot.lane.b32.xlu1 %v1787_v11, %s9078_s17 }
 0x1d5   :  { %v1018_v27 = vadd.f32 %v7705_v43, %v9860_v18 }
 0x1d6   :  { %v1692_v45 = vld [vmem:[#allocation2 + $0x8e] sm:$0xff] }
 0x1d7   :  { %v1788_v22 = vld [vmem:[#allocation2 + $0x90] sm:$0xff]  ;;  %v1163_v47 = vadd.f32 %v9846_v6, %v1018_v27  ;;  %1729 = vrot.lane.b32.xlu0 %v1692_v45, %s9079_s18  ;;  %1264 = vst.msk [vmem:[#allocation3 + $0xd8] sm:$0xff] %vm23_vm0, %v1692_v45  ;;  %1509 = vrot.lane.b32.xlu1 %v1692_v45, %s9080_s21 }
 0x1d8   :  { %v1375_v46 = vld [vmem:[#allocation2 + $0x8a] sm:$0xff]  ;;  %v1884_v48 = vld [vmem:[#allocation2 + $0x92] sm:$0xff]  ;;  %1582 = vst.msk [vmem:[#allocation3 + $0xb0] sm:$0xff] %vm23_vm0, %v1788_v22 }
 0x1d9   :  { %1899 = vst.msk [vmem:[#allocation3 + $0x70] sm:$0xff] %vm23_vm0, %v1375_v46  ;;  %1900 = vst.msk [vmem:[#allocation3 + $0x88] sm:$0xff] %vm23_vm0, %v1884_v48  ;;  %v1209_v49 = vmax.f32 %v1163_v47, 0.0 }
 0x1db   :  { %1228 = vst.msk [vmem:[#allocation2 + $0xa8] sm:$0xff] %vm23_vm0, %v1209_v49  ;;  %1825 = vrot.lane.b32.xlu0 %v1788_v22, %s9080_s21  ;;  %1415 = vrot.lane.b32.xlu1 %v1375_v46, %s9079_s18 }
 0x1dd   :  { %v7706_v6 = vpop.f32.mrb[18].mxu0 }
 0x1de   :  { %v7707_v50 = vpop.f32.mrb[19].mxu0 }
 0x1df   :  { %v7708_v54 = vadd.f32 %v7707_v50, %v7706_v6  ;;  %1635 = vrot.lane.b32.xlu0 %v1375_v46, %s9078_s17  ;;  %1321 = vrot.lane.b32.xlu1 %v1788_v22, %s9078_s17 }
 0x1e0   :  { %v1925_v53 = vld [vmem:[#allocation3 + $0x70] sm:$0xff]  ;;  %v1928_v55 = vld [vmem:[#allocation3 + $0x88] sm:$0xff] }
 0x1e1   :  { %8473 = vmatprep.mubr.msk.f32.mxu0 %vm23_vm0, %v1925_v53  ;;  %v1023_v56 = vadd.f32 %v7708_v54, %v9860_v18 }
 0x1e2   :  { %8474 = vmatmul.mubr.msk.f32.gmra.mrb[36].mxu0 %vm23_vm0, %v1928_v55  ;;  %v1693_v15 = vld [vmem:[#allocation2 + $0xa6] sm:$0xff] }
 0x1e3   :  { %v1789_v59 = vld [vmem:[#allocation2 + $0xa8] sm:$0xff]  ;;  %v1168_v61 = vadd.f32 %v9844_v5, %v1023_v56  ;;  %1637 = vrot.lane.b32.xlu0 %v1884_v48, %s9078_s17  ;;  %1265 = vst.msk [vmem:[#allocation3 + $0xf0] sm:$0xff] %vm23_vm0, %v1693_v15  ;;  %1417 = vrot.lane.b32.xlu1 %v1884_v48, %s9079_s18 }
 0x1e4   :  { %1583 = vst.msk [vmem:[#allocation3 + $0xc8] sm:$0xff] %vm23_vm0, %v1789_v59 }
 0x1e5   :  { %v1210_v25 = vmax.f32 %v1168_v61, 0.0 }
 0x1e7   :  { %1229 = vst.msk [vmem:[#allocation2 + $0xb0] sm:$0xff] %vm23_vm0, %v1210_v25  ;;  %1731 = vrot.lane.b32.xlu0 %v1693_v15, %s9079_s18  ;;  %1511 = vrot.lane.b32.xlu1 %v1693_v15, %s9080_s21 }
 0x1e9   :  { %v7709_v31 = vpop.f32.mrb[20].mxu0 }
 0x1ea   :  { %v7710_v60 = vpop.f32.mrb[21].mxu0 }
 0x1eb   :  { %v7711_v26 = vadd.f32 %v7710_v60, %v7709_v31  ;;  %1827 = vrot.lane.b32.xlu0 %v1789_v59, %s9080_s21  ;;  %1323 = vrot.lane.b32.xlu1 %v1789_v59, %s9078_s17 }
 0x1ed   :  { %v1028_v5 = vadd.f32 %v7711_v26, %v9860_v18 }
 0x1ee   :  { %v1694_v0 = vld [vmem:[#allocation2 + $0xae] sm:$0xff] }
 0x1ef   :  { %v1790_v28 = vld [vmem:[#allocation2 + $0xb0] sm:$0xff]  ;;  %v1173_v44 = vadd.f32 %v9855_v2, %v1028_v5  ;;  %1733 = vrot.lane.b32.xlu0 %v1694_v0, %s9079_s18  ;;  %1266 = vst.msk [vmem:[#allocation3 + $0x108] sm:$0xff] %vm23_vm0, %v1694_v0  ;;  %1513 = vrot.lane.b32.xlu1 %v1694_v0, %s9080_s21 }
 0x1f0   :  { %v1377_v52 = vld [vmem:[#allocation2 + $0xaa] sm:$0xff]  ;;  %v1886_v1 = vld [vmem:[#allocation2 + $0xb2] sm:$0xff]  ;;  %1584 = vst.msk [vmem:[#allocation3 + $0xe0] sm:$0xff] %vm23_vm0, %v1790_v28 }
 0x1f1   :  { %1901 = vst.msk [vmem:[#allocation3 + $0xa0] sm:$0xff] %vm23_vm0, %v1377_v52  ;;  %1902 = vst.msk [vmem:[#allocation3 + $0xb8] sm:$0xff] %vm23_vm0, %v1886_v1  ;;  %v1211_v37 = vmax.f32 %v1173_v44, 0.0 }
 0x1f3   :  { %1231 = vst.msk [vmem:[#allocation2 + $0xc8] sm:$0xff] %vm23_vm0, %v1211_v37  ;;  %1829 = vrot.lane.b32.xlu0 %v1790_v28, %s9080_s21  ;;  %1419 = vrot.lane.b32.xlu1 %v1377_v52, %s9079_s18 }
 0x1f4   :  { %v1496_v63 = vpop.permute.xlu1 %1495 }
 0x1f5   :  { %v7712_v2 = vpop.f32.mrb[22].mxu0  ;;  %1543 = vst.msk [vmem:[#allocation3] sm:$0xff] %vm404_vm4, %v1496_v63 }
 0x1f6   :  { %v7713_v3 = vpop.f32.mrb[23].mxu0 }
 0x1f7   :  { %v7714_v4 = vadd.f32 %v7713_v3, %v7712_v2  ;;  %1639 = vrot.lane.b32.xlu0 %v1377_v52, %s9078_s17  ;;  %1325 = vrot.lane.b32.xlu1 %v1790_v28, %s9078_s17 }
 0x1f8   :  { %v1931_v33 = vld [vmem:[#allocation3 + $0xa0] sm:$0xff]  ;;  %v1934_v7 = vld [vmem:[#allocation3 + $0xb8] sm:$0xff]  ;;  %v1308_v9 = vpop.permute.xlu1 %1307 }
 0x1f9   :  { %8476 = vmatprep.mubr.msk.f32.mxu0 %vm23_vm0, %v1931_v33  ;;  %v1033_v8 = vadd.f32 %v7714_v4, %v9860_v18  ;;  %1353 = vst.msk [vmem:[#allocation3 + $0x30] sm:$0xff] %vm210_vm2, %v1308_v9 }
 0x1fa   :  { %8477 = vmatmul.mubr.msk.f32.gmra.mrb[38].mxu0 %vm23_vm0, %v1934_v7  ;;  %v1695_v10 = vld [vmem:[#allocation2 + $0xc6] sm:$0xff] }
 0x1fb   :  { %v1791_v13 = vld [vmem:[#allocation2 + $0xc8] sm:$0xff]  ;;  %v1178_v39 = vadd.f32 %v9852_v12, %v1033_v8  ;;  %1641 = vrot.lane.b32.xlu0 %v1886_v1, %s9078_s17  ;;  %1267 = vst.msk [vmem:[#allocation3 + $0x120] sm:$0xff] %vm23_vm0, %v1695_v10  ;;  %1421 = vrot.lane.b32.xlu1 %v1886_v1, %s9079_s18 }
 0x1fc   :  { %1585 = vst.msk [vmem:[#allocation3 + $0xf8] sm:$0xff] %vm23_vm0, %v1791_v13  ;;  %v1911_v15 = vld [vmem:[#allocation3] sm:$0xff] }
 0x1fd   :  { %v1212_v40 = vmax.f32 %v1178_v39, 0.0 }
 0x1ff   :  { %1232 = vst.msk [vmem:[#allocation2 + $0xd0] sm:$0xff] %vm23_vm0, %v1212_v40  ;;  %1735 = vrot.lane.b32.xlu0 %v1695_v10, %s9079_s18  ;;  %1515 = vrot.lane.b32.xlu1 %v1695_v10, %s9080_s21 }
 0x200   :  { %v1624_v21 = vpop.permute.xlu0 %1623 }
 0x201   :  { %v7715_v17 = vpop.f32.mrb[24].mxu0  ;;  %1671 = vst.msk [vmem:[#allocation3 + $0x8] sm:$0xff] %vm210_vm2, %v1624_v21  ;;  %v1498_v12 = vpop.permute.xlu1 %1497 }
 0x202   :  { %v7716_v32 = vpop.f32.mrb[25].mxu0  ;;  %1544 = vst.msk [vmem:[#allocation3 + $0x18] sm:$0xff] %vm404_vm4, %v1498_v12 }
 0x203   :  { %v7717_v23 = vadd.f32 %v7716_v32, %v7715_v17  ;;  %1831 = vrot.lane.b32.xlu0 %v1791_v13, %s9080_s21  ;;  %1327 = vrot.lane.b32.xlu1 %v1791_v13, %s9078_s17 }
 0x204   :  { %v1626_v14 = vpop.permute.xlu0 %1625 }
 0x205   :  { %v1038_v20 = vadd.f32 %v7717_v23, %v9860_v18  ;;  %1672 = vst.msk [vmem:[#allocation3 + $0x20] sm:$0xff] %vm210_vm2, %v1626_v14  ;;  %v1404_v35 = vpop.permute.xlu1 %1403 }
 0x206   :  { %v1696_v24 = vld [vmem:[#allocation2 + $0xce] sm:$0xff]  ;;  %1449 = vst.msk [vmem:[#allocation3 + $0x30] sm:$0xff] %vm307_vm3, %v1404_v35 }
 0x207   :  { %v1792_v16 = vld [vmem:[#allocation2 + $0xd0] sm:$0xff]  ;;  %v1183_v51 = vadd.f32 %v9923_v41, %v1038_v20  ;;  %1737 = vrot.lane.b32.xlu0 %v1696_v24, %s9079_s18  ;;  %1268 = vst.msk [vmem:[#allocation3 + $0x138] sm:$0xff] %vm23_vm0, %v1696_v24  ;;  %1517 = vrot.lane.b32.xlu1 %v1696_v24, %s9080_s21 }
 0x208   :  { %v1379_v29 = vld [vmem:[#allocation2 + $0xca] sm:$0xff]  ;;  %v1888_v34 = vld [vmem:[#allocation2 + $0xd2] sm:$0xff]  ;;  %1586 = vst.msk [vmem:[#allocation3 + $0x110] sm:$0xff] %vm23_vm0, %v1792_v16 }
 0x209   :  { %1903 = vst.msk [vmem:[#allocation3 + $0xd0] sm:$0xff] %vm23_vm0, %v1379_v29  ;;  %1904 = vst.msk [vmem:[#allocation3 + $0xe8] sm:$0xff] %vm23_vm0, %v1888_v34  ;;  %v1213_v30 = vmax.f32 %v1183_v51, 0.0  ;;  %v1310_v11 = vpop.permute.xlu1 %1309  ;;  %v1914_v7 = vld [vmem:[#allocation3 + $0x18] sm:$0xff] }
 0x20a   :  { %1354 = vst.msk [vmem:[#allocation3 + $0x48] sm:$0xff] %vm210_vm2, %v1310_v11  ;;  %v1701_v11 = vld [vmem:[#allocation2 + $0x126] sm:$0xff] }
 0x20b   :  { %1234 = vst.msk [vmem:[#allocation2 + $0xe8] sm:$0xff] %vm23_vm0, %v1213_v30  ;;  %1833 = vrot.lane.b32.xlu0 %v1792_v16, %s9080_s21  ;;  %1423 = vrot.lane.b32.xlu1 %v1379_v29, %s9079_s18 }
 0x20d   :  { %v7718_v41 = vpop.f32.mrb[26].mxu0  ;;  %v1720_v36 = vpop.permute.xlu0 %1719 }
 0x20e   :  { %1767 = vst.msk [vmem:[#allocation3 + $0x8] sm:$0xff] %vm307_vm3, %v1720_v36  ;;  %v1406_v38 = vpop.permute.xlu1 %1405  ;;  %v7719_v42 = vpop.f32.mrb[27].mxu0 }
 0x20f   :  { %1450 = vst.msk [vmem:[#allocation3 + $0x48] sm:$0xff] %vm307_vm3, %v1406_v38  ;;  %v7720_v43 = vadd.f32 %v7719_v42, %v7718_v41  ;;  %1643 = vrot.lane.b32.xlu0 %v1379_v29, %s9078_s17  ;;  %1329 = vrot.lane.b32.xlu1 %v1792_v16, %s9078_s17 }
 0x210   :  { %v1937_v19 = vld [vmem:[#allocation3 + $0xd0] sm:$0xff]  ;;  %v1940_v27 = vld [vmem:[#allocation3 + $0xe8] sm:$0xff] }
 0x211   :  { %8479 = vmatprep.mubr.msk.f32.mxu0 %vm23_vm0, %v1937_v19  ;;  %v1043_v45 = vadd.f32 %v7720_v43, %v9860_v18  ;;  %v1816_v22 = vpop.permute.xlu0 %1815 }
 0x212   :  { %8480 = vmatmul.mubr.msk.f32.gmra.mrb[40].mxu0 %vm23_vm0, %v1940_v27  ;;  %1863 = vst.msk [vmem:[#allocation3 + $0x8] sm:$0xff] %vm404_vm4, %v1816_v22  ;;  %v1500_v46 = vpop.permute.xlu1 %1499  ;;  %v1697_v47 = vld [vmem:[#allocation2 + $0xe6] sm:$0xff] }
 0x213   :  { %v1793_v48 = vld [vmem:[#allocation2 + $0xe8] sm:$0xff]  ;;  %v1188_v49 = vadd.f32 %v9907_v62, %v1043_v45  ;;  %1545 = vst.msk [vmem:[#allocation3 + $0x30] sm:$0xff] %vm404_vm4, %v1500_v46  ;;  %1645 = vrot.lane.b32.xlu0 %v1888_v34, %s9078_s17  ;;  %1425 = vrot.lane.b32.xlu1 %v1888_v34, %s9079_s18 }
 0x214   :  { %1269 = vst.msk [vmem:[#allocation3 + $0x150] sm:$0xff] %vm23_vm0, %v1697_v47  ;;  %1587 = vst.msk [vmem:[#allocation3 + $0x128] sm:$0xff] %vm23_vm0, %v1793_v48  ;;  %v1797_v27 = vld [vmem:[#allocation2 + $0x128] sm:$0xff] }
 0x215   :  { %v1214_v6 = vmax.f32 %v1188_v49, 0.0  ;;  %v1702_v46 = vld [vmem:[#allocation2 + $0x12e] sm:$0xff] }
 0x216   :  { %v1312_v50 = vpop.permute.xlu1 %1311 }
 0x217   :  { %1235 = vst.msk [vmem:[#allocation2 + $0xf0] sm:$0xff] %vm23_vm0, %v1214_v6  ;;  %1739 = vrot.lane.b32.xlu0 %v1697_v47, %s9079_s18  ;;  %1519 = vrot.lane.b32.xlu1 %v1697_v47, %s9080_s21 }
 0x218   :  { %1355 = vst.msk [vmem:[#allocation3 + $0x60] sm:$0xff] %vm210_vm2, %v1312_v50  ;;  %v1955_v50 = vld [vmem:[#allocation3 + $0x160] sm:$0xff] }
 0x219   :  { %v7721_v62 = vpop.f32.mrb[28].mxu0  ;;  %v1722_v53 = vpop.permute.xlu0 %1721  ;;  %v1912_v54 = vld [vmem:[#allocation3 + $0x8] sm:$0xff] }
 0x21a   :  { %1768 = vst.msk [vmem:[#allocation3 + $0x20] sm:$0xff] %vm307_vm3, %v1722_v53  ;;  %v1502_v55 = vpop.permute.xlu1 %1501  ;;  %v7722_v56 = vpop.f32.mrb[29].mxu0  ;;  %2113 = vmatprep.mubr.f32.mxu1 %v1912_v54  ;;  %v1917_v20 = vld [vmem:[#allocation3 + $0x30] sm:$0xff]  ;;  %v1958_v53 = vld [vmem:[#allocation3 + $0x178] sm:$0xff] }
 0x21b   :  { %1546 = vst.msk [vmem:[#allocation3 + $0x48] sm:$0xff] %vm404_vm4, %v1502_v55  ;;  %v7723_v59 = vadd.f32 %v7722_v56, %v7721_v62  ;;  %1835 = vrot.lane.b32.xlu0 %v1793_v48, %s9080_s21  ;;  %2114 = vmatmul.mubr.f32.vlgmr.msra.gmra.mrb[16].mxu1 %v1911_v15  ;;  %v3025_v62 = vld [vmem:[#allocation2 + $0x12a] sm:$0xff]  ;;  %v3026_v54 = vld [vmem:[#allocation2 + $0x132] sm:$0xff] }
 0x21c   :  { %3041 = vst.msk [vmem:[#allocation3 + $0x160] sm:$0xff] %vm23_vm0, %v3025_v62  ;;  %3042 = vst.msk [vmem:[#allocation3 + $0x178] sm:$0xff] %vm23_vm0, %v3026_v54 }
 0x21d   :  { %v1818_v61 = vpop.permute.xlu0 %1817  ;;  %v1048_v25 = vadd.f32 %v7723_v59, %v9860_v18 }
 0x21e   :  { %1864 = vst.msk [vmem:[#allocation3 + $0x20] sm:$0xff] %vm404_vm4, %v1818_v61  ;;  %v1408_v31 = vpop.permute.xlu1 %1407  ;;  %v1698_v60 = vld [vmem:[#allocation2 + $0xee] sm:$0xff] }
 0x21f   :  { %v1794_v26 = vld [vmem:[#allocation2 + $0xf0] sm:$0xff]  ;;  %1451 = vst.msk [vmem:[#allocation3 + $0x60] sm:$0xff] %vm307_vm3, %v1408_v31  ;;  %v1193_v0 = vadd.f32 %v9994_v58, %v1048_v25  ;;  %1741 = vrot.lane.b32.xlu0 %v1698_v60, %s9079_s18  ;;  %1521 = vrot.lane.b32.xlu1 %v1698_v60, %s9080_s21 }
 0x220   :  { %v1889_v5 = vld [vmem:[#allocation2 + $0xea] sm:$0xff]  ;;  %v1890_v28 = vld [vmem:[#allocation2 + $0xf2] sm:$0xff]  ;;  %1588 = vst.msk [vmem:[#allocation3 + $0x140] sm:$0xff] %vm23_vm0, %v1794_v26  ;;  %1270 = vst.msk [vmem:[#allocation3 + $0x168] sm:$0xff] %vm23_vm0, %v1698_v60 }
 0x221   :  { %1905 = vst.msk [vmem:[#allocation3 + $0x100] sm:$0xff] %vm23_vm0, %v1889_v5  ;;  %1906 = vst.msk [vmem:[#allocation3 + $0x118] sm:$0xff] %vm23_vm0, %v1890_v28  ;;  %v1215_v52 = vmax.f32 %v1193_v0, 0.0  ;;  %v1628_v44 = vpop.permute.xlu0 %1627  ;;  %v1798_v61 = vld [vmem:[#allocation2 + $0x130] sm:$0xff] }
 0x222   :  { %1673 = vst.msk [vmem:[#allocation3 + $0x38] sm:$0xff] %vm210_vm2, %v1628_v44  ;;  %v1314_v1 = vpop.permute.xlu1 %1313  ;;  %v1920_v19 = vld [vmem:[#allocation3 + $0x48] sm:$0xff] }
 0x223   :  { %1237 = vst.msk [vmem:[#allocation2 + $0x108] sm:$0xff] %vm23_vm0, %v1215_v52  ;;  %1837 = vrot.lane.b32.xlu0 %v1794_v26, %s9080_s21  ;;  %1331 = vrot.lane.b32.xlu1 %v1793_v48, %s9078_s17 }
 0x224   :  { %1356 = vst.msk [vmem:[#allocation3 + $0x78] sm:$0xff] %vm210_vm2, %v1314_v1 }
 0x225   :  { %v7724_v58 = vpop.f32.mrb[30].mxu0  ;;  %v1630_v37 = vpop.permute.xlu0 %1629  ;;  %v1915_v2 = vld [vmem:[#allocation3 + $0x20] sm:$0xff] }
 0x226   :  { %1674 = vst.msk [vmem:[#allocation3 + $0x50] sm:$0xff] %vm210_vm2, %v1630_v37  ;;  %v1410_v63 = vpop.permute.xlu1 %1409  ;;  %v7725_v3 = vpop.f32.mrb[31].mxu0  ;;  %2118 = vmatprep.mubr.f32.mxu1 %v1915_v2 }
 0x227   :  { %1452 = vst.msk [vmem:[#allocation3 + $0x78] sm:$0xff] %vm307_vm3, %v1410_v63  ;;  %v7726_v4 = vadd.f32 %v7725_v3, %v7724_v58  ;;  %1647 = vrot.lane.b32.xlu0 %v1889_v5, %s9078_s17  ;;  %1427 = vrot.lane.b32.xlu1 %v1889_v5, %s9079_s18 }
 0x228   :  { %v1943_v33 = vld [vmem:[#allocation3 + $0x100] sm:$0xff]  ;;  %v1946_v8 = vld [vmem:[#allocation3 + $0x118] sm:$0xff]  ;;  %2119 = vmatmul.mubr.f32.gmra.mrb[18].mxu1 %v1914_v7 }
 0x229   :  { %8482 = vmatprep.mubr.msk.f32.mxu0 %vm23_vm0, %v1943_v33  ;;  %v1053_v9 = vadd.f32 %v7726_v4, %v9860_v18  ;;  %v1724_v10 = vpop.permute.xlu0 %1723 }
 0x22a   :  { %8483 = vmatmul.mubr.msk.f32.gmra.mrb[42].mxu0 %vm23_vm0, %v1946_v8  ;;  %1769 = vst.msk [vmem:[#allocation3 + $0x38] sm:$0xff] %vm307_vm3, %v1724_v10  ;;  %v1504_v13 = vpop.permute.xlu1 %1503  ;;  %v1477_v39 = vld [vmem:[#allocation2 + $0x106] sm:$0xff] }
 0x22b   :  { %v1795_v40 = vld [vmem:[#allocation2 + $0x108] sm:$0xff]  ;;  %v1198_v17 = vadd.f32 %v9989_v57, %v1053_v9  ;;  %1547 = vst.msk [vmem:[#allocation3 + $0x60] sm:$0xff] %vm404_vm4, %v1504_v13  ;;  %1649 = vrot.lane.b32.xlu0 %v1890_v28, %s9078_s17  ;;  %1523 = vrot.lane.b32.xlu1 %v1477_v39, %s9080_s21 }
 0x22c   :  { %1589 = vst.msk [vmem:[#allocation3 + $0x158] sm:$0xff] %vm23_vm0, %v1795_v40 }
 0x22d   :  { %v1216_v21 = vmax.f32 %v1198_v17, 0.0  ;;  %v1820_v18 = vpop.permute.xlu0 %1819 }
 0x22e   :  { %1865 = vst.msk [vmem:[#allocation3 + $0x38] sm:$0xff] %vm404_vm4, %v1820_v18  ;;  %v1316_v12 = vpop.permute.xlu1 %1315 }
 0x22f   :  { %1238 = vst.msk [vmem:[#allocation2 + $0x110] sm:$0xff] %vm23_vm0, %v1216_v21  ;;  %1743 = vrot.lane.b32.xlu0 %v1477_v39, %s9079_s18  ;;  %1333 = vrot.lane.b32.xlu1 %v1794_v26, %s9078_s17  ;;  %v2403_v39 = vld [vmem:[#allocation2 + $0x8] sm:$0xff] }
 0x230   :  { %1357 = vst.msk [vmem:[#allocation3 + $0x90] sm:$0xff] %vm210_vm2, %v1316_v12  ;;  %v2499_v21 = vld [vmem:[#allocation2 + $0xa] sm:$0xff] }
 0x231   :  { %v1726_v57 = vpop.permute.xlu0 %1725 }
 0x232   :  { %1770 = vst.msk [vmem:[#allocation3 + $0x50] sm:$0xff] %vm307_vm3, %v1726_v57  ;;  %v1506_v32 = vpop.permute.xlu1 %1505  ;;  %v1923_v59 = vld [vmem:[#allocation3 + $0x60] sm:$0xff]  ;;  %v2404_v57 = vld [vmem:[#allocation2 + $0x10] sm:$0xff] }
 0x233   :  { %1548 = vst.msk [vmem:[#allocation3 + $0x78] sm:$0xff] %vm404_vm4, %v1506_v32  ;;  %1839 = vrot.lane.b32.xlu0 %v1795_v40, %s9080_s21  ;;  %1429 = vrot.lane.b32.xlu1 %v1890_v28, %s9079_s18 }
 0x235   :  { %v1822_v23 = vpop.permute.xlu0 %1821  ;;  %v1918_v14 = vld [vmem:[#allocation3 + $0x38] sm:$0xff] }
 0x236   :  { %1866 = vst.msk [vmem:[#allocation3 + $0x50] sm:$0xff] %vm404_vm4, %v1822_v23  ;;  %v1412_v35 = vpop.permute.xlu1 %1411  ;;  %2123 = vmatprep.mubr.f32.mxu1 %v1918_v14  ;;  %v1700_v24 = vld [vmem:[#allocation2 + $0x10e] sm:$0xff] }
 0x237   :  { %v1796_v16 = vld [vmem:[#allocation2 + $0x110] sm:$0xff]  ;;  %1453 = vst.msk [vmem:[#allocation3 + $0x90] sm:$0xff] %vm307_vm3, %v1412_v35  ;;  %1745 = vrot.lane.b32.xlu0 %v1700_v24, %s9079_s18  ;;  %2124 = vmatmul.mubr.f32.gmra.mrb[20].mxu1 %v1917_v20 }
 0x238   :  { %v1891_v29 = vld [vmem:[#allocation2 + $0x10a] sm:$0xff]  ;;  %v1892_v51 = vld [vmem:[#allocation2 + $0x112] sm:$0xff]  ;;  %1590 = vst.msk [vmem:[#allocation3 + $0x170] sm:$0xff] %vm23_vm0, %v1796_v16  ;;  %1525 = vrot.lane.b32.xlu1 %v1700_v24, %s9080_s21 }
 0x239   :  { %1907 = vst.msk [vmem:[#allocation3 + $0x130] sm:$0xff] %vm23_vm0, %v1891_v29  ;;  %1908 = vst.msk [vmem:[#allocation3 + $0x148] sm:$0xff] %vm23_vm0, %v1892_v51  ;;  %v1632_v34 = vpop.permute.xlu0 %1631  ;;  %v2500_v14 = vld [vmem:[#allocation2 + $0x12] sm:$0xff] }
 0x23a   :  { %1675 = vst.msk [vmem:[#allocation3 + $0x68] sm:$0xff] %vm210_vm2, %v1632_v34  ;;  %v1318_v30 = vpop.permute.xlu1 %1317  ;;  %v1926_v0 = vld [vmem:[#allocation3 + $0x78] sm:$0xff] }
 0x23b   :  { %1358 = vst.msk [vmem:[#allocation3 + $0xa8] sm:$0xff] %vm210_vm2, %v1318_v30  ;;  %1841 = vrot.lane.b32.xlu0 %v1796_v16, %s9080_s21 }
 0x23c   :  { %2435 = vrot.lane.b32.xlu1 %v2403_v39, %s9078_s17 }
 0x23d   :  { %v1634_v41 = vpop.permute.xlu0 %1633  ;;  %v1921_v36 = vld [vmem:[#allocation3 + $0x50] sm:$0xff] }
 0x23e   :  { %1676 = vst.msk [vmem:[#allocation3 + $0x80] sm:$0xff] %vm210_vm2, %v1634_v41  ;;  %v1414_v38 = vpop.permute.xlu1 %1413  ;;  %2128 = vmatprep.mubr.f32.mxu1 %v1921_v36 }
 0x23f   :  { %1454 = vst.msk [vmem:[#allocation3 + $0xa8] sm:$0xff] %vm307_vm3, %v1414_v38  ;;  %1747 = vrot.lane.b32.xlu0 %v1701_v11, %s9079_s18  ;;  %2129 = vmatmul.mubr.f32.gmra.mrb[22].mxu1 %v1920_v19 }
 0x240   :  { %v1949_v42 = vld [vmem:[#allocation3 + $0x130] sm:$0xff]  ;;  %v1952_v43 = vld [vmem:[#allocation3 + $0x148] sm:$0xff]  ;;  %2531 = vrot.lane.b32.xlu1 %v2499_v21, %s9079_s18 }
 0x241   :  { %8485 = vmatprep.mubr.msk.f32.mxu0 %vm23_vm0, %v1949_v42  ;;  %v1728_v45 = vpop.permute.xlu0 %1727 }
 0x242   :  { %8486 = vmatmul.mubr.msk.f32.gmra.mrb[44].mxu0 %vm23_vm0, %v1952_v43  ;;  %1771 = vst.msk [vmem:[#allocation3 + $0x68] sm:$0xff] %vm307_vm3, %v1728_v45  ;;  %v1508_v22 = vpop.permute.xlu1 %1507 }
 0x243   :  { %1549 = vst.msk [vmem:[#allocation3 + $0x90] sm:$0xff] %vm404_vm4, %v1508_v22  ;;  %1843 = vrot.lane.b32.xlu0 %v1797_v27, %s9080_s21  ;;  %8488 = vmatprep.mubr.msk.f32.mxu0 %vm23_vm0, %v1955_v50 }
 0x244   :  { %2437 = vrot.lane.b32.xlu1 %v2404_v57, %s9078_s17 }
 0x245   :  { %v1824_v47 = vpop.permute.xlu0 %1823 }
 0x246   :  { %1867 = vst.msk [vmem:[#allocation3 + $0x68] sm:$0xff] %vm404_vm4, %v1824_v47  ;;  %v1320_v48 = vpop.permute.xlu1 %1319  ;;  %8489 = vmatmul.mubr.msk.f32.gmra.mrb[46].mxu0 %vm23_vm0, %v1958_v53 }
 0x247   :  { %1359 = vst.msk [vmem:[#allocation3 + $0xc0] sm:$0xff] %vm210_vm2, %v1320_v48  ;;  %1749 = vrot.lane.b32.xlu0 %v1702_v46, %s9079_s18 }
 0x248   :  { %2533 = vrot.lane.b32.xlu1 %v2500_v14, %s9079_s18 }
 0x249   :  { %v1730_v49 = vpop.permute.xlu0 %1729 }
 0x24a   :  { %1772 = vst.msk [vmem:[#allocation3 + $0x80] sm:$0xff] %vm307_vm3, %v1730_v49  ;;  %v1510_v6 = vpop.permute.xlu1 %1509  ;;  %v1929_v33 = vld [vmem:[#allocation3 + $0x90] sm:$0xff] }
 0x24b   :  { %1550 = vst.msk [vmem:[#allocation3 + $0xa8] sm:$0xff] %vm404_vm4, %v1510_v6  ;;  %1651 = vrot.lane.b32.xlu0 %v1891_v29, %s9078_s17 }
 0x24d   :  { %v1826_v55 = vpop.permute.xlu0 %1825  ;;  %v1924_v56 = vld [vmem:[#allocation3 + $0x68] sm:$0xff] }
 0x24e   :  { %1868 = vst.msk [vmem:[#allocation3 + $0x80] sm:$0xff] %vm404_vm4, %v1826_v55  ;;  %v1416_v15 = vpop.permute.xlu1 %1415  ;;  %2133 = vmatprep.mubr.f32.mxu1 %v1924_v56 }
 0x24f   :  { %1455 = vst.msk [vmem:[#allocation3 + $0xc0] sm:$0xff] %vm307_vm3, %v1416_v15  ;;  %1653 = vrot.lane.b32.xlu0 %v1892_v51, %s9078_s17  ;;  %2134 = vmatmul.mubr.f32.gmra.mrb[24].mxu1 %v1923_v59 }
 0x251   :  { %v1636_v25 = vpop.permute.xlu0 %1635 }
 0x252   :  { %1677 = vst.msk [vmem:[#allocation3 + $0x98] sm:$0xff] %vm210_vm2, %v1636_v25  ;;  %v1322_v31 = vpop.permute.xlu1 %1321  ;;  %v1932_v13 = vld [vmem:[#allocation3 + $0xa8] sm:$0xff] }
 0x253   :  { %1360 = vst.msk [vmem:[#allocation3 + $0xd8] sm:$0xff] %vm210_vm2, %v1322_v31  ;;  %1845 = vrot.lane.b32.xlu0 %v1798_v61, %s9080_s21  ;;  %v7471_v61 = vld [vmem:[%s12627_s1 + $0x340] sm:$0xff]  ;;  %v7472_v25 = vld [vmem:[%s12627_s1 + $0x348] sm:$0xff] }
 0x255   :  { %v1638_v60 = vpop.permute.xlu0 %1637  ;;  %v1927_v26 = vld [vmem:[#allocation3 + $0x80] sm:$0xff] }
 0x256   :  { %1678 = vst.msk [vmem:[#allocation3 + $0xb0] sm:$0xff] %vm210_vm2, %v1638_v60  ;;  %v1418_v5 = vpop.permute.xlu1 %1417  ;;  %2138 = vmatprep.mubr.f32.mxu1 %v1927_v26  ;;  %v8699_v60 = vpack.c.bf16 %v7472_v25, %v7471_v61  ;;  %v7443_v61 = vld [vmem:[%s12627_s1 + $0x260] sm:$0xff] }
 0x257   :  { %1456 = vst.msk [vmem:[#allocation3 + $0xd8] sm:$0xff] %vm307_vm3, %v1418_v5  ;;  %2139 = vmatmul.mubr.f32.gmra.mrb[26].mxu1 %v1926_v0  ;;  %2879 = vrot.lane.b32.xlu0 %v1701_v11, %s9079_s18  ;;  %v7473_v5 = vld [vmem:[%s12627_s1 + $0x350] sm:$0xff]  ;;  %v7474_v0 = vld [vmem:[%s12627_s1 + $0x358] sm:$0xff] }
 0x258   :  { %8700 = vmatprep.subr.bf16.mxu0 %v8699_v60 }
 0x259   :  { %v1732_v28 = vpop.permute.xlu0 %1731  ;;  %8702 = vmatpush3.bf16.msra.mxu0 %v8699_v60 }
 0x25a   :  { %1773 = vst.msk [vmem:[#allocation3 + $0x98] sm:$0xff] %vm307_vm3, %v1732_v28  ;;  %v1512_v52 = vpop.permute.xlu1 %1511 }
 0x25b   :  { %1551 = vst.msk [vmem:[#allocation3 + $0xc0] sm:$0xff] %vm404_vm4, %v1512_v52  ;;  %2975 = vrot.lane.b32.xlu0 %v1797_v27, %s9080_s21  ;;  %v8703_v52 = vpack.c.bf16 %v7474_v0, %v7473_v5 }
 0x25d   :  { %v1828_v44 = vpop.permute.xlu0 %1827  ;;  %8704 = vmatprep.subr.bf16.mxu0 %v8703_v52 }
 0x25e   :  { %1869 = vst.msk [vmem:[#allocation3 + $0x98] sm:$0xff] %vm404_vm4, %v1828_v44  ;;  %v1324_v1 = vpop.permute.xlu1 %1323  ;;  %8706 = vmatpush3.bf16.msra.mxu0 %v8703_v52 }
 0x25f   :  { %1361 = vst.msk [vmem:[#allocation3 + $0xf0] sm:$0xff] %vm210_vm2, %v1324_v1  ;;  %2881 = vrot.lane.b32.xlu0 %v1702_v46, %s9079_s18 }
 0x261   :  { %v1734_v58 = vpop.permute.xlu0 %1733 }
 0x262   :  { %1774 = vst.msk [vmem:[#allocation3 + $0xb0] sm:$0xff] %vm307_vm3, %v1734_v58  ;;  %v1514_v37 = vpop.permute.xlu1 %1513  ;;  %v1935_v16 = vld [vmem:[#allocation3 + $0xc0] sm:$0xff] }
 0x263   :  { %1552 = vst.msk [vmem:[#allocation3 + $0xd8] sm:$0xff] %vm404_vm4, %v1514_v37 }
 0x265   :  { %v1830_v2 = vpop.permute.xlu0 %1829  ;;  %v1930_v63 = vld [vmem:[#allocation3 + $0x98] sm:$0xff] }
 0x266   :  { %1870 = vst.msk [vmem:[#allocation3 + $0xb0] sm:$0xff] %vm404_vm4, %v1830_v2  ;;  %v1420_v3 = vpop.permute.xlu1 %1419  ;;  %2143 = vmatprep.mubr.f32.mxu1 %v1930_v63 }
 0x267   :  { %1457 = vst.msk [vmem:[#allocation3 + $0xf0] sm:$0xff] %vm307_vm3, %v1420_v3  ;;  %2144 = vmatmul.mubr.f32.gmra.mrb[28].mxu1 %v1929_v33 }
 0x269   :  { %v1640_v4 = vpop.permute.xlu0 %1639 }
 0x26a   :  { %1679 = vst.msk [vmem:[#allocation3 + $0xc8] sm:$0xff] %vm210_vm2, %v1640_v4  ;;  %v1326_v7 = vpop.permute.xlu1 %1325  ;;  %v1938_v38 = vld [vmem:[#allocation3 + $0xd8] sm:$0xff] }
 0x26b   :  { %1362 = vst.msk [vmem:[#allocation3 + $0x108] sm:$0xff] %vm210_vm2, %v1326_v7 }
 0x26d   :  { %v1642_v8 = vpop.permute.xlu0 %1641  ;;  %v1933_v9 = vld [vmem:[#allocation3 + $0xb0] sm:$0xff] }
 0x26e   :  { %1680 = vst.msk [vmem:[#allocation3 + $0xe0] sm:$0xff] %vm210_vm2, %v1642_v8  ;;  %v1422_v10 = vpop.permute.xlu1 %1421  ;;  %2148 = vmatprep.mubr.f32.mxu1 %v1933_v9 }
 0x26f   :  { %1458 = vst.msk [vmem:[#allocation3 + $0x108] sm:$0xff] %vm307_vm3, %v1422_v10  ;;  %2149 = vmatmul.mubr.f32.gmra.mrb[30].mxu1 %v1932_v13 }
 0x271   :  { %v1736_v40 = vpop.permute.xlu0 %1735 }
 0x272   :  { %1775 = vst.msk [vmem:[#allocation3 + $0xc8] sm:$0xff] %vm307_vm3, %v1736_v40  ;;  %v1516_v17 = vpop.permute.xlu1 %1515 }
 0x273   :  { %1553 = vst.msk [vmem:[#allocation3 + $0xf0] sm:$0xff] %vm404_vm4, %v1516_v17 }
 0x275   :  { %v1832_v18 = vpop.permute.xlu0 %1831 }
 0x276   :  { %1871 = vst.msk [vmem:[#allocation3 + $0xc8] sm:$0xff] %vm404_vm4, %v1832_v18  ;;  %v1328_v12 = vpop.permute.xlu1 %1327 }
 0x277   :  { %1363 = vst.msk [vmem:[#allocation3 + $0x120] sm:$0xff] %vm210_vm2, %v1328_v12 }
 0x279   :  { %v1738_v32 = vpop.permute.xlu0 %1737 }
 0x27a   :  { %1776 = vst.msk [vmem:[#allocation3 + $0xe0] sm:$0xff] %vm307_vm3, %v1738_v32  ;;  %v1518_v23 = vpop.permute.xlu1 %1517  ;;  %v1941_v48 = vld [vmem:[#allocation3 + $0xf0] sm:$0xff] }
 0x27b   :  { %1554 = vst.msk [vmem:[#allocation3 + $0x108] sm:$0xff] %vm404_vm4, %v1518_v23  ;;  %v2371_v23 = vld [vmem:[#allocation2 + $0x6] sm:$0xff] }
 0x27c   :  { %2387 = vst.msk [vmem:[#allocation3] sm:$0xff] %vm23_vm0, %v2371_v23  ;;  %v7447_v23 = vld [vmem:[%s12627_s1 + $0x280] sm:$0xff] }
 0x27d   :  { %v1834_v20 = vpop.permute.xlu0 %1833  ;;  %v1936_v35 = vld [vmem:[#allocation3 + $0xc8] sm:$0xff] }
 0x27e   :  { %1872 = vst.msk [vmem:[#allocation3 + $0xe0] sm:$0xff] %vm404_vm4, %v1834_v20  ;;  %v1424_v24 = vpop.permute.xlu1 %1423  ;;  %2153 = vmatprep.mubr.f32.mxu1 %v1936_v35  ;;  %v7455_v35 = vld [vmem:[%s12627_s1 + $0x2c0] sm:$0xff] }
 0x27f   :  { %1459 = vst.msk [vmem:[#allocation3 + $0x120] sm:$0xff] %vm307_vm3, %v1424_v24  ;;  %2154 = vmatmul.mubr.f32.gmra.mrb[32].mxu1 %v1935_v16  ;;  %v7456_v24 = vld [vmem:[%s12627_s1 + $0x2c8] sm:$0xff]  ;;  %v7439_v16 = vld [vmem:[%s12627_s1 + $0x240] sm:$0xff] }
 0x281   :  { %v1644_v29 = vpop.permute.xlu0 %1643 }
 0x282   :  { %1681 = vst.msk [vmem:[#allocation3 + $0xf8] sm:$0xff] %vm210_vm2, %v1644_v29  ;;  %v1330_v51 = vpop.permute.xlu1 %1329  ;;  %v1944_v56 = vld [vmem:[#allocation3 + $0x108] sm:$0xff]  ;;  %v8667_v29 = vpack.c.bf16 %v7456_v24, %v7455_v35  ;;  %v7465_v24 = vld [vmem:[%s12627_s1 + $0x310] sm:$0xff] }
 0x283   :  { %1364 = vst.msk [vmem:[#allocation3 + $0x138] sm:$0xff] %vm210_vm2, %v1330_v51  ;;  %v7440_v51 = vld [vmem:[%s12627_s1 + $0x248] sm:$0xff] }
 0x284   :  { %8668 = vmatprep.subr.bf16.mxu1 %v8667_v29 }
 0x285   :  { %v10242_v34 = vpop.f32.mrb[32].mxu0  ;;  %v1646_v11 = vpop.permute.xlu0 %1645  ;;  %v1939_v41 = vld [vmem:[#allocation3 + $0xe0] sm:$0xff] }
 0x286   :  { %v10244_v30 = vpop.f32.mrb[33].mxu0  ;;  %1682 = vst.msk [vmem:[#allocation3 + $0x110] sm:$0xff] %vm210_vm2, %v1646_v11  ;;  %v1426_v36 = vpop.permute.xlu1 %1425  ;;  %2158 = vmatprep.mubr.f32.mxu1 %v1939_v41  ;;  %v2372_v11 = vld [vmem:[#allocation2 + $0xe] sm:$0xff]  ;;  %v8669_v41 = vpack.c.bf16 %v7440_v51, %v7439_v16  ;;  %v7466_v16 = vld [vmem:[%s12627_s1 + $0x318] sm:$0xff] }
 0x287   :  { %1460 = vst.msk [vmem:[#allocation3 + $0x138] sm:$0xff] %vm307_vm3, %v1426_v36  ;;  %2159 = vmatmul.mubr.f32.gmra.mrb[34].mxu1 %v1938_v38 }
 0x288   :  { %2388 = vst.msk [vmem:[#allocation3 + $0x18] sm:$0xff] %vm23_vm0, %v2372_v11  ;;  %8670 = vmatpush3.bf16.msra.mxu1 %v8669_v41  ;;  %v8687_v11 = vpack.c.bf16 %v7466_v16, %v7465_v24  ;;  %v7449_v41 = vld [vmem:[%s12627_s1 + $0x290] sm:$0xff] }
 0x289   :  { %v1740_v42 = vpop.permute.xlu0 %1739 }
 0x28a   :  { %1777 = vst.msk [vmem:[#allocation3 + $0xf8] sm:$0xff] %vm307_vm3, %v1740_v42  ;;  %v1520_v19 = vpop.permute.xlu1 %1519  ;;  %v10320_v42 = vld [vmem:[%s12628_s2 + $0x1] ss:$0 sm:$0xff] }
 0x28b   :  { %1555 = vst.msk [vmem:[#allocation3 + $0x120] sm:$0xff] %vm404_vm4, %v1520_v19 }
 0x28d   :  { %v1836_v43 = vpop.permute.xlu0 %1835 }
 0x28e   :  { %1873 = vst.msk [vmem:[#allocation3 + $0xf8] sm:$0xff] %vm404_vm4, %v1836_v43 }
 0x291   :  { %v1742_v27 = vpop.permute.xlu0 %1741  ;;  %v1522_v45 = vpop.permute.xlu1 %1521 }
 0x292   :  { %1778 = vst.msk [vmem:[#allocation3 + $0x110] sm:$0xff] %vm307_vm3, %v1742_v27  ;;  %v1947_v37 = vld [vmem:[#allocation3 + $0x120] sm:$0xff] }
 0x293   :  { %1556 = vst.msk [vmem:[#allocation3 + $0x138] sm:$0xff] %vm404_vm4, %v1522_v45 }
 0x295   :  { %v1838_v22 = vpop.permute.xlu0 %1837  ;;  %v1332_v46 = vpop.permute.xlu1 %1331  ;;  %v1942_v47 = vld [vmem:[#allocation3 + $0xf8] sm:$0xff] }
 0x296   :  { %1874 = vst.msk [vmem:[#allocation3 + $0x110] sm:$0xff] %vm404_vm4, %v1838_v22  ;;  %2163 = vmatprep.mubr.f32.mxu1 %v1942_v47  ;;  %v7458_v47 = vld [vmem:[%s12627_s1 + $0x2d8] sm:$0xff] }
 0x297   :  { %1365 = vst.msk [vmem:[#allocation3 + $0x150] sm:$0xff] %vm210_vm2, %v1332_v46  ;;  %2164 = vmatmul.mubr.f32.gmra.mrb[36].mxu1 %v1941_v48  ;;  %v7457_v46 = vld [vmem:[%s12627_s1 + $0x2d0] sm:$0xff] }
 0x298   :  { %v7441_v48 = vld [vmem:[%s12627_s1 + $0x250] sm:$0xff] }
 0x299   :  { %v1648_v49 = vpop.permute.xlu0 %1647  ;;  %v1428_v6 = vpop.permute.xlu1 %1427 }
 0x29a   :  { %1683 = vst.msk [vmem:[#allocation3 + $0x128] sm:$0xff] %vm210_vm2, %v1648_v49  ;;  %v1950_v7 = vld [vmem:[#allocation3 + $0x138] sm:$0xff]  ;;  %v8671_v49 = vpack.c.bf16 %v7458_v47, %v7457_v46 }
 0x29b   :  { %1461 = vst.msk [vmem:[#allocation3 + $0x150] sm:$0xff] %vm307_vm3, %v1428_v6  ;;  %v7442_v6 = vld [vmem:[%s12627_s1 + $0x258] sm:$0xff] }
 0x29c   :  { %8672 = vmatprep.subr.bf16.mxu1 %v8671_v49  ;;  %v7452_v49 = vld [vmem:[%s12627_s1 + $0x2a8] sm:$0xff] }
 0x29d   :  { %v10257_v50 = vpop.f32.mrb[34].mxu0  ;;  %v1650_v53 = vpop.permute.xlu0 %1649  ;;  %v1945_v54 = vld [vmem:[#allocation3 + $0x110] sm:$0xff] }
 0x29e   :  { %v10259_v62 = vpop.f32.mrb[35].mxu0  ;;  %1684 = vst.msk [vmem:[#allocation3 + $0x140] sm:$0xff] %vm210_vm2, %v1650_v53  ;;  %v1524_v55 = vpop.permute.xlu1 %1523  ;;  %2168 = vmatprep.mubr.f32.mxu1 %v1945_v54  ;;  %v8673_v54 = vpack.c.bf16 %v7442_v6, %v7441_v48  ;;  %v7451_v48 = vld [vmem:[%s12627_s1 + $0x2a0] sm:$0xff] }
 0x29f   :  { %1557 = vst.msk [vmem:[#allocation3 + $0x150] sm:$0xff] %vm404_vm4, %v1524_v55  ;;  %2169 = vmatmul.mubr.f32.gmra.mrb[38].mxu1 %v1944_v56 }
 0x2a0   :  { %8674 = vmatpush3.bf16.msra.mxu1 %v8673_v54 }
 0x2a1   :  { %v1744_v15 = vpop.permute.xlu0 %1743 }
 0x2a2   :  { %1779 = vst.msk [vmem:[#allocation3 + $0x128] sm:$0xff] %vm307_vm3, %v1744_v15  ;;  %v1334_v59 = vpop.permute.xlu1 %1333  ;;  %v7459_v15 = vld [vmem:[%s12627_s1 + $0x2e0] sm:$0xff] }
 0x2a3   :  { %1366 = vst.msk [vmem:[#allocation3 + $0x168] sm:$0xff] %vm210_vm2, %v1334_v59  ;;  %v7460_v59 = vld [vmem:[%s12627_s1 + $0x2e8] sm:$0xff] }
 0x2a4   :  { %v8675_v60 = vpack.c.bf16 %v7460_v59, %v7459_v15  ;;  %v7453_v59 = vld [vmem:[%s12627_s1 + $0x2b0] sm:$0xff] }
 0x2a5   :  { %v1840_v31 = vpop.permute.xlu0 %1839 }
 0x2a6   :  { %1875 = vst.msk [vmem:[#allocation3 + $0x128] sm:$0xff] %vm404_vm4, %v1840_v31  ;;  %v1430_v26 = vpop.permute.xlu1 %1429  ;;  %v1953_v40 = vld [vmem:[#allocation3 + $0x150] sm:$0xff]  ;;  %8676 = vmatprep.subr.bf16.mxu1 %v8675_v60 }
 0x2a7   :  { %1462 = vst.msk [vmem:[#allocation3 + $0x168] sm:$0xff] %vm307_vm3, %v1430_v26  ;;  %v7444_v26 = vld [vmem:[%s12627_s1 + $0x268] sm:$0xff] }
 0x2a8   :  { %v8677_v5 = vpack.c.bf16 %v7444_v26, %v7443_v61  ;;  %v7454_v61 = vld [vmem:[%s12627_s1 + $0x2b8] sm:$0xff] }
 0x2a9   :  { %v1746_v28 = vpop.permute.xlu0 %1745  ;;  %v8697_v60 = vpack.c.bf16 %v7454_v61, %v7453_v59 }
 0x2aa   :  { %1780 = vst.msk [vmem:[#allocation3 + $0x140] sm:$0xff] %vm307_vm3, %v1746_v28  ;;  %v1526_v44 = vpop.permute.xlu1 %1525  ;;  %8678 = vmatpush3.bf16.msra.mxu1 %v8677_v5 }
 0x2ab   :  { %1558 = vst.msk [vmem:[#allocation3 + $0x168] sm:$0xff] %vm404_vm4, %v1526_v44 }
 0x2ad   :  { %v1842_v1 = vpop.permute.xlu0 %1841  ;;  %v1948_v58 = vld [vmem:[#allocation3 + $0x128] sm:$0xff] }
 0x2ae   :  { %1876 = vst.msk [vmem:[#allocation3 + $0x140] sm:$0xff] %vm404_vm4, %v1842_v1  ;;  %2173 = vmatprep.mubr.f32.mxu1 %v1948_v58  ;;  %v2436_v14 = vpop.permute.xlu1 %2435  ;;  %v7461_v1 = vld [vmem:[%s12627_s1 + $0x2f0] sm:$0xff]  ;;  %v7462_v58 = vld [vmem:[%s12627_s1 + $0x2f8] sm:$0xff] }
 0x2af   :  { %2174 = vmatmul.mubr.f32.gmra.mrb[40].mxu1 %v1947_v37  ;;  %2483 = vst.msk [vmem:[#allocation3] sm:$0xff] %vm210_vm2, %v2436_v14  ;;  %v7445_v37 = vld [vmem:[%s12627_s1 + $0x270] sm:$0xff]  ;;  %v7448_v14 = vld [vmem:[%s12627_s1 + $0x288] sm:$0xff] }
 0x2b0   :  { %v8685_v35 = vpack.c.bf16 %v7448_v14, %v7447_v23 }
 0x2b1   :  { %v1748_v2 = vpop.permute.xlu0 %1747 }
 0x2b2   :  { %v1956_v12 = vld [vmem:[#allocation3 + $0x168] sm:$0xff]  ;;  %v2532_v20 = vpop.permute.xlu1 %2531 }
 0x2b3   :  { %2579 = vst.msk [vmem:[#allocation3] sm:$0xff] %vm307_vm3, %v2532_v20 }
 0x2b5   :  { %v10282_v63 = vpop.f32.mrb[36].mxu0  ;;  %v1844_v33 = vpop.permute.xlu0 %1843  ;;  %v1951_v4 = vld [vmem:[#allocation3 + $0x140] sm:$0xff] }
 0x2b6   :  { %v10284_v3 = vpop.f32.mrb[37].mxu0  ;;  %2178 = vmatprep.mubr.f32.mxu1 %v1951_v4  ;;  %v2438_v36 = vpop.permute.xlu1 %2437  ;;  %v7446_v4 = vld [vmem:[%s12627_s1 + $0x278] sm:$0xff] }
 0x2b7   :  { %2179 = vmatmul.mubr.f32.gmra.mrb[42].mxu1 %v1950_v7  ;;  %2484 = vst.msk [vmem:[#allocation3 + $0x18] sm:$0xff] %vm210_vm2, %v2438_v36  ;;  %v7450_v36 = vld [vmem:[%s12627_s1 + $0x298] sm:$0xff] }
 0x2b9   :  { %v1750_v8 = vpop.permute.xlu0 %1749 }
 0x2ba   :  { %v2534_v27 = vpop.permute.xlu1 %2533 }
 0x2bb   :  { %2580 = vst.msk [vmem:[#allocation3 + $0x18] sm:$0xff] %vm307_vm3, %v2534_v27  ;;  %v7467_v27 = vld [vmem:[%s12627_s1 + $0x320] sm:$0xff] }
 0x2bd   :  { %v1652_v9 = vpop.permute.xlu0 %1651 }
 0x2be   :  { %1685 = vst.msk [vmem:[#allocation3 + $0x158] sm:$0xff] %vm210_vm2, %v1652_v9  ;;  %v7463_v9 = vld [vmem:[%s12627_s1 + $0x300] sm:$0xff] }
 0x2bf   :  { %1781 = vst.msk [vmem:[#allocation3 + $0x158] sm:$0xff] %vm307_vm3, %v1748_v2 }
 0x2c0   :  { %1877 = vst.msk [vmem:[#allocation3 + $0x158] sm:$0xff] %vm404_vm4, %v1844_v33  ;;  %v8679_v33 = vpack.c.bf16 %v7462_v58, %v7461_v1 }
 0x2c1   :  { %v1654_v10 = vpop.permute.xlu0 %1653 }
 0x2c2   :  { %1686 = vst.msk [vmem:[#allocation3 + $0x170] sm:$0xff] %vm210_vm2, %v1654_v10  ;;  %8680 = vmatprep.subr.bf16.mxu1 %v8679_v33  ;;  %v7464_v10 = vld [vmem:[%s12627_s1 + $0x308] sm:$0xff] }
 0x2c3   :  { %1782 = vst.msk [vmem:[#allocation3 + $0x170] sm:$0xff] %vm307_vm3, %v1750_v8 }
 0x2c5   :  { %v1846_v13 = vpop.permute.xlu0 %1845 }
 0x2c6   :  { %1878 = vst.msk [vmem:[#allocation3 + $0x170] sm:$0xff] %vm404_vm4, %v1846_v13 }
 0x2c7   :  { %v1954_v39 = vld [vmem:[#allocation3 + $0x158] sm:$0xff] }
 0x2c8   :  { %2183 = vmatprep.mubr.f32.mxu1 %v1954_v39 }
 0x2c9   :  { %2184 = vmatmul.mubr.f32.gmra.mrb[44].mxu1 %v1953_v40 }
 0x2cd   :  { %v10292_v17 = vpop.f32.mrb[38].mxu0  ;;  %v1957_v18 = vld [vmem:[#allocation3 + $0x170] sm:$0xff] }
 0x2ce   :  { %v10294_v21 = vpop.f32.mrb[39].mxu0  ;;  %2188 = vmatprep.mubr.f32.mxu1 %v1957_v18  ;;  %v8683_v18 = vpack.c.bf16 %v7464_v10, %v7463_v9 }
 0x2cf   :  { %2189 = vmatmul.mubr.f32.gmra.mrb[46].mxu1 %v1956_v12 }
 0x2e5   :  { %v10296_v57 = vpop.f32.mrb[40].mxu0 }
 0x2e6   :  { %v10298_v32 = vpop.f32.mrb[41].mxu0 }
 0x2ee   :  { %v7779_v38 = vpop.f32.mrb[16].mxu1 }
 0x2ef   :  { %v7780_v19 = vpop.f32.mrb[17].mxu1 }
 0x2f0   :  { %v7781_v43 = vadd.f32 %v7780_v19, %v7779_v38  ;;  %v8689_v38 = vpack.c.bf16 %v7450_v36, %v7449_v41 }
 0x2f2   :  { %v2116_v45 = vadd.f32 %v7781_v43, %v10320_v42 }
 0x2f4   :  { %v2261_v22 = vadd.f32 %v10244_v30, %v2116_v45  ;;  %v7468_v45 = vld [vmem:[%s12627_s1 + $0x328] sm:$0xff] }
 0x2f5   :  { %v8691_v47 = vpack.c.bf16 %v7468_v45, %v7467_v27 }
 0x2f6   :  { %v2339_v53 = vmax.f32 %v2261_v22, 0.0 }
 0x2f8   :  { %2355 = vst.msk [vmem:[#allocation2 + $0x28] sm:$0xff] %vm23_vm0, %v2339_v53  ;;  %v8693_v53 = vpack.c.bf16 %v7452_v49, %v7451_v48 }
 0x2fb   :  { %v7782_v30 = vpop.f32.mrb[18].mxu1 }
 0x2fc   :  { %v7783_v55 = vpop.f32.mrb[19].mxu1 }
 0x2fd   :  { %v10338_v56 = vpop.f32.mrb[42].mxu0  ;;  %v7784_v25 = vadd.f32 %v7783_v55, %v7782_v30  ;;  %v7469_v30 = vld [vmem:[%s12627_s1 + $0x330] sm:$0xff]  ;;  %v7470_v55 = vld [vmem:[%s12627_s1 + $0x338] sm:$0xff] }
 0x2fe   :  { %v10349_v31 = vpop.f32.mrb[43].mxu0  ;;  %v8695_v15 = vpack.c.bf16 %v7470_v55, %v7469_v30 }
 0x2ff   :  { %v2121_v0 = vadd.f32 %v7784_v25, %v10320_v42  ;;  %v2595_v28 = vld [vmem:[#allocation2 + $0x26] sm:$0xff] }
 0x300   :  { %v2405_v52 = vld [vmem:[#allocation2 + $0x28] sm:$0xff]  ;;  %2627 = vrot.lane.b32.xlu1 %v2595_v28, %s9080_s21  ;;  %2389 = vst.msk [vmem:[#allocation3 + $0x30] sm:$0xff] %vm23_vm0, %v2595_v28 }
 0x301   :  { %2707 = vst.msk [vmem:[#allocation3 + $0x8] sm:$0xff] %vm23_vm0, %v2405_v52  ;;  %v2266_v44 = vadd.f32 %v10242_v34, %v2121_v0  ;;  %v8681_v34 = vpack.c.bf16 %v7446_v4, %v7445_v37 }
 0x303   :  { %v2340_v2 = vmax.f32 %v2266_v44, 0.0  ;;  %8682 = vmatpush3.bf16.msra.mxu1 %v8681_v34 }
 0x304   :  { %2439 = vrot.lane.b32.xlu1 %v2405_v52, %s9078_s17  ;;  %8684 = vmatprep.subr.bf16.mxu1 %v8683_v18 }
 0x305   :  { %2356 = vst.msk [vmem:[#allocation2 + $0x30] sm:$0xff] %vm23_vm0, %v2340_v2 }
 0x307   :  { %8686 = vmatpush3.bf16.msra.mxu1 %v8685_v35 }
 0x308   :  { %8688 = vmatprep.subr.bf16.mxu1 %v8687_v11 }
 0x30a   :  { %v7785_v7 = vpop.f32.mrb[20].mxu1 }
 0x30b   :  { %v7786_v8 = vpop.f32.mrb[21].mxu1  ;;  %8690 = vmatpush3.bf16.msra.mxu1 %v8689_v38 }
 0x30c   :  { %v7787_v13 = vadd.f32 %v7786_v8, %v7785_v7  ;;  %v2723_v39 = vld [vmem:[#allocation2 + $0x2a] sm:$0xff]  ;;  %v2724_v51 = vld [vmem:[#allocation2 + $0x32] sm:$0xff]  ;;  %8692 = vmatprep.subr.bf16.mxu1 %v8691_v47 }
 0x30d   :  { %v2596_v40 = vld [vmem:[#allocation2 + $0x2e] sm:$0xff]  ;;  %2755 = vrot.lane.b32.xlu0 %v2723_v39, %s9078_s17 }
 0x30e   :  { %2629 = vrot.lane.b32.xlu1 %v2596_v40, %s9080_s21  ;;  %v2406_v12 = vld [vmem:[#allocation2 + $0x30] sm:$0xff]  ;;  %2390 = vst.msk [vmem:[#allocation3 + $0x48] sm:$0xff] %vm23_vm0, %v2596_v40  ;;  %v2126_v20 = vadd.f32 %v7787_v13, %v10320_v42 }
 0x30f   :  { %2708 = vst.msk [vmem:[#allocation3 + $0x20] sm:$0xff] %vm23_vm0, %v2406_v12  ;;  %8694 = vmatpush3.bf16.msra.mxu1 %v8693_v53 }
 0x310   :  { %v2271_v29 = vadd.f32 %v10259_v62, %v2126_v20  ;;  %8696 = vmatprep.subr.bf16.mxu1 %v8695_v15 }
 0x311   :  { %2757 = vrot.lane.b32.xlu0 %v2724_v51, %s9078_s17 }
 0x312   :  { %2535 = vrot.lane.b32.xlu1 %v2723_v39, %s9079_s18  ;;  %v2341_v19 = vmax.f32 %v2271_v29, 0.0  ;;  %v7788_v43 = vpop.f32.mrb[22].mxu1 }
 0x313   :  { %v7789_v22 = vpop.f32.mrb[23].mxu1  ;;  %8698 = vmatpush3.bf16.msra.mxu1 %v8697_v60 }
 0x314   :  { %2357 = vst.msk [vmem:[#allocation2 + $0x48] sm:$0xff] %vm23_vm0, %v2341_v19  ;;  %v7790_v6 = vadd.f32 %v7789_v22, %v7788_v43 }
 0x315   :  { %v10405_v62 = vpop.f32.mrb[44].mxu0 }
 0x316   :  { %v10414_v46 = vpop.f32.mrb[45].mxu0  ;;  %2441 = vrot.lane.b32.xlu1 %v2406_v12, %s9078_s17  ;;  %v2131_v54 = vadd.f32 %v7790_v6, %v10320_v42 }
 0x318   :  { %v2276_v25 = vadd.f32 %v10257_v50, %v2131_v54 }
 0x319   :  { %v10445_v50 = vpop.f32.mrb[46].mxu0 }
 0x31a   :  { %2537 = vrot.lane.b32.xlu1 %v2724_v51, %s9079_s18  ;;  %v2342_v26 = vmax.f32 %v2276_v25, 0.0  ;;  %v10447_v52 = vpop.f32.mrb[47].mxu0 }
 0x31b   :  { %v2819_v5 = vld [vmem:[#allocation2 + $0x46] sm:$0xff] }
 0x31c   :  { %v2915_v0 = vld [vmem:[#allocation2 + $0x48] sm:$0xff]  ;;  %2851 = vrot.lane.b32.xlu0 %v2819_v5, %s9079_s18  ;;  %2391 = vst.msk [vmem:[#allocation3 + $0x60] sm:$0xff] %vm23_vm0, %v2819_v5  ;;  %2358 = vst.msk [vmem:[#allocation2 + $0x50] sm:$0xff] %vm23_vm0, %v2342_v26 }
 0x31d   :  { %2709 = vst.msk [vmem:[#allocation3 + $0x38] sm:$0xff] %vm23_vm0, %v2915_v0 }
 0x31e   :  { %2631 = vrot.lane.b32.xlu1 %v2819_v5, %s9080_s21 }
 0x320   :  { %2947 = vrot.lane.b32.xlu0 %v2915_v0, %s9080_s21 }
 0x322   :  { %2443 = vrot.lane.b32.xlu1 %v2915_v0, %s9078_s17  ;;  %v7791_v28 = vpop.f32.mrb[24].mxu1 }
 0x323   :  { %v7792_v44 = vpop.f32.mrb[25].mxu1  ;;  %v2820_v58 = vld [vmem:[#allocation2 + $0x4e] sm:$0xff] }
 0x324   :  { %v7793_v1 = vadd.f32 %v7792_v44, %v7791_v28  ;;  %v2916_v37 = vld [vmem:[#allocation2 + $0x50] sm:$0xff]  ;;  %2853 = vrot.lane.b32.xlu0 %v2820_v58, %s9079_s18  ;;  %2392 = vst.msk [vmem:[#allocation3 + $0x78] sm:$0xff] %vm23_vm0, %v2820_v58 }
 0x325   :  { %v2503_v2 = vld [vmem:[#allocation2 + $0x4a] sm:$0xff]  ;;  %v3012_v33 = vld [vmem:[#allocation2 + $0x52] sm:$0xff]  ;;  %2710 = vst.msk [vmem:[#allocation3 + $0x50] sm:$0xff] %vm23_vm0, %v2916_v37 }
 0x326   :  { %2633 = vrot.lane.b32.xlu1 %v2820_v58, %s9080_s21  ;;  %3027 = vst.msk [vmem:[#allocation3 + $0x10] sm:$0xff] %vm23_vm0, %v2503_v2  ;;  %v2136_v4 = vadd.f32 %v7793_v1, %v10320_v42  ;;  %3028 = vst.msk [vmem:[#allocation3 + $0x28] sm:$0xff] %vm23_vm0, %v3012_v33 }
 0x328   :  { %v2281_v34 = vadd.f32 %v10284_v3, %v2136_v4  ;;  %2949 = vrot.lane.b32.xlu0 %v2916_v37, %s9080_s21 }
 0x32a   :  { %2539 = vrot.lane.b32.xlu1 %v2503_v2, %s9079_s18  ;;  %v2343_v7 = vmax.f32 %v2281_v34, 0.0  ;;  %v7794_v8 = vpop.f32.mrb[26].mxu1 }
 0x32b   :  { %v7795_v9 = vpop.f32.mrb[27].mxu1 }
 0x32c   :  { %2359 = vst.msk [vmem:[#allocation2 + $0x68] sm:$0xff] %vm23_vm0, %v2343_v7  ;;  %v7796_v10 = vadd.f32 %v7795_v9, %v7794_v8  ;;  %2759 = vrot.lane.b32.xlu0 %v2503_v2, %s9078_s17  ;;  %v10531_v8 = vpop.permute.xlu0 %2879 }
 0x32d   :  { %v3045_v13 = vld [vmem:[#allocation3 + $0x10] sm:$0xff]  ;;  %v3048_v39 = vld [vmem:[#allocation3 + $0x28] sm:$0xff] }
 0x32e   :  { %8499 = vmatprep.mubr.msk.f32.mxu0 %vm23_vm0, %v3045_v13  ;;  %v2141_v40 = vadd.f32 %v7796_v10, %v10320_v42  ;;  %2445 = vrot.lane.b32.xlu1 %v2916_v37, %s9078_s17 }
 0x32f   :  { %8500 = vmatmul.mubr.msk.f32.vlgmr.msra.gmra.mrb[48].mxu0 %vm23_vm0, %v3048_v39 }
 0x330   :  { %v2286_v3 = vadd.f32 %v10282_v63, %v2141_v40  ;;  %2761 = vrot.lane.b32.xlu0 %v3012_v33, %s9078_s17 }
 0x332   :  { %v2344_v18 = vmax.f32 %v2286_v3, 0.0  ;;  %2541 = vrot.lane.b32.xlu1 %v3012_v33, %s9079_s18 }
 0x333   :  { %v2821_v12 = vld [vmem:[#allocation2 + $0x66] sm:$0xff] }
 0x334   :  { %v2917_v23 = vld [vmem:[#allocation2 + $0x68] sm:$0xff]  ;;  %2360 = vst.msk [vmem:[#allocation2 + $0x70] sm:$0xff] %vm23_vm0, %v2344_v18  ;;  %2393 = vst.msk [vmem:[#allocation3 + $0x90] sm:$0xff] %vm23_vm0, %v2821_v12  ;;  %2855 = vrot.lane.b32.xlu0 %v2821_v12, %s9079_s18 }
 0x335   :  { %2711 = vst.msk [vmem:[#allocation3 + $0x68] sm:$0xff] %vm23_vm0, %v2917_v23 }
 0x336   :  { %2635 = vrot.lane.b32.xlu1 %v2821_v12, %s9080_s21  ;;  %v10540_v12 = vpop.permute.xlu0 %2975 }
 0x338   :  { %2951 = vrot.lane.b32.xlu0 %v2917_v23, %s9080_s21 }
 0x33a   :  { %2447 = vrot.lane.b32.xlu1 %v2917_v23, %s9078_s17  ;;  %v7797_v63 = vpop.f32.mrb[28].mxu1 }
 0x33b   :  { %v7798_v14 = vpop.f32.mrb[29].mxu1  ;;  %v2822_v20 = vld [vmem:[#allocation2 + $0x6e] sm:$0xff] }
 0x33c   :  { %v2918_v35 = vld [vmem:[#allocation2 + $0x70] sm:$0xff]  ;;  %v7799_v16 = vadd.f32 %v7798_v14, %v7797_v63  ;;  %2394 = vst.msk [vmem:[#allocation3 + $0xa8] sm:$0xff] %vm23_vm0, %v2822_v20  ;;  %2857 = vrot.lane.b32.xlu0 %v2822_v20, %s9079_s18 }
 0x33d   :  { %v2505_v24 = vld [vmem:[#allocation2 + $0x6a] sm:$0xff]  ;;  %v3014_v29 = vld [vmem:[#allocation2 + $0x72] sm:$0xff]  ;;  %2712 = vst.msk [vmem:[#allocation3 + $0x80] sm:$0xff] %vm23_vm0, %v2918_v35 }
 0x33e   :  { %3029 = vst.msk [vmem:[#allocation3 + $0x40] sm:$0xff] %vm23_vm0, %v2505_v24  ;;  %3030 = vst.msk [vmem:[#allocation3 + $0x58] sm:$0xff] %vm23_vm0, %v3014_v29  ;;  %v2146_v51 = vadd.f32 %v7799_v16, %v10320_v42  ;;  %2637 = vrot.lane.b32.xlu1 %v2822_v20, %s9080_s21 }
 0x340   :  { %v2291_v11 = vadd.f32 %v10294_v21, %v2146_v51  ;;  %2953 = vrot.lane.b32.xlu0 %v2918_v35, %s9080_s21 }
 0x342   :  { %v2345_v41 = vmax.f32 %v2291_v11, 0.0  ;;  %2543 = vrot.lane.b32.xlu1 %v2505_v24, %s9079_s18  ;;  %v7800_v36 = vpop.f32.mrb[30].mxu1 }
 0x343   :  { %v7801_v38 = vpop.f32.mrb[31].mxu1 }
 0x344   :  { %2361 = vst.msk [vmem:[#allocation2 + $0x88] sm:$0xff] %vm23_vm0, %v2345_v41  ;;  %v7802_v43 = vadd.f32 %v7801_v38, %v7800_v36  ;;  %2763 = vrot.lane.b32.xlu0 %v2505_v24, %s9078_s17 }
 0x345   :  { %v3051_v19 = vld [vmem:[#allocation3 + $0x40] sm:$0xff]  ;;  %v3054_v27 = vld [vmem:[#allocation3 + $0x58] sm:$0xff] }
 0x346   :  { %8502 = vmatprep.mubr.msk.f32.mxu0 %vm23_vm0, %v3051_v19  ;;  %v2151_v21 = vadd.f32 %v7802_v43, %v10320_v42  ;;  %2449 = vrot.lane.b32.xlu1 %v2918_v35, %s9078_s17  ;;  %v10551_v35 = vpop.permute.xlu0 %2881 }
 0x347   :  { %8503 = vmatmul.mubr.msk.f32.gmra.mrb[50].mxu0 %vm23_vm0, %v3054_v27 }
 0x348   :  { %v2296_v45 = vadd.f32 %v10292_v17, %v2151_v21  ;;  %2765 = vrot.lane.b32.xlu0 %v3014_v29, %s9078_s17 }
 0x34a   :  { %v2346_v22 = vmax.f32 %v2296_v45, 0.0  ;;  %2545 = vrot.lane.b32.xlu1 %v3014_v29, %s9079_s18 }
 0x34b   :  { %v2823_v47 = vld [vmem:[#allocation2 + $0x86] sm:$0xff] }
 0x34c   :  { %v2919_v48 = vld [vmem:[#allocation2 + $0x88] sm:$0xff]  ;;  %2362 = vst.msk [vmem:[#allocation2 + $0x90] sm:$0xff] %vm23_vm0, %v2346_v22  ;;  %2395 = vst.msk [vmem:[#allocation3 + $0xc0] sm:$0xff] %vm23_vm0, %v2823_v47  ;;  %2859 = vrot.lane.b32.xlu0 %v2823_v47, %s9079_s18 }
 0x34d   :  { %2713 = vst.msk [vmem:[#allocation3 + $0x98] sm:$0xff] %vm23_vm0, %v2919_v48 }
 0x34e   :  { %2639 = vrot.lane.b32.xlu1 %v2823_v47, %s9080_s21 }
 0x350   :  { %2955 = vrot.lane.b32.xlu0 %v2919_v48, %s9080_s21 }
 0x352   :  { %2451 = vrot.lane.b32.xlu1 %v2919_v48, %s9078_s17  ;;  %v7803_v17 = vpop.f32.mrb[32].mxu1 }
 0x353   :  { %v7804_v49 = vpop.f32.mrb[33].mxu1  ;;  %v2824_v6 = vld [vmem:[#allocation2 + $0x8e] sm:$0xff] }
 0x354   :  { %v2920_v53 = vld [vmem:[#allocation2 + $0x90] sm:$0xff]  ;;  %v7805_v30 = vadd.f32 %v7804_v49, %v7803_v17  ;;  %2396 = vst.msk [vmem:[#allocation3 + $0xd8] sm:$0xff] %vm23_vm0, %v2824_v6  ;;  %2861 = vrot.lane.b32.xlu0 %v2824_v6, %s9079_s18 }
 0x355   :  { %v2507_v54 = vld [vmem:[#allocation2 + $0x8a] sm:$0xff]  ;;  %v3016_v55 = vld [vmem:[#allocation2 + $0x92] sm:$0xff]  ;;  %2714 = vst.msk [vmem:[#allocation3 + $0xb0] sm:$0xff] %vm23_vm0, %v2920_v53 }
 0x356   :  { %3031 = vst.msk [vmem:[#allocation3 + $0x70] sm:$0xff] %vm23_vm0, %v2507_v54  ;;  %3032 = vst.msk [vmem:[#allocation3 + $0x88] sm:$0xff] %vm23_vm0, %v3016_v55  ;;  %v2156_v15 = vadd.f32 %v7805_v30, %v10320_v42  ;;  %2641 = vrot.lane.b32.xlu1 %v2824_v6, %s9080_s21 }
 0x358   :  { %v2301_v59 = vadd.f32 %v10298_v32, %v2156_v15  ;;  %2957 = vrot.lane.b32.xlu0 %v2920_v53, %s9080_s21 }
 0x35a   :  { %v2347_v61 = vmax.f32 %v2301_v59, 0.0  ;;  %2547 = vrot.lane.b32.xlu1 %v2507_v54, %s9079_s18  ;;  %v7806_v25 = vpop.f32.mrb[34].mxu1 }
 0x35b   :  { %v7807_v60 = vpop.f32.mrb[35].mxu1 }
 0x35c   :  { %2363 = vst.msk [vmem:[#allocation2 + $0xa8] sm:$0xff] %vm23_vm0, %v2347_v61  ;;  %v7808_v5 = vadd.f32 %v7807_v60, %v7806_v25  ;;  %2767 = vrot.lane.b32.xlu0 %v2507_v54, %s9078_s17 }
 0x35d   :  { %v3057_v26 = vld [vmem:[#allocation3 + $0x70] sm:$0xff]  ;;  %v3060_v0 = vld [vmem:[#allocation3 + $0x88] sm:$0xff] }
 0x35e   :  { %8505 = vmatprep.mubr.msk.f32.mxu0 %vm23_vm0, %v3057_v26  ;;  %v2161_v32 = vadd.f32 %v7808_v5, %v10320_v42  ;;  %2453 = vrot.lane.b32.xlu1 %v2920_v53, %s9078_s17 }
 0x35f   :  { %8506 = vmatmul.mubr.msk.f32.gmra.mrb[52].mxu0 %vm23_vm0, %v3060_v0 }
 0x360   :  { %v2306_v28 = vadd.f32 %v10296_v57, %v2161_v32  ;;  %2769 = vrot.lane.b32.xlu0 %v3016_v55, %s9078_s17 }
 0x362   :  { %v2348_v44 = vmax.f32 %v2306_v28, 0.0  ;;  %2549 = vrot.lane.b32.xlu1 %v3016_v55, %s9079_s18 }
 0x363   :  { %v2825_v1 = vld [vmem:[#allocation2 + $0xa6] sm:$0xff] }
 0x364   :  { %v2921_v58 = vld [vmem:[#allocation2 + $0xa8] sm:$0xff]  ;;  %2364 = vst.msk [vmem:[#allocation2 + $0xb0] sm:$0xff] %vm23_vm0, %v2348_v44  ;;  %2397 = vst.msk [vmem:[#allocation3 + $0xf0] sm:$0xff] %vm23_vm0, %v2825_v1  ;;  %2863 = vrot.lane.b32.xlu0 %v2825_v1, %s9079_s18 }
 0x365   :  { %2715 = vst.msk [vmem:[#allocation3 + $0xc8] sm:$0xff] %vm23_vm0, %v2921_v58 }
 0x366   :  { %2643 = vrot.lane.b32.xlu1 %v2825_v1, %s9080_s21 }
 0x368   :  { %2959 = vrot.lane.b32.xlu0 %v2921_v58, %s9080_s21 }
 0x36a   :  { %2455 = vrot.lane.b32.xlu1 %v2921_v58, %s9078_s17  ;;  %v7809_v57 = vpop.f32.mrb[36].mxu1 }
 0x36b   :  { %v7810_v37 = vpop.f32.mrb[37].mxu1  ;;  %v2826_v2 = vld [vmem:[#allocation2 + $0xae] sm:$0xff] }
 0x36c   :  { %v2922_v33 = vld [vmem:[#allocation2 + $0xb0] sm:$0xff]  ;;  %v7811_v34 = vadd.f32 %v7810_v37, %v7809_v57  ;;  %2398 = vst.msk [vmem:[#allocation3 + $0x108] sm:$0xff] %vm23_vm0, %v2826_v2  ;;  %2865 = vrot.lane.b32.xlu0 %v2826_v2, %s9079_s18 }
 0x36d   :  { %v2509_v4 = vld [vmem:[#allocation2 + $0xaa] sm:$0xff]  ;;  %v3018_v7 = vld [vmem:[#allocation2 + $0xb2] sm:$0xff]  ;;  %2716 = vst.msk [vmem:[#allocation3 + $0xe0] sm:$0xff] %vm23_vm0, %v2922_v33 }
 0x36e   :  { %3033 = vst.msk [vmem:[#allocation3 + $0xa0] sm:$0xff] %vm23_vm0, %v2509_v4  ;;  %3034 = vst.msk [vmem:[#allocation3 + $0xb8] sm:$0xff] %vm23_vm0, %v3018_v7  ;;  %v2166_v9 = vadd.f32 %v7811_v34, %v10320_v42  ;;  %2645 = vrot.lane.b32.xlu1 %v2826_v2, %s9080_s21 }
 0x370   :  { %v2311_v10 = vadd.f32 %v10349_v31, %v2166_v9  ;;  %2961 = vrot.lane.b32.xlu0 %v2922_v33, %s9080_s21 }
 0x372   :  { %v2349_v13 = vmax.f32 %v2311_v10, 0.0  ;;  %2551 = vrot.lane.b32.xlu1 %v2509_v4, %s9079_s18  ;;  %v2628_v39 = vpop.permute.xlu1 %2627  ;;  %v7812_v40 = vpop.f32.mrb[38].mxu1 }
 0x373   :  { %2675 = vst.msk [vmem:[#allocation3] sm:$0xff] %vm404_vm4, %v2628_v39  ;;  %v7813_v3 = vpop.f32.mrb[39].mxu1 }
 0x374   :  { %2365 = vst.msk [vmem:[#allocation2 + $0xc8] sm:$0xff] %vm23_vm0, %v2349_v13  ;;  %v7814_v23 = vadd.f32 %v7813_v3, %v7812_v40  ;;  %2771 = vrot.lane.b32.xlu0 %v2509_v4, %s9078_s17 }
 0x375   :  { %v3063_v18 = vld [vmem:[#allocation3 + $0xa0] sm:$0xff]  ;;  %v3066_v63 = vld [vmem:[#allocation3 + $0xb8] sm:$0xff] }
 0x376   :  { %8508 = vmatprep.mubr.msk.f32.mxu0 %vm23_vm0, %v3063_v18  ;;  %v2171_v31 = vadd.f32 %v7814_v23, %v10320_v42  ;;  %2457 = vrot.lane.b32.xlu1 %v2922_v33, %s9078_s17  ;;  %v2440_v14 = vpop.permute.xlu1 %2439 }
 0x377   :  { %8509 = vmatmul.mubr.msk.f32.gmra.mrb[54].mxu0 %vm23_vm0, %v3066_v63  ;;  %2485 = vst.msk [vmem:[#allocation3 + $0x30] sm:$0xff] %vm210_vm2, %v2440_v14 }
 0x378   :  { %v2316_v20 = vadd.f32 %v10338_v56, %v2171_v31  ;;  %2773 = vrot.lane.b32.xlu0 %v3018_v7, %s9078_s17 }
 0x37a   :  { %v2350_v24 = vmax.f32 %v2316_v20, 0.0  ;;  %2553 = vrot.lane.b32.xlu1 %v3018_v7, %s9079_s18  ;;  %v3043_v44 = vld [vmem:[#allocation3] sm:$0xff] }
 0x37b   :  { %v2827_v16 = vld [vmem:[#allocation2 + $0xc6] sm:$0xff] }
 0x37c   :  { %v2923_v29 = vld [vmem:[#allocation2 + $0xc8] sm:$0xff]  ;;  %2366 = vst.msk [vmem:[#allocation2 + $0xd0] sm:$0xff] %vm23_vm0, %v2350_v24  ;;  %2399 = vst.msk [vmem:[#allocation3 + $0x120] sm:$0xff] %vm23_vm0, %v2827_v16  ;;  %2867 = vrot.lane.b32.xlu0 %v2827_v16, %s9079_s18 }
 0x37d   :  { %2717 = vst.msk [vmem:[#allocation3 + $0xf8] sm:$0xff] %vm23_vm0, %v2923_v29 }
 0x37e   :  { %2647 = vrot.lane.b32.xlu1 %v2827_v16, %s9080_s21 }
 0x37f   :  { %v2756_v56 = vpop.permute.xlu0 %2755 }
 0x380   :  { %v2630_v51 = vpop.permute.xlu1 %2629  ;;  %2803 = vst.msk [vmem:[#allocation3 + $0x8] sm:$0xff] %vm210_vm2, %v2756_v56  ;;  %2963 = vrot.lane.b32.xlu0 %v2923_v29, %s9080_s21 }
 0x381   :  { %2676 = vst.msk [vmem:[#allocation3 + $0x18] sm:$0xff] %vm404_vm4, %v2630_v51 }
 0x382   :  { %2459 = vrot.lane.b32.xlu1 %v2923_v29, %s9078_s17  ;;  %v7815_v11 = vpop.f32.mrb[40].mxu1 }
 0x383   :  { %v2758_v41 = vpop.permute.xlu0 %2757  ;;  %v2828_v38 = vld [vmem:[#allocation2 + $0xce] sm:$0xff]  ;;  %v7816_v27 = vpop.f32.mrb[41].mxu1 }
 0x384   :  { %v2536_v36 = vpop.permute.xlu1 %2535  ;;  %v2924_v19 = vld [vmem:[#allocation2 + $0xd0] sm:$0xff]  ;;  %2804 = vst.msk [vmem:[#allocation3 + $0x20] sm:$0xff] %vm210_vm2, %v2758_v41  ;;  %v7817_v45 = vadd.f32 %v7816_v27, %v7815_v11  ;;  %2869 = vrot.lane.b32.xlu0 %v2828_v38, %s9079_s18 }
 0x385   :  { %v2511_v43 = vld [vmem:[#allocation2 + $0xca] sm:$0xff]  ;;  %2581 = vst.msk [vmem:[#allocation3 + $0x30] sm:$0xff] %vm307_vm3, %v2536_v36  ;;  %v3020_v21 = vld [vmem:[#allocation2 + $0xd2] sm:$0xff] }
 0x386   :  { %3035 = vst.msk [vmem:[#allocation3 + $0xd0] sm:$0xff] %vm23_vm0, %v2511_v43  ;;  %2400 = vst.msk [vmem:[#allocation3 + $0x138] sm:$0xff] %vm23_vm0, %v2828_v38  ;;  %2649 = vrot.lane.b32.xlu1 %v2828_v38, %s9080_s21  ;;  %v2176_v22 = vadd.f32 %v7817_v45, %v10320_v42 }
 0x387   :  { %2718 = vst.msk [vmem:[#allocation3 + $0x110] sm:$0xff] %vm23_vm0, %v2924_v19  ;;  %3036 = vst.msk [vmem:[#allocation3 + $0xe8] sm:$0xff] %vm23_vm0, %v3020_v21 }
 0x388   :  { %v2442_v47 = vpop.permute.xlu1 %2441  ;;  %v2321_v48 = vadd.f32 %v10414_v46, %v2176_v22  ;;  %2965 = vrot.lane.b32.xlu0 %v2924_v19, %s9080_s21  ;;  %v3046_v24 = vld [vmem:[#allocation3 + $0x18] sm:$0xff] }
 0x389   :  { %2486 = vst.msk [vmem:[#allocation3 + $0x48] sm:$0xff] %vm210_vm2, %v2442_v47 }
 0x38a   :  { %2555 = vrot.lane.b32.xlu1 %v2511_v43, %s9079_s18  ;;  %v7818_v17 = vpop.f32.mrb[42].mxu1  ;;  %v2351_v49 = vmax.f32 %v2321_v48, 0.0 }
 0x38b   :  { %v7819_v53 = vpop.f32.mrb[43].mxu1 }
 0x38c   :  { %v2538_v6 = vpop.permute.xlu1 %2537  ;;  %v7820_v30 = vadd.f32 %v7819_v53, %v7818_v17  ;;  %2367 = vst.msk [vmem:[#allocation2 + $0xe8] sm:$0xff] %vm23_vm0, %v2351_v49  ;;  %2775 = vrot.lane.b32.xlu0 %v2511_v43, %s9078_s17 }
 0x38d   :  { %v3069_v54 = vld [vmem:[#allocation3 + $0xd0] sm:$0xff]  ;;  %2582 = vst.msk [vmem:[#allocation3 + $0x48] sm:$0xff] %vm307_vm3, %v2538_v6 }
 0x38e   :  { %8511 = vmatprep.mubr.msk.f32.mxu0 %vm23_vm0, %v3069_v54  ;;  %v3072_v55 = vld [vmem:[#allocation3 + $0xe8] sm:$0xff]  ;;  %v2181_v46 = vadd.f32 %v7820_v30, %v10320_v42  ;;  %2461 = vrot.lane.b32.xlu1 %v2924_v19, %s9078_s17  ;;  %v2852_v15 = vpop.permute.xlu0 %2851 }
 0x38f   :  { %8512 = vmatmul.mubr.msk.f32.gmra.mrb[56].mxu0 %vm23_vm0, %v3072_v55  ;;  %2899 = vst.msk [vmem:[#allocation3 + $0x8] sm:$0xff] %vm307_vm3, %v2852_v15 }
 0x390   :  { %v2632_v59 = vpop.permute.xlu1 %2631  ;;  %v2326_v61 = vadd.f32 %v10405_v62, %v2181_v46  ;;  %2777 = vrot.lane.b32.xlu0 %v3020_v21, %s9078_s17 }
 0x391   :  { %2677 = vst.msk [vmem:[#allocation3 + $0x30] sm:$0xff] %vm404_vm4, %v2632_v59  ;;  %v3087_v59 = vld [vmem:[#allocation3 + $0x160] sm:$0xff] }
 0x392   :  { %v2352_v25 = vmax.f32 %v2326_v61, 0.0  ;;  %2557 = vrot.lane.b32.xlu1 %v3020_v21, %s9079_s18  ;;  %v2948_v60 = vpop.permute.xlu0 %2947  ;;  %v4157_v61 = vld [vmem:[#allocation2 + $0x12a] sm:$0xff] }
 0x393   :  { %2995 = vst.msk [vmem:[#allocation3 + $0x8] sm:$0xff] %vm404_vm4, %v2948_v60  ;;  %v2829_v5 = vld [vmem:[#allocation2 + $0xe6] sm:$0xff]  ;;  %v4158_v60 = vld [vmem:[#allocation2 + $0x132] sm:$0xff] }
 0x394   :  { %v2444_v26 = vpop.permute.xlu1 %2443  ;;  %2368 = vst.msk [vmem:[#allocation2 + $0xf0] sm:$0xff] %vm23_vm0, %v2352_v25  ;;  %v2925_v0 = vld [vmem:[#allocation2 + $0xe8] sm:$0xff]  ;;  %2871 = vrot.lane.b32.xlu0 %v2829_v5, %s9079_s18  ;;  %2401 = vst.msk [vmem:[#allocation3 + $0x150] sm:$0xff] %vm23_vm0, %v2829_v5  ;;  %v3090_v25 = vld [vmem:[#allocation3 + $0x178] sm:$0xff] }
 0x395   :  { %2487 = vst.msk [vmem:[#allocation3 + $0x60] sm:$0xff] %vm210_vm2, %v2444_v26 }
 0x396   :  { %2719 = vst.msk [vmem:[#allocation3 + $0x128] sm:$0xff] %vm23_vm0, %v2925_v0  ;;  %2651 = vrot.lane.b32.xlu1 %v2829_v5, %s9080_s21  ;;  %v2854_v62 = vpop.permute.xlu0 %2853  ;;  %4173 = vst.msk [vmem:[#allocation3 + $0x160] sm:$0xff] %vm23_vm0, %v4157_v61 }
 0x397   :  { %2900 = vst.msk [vmem:[#allocation3 + $0x20] sm:$0xff] %vm307_vm3, %v2854_v62  ;;  %v2930_v62 = vld [vmem:[#allocation2 + $0x130] sm:$0xff] }
 0x398   :  { %v2634_v32 = vpop.permute.xlu1 %2633  ;;  %2967 = vrot.lane.b32.xlu0 %v2925_v0, %s9080_s21  ;;  %v3049_v47 = vld [vmem:[#allocation3 + $0x30] sm:$0xff]  ;;  %4174 = vst.msk [vmem:[#allocation3 + $0x178] sm:$0xff] %vm23_vm0, %v4158_v60 }
 0x399   :  { %2678 = vst.msk [vmem:[#allocation3 + $0x48] sm:$0xff] %vm404_vm4, %v2634_v32 }
 0x39a   :  { %2463 = vrot.lane.b32.xlu1 %v2925_v0, %s9078_s17  ;;  %v3044_v28 = vld [vmem:[#allocation3 + $0x8] sm:$0xff]  ;;  %v2950_v1 = vpop.permute.xlu0 %2949 }
 0x39b   :  { %3245 = vmatprep.mubr.f32.mxu1 %v3044_v28  ;;  %v2830_v57 = vld [vmem:[#allocation2 + $0xee] sm:$0xff]  ;;  %2996 = vst.msk [vmem:[#allocation3 + $0x20] sm:$0xff] %vm404_vm4, %v2950_v1 }
 0x39c   :  { %v2540_v58 = vpop.permute.xlu1 %2539  ;;  %v2926_v37 = vld [vmem:[#allocation2 + $0xf0] sm:$0xff]  ;;  %v7821_v33 = vpop.f32.mrb[44].mxu1  ;;  %3246 = vmatmul.mubr.f32.vlgmr.msra.gmra.mrb[48].mxu1 %v3043_v44  ;;  %2402 = vst.msk [vmem:[#allocation3 + $0x168] sm:$0xff] %vm23_vm0, %v2830_v57  ;;  %2873 = vrot.lane.b32.xlu0 %v2830_v57, %s9079_s18 }
 0x39d   :  { %v2513_v2 = vld [vmem:[#allocation2 + $0xea] sm:$0xff]  ;;  %2583 = vst.msk [vmem:[#allocation3 + $0x60] sm:$0xff] %vm307_vm3, %v2540_v58  ;;  %v3022_v4 = vld [vmem:[#allocation2 + $0xf2] sm:$0xff]  ;;  %v7822_v34 = vpop.f32.mrb[45].mxu1 }
 0x39e   :  { %3037 = vst.msk [vmem:[#allocation3 + $0x100] sm:$0xff] %vm23_vm0, %v2513_v2  ;;  %2720 = vst.msk [vmem:[#allocation3 + $0x140] sm:$0xff] %vm23_vm0, %v2926_v37  ;;  %2653 = vrot.lane.b32.xlu1 %v2830_v57, %s9080_s21  ;;  %v7823_v7 = vadd.f32 %v7822_v34, %v7821_v33  ;;  %v2760_v9 = vpop.permute.xlu0 %2759 }
 0x39f   :  { %3038 = vst.msk [vmem:[#allocation3 + $0x118] sm:$0xff] %vm23_vm0, %v3022_v4 }
 0x3a0   :  { %2805 = vst.msk [vmem:[#allocation3 + $0x38] sm:$0xff] %vm210_vm2, %v2760_v9  ;;  %v2446_v10 = vpop.permute.xlu1 %2445  ;;  %v2186_v13 = vadd.f32 %v7823_v7, %v10320_v42  ;;  %2969 = vrot.lane.b32.xlu0 %v2926_v37, %s9080_s21  ;;  %v3052_v30 = vld [vmem:[#allocation3 + $0x48] sm:$0xff] }
 0x3a1   :  { %2488 = vst.msk [vmem:[#allocation3 + $0x78] sm:$0xff] %vm210_vm2, %v2446_v10 }
 0x3a2   :  { %v2331_v39 = vadd.f32 %v10447_v52, %v2186_v13  ;;  %2559 = vrot.lane.b32.xlu1 %v2513_v2, %s9079_s18  ;;  %v7824_v40 = vpop.f32.mrb[46].mxu1  ;;  %v2762_v3 = vpop.permute.xlu0 %2761  ;;  %v3047_v23 = vld [vmem:[#allocation3 + $0x20] sm:$0xff] }
 0x3a3   :  { %v7825_v18 = vpop.f32.mrb[47].mxu1  ;;  %2806 = vst.msk [vmem:[#allocation3 + $0x50] sm:$0xff] %vm210_vm2, %v2762_v3  ;;  %3250 = vmatprep.mubr.f32.mxu1 %v3047_v23 }
 0x3a4   :  { %v2353_v31 = vmax.f32 %v2331_v39, 0.0  ;;  %v2542_v14 = vpop.permute.xlu1 %2541  ;;  %v7826_v20 = vadd.f32 %v7825_v18, %v7824_v40  ;;  %3251 = vmatmul.mubr.f32.gmra.mrb[50].mxu1 %v3046_v24  ;;  %2779 = vrot.lane.b32.xlu0 %v2513_v2, %s9078_s17 }
 0x3a5   :  { %v3075_v63 = vld [vmem:[#allocation3 + $0x100] sm:$0xff]  ;;  %2584 = vst.msk [vmem:[#allocation3 + $0x78] sm:$0xff] %vm307_vm3, %v2542_v14 }
 0x3a6   :  { %8514 = vmatprep.mubr.msk.f32.mxu0 %vm23_vm0, %v3075_v63  ;;  %v3078_v16 = vld [vmem:[#allocation3 + $0x118] sm:$0xff]  ;;  %2369 = vst.msk [vmem:[#allocation2 + $0x108] sm:$0xff] %vm23_vm0, %v2353_v31  ;;  %v2191_v52 = vadd.f32 %v7826_v20, %v10320_v42  ;;  %2465 = vrot.lane.b32.xlu1 %v2926_v37, %s9078_s17  ;;  %v2856_v29 = vpop.permute.xlu0 %2855 }
 0x3a7   :  { %8515 = vmatmul.mubr.msk.f32.gmra.mrb[58].mxu0 %vm23_vm0, %v3078_v16  ;;  %2901 = vst.msk [vmem:[#allocation3 + $0x38] sm:$0xff] %vm307_vm3, %v2856_v29 }
 0x3a8   :  { %v2336_v56 = vadd.f32 %v10445_v50, %v2191_v52  ;;  %v2636_v51 = vpop.permute.xlu1 %2635  ;;  %2781 = vrot.lane.b32.xlu0 %v3022_v4, %s9078_s17 }
 0x3a9   :  { %2679 = vst.msk [vmem:[#allocation3 + $0x60] sm:$0xff] %vm404_vm4, %v2636_v51 }
 0x3aa   :  { %v2354_v11 = vmax.f32 %v2336_v56, 0.0  ;;  %2561 = vrot.lane.b32.xlu1 %v3022_v4, %s9079_s18  ;;  %v2952_v41 = vpop.permute.xlu0 %2951 }
 0x3ab   :  { %2997 = vst.msk [vmem:[#allocation3 + $0x38] sm:$0xff] %vm404_vm4, %v2952_v41  ;;  %v3535_v41 = vld [vmem:[#allocation2 + $0x8] sm:$0xff] }
 0x3ac   :  { %2370 = vst.msk [vmem:[#allocation2 + $0x110] sm:$0xff] %vm23_vm0, %v2354_v11  ;;  %v2448_v42 = vpop.permute.xlu1 %2447 }
 0x3ad   :  { %2489 = vst.msk [vmem:[#allocation3 + $0x90] sm:$0xff] %vm210_vm2, %v2448_v42  ;;  %v2831_v36 = vld [vmem:[#allocation2 + $0x106] sm:$0xff] }
 0x3ae   :  { %v2927_v50 = vld [vmem:[#allocation2 + $0x108] sm:$0xff]  ;;  %2875 = vrot.lane.b32.xlu0 %v2831_v36, %s9079_s18  ;;  %2655 = vrot.lane.b32.xlu1 %v2831_v36, %s9080_s21  ;;  %v2858_v38 = vpop.permute.xlu0 %2857 }
 0x3af   :  { %2721 = vst.msk [vmem:[#allocation3 + $0x158] sm:$0xff] %vm23_vm0, %v2927_v50 }
 0x3b0   :  { %2902 = vst.msk [vmem:[#allocation3 + $0x50] sm:$0xff] %vm307_vm3, %v2858_v38  ;;  %v2638_v19 = vpop.permute.xlu1 %2637  ;;  %v3055_v37 = vld [vmem:[#allocation3 + $0x60] sm:$0xff] }
 0x3b1   :  { %2680 = vst.msk [vmem:[#allocation3 + $0x78] sm:$0xff] %vm404_vm4, %v2638_v19 }
 0x3b2   :  { %2971 = vrot.lane.b32.xlu0 %v2927_v50, %s9080_s21  ;;  %v2954_v43 = vpop.permute.xlu0 %2953  ;;  %v3050_v27 = vld [vmem:[#allocation3 + $0x38] sm:$0xff]  ;;  %v3631_v50 = vld [vmem:[#allocation2 + $0xa] sm:$0xff] }
 0x3b3   :  { %v2610_v21 = vld [vmem:[#allocation2 + $0x10e] sm:$0xff]  ;;  %2998 = vst.msk [vmem:[#allocation3 + $0x50] sm:$0xff] %vm404_vm4, %v2954_v43  ;;  %3255 = vmatprep.mubr.f32.mxu1 %v3050_v27 }
 0x3b4   :  { %v2928_v45 = vld [vmem:[#allocation2 + $0x110] sm:$0xff]  ;;  %v2544_v22 = vpop.permute.xlu1 %2543  ;;  %2657 = vrot.lane.b32.xlu1 %v2610_v21, %s9080_s21  ;;  %3256 = vmatmul.mubr.f32.gmra.mrb[52].mxu1 %v3049_v47 }
 0x3b5   :  { %v3023_v48 = vld [vmem:[#allocation2 + $0x10a] sm:$0xff]  ;;  %v3024_v17 = vld [vmem:[#allocation2 + $0x112] sm:$0xff]  ;;  %2722 = vst.msk [vmem:[#allocation3 + $0x170] sm:$0xff] %vm23_vm0, %v2928_v45 }
 0x3b6   :  { %2585 = vst.msk [vmem:[#allocation3 + $0x90] sm:$0xff] %vm307_vm3, %v2544_v22  ;;  %2877 = vrot.lane.b32.xlu0 %v2610_v21, %s9079_s18  ;;  %v2764_v49 = vpop.permute.xlu0 %2763  ;;  %v3536_v43 = vld [vmem:[#allocation2 + $0x10] sm:$0xff] }
 0x3b7   :  { %3039 = vst.msk [vmem:[#allocation3 + $0x130] sm:$0xff] %vm23_vm0, %v3023_v48  ;;  %3040 = vst.msk [vmem:[#allocation3 + $0x148] sm:$0xff] %vm23_vm0, %v3024_v17  ;;  %v3632_v47 = vld [vmem:[#allocation2 + $0x12] sm:$0xff] }
 0x3b8   :  { %2807 = vst.msk [vmem:[#allocation3 + $0x68] sm:$0xff] %vm210_vm2, %v2764_v49  ;;  %v2450_v6 = vpop.permute.xlu1 %2449  ;;  %v3058_v9 = vld [vmem:[#allocation3 + $0x78] sm:$0xff]  ;;  %3567 = vrot.lane.b32.xlu1 %v3535_v41, %s9078_s17 }
 0x3b9   :  { %2490 = vst.msk [vmem:[#allocation3 + $0xa8] sm:$0xff] %vm210_vm2, %v2450_v6 }
 0x3ba   :  { %2973 = vrot.lane.b32.xlu0 %v2928_v45, %s9080_s21  ;;  %v2766_v53 = vpop.permute.xlu0 %2765  ;;  %v3053_v54 = vld [vmem:[#allocation3 + $0x50] sm:$0xff] }
 0x3bb   :  { %2808 = vst.msk [vmem:[#allocation3 + $0x80] sm:$0xff] %vm210_vm2, %v2766_v53  ;;  %3260 = vmatprep.mubr.f32.mxu1 %v3053_v54 }
 0x3bc   :  { %v2546_v55 = vpop.permute.xlu1 %2545  ;;  %3261 = vmatmul.mubr.f32.gmra.mrb[54].mxu1 %v3052_v30  ;;  %3663 = vrot.lane.b32.xlu1 %v3631_v50, %s9079_s18 }
 0x3bd   :  { %2586 = vst.msk [vmem:[#allocation3 + $0xa8] sm:$0xff] %vm307_vm3, %v2546_v55 }
 0x3be   :  { %v3081_v46 = vld [vmem:[#allocation3 + $0x130] sm:$0xff]  ;;  %v3084_v15 = vld [vmem:[#allocation3 + $0x148] sm:$0xff]  ;;  %2783 = vrot.lane.b32.xlu0 %v3023_v48, %s9078_s17  ;;  %v2860_v26 = vpop.permute.xlu0 %2859 }
 0x3bf   :  { %8517 = vmatprep.mubr.msk.f32.mxu0 %vm23_vm0, %v3081_v46  ;;  %2903 = vst.msk [vmem:[#allocation3 + $0x68] sm:$0xff] %vm307_vm3, %v2860_v26 }
 0x3c0   :  { %8518 = vmatmul.mubr.msk.f32.gmra.mrb[60].mxu0 %vm23_vm0, %v3084_v15  ;;  %v2640_v5 = vpop.permute.xlu1 %2639  ;;  %3569 = vrot.lane.b32.xlu1 %v3536_v43, %s9078_s17 }
 0x3c1   :  { %8520 = vmatprep.mubr.msk.f32.mxu0 %vm23_vm0, %v3087_v59  ;;  %2681 = vst.msk [vmem:[#allocation3 + $0x90] sm:$0xff] %vm404_vm4, %v2640_v5 }
 0x3c2   :  { %2785 = vrot.lane.b32.xlu0 %v3024_v17, %s9078_s17  ;;  %v2956_v0 = vpop.permute.xlu0 %2955 }
 0x3c3   :  { %2999 = vst.msk [vmem:[#allocation3 + $0x68] sm:$0xff] %vm404_vm4, %v2956_v0 }
 0x3c4   :  { %8521 = vmatmul.mubr.msk.f32.gmra.mrb[62].mxu0 %vm23_vm0, %v3090_v25  ;;  %v2452_v32 = vpop.permute.xlu1 %2451  ;;  %3665 = vrot.lane.b32.xlu1 %v3632_v47, %s9079_s18  ;;  %v3504_v47 = vld [vmem:[#allocation2 + $0xe] sm:$0xff] }
 0x3c5   :  { %2491 = vst.msk [vmem:[#allocation3 + $0xc0] sm:$0xff] %vm210_vm2, %v2452_v32 }
 0x3c6   :  { %2977 = vrot.lane.b32.xlu0 %v2930_v62, %s9080_s21  ;;  %v2862_v28 = vpop.permute.xlu0 %2861  ;;  %3520 = vst.msk [vmem:[#allocation3 + $0x18] sm:$0xff] %vm23_vm0, %v3504_v47 }
 0x3c7   :  { %2904 = vst.msk [vmem:[#allocation3 + $0x80] sm:$0xff] %vm307_vm3, %v2862_v28 }
 0x3c8   :  { %v2642_v44 = vpop.permute.xlu1 %2641  ;;  %v3061_v14 = vld [vmem:[#allocation3 + $0x90] sm:$0xff] }
 0x3c9   :  { %2682 = vst.msk [vmem:[#allocation3 + $0xa8] sm:$0xff] %vm404_vm4, %v2642_v44 }
 0x3ca   :  { %v2958_v1 = vpop.permute.xlu0 %2957  ;;  %v3056_v58 = vld [vmem:[#allocation3 + $0x68] sm:$0xff] }
 0x3cb   :  { %3000 = vst.msk [vmem:[#allocation3 + $0x80] sm:$0xff] %vm404_vm4, %v2958_v1  ;;  %3265 = vmatprep.mubr.f32.mxu1 %v3056_v58 }
 0x3cc   :  { %v2548_v57 = vpop.permute.xlu1 %2547  ;;  %3266 = vmatmul.mubr.f32.gmra.mrb[56].mxu1 %v3055_v37 }
 0x3cd   :  { %2587 = vst.msk [vmem:[#allocation3 + $0xc0] sm:$0xff] %vm307_vm3, %v2548_v57 }
 0x3ce   :  { %v2768_v2 = vpop.permute.xlu0 %2767 }
 0x3cf   :  { %2809 = vst.msk [vmem:[#allocation3 + $0x98] sm:$0xff] %vm210_vm2, %v2768_v2 }
 0x3d0   :  { %v2454_v33 = vpop.permute.xlu1 %2453  ;;  %v3064_v56 = vld [vmem:[#allocation3 + $0xa8] sm:$0xff] }
 0x3d1   :  { %2492 = vst.msk [vmem:[#allocation3 + $0xd8] sm:$0xff] %vm210_vm2, %v2454_v33 }
 0x3d2   :  { %v2770_v4 = vpop.permute.xlu0 %2769  ;;  %v3059_v34 = vld [vmem:[#allocation3 + $0x80] sm:$0xff] }
 0x3d3   :  { %2810 = vst.msk [vmem:[#allocation3 + $0xb0] sm:$0xff] %vm210_vm2, %v2770_v4  ;;  %3270 = vmatprep.mubr.f32.mxu1 %v3059_v34  ;;  %v7524_v34 = vld [vmem:[%s12627_s1 + $0x460] sm:$0xff] }
 0x3d4   :  { %v2550_v7 = vpop.permute.xlu1 %2549  ;;  %3271 = vmatmul.mubr.f32.gmra.mrb[58].mxu1 %v3058_v9 }
 0x3d5   :  { %2588 = vst.msk [vmem:[#allocation3 + $0xd8] sm:$0xff] %vm307_vm3, %v2550_v7  ;;  %v7525_v7 = vld [vmem:[%s12627_s1 + $0x468] sm:$0xff] }
 0x3d6   :  { %v2864_v10 = vpop.permute.xlu0 %2863  ;;  %v8739_v9 = vpack.c.bf16 %v7525_v7, %v7524_v34  ;;  %v7512_v7 = vld [vmem:[%s12627_s1 + $0x400] sm:$0xff] }
 0x3d7   :  { %2905 = vst.msk [vmem:[#allocation3 + $0x98] sm:$0xff] %vm307_vm3, %v2864_v10 }
 0x3d8   :  { %v2644_v13 = vpop.permute.xlu1 %2643  ;;  %8740 = vmatprep.subr.bf16.mxu1 %v8739_v9 }
 0x3d9   :  { %2683 = vst.msk [vmem:[#allocation3 + $0xc0] sm:$0xff] %vm404_vm4, %v2644_v13  ;;  %8742 = vmatpush3.bf16.msra.mxu1 %v8739_v9  ;;  %v7526_v13 = vld [vmem:[%s12627_s1 + $0x470] sm:$0xff]  ;;  %v7496_v9 = vld [vmem:[%s12627_s1 + $0x380] sm:$0xff] }
 0x3da   :  { %v2960_v39 = vpop.permute.xlu0 %2959 }
 0x3db   :  { %3001 = vst.msk [vmem:[#allocation3 + $0x98] sm:$0xff] %vm404_vm4, %v2960_v39  ;;  %v7527_v39 = vld [vmem:[%s12627_s1 + $0x478] sm:$0xff] }
 0x3dc   :  { %v2456_v40 = vpop.permute.xlu1 %2455 }
 0x3dd   :  { %2493 = vst.msk [vmem:[#allocation3 + $0xf0] sm:$0xff] %vm210_vm2, %v2456_v40 }
 0x3de   :  { %v2866_v3 = vpop.permute.xlu0 %2865 }
 0x3df   :  { %2906 = vst.msk [vmem:[#allocation3 + $0xb0] sm:$0xff] %vm307_vm3, %v2866_v3  ;;  %v8743_v3 = vpack.c.bf16 %v7527_v39, %v7526_v13 }
 0x3e0   :  { %v2646_v18 = vpop.permute.xlu1 %2645  ;;  %v3067_v22 = vld [vmem:[#allocation3 + $0xc0] sm:$0xff] }
 0x3e1   :  { %2684 = vst.msk [vmem:[#allocation3 + $0xd8] sm:$0xff] %vm404_vm4, %v2646_v18  ;;  %8744 = vmatprep.subr.bf16.mxu1 %v8743_v3 }
 0x3e2   :  { %v2962_v23 = vpop.permute.xlu0 %2961  ;;  %v3062_v63 = vld [vmem:[#allocation3 + $0x98] sm:$0xff]  ;;  %8746 = vmatpush3.bf16.msra.mxu1 %v8743_v3 }
 0x3e3   :  { %3002 = vst.msk [vmem:[#allocation3 + $0xb0] sm:$0xff] %vm404_vm4, %v2962_v23  ;;  %3275 = vmatprep.mubr.f32.mxu1 %v3062_v63  ;;  %v7515_v3 = vld [vmem:[%s12627_s1 + $0x418] sm:$0xff] }
 0x3e4   :  { %v2552_v31 = vpop.permute.xlu1 %2551  ;;  %3276 = vmatmul.mubr.f32.gmra.mrb[60].mxu1 %v3061_v14 }
 0x3e5   :  { %2589 = vst.msk [vmem:[#allocation3 + $0xf0] sm:$0xff] %vm307_vm3, %v2552_v31 }
 0x3e6   :  { %v2772_v20 = vpop.permute.xlu0 %2771 }
 0x3e7   :  { %2811 = vst.msk [vmem:[#allocation3 + $0xc8] sm:$0xff] %vm210_vm2, %v2772_v20 }
 0x3e8   :  { %v2458_v24 = vpop.permute.xlu1 %2457  ;;  %v3070_v55 = vld [vmem:[#allocation3 + $0xd8] sm:$0xff] }
 0x3e9   :  { %2494 = vst.msk [vmem:[#allocation3 + $0x108] sm:$0xff] %vm210_vm2, %v2458_v24 }
 0x3ea   :  { %v2774_v16 = vpop.permute.xlu0 %2773  ;;  %v3065_v52 = vld [vmem:[#allocation3 + $0xb0] sm:$0xff] }
 0x3eb   :  { %2812 = vst.msk [vmem:[#allocation3 + $0xe0] sm:$0xff] %vm210_vm2, %v2774_v16  ;;  %3280 = vmatprep.mubr.f32.mxu1 %v3065_v52 }
 0x3ec   :  { %v2554_v29 = vpop.permute.xlu1 %2553  ;;  %3281 = vmatmul.mubr.f32.gmra.mrb[62].mxu1 %v3064_v56 }
 0x3ed   :  { %2590 = vst.msk [vmem:[#allocation3 + $0x108] sm:$0xff] %vm307_vm3, %v2554_v29 }
 0x3ee   :  { %v2868_v51 = vpop.permute.xlu0 %2867 }
 0x3ef   :  { %2907 = vst.msk [vmem:[#allocation3 + $0xc8] sm:$0xff] %vm307_vm3, %v2868_v51 }
 0x3f0   :  { %v2648_v11 = vpop.permute.xlu1 %2647 }
 0x3f1   :  { %2685 = vst.msk [vmem:[#allocation3 + $0xf0] sm:$0xff] %vm404_vm4, %v2648_v11 }
 0x3f2   :  { %v2964_v42 = vpop.permute.xlu0 %2963 }
 0x3f3   :  { %3003 = vst.msk [vmem:[#allocation3 + $0xc8] sm:$0xff] %vm404_vm4, %v2964_v42 }
 0x3f4   :  { %v2460_v36 = vpop.permute.xlu1 %2459 }
 0x3f5   :  { %2495 = vst.msk [vmem:[#allocation3 + $0x120] sm:$0xff] %vm210_vm2, %v2460_v36 }
 0x3f6   :  { %v2870_v38 = vpop.permute.xlu0 %2869 }
 0x3f7   :  { %2908 = vst.msk [vmem:[#allocation3 + $0xe0] sm:$0xff] %vm307_vm3, %v2870_v38 }
 0x3f8   :  { %v2650_v19 = vpop.permute.xlu1 %2649  ;;  %v3073_v62 = vld [vmem:[#allocation3 + $0xf0] sm:$0xff] }
 0x3f9   :  { %2686 = vst.msk [vmem:[#allocation3 + $0x108] sm:$0xff] %vm404_vm4, %v2650_v19 }
 0x3fa   :  { %v2966_v27 = vpop.permute.xlu0 %2965  ;;  %v3068_v21 = vld [vmem:[#allocation3 + $0xc8] sm:$0xff] }
 0x3fb   :  { %3004 = vst.msk [vmem:[#allocation3 + $0xe0] sm:$0xff] %vm404_vm4, %v2966_v27  ;;  %3285 = vmatprep.mubr.f32.mxu1 %v3068_v21  ;;  %v10761_v21 = vld [vmem:[%s12628_s2 + $0x2] ss:$0 sm:$0xff] }
 0x3fc   :  { %v2556_v45 = vpop.permute.xlu1 %2555  ;;  %3286 = vmatmul.mubr.f32.gmra.mrb[64].mxu1 %v3067_v22 }
 0x3fd   :  { %2591 = vst.msk [vmem:[#allocation3 + $0x120] sm:$0xff] %vm307_vm3, %v2556_v45 }
 0x3fe   :  { %v2776_v48 = vpop.permute.xlu0 %2775 }
 0x3ff   :  { %2813 = vst.msk [vmem:[#allocation3 + $0xf8] sm:$0xff] %vm210_vm2, %v2776_v48 }
 0x400   :  { %v2462_v17 = vpop.permute.xlu1 %2461  ;;  %v3076_v2 = vld [vmem:[#allocation3 + $0x108] sm:$0xff] }
 0x401   :  { %2496 = vst.msk [vmem:[#allocation3 + $0x138] sm:$0xff] %vm210_vm2, %v2462_v17 }
 0x402   :  { %v10694_v49 = vpop.f32.mrb[48].mxu0  ;;  %v2778_v53 = vpop.permute.xlu0 %2777  ;;  %v3071_v54 = vld [vmem:[#allocation3 + $0xe0] sm:$0xff] }
 0x403   :  { %v10696_v6 = vpop.f32.mrb[49].mxu0  ;;  %2814 = vst.msk [vmem:[#allocation3 + $0x110] sm:$0xff] %vm210_vm2, %v2778_v53  ;;  %3290 = vmatprep.mubr.f32.mxu1 %v3071_v54 }
 0x404   :  { %v2558_v30 = vpop.permute.xlu1 %2557  ;;  %3291 = vmatmul.mubr.f32.gmra.mrb[66].mxu1 %v3070_v55  ;;  %v7508_v55 = vld [vmem:[%s12627_s1 + $0x3e0] sm:$0xff] }
 0x405   :  { %2592 = vst.msk [vmem:[#allocation3 + $0x138] sm:$0xff] %vm307_vm3, %v2558_v30 }
 0x406   :  { %v2872_v46 = vpop.permute.xlu0 %2871 }
 0x407   :  { %2909 = vst.msk [vmem:[#allocation3 + $0xf8] sm:$0xff] %vm307_vm3, %v2872_v46  ;;  %v7509_v46 = vld [vmem:[%s12627_s1 + $0x3e8] sm:$0xff] }
 0x408   :  { %v2652_v15 = vpop.permute.xlu1 %2651 }
 0x409   :  { %2687 = vst.msk [vmem:[#allocation3 + $0x120] sm:$0xff] %vm404_vm4, %v2652_v15 }
 0x40a   :  { %v2968_v59 = vpop.permute.xlu0 %2967 }
 0x40b   :  { %3005 = vst.msk [vmem:[#allocation3 + $0xf8] sm:$0xff] %vm404_vm4, %v2968_v59 }
 0x40c   :  { %v2464_v61 = vpop.permute.xlu1 %2463 }
 0x40d   :  { %2497 = vst.msk [vmem:[#allocation3 + $0x150] sm:$0xff] %vm210_vm2, %v2464_v61  ;;  %v8707_v61 = vpack.c.bf16 %v7509_v46, %v7508_v55  ;;  %v7520_v46 = vld [vmem:[%s12627_s1 + $0x440] sm:$0xff] }
 0x40e   :  { %v2874_v25 = vpop.permute.xlu0 %2873 }
 0x40f   :  { %2910 = vst.msk [vmem:[#allocation3 + $0x110] sm:$0xff] %vm307_vm3, %v2874_v25  ;;  %v7493_v25 = vld [vmem:[%s12627_s1 + $0x368] sm:$0xff]  ;;  %8708 = vmatprep.subr.bf16.mxu0 %v8707_v61 }
 0x410   :  { %v2654_v60 = vpop.permute.xlu1 %2653  ;;  %v3079_v31 = vld [vmem:[#allocation3 + $0x120] sm:$0xff] }
 0x411   :  { %2688 = vst.msk [vmem:[#allocation3 + $0x138] sm:$0xff] %vm404_vm4, %v2654_v60 }
 0x412   :  { %v2970_v26 = vpop.permute.xlu0 %2969  ;;  %v3074_v5 = vld [vmem:[#allocation3 + $0xf8] sm:$0xff] }
 0x413   :  { %3006 = vst.msk [vmem:[#allocation3 + $0x110] sm:$0xff] %vm404_vm4, %v2970_v26  ;;  %3295 = vmatprep.mubr.f32.mxu1 %v3074_v5 }
 0x414   :  { %v2560_v0 = vpop.permute.xlu1 %2559  ;;  %3296 = vmatmul.mubr.f32.gmra.mrb[68].mxu1 %v3073_v62  ;;  %v7510_v62 = vld [vmem:[%s12627_s1 + $0x3f0] sm:$0xff] }
 0x415   :  { %2593 = vst.msk [vmem:[#allocation3 + $0x150] sm:$0xff] %vm307_vm3, %v2560_v0 }
 0x416   :  { %v2780_v32 = vpop.permute.xlu0 %2779 }
 0x417   :  { %2815 = vst.msk [vmem:[#allocation3 + $0x128] sm:$0xff] %vm210_vm2, %v2780_v32  ;;  %v7511_v32 = vld [vmem:[%s12627_s1 + $0x3f8] sm:$0xff] }
 0x418   :  { %v2466_v28 = vpop.permute.xlu1 %2465  ;;  %v3082_v29 = vld [vmem:[#allocation3 + $0x138] sm:$0xff] }
 0x419   :  { %2498 = vst.msk [vmem:[#allocation3 + $0x168] sm:$0xff] %vm210_vm2, %v2466_v28  ;;  %v8711_v28 = vpack.c.bf16 %v7511_v32, %v7510_v62 }
 0x41a   :  { %v10709_v44 = vpop.f32.mrb[50].mxu0  ;;  %v2782_v58 = vpop.permute.xlu0 %2781  ;;  %v3077_v57 = vld [vmem:[#allocation3 + $0x110] sm:$0xff] }
 0x41b   :  { %v10712_v1 = vpop.f32.mrb[51].mxu0  ;;  %2816 = vst.msk [vmem:[#allocation3 + $0x140] sm:$0xff] %vm210_vm2, %v2782_v58  ;;  %3300 = vmatprep.mubr.f32.mxu1 %v3077_v57  ;;  %v7494_v58 = vld [vmem:[%s12627_s1 + $0x370] sm:$0xff]  ;;  %v7495_v57 = vld [vmem:[%s12627_s1 + $0x378] sm:$0xff] }
 0x41c   :  { %v2562_v37 = vpop.permute.xlu1 %2561  ;;  %3301 = vmatmul.mubr.f32.gmra.mrb[70].mxu1 %v3076_v2  ;;  %v8713_v2 = vpack.c.bf16 %v7495_v57, %v7494_v58  ;;  %v7523_v58 = vld [vmem:[%s12627_s1 + $0x458] sm:$0xff] }
 0x41d   :  { %2594 = vst.msk [vmem:[#allocation3 + $0x168] sm:$0xff] %vm307_vm3, %v2562_v37 }
 0x420   :  { %v2876_v33 = vpop.permute.xlu0 %2875  ;;  %v2656_v4 = vpop.permute.xlu1 %2655 }
 0x421   :  { %2911 = vst.msk [vmem:[#allocation3 + $0x128] sm:$0xff] %vm307_vm3, %v2876_v33 }
 0x422   :  { %2689 = vst.msk [vmem:[#allocation3 + $0x150] sm:$0xff] %vm404_vm4, %v2656_v4 }
 0x424   :  { %v2972_v10 = vpop.permute.xlu0 %2971 }
 0x425   :  { %3007 = vst.msk [vmem:[#allocation3 + $0x128] sm:$0xff] %vm404_vm4, %v2972_v10  ;;  %v7497_v10 = vld [vmem:[%s12627_s1 + $0x388] sm:$0xff] }
 0x426   :  { %v2658_v40 = vpop.permute.xlu1 %2657  ;;  %v8717_v39 = vpack.c.bf16 %v7497_v10, %v7496_v9 }
 0x427   :  { %2690 = vst.msk [vmem:[#allocation3 + $0x168] sm:$0xff] %vm404_vm4, %v2658_v40  ;;  %v7514_v40 = vld [vmem:[%s12627_s1 + $0x410] sm:$0xff] }
 0x428   :  { %v2878_v18 = vpop.permute.xlu0 %2877 }
 0x429   :  { %2912 = vst.msk [vmem:[#allocation3 + $0x140] sm:$0xff] %vm307_vm3, %v2878_v18  ;;  %v3085_v11 = vld [vmem:[#allocation3 + $0x150] sm:$0xff]  ;;  %v8719_v18 = vpack.c.bf16 %v7515_v3, %v7514_v40 }
 0x42a   :  { %v3568_v38 = vpop.permute.xlu1 %3567 }
 0x42c   :  { %v2974_v23 = vpop.permute.xlu0 %2973  ;;  %v3080_v63 = vld [vmem:[#allocation3 + $0x128] sm:$0xff] }
 0x42d   :  { %3008 = vst.msk [vmem:[#allocation3 + $0x140] sm:$0xff] %vm404_vm4, %v2974_v23  ;;  %3305 = vmatprep.mubr.f32.mxu1 %v3080_v63  ;;  %v7498_v23 = vld [vmem:[%s12627_s1 + $0x390] sm:$0xff]  ;;  %v7499_v63 = vld [vmem:[%s12627_s1 + $0x398] sm:$0xff] }
 0x42e   :  { %3306 = vmatmul.mubr.f32.gmra.mrb[72].mxu1 %v3079_v31  ;;  %v3664_v19 = vpop.permute.xlu1 %3663  ;;  %v8721_v31 = vpack.c.bf16 %v7499_v63, %v7498_v23 }
 0x430   :  { %v2784_v20 = vpop.permute.xlu0 %2783 }
 0x431   :  { %2817 = vst.msk [vmem:[#allocation3 + $0x158] sm:$0xff] %vm210_vm2, %v2784_v20 }
 0x432   :  { %v10734_v14 = vpop.f32.mrb[52].mxu0  ;;  %2913 = vst.msk [vmem:[#allocation3 + $0x158] sm:$0xff] %vm307_vm3, %v10531_v8  ;;  %v3570_v43 = vpop.permute.xlu1 %3569 }
 0x433   :  { %v10737_v24 = vpop.f32.mrb[53].mxu0  ;;  %3009 = vst.msk [vmem:[#allocation3 + $0x158] sm:$0xff] %vm404_vm4, %v10540_v12  ;;  %v3088_v12 = vld [vmem:[#allocation3 + $0x168] sm:$0xff] }
 0x434   :  { %v2786_v16 = vpop.permute.xlu0 %2785  ;;  %v3083_v52 = vld [vmem:[#allocation3 + $0x140] sm:$0xff]  ;;  %3616 = vst.msk [vmem:[#allocation3 + $0x18] sm:$0xff] %vm210_vm2, %v3570_v43 }
 0x435   :  { %2818 = vst.msk [vmem:[#allocation3 + $0x170] sm:$0xff] %vm210_vm2, %v2786_v16  ;;  %3310 = vmatprep.mubr.f32.mxu1 %v3083_v52  ;;  %v7516_v16 = vld [vmem:[%s12627_s1 + $0x420] sm:$0xff]  ;;  %v7517_v52 = vld [vmem:[%s12627_s1 + $0x428] sm:$0xff] }
 0x436   :  { %2914 = vst.msk [vmem:[#allocation3 + $0x170] sm:$0xff] %vm307_vm3, %v10551_v35  ;;  %3311 = vmatmul.mubr.f32.gmra.mrb[74].mxu1 %v3082_v29  ;;  %v3503_v35 = vld [vmem:[#allocation2 + $0x6] sm:$0xff]  ;;  %v3666_v17 = vpop.permute.xlu1 %3665 }
 0x437   :  { %3519 = vst.msk [vmem:[#allocation3] sm:$0xff] %vm23_vm0, %v3503_v35  ;;  %v7500_v35 = vld [vmem:[%s12627_s1 + $0x3a0] sm:$0xff] }
 0x438   :  { %v2978_v56 = vpop.permute.xlu0 %2977  ;;  %3615 = vst.msk [vmem:[#allocation3] sm:$0xff] %vm210_vm2, %v3568_v38  ;;  %v7501_v38 = vld [vmem:[%s12627_s1 + $0x3a8] sm:$0xff] }
 0x439   :  { %3010 = vst.msk [vmem:[#allocation3 + $0x170] sm:$0xff] %vm404_vm4, %v2978_v56 }
 0x43a   :  { %v3086_v51 = vld [vmem:[#allocation3 + $0x158] sm:$0xff]  ;;  %3711 = vst.msk [vmem:[#allocation3] sm:$0xff] %vm307_vm3, %v3664_v19  ;;  %3712 = vst.msk [vmem:[#allocation3 + $0x18] sm:$0xff] %vm307_vm3, %v3666_v17  ;;  %v8725_v19 = vpack.c.bf16 %v7501_v38, %v7500_v35 }
 0x43b   :  { %3315 = vmatprep.mubr.f32.mxu1 %v3086_v51  ;;  %v7503_v17 = vld [vmem:[%s12627_s1 + $0x3b8] sm:$0xff] }
 0x43c   :  { %3316 = vmatmul.mubr.f32.gmra.mrb[76].mxu1 %v3085_v11  ;;  %v8723_v11 = vpack.c.bf16 %v7517_v52, %v7516_v16 }
 0x440   :  { %v3089_v8 = vld [vmem:[#allocation3 + $0x170] sm:$0xff] }
 0x441   :  { %3320 = vmatprep.mubr.f32.mxu1 %v3089_v8 }
 0x442   :  { %3321 = vmatmul.mubr.f32.gmra.mrb[78].mxu1 %v3088_v12 }
 0x44a   :  { %v10747_v41 = vpop.f32.mrb[54].mxu0 }
 0x44b   :  { %v10749_v42 = vpop.f32.mrb[55].mxu0 }
 0x462   :  { %v10751_v36 = vpop.f32.mrb[56].mxu0 }
 0x463   :  { %v10753_v50 = vpop.f32.mrb[57].mxu0 }
 0x46f   :  { %v7879_v27 = vpop.f32.mrb[48].mxu1 }
 0x470   :  { %v7880_v45 = vpop.f32.mrb[49].mxu1 }
 0x471   :  { %v7881_v22 = vadd.f32 %v7880_v45, %v7879_v27  ;;  %v7518_v27 = vld [vmem:[%s12627_s1 + $0x430] sm:$0xff]  ;;  %v7519_v45 = vld [vmem:[%s12627_s1 + $0x438] sm:$0xff] }
 0x472   :  { %v8727_v47 = vpack.c.bf16 %v7519_v45, %v7518_v27 }
 0x473   :  { %v3248_v48 = vadd.f32 %v7881_v22, %v10761_v21 }
 0x475   :  { %v3393_v53 = vadd.f32 %v10696_v6, %v3248_v48  ;;  %v7492_v6 = vld [vmem:[%s12627_s1 + $0x360] sm:$0xff]  ;;  %v7502_v48 = vld [vmem:[%s12627_s1 + $0x3b0] sm:$0xff] }
 0x476   :  { %v8709_v5 = vpack.c.bf16 %v7493_v25, %v7492_v6  ;;  %v7504_v25 = vld [vmem:[%s12627_s1 + $0x3c0] sm:$0xff] }
 0x477   :  { %v3471_v54 = vmax.f32 %v3393_v53, 0.0  ;;  %v7882_v30 = vpop.f32.mrb[50].mxu1 }
 0x478   :  { %v7883_v15 = vpop.f32.mrb[51].mxu1  ;;  %8710 = vmatpush3.bf16.msra.mxu0 %v8709_v5 }
 0x479   :  { %3487 = vst.msk [vmem:[#allocation2 + $0x28] sm:$0xff] %vm23_vm0, %v3471_v54  ;;  %v7884_v60 = vadd.f32 %v7883_v15, %v7882_v30  ;;  %8712 = vmatprep.subr.bf16.mxu0 %v8711_v28  ;;  %v8729_v54 = vpack.c.bf16 %v7503_v17, %v7502_v48  ;;  %v7521_v15 = vld [vmem:[%s12627_s1 + $0x448] sm:$0xff]  ;;  %v7522_v28 = vld [vmem:[%s12627_s1 + $0x450] sm:$0xff] }
 0x47a   :  { %v10775_v59 = vpop.f32.mrb[58].mxu0 }
 0x47b   :  { %v10783_v26 = vpop.f32.mrb[59].mxu0  ;;  %v3253_v0 = vadd.f32 %v7884_v60, %v10761_v21  ;;  %v7505_v60 = vld [vmem:[%s12627_s1 + $0x3c8] sm:$0xff] }
 0x47c   :  { %8714 = vmatpush3.bf16.msra.mxu0 %v8713_v2  ;;  %v8733_v62 = vpack.c.bf16 %v7505_v60, %v7504_v25  ;;  %v7506_v2 = vld [vmem:[%s12627_s1 + $0x3d0] sm:$0xff] }
 0x47d   :  { %v3398_v37 = vadd.f32 %v10694_v49, %v3253_v0  ;;  %v7513_v49 = vld [vmem:[%s12627_s1 + $0x408] sm:$0xff] }
 0x47e   :  { %v8715_v13 = vpack.c.bf16 %v7513_v49, %v7512_v7 }
 0x47f   :  { %v3472_v33 = vmax.f32 %v3398_v37, 0.0  ;;  %v8735_v37 = vpack.c.bf16 %v7523_v58, %v7522_v28 }
 0x480   :  { %v3727_v4 = vld [vmem:[#allocation2 + $0x26] sm:$0xff]  ;;  %8716 = vmatprep.subr.bf16.mxu0 %v8715_v13 }
 0x481   :  { %v3537_v34 = vld [vmem:[#allocation2 + $0x28] sm:$0xff]  ;;  %3759 = vrot.lane.b32.xlu1 %v3727_v4, %s9080_s21  ;;  %3521 = vst.msk [vmem:[#allocation3 + $0x30] sm:$0xff] %vm23_vm0, %v3727_v4  ;;  %3488 = vst.msk [vmem:[#allocation2 + $0x30] sm:$0xff] %vm23_vm0, %v3472_v33  ;;  %8718 = vmatpush3.bf16.msra.mxu0 %v8717_v39  ;;  %v7507_v33 = vld [vmem:[%s12627_s1 + $0x3d8] sm:$0xff] }
 0x482   :  { %3839 = vst.msk [vmem:[#allocation3 + $0x8] sm:$0xff] %vm23_vm0, %v3537_v34  ;;  %8720 = vmatprep.subr.bf16.mxu0 %v8719_v18  ;;  %v8737_v7 = vpack.c.bf16 %v7507_v33, %v7506_v2 }
 0x485   :  { %3571 = vrot.lane.b32.xlu1 %v3537_v34, %s9078_s17  ;;  %8722 = vmatpush3.bf16.msra.mxu0 %v8721_v31 }
 0x486   :  { %8724 = vmatprep.subr.bf16.mxu0 %v8723_v11 }
 0x487   :  { %v7885_v20 = vpop.f32.mrb[52].mxu1 }
 0x488   :  { %v7886_v29 = vpop.f32.mrb[53].mxu1  ;;  %v3855_v56 = vld [vmem:[#allocation2 + $0x2a] sm:$0xff]  ;;  %v3856_v22 = vld [vmem:[#allocation2 + $0x32] sm:$0xff] }
 0x489   :  { %v3728_v51 = vld [vmem:[#allocation2 + $0x2e] sm:$0xff]  ;;  %v7887_v8 = vadd.f32 %v7886_v29, %v7885_v20  ;;  %3887 = vrot.lane.b32.xlu0 %v3855_v56, %s9078_s17  ;;  %8726 = vmatpush3.bf16.msra.mxu0 %v8725_v19 }
 0x48a   :  { %3761 = vrot.lane.b32.xlu1 %v3728_v51, %s9080_s21  ;;  %v3538_v12 = vld [vmem:[#allocation2 + $0x30] sm:$0xff]  ;;  %3522 = vst.msk [vmem:[#allocation3 + $0x48] sm:$0xff] %vm23_vm0, %v3728_v51  ;;  %8728 = vmatprep.subr.bf16.mxu0 %v8727_v47 }
 0x48b   :  { %3840 = vst.msk [vmem:[#allocation3 + $0x20] sm:$0xff] %vm23_vm0, %v3538_v12  ;;  %v3258_v43 = vadd.f32 %v7887_v8, %v10761_v21 }
 0x48d   :  { %v3403_v53 = vadd.f32 %v10712_v1, %v3258_v43  ;;  %3889 = vrot.lane.b32.xlu0 %v3856_v22, %s9078_s17  ;;  %8730 = vmatpush3.bf16.msra.mxu0 %v8729_v54  ;;  %v8731_v1 = vpack.c.bf16 %v7521_v15, %v7520_v46 }
 0x48e   :  { %3667 = vrot.lane.b32.xlu1 %v3855_v56, %s9079_s18 }
 0x48f   :  { %v3473_v30 = vmax.f32 %v3403_v53, 0.0  ;;  %v7888_v55 = vpop.f32.mrb[54].mxu1  ;;  %8732 = vmatprep.subr.bf16.mxu0 %v8731_v1 }
 0x490   :  { %v7889_v61 = vpop.f32.mrb[55].mxu1 }
 0x491   :  { %3489 = vst.msk [vmem:[#allocation2 + $0x48] sm:$0xff] %vm23_vm0, %v3473_v30  ;;  %v7890_v5 = vadd.f32 %v7889_v61, %v7888_v55  ;;  %8734 = vmatpush3.bf16.msra.mxu0 %v8733_v62 }
 0x492   :  { %3573 = vrot.lane.b32.xlu1 %v3538_v12, %s9078_s17  ;;  %8736 = vmatprep.subr.bf16.mxu0 %v8735_v37 }
 0x493   :  { %v10866_v6 = vpop.f32.mrb[60].mxu0  ;;  %v3263_v32 = vadd.f32 %v7890_v5, %v10761_v21 }
 0x494   :  { %v10875_v0 = vpop.f32.mrb[61].mxu0 }
 0x495   :  { %v3408_v4 = vadd.f32 %v10709_v44, %v3263_v32  ;;  %8738 = vmatpush3.bf16.msra.mxu0 %v8737_v7 }
 0x496   :  { %3669 = vrot.lane.b32.xlu1 %v3856_v22, %s9079_s18 }
 0x497   :  { %v10885_v57 = vpop.f32.mrb[62].mxu0  ;;  %v3474_v49 = vmax.f32 %v3408_v4, 0.0 }
 0x498   :  { %v10895_v34 = vpop.f32.mrb[63].mxu0  ;;  %v3951_v9 = vld [vmem:[#allocation2 + $0x46] sm:$0xff] }
 0x499   :  { %v4047_v10 = vld [vmem:[#allocation2 + $0x48] sm:$0xff]  ;;  %3490 = vst.msk [vmem:[#allocation2 + $0x50] sm:$0xff] %vm23_vm0, %v3474_v49  ;;  %3983 = vrot.lane.b32.xlu0 %v3951_v9, %s9079_s18  ;;  %3523 = vst.msk [vmem:[#allocation3 + $0x60] sm:$0xff] %vm23_vm0, %v3951_v9 }
 0x49a   :  { %3763 = vrot.lane.b32.xlu1 %v3951_v9, %s9080_s21  ;;  %3841 = vst.msk [vmem:[#allocation3 + $0x38] sm:$0xff] %vm23_vm0, %v4047_v10 }
 0x49d   :  { %4079 = vrot.lane.b32.xlu0 %v4047_v10, %s9080_s21 }
 0x49e   :  { %3575 = vrot.lane.b32.xlu1 %v4047_v10, %s9078_s17 }
 0x49f   :  { %v7891_v44 = vpop.f32.mrb[56].mxu1 }
 0x4a0   :  { %v7892_v13 = vpop.f32.mrb[57].mxu1  ;;  %v3952_v39 = vld [vmem:[#allocation2 + $0x4e] sm:$0xff] }
 0x4a1   :  { %v4048_v40 = vld [vmem:[#allocation2 + $0x50] sm:$0xff]  ;;  %v7893_v18 = vadd.f32 %v7892_v13, %v7891_v44  ;;  %3985 = vrot.lane.b32.xlu0 %v3952_v39, %s9079_s18  ;;  %3524 = vst.msk [vmem:[#allocation3 + $0x78] sm:$0xff] %vm23_vm0, %v3952_v39 }
 0x4a2   :  { %v3635_v3 = vld [vmem:[#allocation2 + $0x4a] sm:$0xff]  ;;  %3765 = vrot.lane.b32.xlu1 %v3952_v39, %s9080_s21  ;;  %v4144_v23 = vld [vmem:[#allocation2 + $0x52] sm:$0xff]  ;;  %3842 = vst.msk [vmem:[#allocation3 + $0x50] sm:$0xff] %vm23_vm0, %v4048_v40 }
 0x4a3   :  { %4159 = vst.msk [vmem:[#allocation3 + $0x10] sm:$0xff] %vm23_vm0, %v3635_v3  ;;  %4160 = vst.msk [vmem:[#allocation3 + $0x28] sm:$0xff] %vm23_vm0, %v4144_v23  ;;  %v3268_v63 = vadd.f32 %v7893_v18, %v10761_v21 }
 0x4a5   :  { %v3413_v31 = vadd.f32 %v10737_v24, %v3268_v63  ;;  %4081 = vrot.lane.b32.xlu0 %v4048_v40, %s9080_s21 }
 0x4a6   :  { %3671 = vrot.lane.b32.xlu1 %v3635_v3, %s9079_s18 }
 0x4a7   :  { %v3475_v20 = vmax.f32 %v3413_v31, 0.0  ;;  %v7894_v16 = vpop.f32.mrb[58].mxu1 }
 0x4a8   :  { %v7895_v52 = vpop.f32.mrb[59].mxu1 }
 0x4a9   :  { %3491 = vst.msk [vmem:[#allocation2 + $0x68] sm:$0xff] %vm23_vm0, %v3475_v20  ;;  %v7896_v56 = vadd.f32 %v7895_v52, %v7894_v16  ;;  %3891 = vrot.lane.b32.xlu0 %v3635_v3, %s9078_s17 }
 0x4aa   :  { %v4177_v29 = vld [vmem:[#allocation3 + $0x10] sm:$0xff]  ;;  %3577 = vrot.lane.b32.xlu1 %v4048_v40, %s9078_s17  ;;  %v4180_v51 = vld [vmem:[#allocation3 + $0x28] sm:$0xff] }
 0x4ab   :  { %8531 = vmatprep.mubr.msk.f32.mxu1 %vm23_vm0, %v4177_v29  ;;  %v3273_v24 = vadd.f32 %v7896_v56, %v10761_v21 }
 0x4ac   :  { %8532 = vmatmul.mubr.msk.f32.vlgmr.msra.gmra.mrb[80].mxu1 %vm23_vm0, %v4180_v51 }
 0x4ad   :  { %v3418_v11 = vadd.f32 %v10734_v14, %v3273_v24  ;;  %3893 = vrot.lane.b32.xlu0 %v4144_v23, %s9078_s17 }
 0x4ae   :  { %3673 = vrot.lane.b32.xlu1 %v4144_v23, %s9079_s18 }
 0x4af   :  { %v3476_v8 = vmax.f32 %v3418_v11, 0.0 }
 0x4b0   :  { %v3953_v12 = vld [vmem:[#allocation2 + $0x66] sm:$0xff] }
 0x4b1   :  { %v4049_v35 = vld [vmem:[#allocation2 + $0x68] sm:$0xff]  ;;  %3492 = vst.msk [vmem:[#allocation2 + $0x70] sm:$0xff] %vm23_vm0, %v3476_v8  ;;  %3987 = vrot.lane.b32.xlu0 %v3953_v12, %s9079_s18  ;;  %3525 = vst.msk [vmem:[#allocation3 + $0x90] sm:$0xff] %vm23_vm0, %v3953_v12 }
 0x4b2   :  { %3767 = vrot.lane.b32.xlu1 %v3953_v12, %s9080_s21  ;;  %3843 = vst.msk [vmem:[#allocation3 + $0x68] sm:$0xff] %vm23_vm0, %v4049_v35 }
 0x4b5   :  { %4083 = vrot.lane.b32.xlu0 %v4049_v35, %s9080_s21 }
 0x4b6   :  { %3579 = vrot.lane.b32.xlu1 %v4049_v35, %s9078_s17 }
 0x4b7   :  { %v7897_v14 = vpop.f32.mrb[60].mxu1 }
 0x4b8   :  { %v7898_v38 = vpop.f32.mrb[61].mxu1  ;;  %v3954_v19 = vld [vmem:[#allocation2 + $0x6e] sm:$0xff] }
 0x4b9   :  { %v4050_v43 = vld [vmem:[#allocation2 + $0x70] sm:$0xff]  ;;  %v7899_v45 = vadd.f32 %v7898_v38, %v7897_v14  ;;  %3989 = vrot.lane.b32.xlu0 %v3954_v19, %s9079_s18  ;;  %3526 = vst.msk [vmem:[#allocation3 + $0xa8] sm:$0xff] %vm23_vm0, %v3954_v19 }
 0x4ba   :  { %v3637_v27 = vld [vmem:[#allocation2 + $0x6a] sm:$0xff]  ;;  %3769 = vrot.lane.b32.xlu1 %v3954_v19, %s9080_s21  ;;  %v4146_v22 = vld [vmem:[#allocation2 + $0x72] sm:$0xff]  ;;  %3844 = vst.msk [vmem:[#allocation3 + $0x80] sm:$0xff] %vm23_vm0, %v4050_v43 }
 0x4bb   :  { %4161 = vst.msk [vmem:[#allocation3 + $0x40] sm:$0xff] %vm23_vm0, %v3637_v27  ;;  %4162 = vst.msk [vmem:[#allocation3 + $0x58] sm:$0xff] %vm23_vm0, %v4146_v22  ;;  %v3278_v47 = vadd.f32 %v7899_v45, %v10761_v21 }
 0x4bd   :  { %v3423_v48 = vadd.f32 %v10749_v42, %v3278_v47  ;;  %4085 = vrot.lane.b32.xlu0 %v4050_v43, %s9080_s21 }
 0x4be   :  { %3675 = vrot.lane.b32.xlu1 %v3637_v27, %s9079_s18 }
 0x4bf   :  { %v3477_v17 = vmax.f32 %v3423_v48, 0.0  ;;  %v7900_v53 = vpop.f32.mrb[62].mxu1 }
 0x4c0   :  { %v7901_v54 = vpop.f32.mrb[63].mxu1 }
 0x4c1   :  { %3493 = vst.msk [vmem:[#allocation2 + $0x88] sm:$0xff] %vm23_vm0, %v3477_v17  ;;  %v7902_v55 = vadd.f32 %v7901_v54, %v7900_v53  ;;  %3895 = vrot.lane.b32.xlu0 %v3637_v27, %s9078_s17 }
 0x4c2   :  { %v4183_v30 = vld [vmem:[#allocation3 + $0x40] sm:$0xff]  ;;  %v4186_v46 = vld [vmem:[#allocation3 + $0x58] sm:$0xff]  ;;  %3581 = vrot.lane.b32.xlu1 %v4050_v43, %s9078_s17 }
 0x4c3   :  { %8534 = vmatprep.mubr.msk.f32.mxu1 %vm23_vm0, %v4183_v30  ;;  %v3283_v42 = vadd.f32 %v7902_v55, %v10761_v21 }
 0x4c4   :  { %8535 = vmatmul.mubr.msk.f32.gmra.mrb[82].mxu1 %vm23_vm0, %v4186_v46 }
 0x4c5   :  { %v3428_v15 = vadd.f32 %v10747_v41, %v3283_v42  ;;  %3897 = vrot.lane.b32.xlu0 %v4146_v22, %s9078_s17 }
 0x4c6   :  { %3677 = vrot.lane.b32.xlu1 %v4146_v22, %s9079_s18 }
 0x4c7   :  { %v3478_v61 = vmax.f32 %v3428_v15, 0.0 }
 0x4c8   :  { %v3955_v1 = vld [vmem:[#allocation2 + $0x86] sm:$0xff] }
 0x4c9   :  { %v4051_v25 = vld [vmem:[#allocation2 + $0x88] sm:$0xff]  ;;  %3494 = vst.msk [vmem:[#allocation2 + $0x90] sm:$0xff] %vm23_vm0, %v3478_v61  ;;  %3991 = vrot.lane.b32.xlu0 %v3955_v1, %s9079_s18  ;;  %3527 = vst.msk [vmem:[#allocation3 + $0xc0] sm:$0xff] %vm23_vm0, %v3955_v1 }
 0x4ca   :  { %3845 = vst.msk [vmem:[#allocation3 + $0x98] sm:$0xff] %vm23_vm0, %v4051_v25  ;;  %3771 = vrot.lane.b32.xlu1 %v3955_v1, %s9080_s21 }
 0x4cd   :  { %4087 = vrot.lane.b32.xlu0 %v4051_v25, %s9080_s21 }
 0x4ce   :  { %3583 = vrot.lane.b32.xlu1 %v4051_v25, %s9078_s17 }
 0x4cf   :  { %v7903_v41 = vpop.f32.mrb[64].mxu1 }
 0x4d0   :  { %v7904_v60 = vpop.f32.mrb[65].mxu1  ;;  %v3956_v5 = vld [vmem:[#allocation2 + $0x8e] sm:$0xff] }
 0x4d1   :  { %v4052_v62 = vld [vmem:[#allocation2 + $0x90] sm:$0xff]  ;;  %v7905_v28 = vadd.f32 %v7904_v60, %v7903_v41  ;;  %3993 = vrot.lane.b32.xlu0 %v3956_v5, %s9079_s18  ;;  %3528 = vst.msk [vmem:[#allocation3 + $0xd8] sm:$0xff] %vm23_vm0, %v3956_v5 }
 0x4d2   :  { %v3639_v32 = vld [vmem:[#allocation2 + $0x8a] sm:$0xff]  ;;  %v4148_v58 = vld [vmem:[#allocation2 + $0x92] sm:$0xff]  ;;  %3846 = vst.msk [vmem:[#allocation3 + $0xb0] sm:$0xff] %vm23_vm0, %v4052_v62  ;;  %3773 = vrot.lane.b32.xlu1 %v3956_v5, %s9080_s21 }
 0x4d3   :  { %4163 = vst.msk [vmem:[#allocation3 + $0x70] sm:$0xff] %vm23_vm0, %v3639_v32  ;;  %4164 = vst.msk [vmem:[#allocation3 + $0x88] sm:$0xff] %vm23_vm0, %v4148_v58  ;;  %v3288_v37 = vadd.f32 %v7905_v28, %v10761_v21 }
 0x4d5   :  { %v3433_v2 = vadd.f32 %v10753_v50, %v3288_v37  ;;  %4089 = vrot.lane.b32.xlu0 %v4052_v62, %s9080_s21 }
 0x4d6   :  { %3679 = vrot.lane.b32.xlu1 %v3639_v32, %s9079_s18 }
 0x4d7   :  { %v3479_v33 = vmax.f32 %v3433_v2, 0.0  ;;  %v7906_v4 = vpop.f32.mrb[66].mxu1 }
 0x4d8   :  { %v7907_v7 = vpop.f32.mrb[67].mxu1 }
 0x4d9   :  { %3495 = vst.msk [vmem:[#allocation2 + $0xa8] sm:$0xff] %vm23_vm0, %v3479_v33  ;;  %v7908_v9 = vadd.f32 %v7907_v7, %v7906_v4  ;;  %3899 = vrot.lane.b32.xlu0 %v3639_v32, %s9078_s17 }
 0x4da   :  { %v4189_v49 = vld [vmem:[#allocation3 + $0x70] sm:$0xff]  ;;  %v4192_v10 = vld [vmem:[#allocation3 + $0x88] sm:$0xff]  ;;  %3585 = vrot.lane.b32.xlu1 %v4052_v62, %s9078_s17 }
 0x4db   :  { %8537 = vmatprep.mubr.msk.f32.mxu1 %vm23_vm0, %v4189_v49  ;;  %v3293_v50 = vadd.f32 %v7908_v9, %v10761_v21 }
 0x4dc   :  { %8538 = vmatmul.mubr.msk.f32.gmra.mrb[84].mxu1 %vm23_vm0, %v4192_v10 }
 0x4dd   :  { %v3438_v44 = vadd.f32 %v10751_v36, %v3293_v50  ;;  %3901 = vrot.lane.b32.xlu0 %v4148_v58, %s9078_s17 }
 0x4de   :  { %3681 = vrot.lane.b32.xlu1 %v4148_v58, %s9079_s18 }
 0x4df   :  { %v3480_v13 = vmax.f32 %v3438_v44, 0.0 }
 0x4e0   :  { %v3957_v39 = vld [vmem:[#allocation2 + $0xa6] sm:$0xff] }
 0x4e1   :  { %v4053_v40 = vld [vmem:[#allocation2 + $0xa8] sm:$0xff]  ;;  %3496 = vst.msk [vmem:[#allocation2 + $0xb0] sm:$0xff] %vm23_vm0, %v3480_v13  ;;  %3995 = vrot.lane.b32.xlu0 %v3957_v39, %s9079_s18  ;;  %3529 = vst.msk [vmem:[#allocation3 + $0xf0] sm:$0xff] %vm23_vm0, %v3957_v39 }
 0x4e2   :  { %3847 = vst.msk [vmem:[#allocation3 + $0xc8] sm:$0xff] %vm23_vm0, %v4053_v40  ;;  %3775 = vrot.lane.b32.xlu1 %v3957_v39, %s9080_s21 }
 0x4e5   :  { %4091 = vrot.lane.b32.xlu0 %v4053_v40, %s9080_s21 }
 0x4e6   :  { %3587 = vrot.lane.b32.xlu1 %v4053_v40, %s9078_s17 }
 0x4e7   :  { %v7909_v36 = vpop.f32.mrb[68].mxu1 }
 0x4e8   :  { %v7910_v3 = vpop.f32.mrb[69].mxu1  ;;  %v3958_v18 = vld [vmem:[#allocation2 + $0xae] sm:$0xff] }
 0x4e9   :  { %v4054_v23 = vld [vmem:[#allocation2 + $0xb0] sm:$0xff]  ;;  %v7911_v31 = vadd.f32 %v7910_v3, %v7909_v36  ;;  %3997 = vrot.lane.b32.xlu0 %v3958_v18, %s9079_s18  ;;  %3530 = vst.msk [vmem:[#allocation3 + $0x108] sm:$0xff] %vm23_vm0, %v3958_v18 }
 0x4ea   :  { %v3641_v63 = vld [vmem:[#allocation2 + $0xaa] sm:$0xff]  ;;  %v4150_v20 = vld [vmem:[#allocation2 + $0xb2] sm:$0xff]  ;;  %3848 = vst.msk [vmem:[#allocation3 + $0xe0] sm:$0xff] %vm23_vm0, %v4054_v23  ;;  %3777 = vrot.lane.b32.xlu1 %v3958_v18, %s9080_s21 }
 0x4eb   :  { %4165 = vst.msk [vmem:[#allocation3 + $0xa0] sm:$0xff] %vm23_vm0, %v3641_v63  ;;  %4166 = vst.msk [vmem:[#allocation3 + $0xb8] sm:$0xff] %vm23_vm0, %v4150_v20  ;;  %v3298_v16 = vadd.f32 %v7911_v31, %v10761_v21 }
 0x4ed   :  { %v3443_v52 = vadd.f32 %v10783_v26, %v3298_v16  ;;  %4093 = vrot.lane.b32.xlu0 %v4054_v23, %s9080_s21 }
 0x4ee   :  { %3683 = vrot.lane.b32.xlu1 %v3641_v63, %s9079_s18 }
 0x4ef   :  { %v3481_v29 = vmax.f32 %v3443_v52, 0.0  ;;  %v7912_v56 = vpop.f32.mrb[70].mxu1 }
 0x4f0   :  { %v7913_v51 = vpop.f32.mrb[71].mxu1 }
 0x4f1   :  { %3497 = vst.msk [vmem:[#allocation2 + $0xc8] sm:$0xff] %vm23_vm0, %v3481_v29  ;;  %v7914_v11 = vadd.f32 %v7913_v51, %v7912_v56  ;;  %3903 = vrot.lane.b32.xlu0 %v3641_v63, %s9078_s17 }
 0x4f2   :  { %v4195_v24 = vld [vmem:[#allocation3 + $0xa0] sm:$0xff]  ;;  %v4198_v8 = vld [vmem:[#allocation3 + $0xb8] sm:$0xff]  ;;  %3589 = vrot.lane.b32.xlu1 %v4054_v23, %s9078_s17 }
 0x4f3   :  { %8540 = vmatprep.mubr.msk.f32.mxu1 %vm23_vm0, %v4195_v24  ;;  %v3760_v26 = vpop.permute.xlu1 %3759  ;;  %v3303_v12 = vadd.f32 %v7914_v11, %v10761_v21 }
 0x4f4   :  { %8541 = vmatmul.mubr.msk.f32.gmra.mrb[86].mxu1 %vm23_vm0, %v4198_v8  ;;  %3807 = vst.msk [vmem:[#allocation3] sm:$0xff] %vm404_vm4, %v3760_v26 }
 0x4f5   :  { %v3448_v35 = vadd.f32 %v10775_v59, %v3303_v12  ;;  %3905 = vrot.lane.b32.xlu0 %v4150_v20, %s9078_s17 }
 0x4f6   :  { %3685 = vrot.lane.b32.xlu1 %v4150_v20, %s9079_s18 }
 0x4f7   :  { %v3572_v14 = vpop.permute.xlu1 %3571  ;;  %v3482_v38 = vmax.f32 %v3448_v35, 0.0 }
 0x4f8   :  { %3617 = vst.msk [vmem:[#allocation3 + $0x30] sm:$0xff] %vm210_vm2, %v3572_v14  ;;  %v3959_v19 = vld [vmem:[#allocation2 + $0xc6] sm:$0xff] }
 0x4f9   :  { %v4055_v43 = vld [vmem:[#allocation2 + $0xc8] sm:$0xff]  ;;  %3498 = vst.msk [vmem:[#allocation2 + $0xd0] sm:$0xff] %vm23_vm0, %v3482_v38  ;;  %3999 = vrot.lane.b32.xlu0 %v3959_v19, %s9079_s18  ;;  %3531 = vst.msk [vmem:[#allocation3 + $0x120] sm:$0xff] %vm23_vm0, %v3959_v19 }
 0x4fa   :  { %3849 = vst.msk [vmem:[#allocation3 + $0xf8] sm:$0xff] %vm23_vm0, %v4055_v43  ;;  %3779 = vrot.lane.b32.xlu1 %v3959_v19, %s9080_s21 }
 0x4fb   :  { %v3888_v59 = vpop.permute.xlu0 %3887  ;;  %v4175_v20 = vld [vmem:[#allocation3] sm:$0xff] }
 0x4fc   :  { %v3762_v27 = vpop.permute.xlu1 %3761  ;;  %3935 = vst.msk [vmem:[#allocation3 + $0x8] sm:$0xff] %vm210_vm2, %v3888_v59 }
 0x4fd   :  { %3808 = vst.msk [vmem:[#allocation3 + $0x18] sm:$0xff] %vm404_vm4, %v3762_v27  ;;  %4095 = vrot.lane.b32.xlu0 %v4055_v43, %s9080_s21 }
 0x4fe   :  { %3591 = vrot.lane.b32.xlu1 %v4055_v43, %s9078_s17 }
 0x4ff   :  { %v3890_v45 = vpop.permute.xlu0 %3889 }
 0x500   :  { %v3668_v22 = vpop.permute.xlu1 %3667  ;;  %3936 = vst.msk [vmem:[#allocation3 + $0x20] sm:$0xff] %vm210_vm2, %v3890_v45  ;;  %v3960_v48 = vld [vmem:[#allocation2 + $0xce] sm:$0xff] }
 0x501   :  { %3713 = vst.msk [vmem:[#allocation3 + $0x30] sm:$0xff] %vm307_vm3, %v3668_v22  ;;  %v7915_v47 = vpop.f32.mrb[72].mxu1  ;;  %v4056_v17 = vld [vmem:[#allocation2 + $0xd0] sm:$0xff]  ;;  %4001 = vrot.lane.b32.xlu0 %v3960_v48, %s9079_s18 }
 0x502   :  { %v3643_v53 = vld [vmem:[#allocation2 + $0xca] sm:$0xff]  ;;  %v7916_v54 = vpop.f32.mrb[73].mxu1  ;;  %v4152_v30 = vld [vmem:[#allocation2 + $0xd2] sm:$0xff]  ;;  %3532 = vst.msk [vmem:[#allocation3 + $0x138] sm:$0xff] %vm23_vm0, %v3960_v48  ;;  %3850 = vst.msk [vmem:[#allocation3 + $0x110] sm:$0xff] %vm23_vm0, %v4056_v17  ;;  %3781 = vrot.lane.b32.xlu1 %v3960_v48, %s9080_s21 }
 0x503   :  { %4167 = vst.msk [vmem:[#allocation3 + $0xd0] sm:$0xff] %vm23_vm0, %v3643_v53  ;;  %v7917_v55 = vadd.f32 %v7916_v54, %v7915_v47  ;;  %4168 = vst.msk [vmem:[#allocation3 + $0xe8] sm:$0xff] %vm23_vm0, %v4152_v30 }
 0x504   :  { %v3574_v46 = vpop.permute.xlu1 %3573  ;;  %v4178_v26 = vld [vmem:[#allocation3 + $0x18] sm:$0xff] }
 0x505   :  { %v3308_v42 = vadd.f32 %v7917_v55, %v10761_v21  ;;  %3618 = vst.msk [vmem:[#allocation3 + $0x48] sm:$0xff] %vm210_vm2, %v3574_v46  ;;  %4097 = vrot.lane.b32.xlu0 %v4056_v17, %s9080_s21 }
 0x506   :  { %3687 = vrot.lane.b32.xlu1 %v3643_v53, %s9079_s18 }
 0x507   :  { %v3453_v15 = vadd.f32 %v10875_v0, %v3308_v42 }
 0x508   :  { %v3670_v61 = vpop.permute.xlu1 %3669 }
 0x509   :  { %v3483_v1 = vmax.f32 %v3453_v15, 0.0  ;;  %3714 = vst.msk [vmem:[#allocation3 + $0x48] sm:$0xff] %vm307_vm3, %v3670_v61  ;;  %v7918_v25 = vpop.f32.mrb[74].mxu1  ;;  %3907 = vrot.lane.b32.xlu0 %v3643_v53, %s9078_s17 }
 0x50a   :  { %v4201_v41 = vld [vmem:[#allocation3 + $0xd0] sm:$0xff]  ;;  %v7919_v60 = vpop.f32.mrb[75].mxu1  ;;  %v4204_v5 = vld [vmem:[#allocation3 + $0xe8] sm:$0xff]  ;;  %3593 = vrot.lane.b32.xlu1 %v4056_v17, %s9078_s17 }
 0x50b   :  { %8543 = vmatprep.mubr.msk.f32.mxu1 %vm23_vm0, %v4201_v41  ;;  %3499 = vst.msk [vmem:[#allocation2 + $0xe8] sm:$0xff] %vm23_vm0, %v3483_v1  ;;  %v7920_v62 = vadd.f32 %v7919_v60, %v7918_v25  ;;  %v3984_v0 = vpop.permute.xlu0 %3983  ;;  %v3965_v60 = vld [vmem:[#allocation2 + $0x126] sm:$0xff] }
 0x50c   :  { %8544 = vmatmul.mubr.msk.f32.gmra.mrb[88].mxu1 %vm23_vm0, %v4204_v5  ;;  %v3764_v32 = vpop.permute.xlu1 %3763  ;;  %4031 = vst.msk [vmem:[#allocation3 + $0x8] sm:$0xff] %vm307_vm3, %v3984_v0 }
 0x50d   :  { %v3313_v28 = vadd.f32 %v7920_v62, %v10761_v21  ;;  %3809 = vst.msk [vmem:[#allocation3 + $0x30] sm:$0xff] %vm404_vm4, %v3764_v32  ;;  %3909 = vrot.lane.b32.xlu0 %v4152_v30, %s9078_s17  ;;  %v4061_v32 = vld [vmem:[#allocation2 + $0x128] sm:$0xff] }
 0x50e   :  { %3689 = vrot.lane.b32.xlu1 %v4152_v30, %s9079_s18 }
 0x50f   :  { %v3458_v58 = vadd.f32 %v10866_v6, %v3313_v28  ;;  %v7921_v37 = vpop.f32.mrb[76].mxu1  ;;  %v4080_v2 = vpop.permute.xlu0 %4079 }
 0x510   :  { %v3576_v33 = vpop.permute.xlu1 %3575  ;;  %4127 = vst.msk [vmem:[#allocation3 + $0x8] sm:$0xff] %vm404_vm4, %v4080_v2  ;;  %v7922_v7 = vpop.f32.mrb[77].mxu1 }
 0x511   :  { %v3484_v4 = vmax.f32 %v3458_v58, 0.0  ;;  %3619 = vst.msk [vmem:[#allocation3 + $0x60] sm:$0xff] %vm210_vm2, %v3576_v33  ;;  %v7923_v49 = vadd.f32 %v7922_v7, %v7921_v37  ;;  %v3966_v37 = vld [vmem:[#allocation2 + $0x12e] sm:$0xff]  ;;  %v4219_v7 = vld [vmem:[#allocation3 + $0x160] sm:$0xff] }
 0x512   :  { %v3961_v9 = vld [vmem:[#allocation2 + $0xe6] sm:$0xff] }
 0x513   :  { %v4057_v10 = vld [vmem:[#allocation2 + $0xe8] sm:$0xff]  ;;  %3500 = vst.msk [vmem:[#allocation2 + $0xf0] sm:$0xff] %vm23_vm0, %v3484_v4  ;;  %4003 = vrot.lane.b32.xlu0 %v3961_v9, %s9079_s18  ;;  %3783 = vrot.lane.b32.xlu1 %v3961_v9, %s9080_s21  ;;  %3533 = vst.msk [vmem:[#allocation3 + $0x150] sm:$0xff] %vm23_vm0, %v3961_v9  ;;  %v3986_v6 = vpop.permute.xlu0 %3985  ;;  %v3318_v44 = vadd.f32 %v7923_v49, %v10761_v21  ;;  %v4222_v9 = vld [vmem:[#allocation3 + $0x178] sm:$0xff] }
 0x514   :  { %3851 = vst.msk [vmem:[#allocation3 + $0x128] sm:$0xff] %vm23_vm0, %v4057_v10  ;;  %v3766_v50 = vpop.permute.xlu1 %3765  ;;  %v4181_v42 = vld [vmem:[#allocation3 + $0x30] sm:$0xff] }
 0x515   :  { %4032 = vst.msk [vmem:[#allocation3 + $0x20] sm:$0xff] %vm307_vm3, %v3986_v6  ;;  %v7924_v13 = vpop.f32.mrb[78].mxu1  ;;  %v3463_v39 = vadd.f32 %v10895_v34, %v3318_v44  ;;  %v5289_v49 = vld [vmem:[#allocation2 + $0x12a] sm:$0xff] }
 0x516   :  { %3810 = vst.msk [vmem:[#allocation3 + $0x48] sm:$0xff] %vm404_vm4, %v3766_v50  ;;  %v7925_v40 = vpop.f32.mrb[79].mxu1  ;;  %v5290_v50 = vld [vmem:[#allocation2 + $0x132] sm:$0xff] }
 0x517   :  { %v7926_v36 = vadd.f32 %v7925_v40, %v7924_v13  ;;  %4099 = vrot.lane.b32.xlu0 %v4057_v10, %s9080_s21  ;;  %v3485_v3 = vmax.f32 %v3463_v39, 0.0  ;;  %v4082_v18 = vpop.permute.xlu0 %4081  ;;  %v4176_v63 = vld [vmem:[#allocation3 + $0x8] sm:$0xff]  ;;  %5305 = vst.msk [vmem:[#allocation3 + $0x160] sm:$0xff] %vm23_vm0, %v5289_v49  ;;  %5306 = vst.msk [vmem:[#allocation3 + $0x178] sm:$0xff] %vm23_vm0, %v5290_v50  ;;  %v4062_v40 = vld [vmem:[#allocation2 + $0x130] sm:$0xff] }
 0x518   :  { %v3672_v23 = vpop.permute.xlu1 %3671  ;;  %4128 = vst.msk [vmem:[#allocation3 + $0x20] sm:$0xff] %vm404_vm4, %v4082_v18  ;;  %4377 = vmatprep.mubr.f32.mxu0 %v4176_v63 }
 0x519   :  { %v3323_v31 = vadd.f32 %v7926_v36, %v10761_v21  ;;  %3715 = vst.msk [vmem:[#allocation3 + $0x60] sm:$0xff] %vm307_vm3, %v3672_v23  ;;  %4378 = vmatmul.mubr.f32.vlgmr.msra.gmra.mrb[64].mxu0 %v4175_v20 }
 0x51a   :  { %3501 = vst.msk [vmem:[#allocation2 + $0x108] sm:$0xff] %vm23_vm0, %v3485_v3  ;;  %v3962_v34 = vld [vmem:[#allocation2 + $0xee] sm:$0xff] }
 0x51b   :  { %v4058_v16 = vld [vmem:[#allocation2 + $0xf0] sm:$0xff]  ;;  %v3468_v29 = vadd.f32 %v10885_v57, %v3323_v31  ;;  %4005 = vrot.lane.b32.xlu0 %v3962_v34, %s9079_s18  ;;  %3785 = vrot.lane.b32.xlu1 %v3962_v34, %s9080_s21  ;;  %3534 = vst.msk [vmem:[#allocation3 + $0x168] sm:$0xff] %vm23_vm0, %v3962_v34  ;;  %v3892_v56 = vpop.permute.xlu0 %3891 }
 0x51c   :  { %v4153_v52 = vld [vmem:[#allocation2 + $0xea] sm:$0xff]  ;;  %v4154_v21 = vld [vmem:[#allocation2 + $0xf2] sm:$0xff]  ;;  %3852 = vst.msk [vmem:[#allocation3 + $0x140] sm:$0xff] %vm23_vm0, %v4058_v16  ;;  %v3578_v51 = vpop.permute.xlu1 %3577 }
 0x51d   :  { %4169 = vst.msk [vmem:[#allocation3 + $0x100] sm:$0xff] %vm23_vm0, %v4153_v52  ;;  %4170 = vst.msk [vmem:[#allocation3 + $0x118] sm:$0xff] %vm23_vm0, %v4154_v21  ;;  %v3486_v24 = vmax.f32 %v3468_v29, 0.0  ;;  %v4184_v62 = vld [vmem:[#allocation3 + $0x48] sm:$0xff] }
 0x51e   :  { %3937 = vst.msk [vmem:[#allocation3 + $0x38] sm:$0xff] %vm210_vm2, %v3892_v56  ;;  %3620 = vst.msk [vmem:[#allocation3 + $0x78] sm:$0xff] %vm210_vm2, %v3578_v51 }
 0x51f   :  { %3502 = vst.msk [vmem:[#allocation2 + $0x110] sm:$0xff] %vm23_vm0, %v3486_v24  ;;  %4101 = vrot.lane.b32.xlu0 %v4058_v16, %s9080_s21  ;;  %3595 = vrot.lane.b32.xlu1 %v4057_v10, %s9078_s17  ;;  %v3894_v57 = vpop.permute.xlu0 %3893  ;;  %v4179_v8 = vld [vmem:[#allocation3 + $0x20] sm:$0xff] }
 0x520   :  { %v3674_v11 = vpop.permute.xlu1 %3673  ;;  %3938 = vst.msk [vmem:[#allocation3 + $0x50] sm:$0xff] %vm210_vm2, %v3894_v57  ;;  %4382 = vmatprep.mubr.f32.mxu0 %v4179_v8 }
 0x521   :  { %3716 = vst.msk [vmem:[#allocation3 + $0x78] sm:$0xff] %vm307_vm3, %v3674_v11  ;;  %v4059_v12 = vld [vmem:[#allocation2 + $0x108] sm:$0xff]  ;;  %4383 = vmatmul.mubr.f32.gmra.mrb[66].mxu0 %v4178_v26 }
 0x522   :  { %3853 = vst.msk [vmem:[#allocation3 + $0x158] sm:$0xff] %vm23_vm0, %v4059_v12  ;;  %v3741_v27 = vld [vmem:[#allocation2 + $0x106] sm:$0xff] }
 0x523   :  { %3911 = vrot.lane.b32.xlu0 %v4153_v52, %s9078_s17  ;;  %v3988_v38 = vpop.permute.xlu0 %3987  ;;  %3691 = vrot.lane.b32.xlu1 %v4153_v52, %s9079_s18 }
 0x524   :  { %v4207_v35 = vld [vmem:[#allocation3 + $0x100] sm:$0xff]  ;;  %v4210_v14 = vld [vmem:[#allocation3 + $0x118] sm:$0xff]  ;;  %v3768_v19 = vpop.permute.xlu1 %3767  ;;  %4033 = vst.msk [vmem:[#allocation3 + $0x38] sm:$0xff] %vm307_vm3, %v3988_v38 }
 0x525   :  { %8546 = vmatprep.mubr.msk.f32.mxu1 %vm23_vm0, %v4207_v35  ;;  %3811 = vst.msk [vmem:[#allocation3 + $0x60] sm:$0xff] %vm404_vm4, %v3768_v19  ;;  %v4667_v19 = vld [vmem:[#allocation2 + $0x8] sm:$0xff] }
 0x526   :  { %8547 = vmatmul.mubr.msk.f32.gmra.mrb[90].mxu1 %vm23_vm0, %v4210_v14  ;;  %v11074_v43 = vld [vmem:[#allocation2 + $0x10a] sm:$0xff]  ;;  %v11076_v59 = vld [vmem:[#allocation2 + $0x112] sm:$0xff] }
 0x527   :  { %3913 = vrot.lane.b32.xlu0 %v4154_v21, %s9078_s17  ;;  %4171 = vst.msk [vmem:[#allocation3 + $0x130] sm:$0xff] %vm23_vm0, %v11074_v43  ;;  %4172 = vst.msk [vmem:[#allocation3 + $0x148] sm:$0xff] %vm23_vm0, %v11076_v59  ;;  %v4060_v45 = vld [vmem:[#allocation2 + $0x110] sm:$0xff]  ;;  %v4084_v22 = vpop.permute.xlu0 %4083  ;;  %3787 = vrot.lane.b32.xlu1 %v3741_v27, %s9080_s21 }
 0x528   :  { %v3580_v47 = vpop.permute.xlu1 %3579  ;;  %3854 = vst.msk [vmem:[#allocation3 + $0x170] sm:$0xff] %vm23_vm0, %v4060_v45  ;;  %v3964_v15 = vld [vmem:[#allocation2 + $0x10e] sm:$0xff] }
 0x529   :  { %4129 = vst.msk [vmem:[#allocation3 + $0x38] sm:$0xff] %vm404_vm4, %v4084_v22 }
 0x52a   :  { %3621 = vst.msk [vmem:[#allocation3 + $0x90] sm:$0xff] %vm210_vm2, %v3580_v47  ;;  %v4668_v47 = vld [vmem:[#allocation2 + $0x10] sm:$0xff] }
 0x52b   :  { %4007 = vrot.lane.b32.xlu0 %v3741_v27, %s9079_s18  ;;  %v3990_v48 = vpop.permute.xlu0 %3989  ;;  %3597 = vrot.lane.b32.xlu1 %v4058_v16, %s9078_s17  ;;  %v4763_v27 = vld [vmem:[#allocation2 + $0xa] sm:$0xff] }
 0x52c   :  { %v3770_v17 = vpop.permute.xlu1 %3769  ;;  %4034 = vst.msk [vmem:[#allocation3 + $0x50] sm:$0xff] %vm307_vm3, %v3990_v48  ;;  %v4187_v13 = vld [vmem:[#allocation3 + $0x60] sm:$0xff] }
 0x52d   :  { %3812 = vst.msk [vmem:[#allocation3 + $0x78] sm:$0xff] %vm404_vm4, %v3770_v17 }
 0x52e   :  { %v4213_v53 = vld [vmem:[#allocation3 + $0x130] sm:$0xff]  ;;  %v4216_v54 = vld [vmem:[#allocation3 + $0x148] sm:$0xff] }
 0x52f   :  { %8549 = vmatprep.mubr.msk.f32.mxu1 %vm23_vm0, %v4213_v53  ;;  %4103 = vrot.lane.b32.xlu0 %v4059_v12, %s9080_s21  ;;  %v4086_v30 = vpop.permute.xlu0 %4085 }
 0x530   :  { %3693 = vrot.lane.b32.xlu1 %v4154_v21, %s9079_s18  ;;  %v3676_v55 = vpop.permute.xlu1 %3675  ;;  %v4182_v46 = vld [vmem:[#allocation3 + $0x38] sm:$0xff]  ;;  %8550 = vmatmul.mubr.msk.f32.gmra.mrb[92].mxu1 %vm23_vm0, %v4216_v54  ;;  %4130 = vst.msk [vmem:[#allocation3 + $0x50] sm:$0xff] %vm404_vm4, %v4086_v30 }
 0x531   :  { %3717 = vst.msk [vmem:[#allocation3 + $0x90] sm:$0xff] %vm307_vm3, %v3676_v55  ;;  %4387 = vmatprep.mubr.f32.mxu0 %v4182_v46  ;;  %8552 = vmatprep.mubr.msk.f32.mxu1 %vm23_vm0, %v4219_v7  ;;  %v4764_v30 = vld [vmem:[#allocation2 + $0x12] sm:$0xff] }
 0x532   :  { %4388 = vmatmul.mubr.f32.gmra.mrb[68].mxu0 %v4181_v42 }
 0x533   :  { %4009 = vrot.lane.b32.xlu0 %v3964_v15, %s9079_s18  ;;  %v3896_v61 = vpop.permute.xlu0 %3895 }
 0x534   :  { %3789 = vrot.lane.b32.xlu1 %v3964_v15, %s9080_s21  ;;  %3939 = vst.msk [vmem:[#allocation3 + $0x68] sm:$0xff] %vm210_vm2, %v3896_v61  ;;  %v3582_v1 = vpop.permute.xlu1 %3581  ;;  %8553 = vmatmul.mubr.msk.f32.gmra.mrb[94].mxu1 %vm23_vm0, %v4222_v9  ;;  %v4190_v63 = vld [vmem:[#allocation3 + $0x78] sm:$0xff] }
 0x535   :  { %3622 = vst.msk [vmem:[#allocation3 + $0xa8] sm:$0xff] %vm210_vm2, %v3582_v1 }
 0x537   :  { %4105 = vrot.lane.b32.xlu0 %v4060_v45, %s9080_s21  ;;  %v3898_v25 = vpop.permute.xlu0 %3897  ;;  %v4185_v41 = vld [vmem:[#allocation3 + $0x50] sm:$0xff] }
 0x538   :  { %3940 = vst.msk [vmem:[#allocation3 + $0x80] sm:$0xff] %vm210_vm2, %v3898_v25  ;;  %v3678_v5 = vpop.permute.xlu1 %3677  ;;  %4392 = vmatprep.mubr.f32.mxu0 %v4185_v41  ;;  %4699 = vrot.lane.b32.xlu1 %v4667_v19, %s9078_s17 }
 0x539   :  { %3718 = vst.msk [vmem:[#allocation3 + $0xa8] sm:$0xff] %vm307_vm3, %v3678_v5  ;;  %4393 = vmatmul.mubr.f32.gmra.mrb[70].mxu0 %v4184_v62 }
 0x53b   :  { %4011 = vrot.lane.b32.xlu0 %v3965_v60, %s9079_s18  ;;  %v3992_v0 = vpop.permute.xlu0 %3991 }
 0x53c   :  { %4035 = vst.msk [vmem:[#allocation3 + $0x68] sm:$0xff] %vm307_vm3, %v3992_v0  ;;  %v3772_v28 = vpop.permute.xlu1 %3771  ;;  %4795 = vrot.lane.b32.xlu1 %v4763_v27, %s9079_s18 }
 0x53d   :  { %3813 = vst.msk [vmem:[#allocation3 + $0x90] sm:$0xff] %vm404_vm4, %v3772_v28 }
 0x53f   :  { %4107 = vrot.lane.b32.xlu0 %v4061_v32, %s9080_s21  ;;  %v4088_v58 = vpop.permute.xlu0 %4087 }
 0x540   :  { %4131 = vst.msk [vmem:[#allocation3 + $0x68] sm:$0xff] %vm404_vm4, %v4088_v58  ;;  %v3584_v2 = vpop.permute.xlu1 %3583  ;;  %4701 = vrot.lane.b32.xlu1 %v4668_v47, %s9078_s17  ;;  %v4635_v47 = vld [vmem:[#allocation2 + $0x6] sm:$0xff] }
 0x541   :  { %3623 = vst.msk [vmem:[#allocation3 + $0xc0] sm:$0xff] %vm210_vm2, %v3584_v2 }
 0x542   :  { %4651 = vst.msk [vmem:[#allocation3] sm:$0xff] %vm23_vm0, %v4635_v47 }
 0x543   :  { %4013 = vrot.lane.b32.xlu0 %v3966_v37, %s9079_s18  ;;  %v3994_v33 = vpop.permute.xlu0 %3993 }
 0x544   :  { %4036 = vst.msk [vmem:[#allocation3 + $0x80] sm:$0xff] %vm307_vm3, %v3994_v33  ;;  %v3774_v4 = vpop.permute.xlu1 %3773  ;;  %v4193_v24 = vld [vmem:[#allocation3 + $0x90] sm:$0xff]  ;;  %4797 = vrot.lane.b32.xlu1 %v4764_v30, %s9079_s18  ;;  %v11221_v30 = vld [vmem:[%s12628_s2 + $0x3] ss:$0 sm:$0xff] }
 0x545   :  { %3814 = vst.msk [vmem:[#allocation3 + $0xa8] sm:$0xff] %vm404_vm4, %v3774_v4 }
 0x547   :  { %3915 = vrot.lane.b32.xlu0 %v11074_v43, %s9078_s17  ;;  %v4090_v10 = vpop.permute.xlu0 %4089  ;;  %v4188_v6 = vld [vmem:[#allocation3 + $0x68] sm:$0xff] }
 0x548   :  { %4132 = vst.msk [vmem:[#allocation3 + $0x80] sm:$0xff] %vm404_vm4, %v4090_v10  ;;  %v3680_v44 = vpop.permute.xlu1 %3679  ;;  %4397 = vmatprep.mubr.f32.mxu0 %v4188_v6 }
 0x549   :  { %3719 = vst.msk [vmem:[#allocation3 + $0xc0] sm:$0xff] %vm307_vm3, %v3680_v44  ;;  %4398 = vmatmul.mubr.f32.gmra.mrb[72].mxu0 %v4187_v13 }
 0x54b   :  { %3917 = vrot.lane.b32.xlu0 %v11076_v59, %s9078_s17  ;;  %v3900_v39 = vpop.permute.xlu0 %3899 }
 0x54c   :  { %3941 = vst.msk [vmem:[#allocation3 + $0x98] sm:$0xff] %vm210_vm2, %v3900_v39  ;;  %v3586_v36 = vpop.permute.xlu1 %3585  ;;  %v4196_v35 = vld [vmem:[#allocation3 + $0xa8] sm:$0xff]  ;;  %v7577_v39 = vld [vmem:[%s12627_s1 + $0x580] sm:$0xff] }
 0x54d   :  { %3624 = vst.msk [vmem:[#allocation3 + $0xd8] sm:$0xff] %vm210_vm2, %v3586_v36 }
 0x54f   :  { %4109 = vrot.lane.b32.xlu0 %v4062_v40, %s9080_s21  ;;  %v3902_v3 = vpop.permute.xlu0 %3901  ;;  %v4191_v18 = vld [vmem:[#allocation3 + $0x80] sm:$0xff]  ;;  %v7578_v40 = vld [vmem:[%s12627_s1 + $0x588] sm:$0xff] }
 0x550   :  { %3942 = vst.msk [vmem:[#allocation3 + $0xb0] sm:$0xff] %vm210_vm2, %v3902_v3  ;;  %v3682_v23 = vpop.permute.xlu1 %3681  ;;  %4402 = vmatprep.mubr.f32.mxu0 %v4191_v18  ;;  %v8779_v36 = vpack.c.bf16 %v7578_v40, %v7577_v39 }
 0x551   :  { %3720 = vst.msk [vmem:[#allocation3 + $0xd8] sm:$0xff] %vm307_vm3, %v3682_v23  ;;  %4403 = vmatmul.mubr.f32.gmra.mrb[74].mxu0 %v4190_v63  ;;  %v7579_v23 = vld [vmem:[%s12627_s1 + $0x590] sm:$0xff]  ;;  %v7580_v63 = vld [vmem:[%s12627_s1 + $0x598] sm:$0xff] }
 0x552   :  { %8780 = vmatprep.subr.bf16.mxu0 %v8779_v36 }
 0x553   :  { %5143 = vrot.lane.b32.xlu0 %v3965_v60, %s9079_s18  ;;  %v3996_v31 = vpop.permute.xlu0 %3995  ;;  %8782 = vmatpush3.bf16.msra.mxu0 %v8779_v36 }
 0x554   :  { %4037 = vst.msk [vmem:[#allocation3 + $0x98] sm:$0xff] %vm307_vm3, %v3996_v31  ;;  %v3776_v20 = vpop.permute.xlu1 %3775  ;;  %v8783_v31 = vpack.c.bf16 %v7580_v63, %v7579_v23 }
 0x555   :  { %3815 = vst.msk [vmem:[#allocation3 + $0xc0] sm:$0xff] %vm404_vm4, %v3776_v20 }
 0x556   :  { %8784 = vmatprep.subr.bf16.mxu0 %v8783_v31 }
 0x557   :  { %5239 = vrot.lane.b32.xlu0 %v4061_v32, %s9080_s21  ;;  %v4092_v34 = vpop.permute.xlu0 %4091  ;;  %8786 = vmatpush3.bf16.msra.mxu0 %v8783_v31 }
 0x558   :  { %4133 = vst.msk [vmem:[#allocation3 + $0x98] sm:$0xff] %vm404_vm4, %v4092_v34  ;;  %v3588_v16 = vpop.permute.xlu1 %3587 }
 0x559   :  { %3625 = vst.msk [vmem:[#allocation3 + $0xf0] sm:$0xff] %vm210_vm2, %v3588_v16 }
 0x55b   :  { %5145 = vrot.lane.b32.xlu0 %v3966_v37, %s9079_s18  ;;  %v3998_v52 = vpop.permute.xlu0 %3997 }
 0x55c   :  { %4038 = vst.msk [vmem:[#allocation3 + $0xb0] sm:$0xff] %vm307_vm3, %v3998_v52  ;;  %v3778_v29 = vpop.permute.xlu1 %3777  ;;  %v4199_v54 = vld [vmem:[#allocation3 + $0xc0] sm:$0xff] }
 0x55d   :  { %3816 = vst.msk [vmem:[#allocation3 + $0xd8] sm:$0xff] %vm404_vm4, %v3778_v29 }
 0x55f   :  { %v4094_v21 = vpop.permute.xlu0 %4093  ;;  %v4194_v56 = vld [vmem:[#allocation3 + $0x98] sm:$0xff] }
 0x560   :  { %4134 = vst.msk [vmem:[#allocation3 + $0xb0] sm:$0xff] %vm404_vm4, %v4094_v21  ;;  %v3684_v51 = vpop.permute.xlu1 %3683  ;;  %4407 = vmatprep.mubr.f32.mxu0 %v4194_v56 }
 0x561   :  { %3721 = vst.msk [vmem:[#allocation3 + $0xf0] sm:$0xff] %vm307_vm3, %v3684_v51  ;;  %4408 = vmatmul.mubr.f32.gmra.mrb[76].mxu0 %v4193_v24 }
 0x563   :  { %v3904_v57 = vpop.permute.xlu0 %3903 }
 0x564   :  { %3943 = vst.msk [vmem:[#allocation3 + $0xc8] sm:$0xff] %vm210_vm2, %v3904_v57  ;;  %v3590_v11 = vpop.permute.xlu1 %3589  ;;  %v4202_v41 = vld [vmem:[#allocation3 + $0xd8] sm:$0xff] }
 0x565   :  { %3626 = vst.msk [vmem:[#allocation3 + $0x108] sm:$0xff] %vm210_vm2, %v3590_v11 }
 0x567   :  { %v3906_v8 = vpop.permute.xlu0 %3905  ;;  %v4197_v26 = vld [vmem:[#allocation3 + $0xb0] sm:$0xff] }
 0x568   :  { %3944 = vst.msk [vmem:[#allocation3 + $0xe0] sm:$0xff] %vm210_vm2, %v3906_v8  ;;  %v3686_v12 = vpop.permute.xlu1 %3685  ;;  %4412 = vmatprep.mubr.f32.mxu0 %v4197_v26 }
 0x569   :  { %3722 = vst.msk [vmem:[#allocation3 + $0x108] sm:$0xff] %vm307_vm3, %v3686_v12  ;;  %4413 = vmatmul.mubr.f32.gmra.mrb[78].mxu0 %v4196_v35 }
 0x56b   :  { %v4000_v14 = vpop.permute.xlu0 %3999 }
 0x56c   :  { %4039 = vst.msk [vmem:[#allocation3 + $0xc8] sm:$0xff] %vm307_vm3, %v4000_v14  ;;  %v3780_v38 = vpop.permute.xlu1 %3779 }
 0x56d   :  { %3817 = vst.msk [vmem:[#allocation3 + $0xf0] sm:$0xff] %vm404_vm4, %v3780_v38 }
 0x56f   :  { %v4096_v43 = vpop.permute.xlu0 %4095 }
 0x570   :  { %4135 = vst.msk [vmem:[#allocation3 + $0xc8] sm:$0xff] %vm404_vm4, %v4096_v43  ;;  %v3592_v59 = vpop.permute.xlu1 %3591 }
 0x571   :  { %3627 = vst.msk [vmem:[#allocation3 + $0x120] sm:$0xff] %vm210_vm2, %v3592_v59 }
 0x573   :  { %v4002_v45 = vpop.permute.xlu0 %4001 }
 0x574   :  { %4040 = vst.msk [vmem:[#allocation3 + $0xe0] sm:$0xff] %vm307_vm3, %v4002_v45  ;;  %v3782_v22 = vpop.permute.xlu1 %3781  ;;  %v4205_v2 = vld [vmem:[#allocation3 + $0xf0] sm:$0xff] }
 0x575   :  { %3818 = vst.msk [vmem:[#allocation3 + $0x108] sm:$0xff] %vm404_vm4, %v3782_v22 }
 0x577   :  { %v4098_v48 = vpop.permute.xlu0 %4097  ;;  %v4200_v17 = vld [vmem:[#allocation3 + $0xc8] sm:$0xff] }
 0x578   :  { %4136 = vst.msk [vmem:[#allocation3 + $0xe0] sm:$0xff] %vm404_vm4, %v4098_v48  ;;  %v3688_v53 = vpop.permute.xlu1 %3687  ;;  %4417 = vmatprep.mubr.f32.mxu0 %v4200_v17 }
 0x579   :  { %3723 = vst.msk [vmem:[#allocation3 + $0x120] sm:$0xff] %vm307_vm3, %v3688_v53  ;;  %4418 = vmatmul.mubr.f32.gmra.mrb[80].mxu0 %v4199_v54 }
 0x57b   :  { %v3908_v55 = vpop.permute.xlu0 %3907 }
 0x57c   :  { %3945 = vst.msk [vmem:[#allocation3 + $0xf8] sm:$0xff] %vm210_vm2, %v3908_v55  ;;  %v3594_v46 = vpop.permute.xlu1 %3593  ;;  %v4208_v50 = vld [vmem:[#allocation3 + $0x108] sm:$0xff] }
 0x57d   :  { %3628 = vst.msk [vmem:[#allocation3 + $0x138] sm:$0xff] %vm210_vm2, %v3594_v46 }
 0x57f   :  { %v11157_v42 = vpop.f32.mrb[80].mxu1  ;;  %v3910_v61 = vpop.permute.xlu0 %3909  ;;  %v4203_v1 = vld [vmem:[#allocation3 + $0xe0] sm:$0xff] }
 0x580   :  { %v11159_v15 = vpop.f32.mrb[81].mxu1  ;;  %3946 = vst.msk [vmem:[#allocation3 + $0x110] sm:$0xff] %vm210_vm2, %v3910_v61  ;;  %v3690_v25 = vpop.permute.xlu1 %3689  ;;  %4422 = vmatprep.mubr.f32.mxu0 %v4203_v1  ;;  %v4636_v61 = vld [vmem:[#allocation2 + $0xe] sm:$0xff] }
 0x581   :  { %3724 = vst.msk [vmem:[#allocation3 + $0x138] sm:$0xff] %vm307_vm3, %v3690_v25  ;;  %4423 = vmatmul.mubr.f32.gmra.mrb[82].mxu0 %v4202_v41 }
 0x582   :  { %4652 = vst.msk [vmem:[#allocation3 + $0x18] sm:$0xff] %vm23_vm0, %v4636_v61  ;;  %v7572_v61 = vld [vmem:[%s12627_s1 + $0x558] sm:$0xff] }
 0x585   :  { %v4004_v60 = vpop.permute.xlu0 %4003  ;;  %v3784_v5 = vpop.permute.xlu1 %3783 }
 0x586   :  { %4041 = vst.msk [vmem:[#allocation3 + $0xf8] sm:$0xff] %vm307_vm3, %v4004_v60 }
 0x587   :  { %3819 = vst.msk [vmem:[#allocation3 + $0x120] sm:$0xff] %vm404_vm4, %v3784_v5 }
 0x589   :  { %v4100_v62 = vpop.permute.xlu0 %4099 }
 0x58a   :  { %4137 = vst.msk [vmem:[#allocation3 + $0xf8] sm:$0xff] %vm404_vm4, %v4100_v62  ;;  %v7561_v62 = vld [vmem:[%s12627_s1 + $0x500] sm:$0xff] }
 0x58d   :  { %v4006_v0 = vpop.permute.xlu0 %4005  ;;  %v3786_v32 = vpop.permute.xlu1 %3785 }
 0x58e   :  { %4042 = vst.msk [vmem:[#allocation3 + $0x110] sm:$0xff] %vm307_vm3, %v4006_v0  ;;  %v4211_v29 = vld [vmem:[#allocation3 + $0x120] sm:$0xff]  ;;  %v7562_v0 = vld [vmem:[%s12627_s1 + $0x508] sm:$0xff] }
 0x58f   :  { %3820 = vst.msk [vmem:[#allocation3 + $0x138] sm:$0xff] %vm404_vm4, %v3786_v32 }
 0x591   :  { %v4102_v28 = vpop.permute.xlu0 %4101  ;;  %v3596_v58 = vpop.permute.xlu1 %3595  ;;  %v4206_v37 = vld [vmem:[#allocation3 + $0xf8] sm:$0xff] }
 0x592   :  { %4138 = vst.msk [vmem:[#allocation3 + $0x110] sm:$0xff] %vm404_vm4, %v4102_v28  ;;  %4427 = vmatprep.mubr.f32.mxu0 %v4206_v37  ;;  %v8747_v28 = vpack.c.bf16 %v7562_v0, %v7561_v62 }
 0x593   :  { %3629 = vst.msk [vmem:[#allocation3 + $0x150] sm:$0xff] %vm210_vm2, %v3596_v58  ;;  %4428 = vmatmul.mubr.f32.gmra.mrb[84].mxu0 %v4205_v2  ;;  %v7545_v58 = vld [vmem:[%s12627_s1 + $0x480] sm:$0xff] }
 0x594   :  { %8748 = vmatprep.subr.bf16.mxu1 %v8747_v28  ;;  %v7573_v28 = vld [vmem:[%s12627_s1 + $0x560] sm:$0xff] }
 0x595   :  { %v3912_v33 = vpop.permute.xlu0 %3911  ;;  %v3692_v7 = vpop.permute.xlu1 %3691 }
 0x596   :  { %3947 = vst.msk [vmem:[#allocation3 + $0x128] sm:$0xff] %vm210_vm2, %v3912_v33  ;;  %v4214_v11 = vld [vmem:[#allocation3 + $0x138] sm:$0xff] }
 0x597   :  { %v11170_v4 = vpop.f32.mrb[82].mxu1  ;;  %3725 = vst.msk [vmem:[#allocation3 + $0x150] sm:$0xff] %vm307_vm3, %v3692_v7 }
 0x598   :  { %v11174_v49 = vpop.f32.mrb[83].mxu1 }
 0x599   :  { %v3914_v9 = vpop.permute.xlu0 %3913  ;;  %v4209_v10 = vld [vmem:[#allocation3 + $0x110] sm:$0xff]  ;;  %v3788_v6 = vpop.permute.xlu1 %3787 }
 0x59a   :  { %3948 = vst.msk [vmem:[#allocation3 + $0x140] sm:$0xff] %vm210_vm2, %v3914_v9  ;;  %4432 = vmatprep.mubr.f32.mxu0 %v4209_v10  ;;  %v7563_v10 = vld [vmem:[%s12627_s1 + $0x510] sm:$0xff] }
 0x59b   :  { %3821 = vst.msk [vmem:[#allocation3 + $0x150] sm:$0xff] %vm404_vm4, %v3788_v6  ;;  %4433 = vmatmul.mubr.f32.gmra.mrb[86].mxu0 %v4208_v50  ;;  %v7564_v6 = vld [vmem:[%s12627_s1 + $0x518] sm:$0xff] }
 0x59c   :  { %v8751_v50 = vpack.c.bf16 %v7564_v6, %v7563_v10 }
 0x59d   :  { %v4008_v44 = vpop.permute.xlu0 %4007  ;;  %v3598_v13 = vpop.permute.xlu1 %3597 }
 0x59e   :  { %4043 = vst.msk [vmem:[#allocation3 + $0x128] sm:$0xff] %vm307_vm3, %v4008_v44  ;;  %v7547_v44 = vld [vmem:[%s12627_s1 + $0x490] sm:$0xff] }
 0x59f   :  { %3630 = vst.msk [vmem:[#allocation3 + $0x168] sm:$0xff] %vm210_vm2, %v3598_v13  ;;  %v7548_v13 = vld [vmem:[%s12627_s1 + $0x498] sm:$0xff] }
 0x5a0   :  { %v8753_v40 = vpack.c.bf16 %v7548_v13, %v7547_v44  ;;  %v7576_v44 = vld [vmem:[%s12627_s1 + $0x578] sm:$0xff] }
 0x5a1   :  { %v4104_v3 = vpop.permute.xlu0 %4103 }
 0x5a2   :  { %4139 = vst.msk [vmem:[#allocation3 + $0x128] sm:$0xff] %vm404_vm4, %v4104_v3  ;;  %v3694_v18 = vpop.permute.xlu1 %3693  ;;  %v4217_v38 = vld [vmem:[#allocation3 + $0x150] sm:$0xff]  ;;  %v7565_v3 = vld [vmem:[%s12627_s1 + $0x520] sm:$0xff] }
 0x5a3   :  { %3726 = vst.msk [vmem:[#allocation3 + $0x168] sm:$0xff] %vm307_vm3, %v3694_v18  ;;  %v7566_v18 = vld [vmem:[%s12627_s1 + $0x528] sm:$0xff] }
 0x5a4   :  { %v8755_v31 = vpack.c.bf16 %v7566_v18, %v7565_v3 }
 0x5a5   :  { %v4010_v20 = vpop.permute.xlu0 %4009 }
 0x5a6   :  { %4044 = vst.msk [vmem:[#allocation3 + $0x140] sm:$0xff] %vm307_vm3, %v4010_v20  ;;  %v3790_v34 = vpop.permute.xlu1 %3789  ;;  %v7549_v20 = vld [vmem:[%s12627_s1 + $0x4a0] sm:$0xff] }
 0x5a7   :  { %3822 = vst.msk [vmem:[#allocation3 + $0x168] sm:$0xff] %vm404_vm4, %v3790_v34 }
 0x5a9   :  { %v4106_v16 = vpop.permute.xlu0 %4105  ;;  %v4212_v52 = vld [vmem:[#allocation3 + $0x128] sm:$0xff] }
 0x5aa   :  { %4140 = vst.msk [vmem:[#allocation3 + $0x140] sm:$0xff] %vm404_vm4, %v4106_v16  ;;  %4437 = vmatprep.mubr.f32.mxu0 %v4212_v52  ;;  %v4700_v48 = vpop.permute.xlu1 %4699  ;;  %v7567_v16 = vld [vmem:[%s12627_s1 + $0x530] sm:$0xff]  ;;  %v7568_v52 = vld [vmem:[%s12627_s1 + $0x538] sm:$0xff] }
 0x5ab   :  { %4438 = vmatmul.mubr.f32.gmra.mrb[88].mxu0 %v4211_v29  ;;  %4747 = vst.msk [vmem:[#allocation3] sm:$0xff] %vm210_vm2, %v4700_v48  ;;  %v8759_v29 = vpack.c.bf16 %v7568_v52, %v7567_v16 }
 0x5ad   :  { %v4012_v21 = vpop.permute.xlu0 %4011 }
 0x5ae   :  { %v4220_v27 = vld [vmem:[#allocation3 + $0x168] sm:$0xff]  ;;  %v4796_v17 = vpop.permute.xlu1 %4795 }
 0x5af   :  { %v11197_v56 = vpop.f32.mrb[84].mxu1  ;;  %4843 = vst.msk [vmem:[#allocation3] sm:$0xff] %vm307_vm3, %v4796_v17  ;;  %v7553_v17 = vld [vmem:[%s12627_s1 + $0x4c0] sm:$0xff] }
 0x5b0   :  { %v11199_v51 = vpop.f32.mrb[85].mxu1 }
 0x5b1   :  { %v4108_v24 = vpop.permute.xlu0 %4107  ;;  %v4215_v57 = vld [vmem:[#allocation3 + $0x140] sm:$0xff] }
 0x5b2   :  { %4442 = vmatprep.mubr.f32.mxu0 %v4215_v57  ;;  %v4702_v53 = vpop.permute.xlu1 %4701 }
 0x5b3   :  { %4443 = vmatmul.mubr.f32.gmra.mrb[90].mxu0 %v4214_v11  ;;  %4748 = vst.msk [vmem:[#allocation3 + $0x18] sm:$0xff] %vm210_vm2, %v4702_v53  ;;  %v7554_v53 = vld [vmem:[%s12627_s1 + $0x4c8] sm:$0xff] }
 0x5b5   :  { %v4014_v8 = vpop.permute.xlu0 %4013 }
 0x5b6   :  { %v4798_v25 = vpop.permute.xlu1 %4797 }
 0x5b7   :  { %4844 = vst.msk [vmem:[#allocation3 + $0x18] sm:$0xff] %vm307_vm3, %v4798_v25 }
 0x5b9   :  { %v3916_v26 = vpop.permute.xlu0 %3915 }
 0x5ba   :  { %3949 = vst.msk [vmem:[#allocation3 + $0x158] sm:$0xff] %vm210_vm2, %v3916_v26 }
 0x5bb   :  { %4045 = vst.msk [vmem:[#allocation3 + $0x158] sm:$0xff] %vm307_vm3, %v4012_v21  ;;  %v7551_v21 = vld [vmem:[%s12627_s1 + $0x4b0] sm:$0xff] }
 0x5bc   :  { %4141 = vst.msk [vmem:[#allocation3 + $0x158] sm:$0xff] %vm404_vm4, %v4108_v24  ;;  %v7552_v24 = vld [vmem:[%s12627_s1 + $0x4b8] sm:$0xff] }
 0x5bd   :  { %v3918_v12 = vpop.permute.xlu0 %3917  ;;  %v8761_v11 = vpack.c.bf16 %v7552_v24, %v7551_v21 }
 0x5be   :  { %3950 = vst.msk [vmem:[#allocation3 + $0x170] sm:$0xff] %vm210_vm2, %v3918_v12  ;;  %v7569_v12 = vld [vmem:[%s12627_s1 + $0x540] sm:$0xff] }
 0x5bf   :  { %4046 = vst.msk [vmem:[#allocation3 + $0x170] sm:$0xff] %vm307_vm3, %v4014_v8 }
 0x5c1   :  { %v4110_v35 = vpop.permute.xlu0 %4109 }
 0x5c2   :  { %4142 = vst.msk [vmem:[#allocation3 + $0x170] sm:$0xff] %vm404_vm4, %v4110_v35  ;;  %v7570_v35 = vld [vmem:[%s12627_s1 + $0x548] sm:$0xff] }
 0x5c3   :  { %v4218_v14 = vld [vmem:[#allocation3 + $0x158] sm:$0xff] }
 0x5c4   :  { %4447 = vmatprep.mubr.f32.mxu0 %v4218_v14 }
 0x5c5   :  { %4448 = vmatmul.mubr.f32.gmra.mrb[92].mxu0 %v4217_v38 }
 0x5c7   :  { %v11207_v19 = vpop.f32.mrb[86].mxu1 }
 0x5c8   :  { %v11209_v43 = vpop.f32.mrb[87].mxu1 }
 0x5c9   :  { %v4221_v59 = vld [vmem:[#allocation3 + $0x170] sm:$0xff] }
 0x5ca   :  { %4452 = vmatprep.mubr.f32.mxu0 %v4221_v59 }
 0x5cb   :  { %4453 = vmatmul.mubr.f32.gmra.mrb[94].mxu0 %v4220_v27  ;;  %v8763_v27 = vpack.c.bf16 %v7570_v35, %v7569_v12 }
 0x5df   :  { %v11211_v45 = vpop.f32.mrb[88].mxu1 }
 0x5e0   :  { %v11213_v22 = vpop.f32.mrb[89].mxu1 }
 0x5ec   :  { %v7979_v54 = vpop.f32.mrb[64].mxu0 }
 0x5ed   :  { %v7980_v55 = vpop.f32.mrb[65].mxu0 }
 0x5ee   :  { %v7981_v46 = vadd.f32 %v7980_v55, %v7979_v54  ;;  %v8765_v54 = vpack.c.bf16 %v7554_v53, %v7553_v17 }
 0x5f0   :  { %v4380_v1 = vadd.f32 %v7981_v46, %v11221_v30  ;;  %v7571_v46 = vld [vmem:[%s12627_s1 + $0x550] sm:$0xff] }
 0x5f1   :  { %v8767_v25 = vpack.c.bf16 %v7572_v61, %v7571_v46 }
 0x5f2   :  { %v4525_v41 = vadd.f32 %v11159_v15, %v4380_v1  ;;  %v7546_v15 = vld [vmem:[%s12627_s1 + $0x488] sm:$0xff] }
 0x5f3   :  { %v8749_v33 = vpack.c.bf16 %v7546_v15, %v7545_v58  ;;  %v7574_v58 = vld [vmem:[%s12627_s1 + $0x568] sm:$0xff] }
 0x5f4   :  { %v4603_v60 = vmax.f32 %v4525_v41, 0.0  ;;  %v7982_v5 = vpop.f32.mrb[66].mxu0  ;;  %v7555_v41 = vld [vmem:[%s12627_s1 + $0x4d0] sm:$0xff] }
 0x5f5   :  { %v7983_v32 = vpop.f32.mrb[67].mxu0  ;;  %8750 = vmatpush3.bf16.msra.mxu1 %v8749_v33  ;;  %v7558_v33 = vld [vmem:[%s12627_s1 + $0x4e8] sm:$0xff] }
 0x5f6   :  { %4619 = vst.msk [vmem:[#allocation2 + $0x28] sm:$0xff] %vm23_vm0, %v4603_v60  ;;  %v7984_v37 = vadd.f32 %v7983_v32, %v7982_v5  ;;  %8752 = vmatprep.subr.bf16.mxu1 %v8751_v50  ;;  %v7556_v60 = vld [vmem:[%s12627_s1 + $0x4d8] sm:$0xff]  ;;  %v7575_v50 = vld [vmem:[%s12627_s1 + $0x570] sm:$0xff] }
 0x5f7   :  { %v8769_v62 = vpack.c.bf16 %v7556_v60, %v7555_v41  ;;  %v8775_v13 = vpack.c.bf16 %v7576_v44, %v7575_v50 }
 0x5f8   :  { %v4385_v9 = vadd.f32 %v7984_v37, %v11221_v30  ;;  %v8771_v37 = vpack.c.bf16 %v7574_v58, %v7573_v28 }
 0x5f9   :  { %v11241_v2 = vpop.f32.mrb[90].mxu1  ;;  %8754 = vmatpush3.bf16.msra.mxu1 %v8753_v40  ;;  %v7560_v40 = vld [vmem:[%s12627_s1 + $0x4f8] sm:$0xff] }
 0x5fa   :  { %v11243_v7 = vpop.f32.mrb[91].mxu1  ;;  %v4530_v39 = vadd.f32 %v11157_v42, %v4385_v9  ;;  %v7550_v42 = vld [vmem:[%s12627_s1 + $0x4a8] sm:$0xff]  ;;  %8756 = vmatprep.subr.bf16.mxu1 %v8755_v31 }
 0x5fb   :  { %v8757_v34 = vpack.c.bf16 %v7550_v42, %v7549_v20 }
 0x5fc   :  { %v4604_v36 = vmax.f32 %v4530_v39, 0.0  ;;  %v7559_v39 = vld [vmem:[%s12627_s1 + $0x4f0] sm:$0xff] }
 0x5fd   :  { %v4859_v23 = vld [vmem:[#allocation2 + $0x26] sm:$0xff]  ;;  %8758 = vmatpush3.bf16.msra.mxu1 %v8757_v34  ;;  %v8777_v3 = vpack.c.bf16 %v7560_v40, %v7559_v39 }
 0x5fe   :  { %v4669_v63 = vld [vmem:[#allocation2 + $0x28] sm:$0xff]  ;;  %4620 = vst.msk [vmem:[#allocation2 + $0x30] sm:$0xff] %vm23_vm0, %v4604_v36  ;;  %4891 = vrot.lane.b32.xlu1 %v4859_v23, %s9080_s21  ;;  %4653 = vst.msk [vmem:[#allocation3 + $0x30] sm:$0xff] %vm23_vm0, %v4859_v23  ;;  %8760 = vmatprep.subr.bf16.mxu1 %v8759_v29 }
 0x5ff   :  { %4971 = vst.msk [vmem:[#allocation3 + $0x8] sm:$0xff] %vm23_vm0, %v4669_v63 }
 0x601   :  { %8762 = vmatpush3.bf16.msra.mxu1 %v8761_v11 }
 0x602   :  { %4703 = vrot.lane.b32.xlu1 %v4669_v63, %s9078_s17  ;;  %8764 = vmatprep.subr.bf16.mxu1 %v8763_v27 }
 0x603   :  { %v11288_v57 = vpop.f32.mrb[92].mxu1 }
 0x604   :  { %v11290_v8 = vpop.f32.mrb[93].mxu1 }
 0x605   :  { %v7985_v26 = vpop.f32.mrb[68].mxu0  ;;  %v4987_v38 = vld [vmem:[#allocation2 + $0x2a] sm:$0xff]  ;;  %v4988_v1 = vld [vmem:[#allocation2 + $0x32] sm:$0xff]  ;;  %8766 = vmatpush3.bf16.msra.mxu1 %v8765_v54 }
 0x606   :  { %v7986_v14 = vpop.f32.mrb[69].mxu0  ;;  %v4860_v59 = vld [vmem:[#allocation2 + $0x2e] sm:$0xff]  ;;  %5019 = vrot.lane.b32.xlu0 %v4987_v38, %s9078_s17  ;;  %8768 = vmatprep.subr.bf16.mxu1 %v8767_v25 }
 0x607   :  { %v7987_v47 = vadd.f32 %v7986_v14, %v7985_v26  ;;  %4893 = vrot.lane.b32.xlu1 %v4860_v59, %s9080_s21  ;;  %v4670_v48 = vld [vmem:[#allocation2 + $0x30] sm:$0xff]  ;;  %4654 = vst.msk [vmem:[#allocation3 + $0x48] sm:$0xff] %vm23_vm0, %v4860_v59 }
 0x608   :  { %4972 = vst.msk [vmem:[#allocation3 + $0x20] sm:$0xff] %vm23_vm0, %v4670_v48 }
 0x609   :  { %v4390_v55 = vadd.f32 %v7987_v47, %v11221_v30  ;;  %8770 = vmatpush3.bf16.msra.mxu1 %v8769_v62 }
 0x60a   :  { %5021 = vrot.lane.b32.xlu0 %v4988_v1, %s9078_s17  ;;  %8772 = vmatprep.subr.bf16.mxu1 %v8771_v37 }
 0x60b   :  { %v4535_v5 = vadd.f32 %v11174_v49, %v4390_v55  ;;  %4799 = vrot.lane.b32.xlu1 %v4987_v38, %s9079_s18  ;;  %v7557_v49 = vld [vmem:[%s12627_s1 + $0x4e0] sm:$0xff] }
 0x60c   :  { %v7988_v32 = vpop.f32.mrb[70].mxu0  ;;  %v8773_v10 = vpack.c.bf16 %v7558_v33, %v7557_v49 }
 0x60d   :  { %v4605_v0 = vmax.f32 %v4535_v5, 0.0  ;;  %v7989_v15 = vpop.f32.mrb[71].mxu0 }
 0x60e   :  { %v7990_v9 = vadd.f32 %v7989_v15, %v7988_v32  ;;  %8774 = vmatpush3.bf16.msra.mxu1 %v8773_v10 }
 0x60f   :  { %4621 = vst.msk [vmem:[#allocation2 + $0x48] sm:$0xff] %vm23_vm0, %v4605_v0  ;;  %4705 = vrot.lane.b32.xlu1 %v4670_v48, %s9078_s17  ;;  %8776 = vmatprep.subr.bf16.mxu1 %v8775_v13 }
 0x610   :  { %v4395_v6 = vadd.f32 %v7990_v9, %v11221_v30 }
 0x612   :  { %v4540_v36 = vadd.f32 %v11170_v4, %v4395_v6  ;;  %8778 = vmatpush3.bf16.msra.mxu1 %v8777_v3  ;;  %v11360_v4 = vpop.f32.mrb[94].mxu1 }
 0x613   :  { %4801 = vrot.lane.b32.xlu1 %v4988_v1, %s9079_s18  ;;  %v11362_v20 = vpop.f32.mrb[95].mxu1 }
 0x614   :  { %v4606_v18 = vmax.f32 %v4540_v36, 0.0 }
 0x616   :  { %v5083_v23 = vld [vmem:[#allocation2 + $0x46] sm:$0xff]  ;;  %4622 = vst.msk [vmem:[#allocation2 + $0x50] sm:$0xff] %vm23_vm0, %v4606_v18 }
 0x617   :  { %v5179_v63 = vld [vmem:[#allocation2 + $0x48] sm:$0xff]  ;;  %5115 = vrot.lane.b32.xlu0 %v5083_v23, %s9079_s18  ;;  %4895 = vrot.lane.b32.xlu1 %v5083_v23, %s9080_s21  ;;  %4655 = vst.msk [vmem:[#allocation3 + $0x60] sm:$0xff] %vm23_vm0, %v5083_v23 }
 0x618   :  { %4973 = vst.msk [vmem:[#allocation3 + $0x38] sm:$0xff] %vm23_vm0, %v5179_v63 }
 0x61b   :  { %5211 = vrot.lane.b32.xlu0 %v5179_v63, %s9080_s21  ;;  %4707 = vrot.lane.b32.xlu1 %v5179_v63, %s9078_s17 }
 0x61c   :  { %v7991_v31 = vpop.f32.mrb[72].mxu0 }
 0x61d   :  { %v7992_v42 = vpop.f32.mrb[73].mxu0  ;;  %v5084_v34 = vld [vmem:[#allocation2 + $0x4e] sm:$0xff] }
 0x61e   :  { %v5180_v16 = vld [vmem:[#allocation2 + $0x50] sm:$0xff]  ;;  %v7993_v29 = vadd.f32 %v7992_v42, %v7991_v31  ;;  %4656 = vst.msk [vmem:[#allocation3 + $0x78] sm:$0xff] %vm23_vm0, %v5084_v34 }
 0x61f   :  { %v4767_v52 = vld [vmem:[#allocation2 + $0x4a] sm:$0xff]  ;;  %5117 = vrot.lane.b32.xlu0 %v5084_v34, %s9079_s18  ;;  %4897 = vrot.lane.b32.xlu1 %v5084_v34, %s9080_s21  ;;  %v5276_v21 = vld [vmem:[#allocation2 + $0x52] sm:$0xff]  ;;  %4974 = vst.msk [vmem:[#allocation3 + $0x50] sm:$0xff] %vm23_vm0, %v5180_v16 }
 0x620   :  { %5291 = vst.msk [vmem:[#allocation3 + $0x10] sm:$0xff] %vm23_vm0, %v4767_v52  ;;  %5292 = vst.msk [vmem:[#allocation3 + $0x28] sm:$0xff] %vm23_vm0, %v5276_v21  ;;  %v4400_v24 = vadd.f32 %v7993_v29, %v11221_v30 }
 0x622   :  { %v4545_v11 = vadd.f32 %v11199_v51, %v4400_v24 }
 0x623   :  { %5213 = vrot.lane.b32.xlu0 %v5180_v16, %s9080_s21  ;;  %4803 = vrot.lane.b32.xlu1 %v4767_v52, %s9079_s18 }
 0x624   :  { %v4607_v26 = vmax.f32 %v4545_v11, 0.0  ;;  %v7994_v12 = vpop.f32.mrb[74].mxu0  ;;  %v11443_v11 = vpop.permute.xlu0 %5143 }
 0x625   :  { %v7995_v35 = vpop.f32.mrb[75].mxu0 }
 0x626   :  { %4623 = vst.msk [vmem:[#allocation2 + $0x68] sm:$0xff] %vm23_vm0, %v4607_v26  ;;  %v7996_v38 = vadd.f32 %v7995_v35, %v7994_v12 }
 0x627   :  { %v5309_v14 = vld [vmem:[#allocation3 + $0x10] sm:$0xff]  ;;  %5023 = vrot.lane.b32.xlu0 %v4767_v52, %s9078_s17  ;;  %4709 = vrot.lane.b32.xlu1 %v5180_v16, %s9078_s17  ;;  %v5312_v59 = vld [vmem:[#allocation3 + $0x28] sm:$0xff] }
 0x628   :  { %8563 = vmatprep.mubr.msk.f32.mxu0 %vm23_vm0, %v5309_v14  ;;  %v4405_v51 = vadd.f32 %v7996_v38, %v11221_v30  ;;  %v11454_v38 = vpop.permute.xlu0 %5239 }
 0x629   :  { %8564 = vmatmul.mubr.msk.f32.vlgmr.msra.gmra.mrb[96].mxu0 %vm23_vm0, %v5312_v59 }
 0x62a   :  { %v4550_v27 = vadd.f32 %v11197_v56, %v4405_v51 }
 0x62b   :  { %5025 = vrot.lane.b32.xlu0 %v5276_v21, %s9078_s17  ;;  %4805 = vrot.lane.b32.xlu1 %v5276_v21, %s9079_s18 }
 0x62c   :  { %v4608_v47 = vmax.f32 %v4550_v27, 0.0 }
 0x62d   :  { %v5085_v48 = vld [vmem:[#allocation2 + $0x66] sm:$0xff] }
 0x62e   :  { %v5181_v17 = vld [vmem:[#allocation2 + $0x68] sm:$0xff]  ;;  %4624 = vst.msk [vmem:[#allocation2 + $0x70] sm:$0xff] %vm23_vm0, %v4608_v47  ;;  %4657 = vst.msk [vmem:[#allocation3 + $0x90] sm:$0xff] %vm23_vm0, %v5085_v48 }
 0x62f   :  { %5119 = vrot.lane.b32.xlu0 %v5085_v48, %s9079_s18  ;;  %4899 = vrot.lane.b32.xlu1 %v5085_v48, %s9080_s21  ;;  %4975 = vst.msk [vmem:[#allocation3 + $0x68] sm:$0xff] %vm23_vm0, %v5181_v17 }
 0x633   :  { %5215 = vrot.lane.b32.xlu0 %v5181_v17, %s9080_s21  ;;  %4711 = vrot.lane.b32.xlu1 %v5181_v17, %s9078_s17 }
 0x634   :  { %v7997_v56 = vpop.f32.mrb[76].mxu0 }
 0x635   :  { %v7998_v53 = vpop.f32.mrb[77].mxu0  ;;  %v5086_v54 = vld [vmem:[#allocation2 + $0x6e] sm:$0xff] }
 0x636   :  { %v5182_v55 = vld [vmem:[#allocation2 + $0x70] sm:$0xff]  ;;  %v7999_v61 = vadd.f32 %v7998_v53, %v7997_v56  ;;  %4658 = vst.msk [vmem:[#allocation3 + $0xa8] sm:$0xff] %vm23_vm0, %v5086_v54  ;;  %v11464_v53 = vpop.permute.xlu0 %5145 }
 0x637   :  { %v4769_v46 = vld [vmem:[#allocation2 + $0x6a] sm:$0xff]  ;;  %5121 = vrot.lane.b32.xlu0 %v5086_v54, %s9079_s18  ;;  %4901 = vrot.lane.b32.xlu1 %v5086_v54, %s9080_s21  ;;  %v5278_v1 = vld [vmem:[#allocation2 + $0x72] sm:$0xff]  ;;  %4976 = vst.msk [vmem:[#allocation3 + $0x80] sm:$0xff] %vm23_vm0, %v5182_v55 }
 0x638   :  { %5293 = vst.msk [vmem:[#allocation3 + $0x40] sm:$0xff] %vm23_vm0, %v4769_v46  ;;  %5294 = vst.msk [vmem:[#allocation3 + $0x58] sm:$0xff] %vm23_vm0, %v5278_v1  ;;  %v4410_v25 = vadd.f32 %v7999_v61, %v11221_v30 }
 0x63a   :  { %v4555_v41 = vadd.f32 %v11209_v43, %v4410_v25 }
 0x63b   :  { %5217 = vrot.lane.b32.xlu0 %v5182_v55, %s9080_s21  ;;  %4807 = vrot.lane.b32.xlu1 %v4769_v46, %s9079_s18 }
 0x63c   :  { %v4609_v60 = vmax.f32 %v4555_v41, 0.0  ;;  %v8000_v5 = vpop.f32.mrb[78].mxu0 }
 0x63d   :  { %v8001_v62 = vpop.f32.mrb[79].mxu0 }
 0x63e   :  { %4625 = vst.msk [vmem:[#allocation2 + $0x88] sm:$0xff] %vm23_vm0, %v4609_v60  ;;  %v8002_v32 = vadd.f32 %v8001_v62, %v8000_v5 }
 0x63f   :  { %v5315_v0 = vld [vmem:[#allocation3 + $0x40] sm:$0xff]  ;;  %5027 = vrot.lane.b32.xlu0 %v4769_v46, %s9078_s17  ;;  %4713 = vrot.lane.b32.xlu1 %v5182_v55, %s9078_s17  ;;  %v5318_v28 = vld [vmem:[#allocation3 + $0x58] sm:$0xff] }
 0x640   :  { %8566 = vmatprep.mubr.msk.f32.mxu0 %vm23_vm0, %v5315_v0  ;;  %v4415_v43 = vadd.f32 %v8002_v32, %v11221_v30 }
 0x641   :  { %8567 = vmatmul.mubr.msk.f32.gmra.mrb[98].mxu0 %vm23_vm0, %v5318_v28 }
 0x642   :  { %v4560_v58 = vadd.f32 %v11207_v19, %v4415_v43 }
 0x643   :  { %5029 = vrot.lane.b32.xlu0 %v5278_v1, %s9078_s17  ;;  %4809 = vrot.lane.b32.xlu1 %v5278_v1, %s9079_s18 }
 0x644   :  { %v4610_v15 = vmax.f32 %v4560_v58, 0.0 }
 0x645   :  { %v5087_v37 = vld [vmem:[#allocation2 + $0x86] sm:$0xff] }
 0x646   :  { %v5183_v49 = vld [vmem:[#allocation2 + $0x88] sm:$0xff]  ;;  %4626 = vst.msk [vmem:[#allocation2 + $0x90] sm:$0xff] %vm23_vm0, %v4610_v15  ;;  %4659 = vst.msk [vmem:[#allocation3 + $0xc0] sm:$0xff] %vm23_vm0, %v5087_v37 }
 0x647   :  { %5123 = vrot.lane.b32.xlu0 %v5087_v37, %s9079_s18  ;;  %4903 = vrot.lane.b32.xlu1 %v5087_v37, %s9080_s21  ;;  %4977 = vst.msk [vmem:[#allocation3 + $0x98] sm:$0xff] %vm23_vm0, %v5183_v49 }
 0x64b   :  { %5219 = vrot.lane.b32.xlu0 %v5183_v49, %s9080_s21  ;;  %4715 = vrot.lane.b32.xlu1 %v5183_v49, %s9078_s17 }
 0x64c   :  { %v8003_v19 = vpop.f32.mrb[80].mxu0 }
 0x64d   :  { %v8004_v33 = vpop.f32.mrb[81].mxu0  ;;  %v5088_v9 = vld [vmem:[#allocation2 + $0x8e] sm:$0xff] }
 0x64e   :  { %v5184_v10 = vld [vmem:[#allocation2 + $0x90] sm:$0xff]  ;;  %v8005_v50 = vadd.f32 %v8004_v33, %v8003_v19  ;;  %4660 = vst.msk [vmem:[#allocation3 + $0xd8] sm:$0xff] %vm23_vm0, %v5088_v9 }
 0x64f   :  { %v4771_v6 = vld [vmem:[#allocation2 + $0x8a] sm:$0xff]  ;;  %5125 = vrot.lane.b32.xlu0 %v5088_v9, %s9079_s18  ;;  %4905 = vrot.lane.b32.xlu1 %v5088_v9, %s9080_s21  ;;  %v5280_v44 = vld [vmem:[#allocation2 + $0x92] sm:$0xff]  ;;  %4978 = vst.msk [vmem:[#allocation3 + $0xb0] sm:$0xff] %vm23_vm0, %v5184_v10 }
 0x650   :  { %5295 = vst.msk [vmem:[#allocation3 + $0x70] sm:$0xff] %vm23_vm0, %v4771_v6  ;;  %5296 = vst.msk [vmem:[#allocation3 + $0x88] sm:$0xff] %vm23_vm0, %v5280_v44  ;;  %v4420_v13 = vadd.f32 %v8005_v50, %v11221_v30 }
 0x652   :  { %v4565_v39 = vadd.f32 %v11213_v22, %v4420_v13 }
 0x653   :  { %5221 = vrot.lane.b32.xlu0 %v5184_v10, %s9080_s21  ;;  %4811 = vrot.lane.b32.xlu1 %v4771_v6, %s9079_s18 }
 0x654   :  { %v4611_v40 = vmax.f32 %v4565_v39, 0.0  ;;  %v8006_v36 = vpop.f32.mrb[82].mxu0 }
 0x655   :  { %v8007_v3 = vpop.f32.mrb[83].mxu0 }
 0x656   :  { %4627 = vst.msk [vmem:[#allocation2 + $0xa8] sm:$0xff] %vm23_vm0, %v4611_v40  ;;  %v8008_v23 = vadd.f32 %v8007_v3, %v8006_v36 }
 0x657   :  { %v5321_v18 = vld [vmem:[#allocation3 + $0x70] sm:$0xff]  ;;  %5031 = vrot.lane.b32.xlu0 %v4771_v6, %s9078_s17  ;;  %v5324_v63 = vld [vmem:[#allocation3 + $0x88] sm:$0xff]  ;;  %4717 = vrot.lane.b32.xlu1 %v5184_v10, %s9078_s17 }
 0x658   :  { %8569 = vmatprep.mubr.msk.f32.mxu0 %vm23_vm0, %v5321_v18  ;;  %v4425_v22 = vadd.f32 %v8008_v23, %v11221_v30 }
 0x659   :  { %8570 = vmatmul.mubr.msk.f32.gmra.mrb[100].mxu0 %vm23_vm0, %v5324_v63 }
 0x65a   :  { %v4570_v31 = vadd.f32 %v11211_v45, %v4425_v22 }
 0x65b   :  { %5033 = vrot.lane.b32.xlu0 %v5280_v44, %s9078_s17  ;;  %4813 = vrot.lane.b32.xlu1 %v5280_v44, %s9079_s18 }
 0x65c   :  { %v4612_v42 = vmax.f32 %v4570_v31, 0.0 }
 0x65d   :  { %v5089_v34 = vld [vmem:[#allocation2 + $0xa6] sm:$0xff] }
 0x65e   :  { %v5185_v16 = vld [vmem:[#allocation2 + $0xa8] sm:$0xff]  ;;  %4628 = vst.msk [vmem:[#allocation2 + $0xb0] sm:$0xff] %vm23_vm0, %v4612_v42  ;;  %4661 = vst.msk [vmem:[#allocation3 + $0xf0] sm:$0xff] %vm23_vm0, %v5089_v34 }
 0x65f   :  { %5127 = vrot.lane.b32.xlu0 %v5089_v34, %s9079_s18  ;;  %4979 = vst.msk [vmem:[#allocation3 + $0xc8] sm:$0xff] %vm23_vm0, %v5185_v16  ;;  %4907 = vrot.lane.b32.xlu1 %v5089_v34, %s9080_s21 }
 0x663   :  { %5223 = vrot.lane.b32.xlu0 %v5185_v16, %s9080_s21  ;;  %4719 = vrot.lane.b32.xlu1 %v5185_v16, %s9078_s17 }
 0x665   :  { %v5090_v52 = vld [vmem:[#allocation2 + $0xae] sm:$0xff] }
 0x666   :  { %v8009_v45 = vpop.f32.mrb[84].mxu0  ;;  %v5186_v29 = vld [vmem:[#allocation2 + $0xb0] sm:$0xff]  ;;  %4662 = vst.msk [vmem:[#allocation3 + $0x108] sm:$0xff] %vm23_vm0, %v5090_v52 }
 0x667   :  { %v4773_v21 = vld [vmem:[#allocation2 + $0xaa] sm:$0xff]  ;;  %5129 = vrot.lane.b32.xlu0 %v5090_v52, %s9079_s18  ;;  %v8010_v24 = vpop.f32.mrb[85].mxu0  ;;  %v5282_v26 = vld [vmem:[#allocation2 + $0xb2] sm:$0xff]  ;;  %4980 = vst.msk [vmem:[#allocation3 + $0xe0] sm:$0xff] %vm23_vm0, %v5186_v29  ;;  %4909 = vrot.lane.b32.xlu1 %v5090_v52, %s9080_s21 }
 0x668   :  { %5297 = vst.msk [vmem:[#allocation3 + $0xa0] sm:$0xff] %vm23_vm0, %v4773_v21  ;;  %v8011_v12 = vadd.f32 %v8010_v24, %v8009_v45  ;;  %5298 = vst.msk [vmem:[#allocation3 + $0xb8] sm:$0xff] %vm23_vm0, %v5282_v26 }
 0x66a   :  { %v4430_v35 = vadd.f32 %v8011_v12, %v11221_v30 }
 0x66b   :  { %5225 = vrot.lane.b32.xlu0 %v5186_v29, %s9080_s21  ;;  %4815 = vrot.lane.b32.xlu1 %v4773_v21, %s9079_s18 }
 0x66c   :  { %v4575_v14 = vadd.f32 %v11243_v7, %v4430_v35 }
 0x66e   :  { %v4613_v59 = vmax.f32 %v4575_v14, 0.0  ;;  %v8012_v51 = vpop.f32.mrb[86].mxu0 }
 0x66f   :  { %v5327_v27 = vld [vmem:[#allocation3 + $0xa0] sm:$0xff]  ;;  %5035 = vrot.lane.b32.xlu0 %v4773_v21, %s9078_s17  ;;  %v8013_v47 = vpop.f32.mrb[87].mxu0  ;;  %v5330_v48 = vld [vmem:[#allocation3 + $0xb8] sm:$0xff]  ;;  %4721 = vrot.lane.b32.xlu1 %v5186_v29, %s9078_s17 }
 0x670   :  { %8572 = vmatprep.mubr.msk.f32.mxu0 %vm23_vm0, %v5327_v27  ;;  %4629 = vst.msk [vmem:[#allocation2 + $0xc8] sm:$0xff] %vm23_vm0, %v4613_v59  ;;  %v8014_v17 = vadd.f32 %v8013_v47, %v8012_v51  ;;  %v4892_v7 = vpop.permute.xlu1 %4891 }
 0x671   :  { %8573 = vmatmul.mubr.msk.f32.gmra.mrb[102].mxu0 %vm23_vm0, %v5330_v48  ;;  %4939 = vst.msk [vmem:[#allocation3] sm:$0xff] %vm404_vm4, %v4892_v7 }
 0x672   :  { %v4435_v56 = vadd.f32 %v8014_v17, %v11221_v30 }
 0x673   :  { %5037 = vrot.lane.b32.xlu0 %v5282_v26, %s9078_s17  ;;  %4817 = vrot.lane.b32.xlu1 %v5282_v26, %s9079_s18 }
 0x674   :  { %v4580_v54 = vadd.f32 %v11241_v2, %v4435_v56  ;;  %v4704_v55 = vpop.permute.xlu1 %4703 }
 0x675   :  { %4749 = vst.msk [vmem:[#allocation3 + $0x30] sm:$0xff] %vm210_vm2, %v4704_v55 }
 0x676   :  { %v4614_v46 = vmax.f32 %v4580_v54, 0.0 }
 0x677   :  { %v5091_v61 = vld [vmem:[#allocation2 + $0xc6] sm:$0xff] }
 0x678   :  { %v5187_v1 = vld [vmem:[#allocation2 + $0xc8] sm:$0xff]  ;;  %4630 = vst.msk [vmem:[#allocation2 + $0xd0] sm:$0xff] %vm23_vm0, %v4614_v46  ;;  %5131 = vrot.lane.b32.xlu0 %v5091_v61, %s9079_s18  ;;  %4911 = vrot.lane.b32.xlu1 %v5091_v61, %s9080_s21  ;;  %4663 = vst.msk [vmem:[#allocation3 + $0x120] sm:$0xff] %vm23_vm0, %v5091_v61  ;;  %v5020_v25 = vpop.permute.xlu0 %5019  ;;  %v5307_v16 = vld [vmem:[#allocation3] sm:$0xff] }
 0x679   :  { %4981 = vst.msk [vmem:[#allocation3 + $0xf8] sm:$0xff] %vm23_vm0, %v5187_v1  ;;  %v4894_v2 = vpop.permute.xlu1 %4893 }
 0x67a   :  { %5067 = vst.msk [vmem:[#allocation3 + $0x8] sm:$0xff] %vm210_vm2, %v5020_v25 }
 0x67b   :  { %4940 = vst.msk [vmem:[#allocation3 + $0x18] sm:$0xff] %vm404_vm4, %v4894_v2 }
 0x67c   :  { %5227 = vrot.lane.b32.xlu0 %v5187_v1, %s9080_s21  ;;  %4723 = vrot.lane.b32.xlu1 %v5187_v1, %s9078_s17  ;;  %v5022_v41 = vpop.permute.xlu0 %5021 }
 0x67d   :  { %v4800_v60 = vpop.permute.xlu1 %4799  ;;  %5068 = vst.msk [vmem:[#allocation3 + $0x20] sm:$0xff] %vm210_vm2, %v5022_v41 }
 0x67e   :  { %4845 = vst.msk [vmem:[#allocation3 + $0x30] sm:$0xff] %vm307_vm3, %v4800_v60  ;;  %v8015_v5 = vpop.f32.mrb[88].mxu0 }
 0x67f   :  { %v8016_v62 = vpop.f32.mrb[89].mxu0  ;;  %v5092_v0 = vld [vmem:[#allocation2 + $0xce] sm:$0xff] }
 0x680   :  { %v5188_v32 = vld [vmem:[#allocation2 + $0xd0] sm:$0xff]  ;;  %v8017_v43 = vadd.f32 %v8016_v62, %v8015_v5  ;;  %5133 = vrot.lane.b32.xlu0 %v5092_v0, %s9079_s18  ;;  %4913 = vrot.lane.b32.xlu1 %v5092_v0, %s9080_s21  ;;  %4664 = vst.msk [vmem:[#allocation3 + $0x138] sm:$0xff] %vm23_vm0, %v5092_v0 }
 0x681   :  { %v4775_v28 = vld [vmem:[#allocation2 + $0xca] sm:$0xff]  ;;  %v5284_v58 = vld [vmem:[#allocation2 + $0xd2] sm:$0xff]  ;;  %4982 = vst.msk [vmem:[#allocation3 + $0x110] sm:$0xff] %vm23_vm0, %v5188_v32  ;;  %v4706_v15 = vpop.permute.xlu1 %4705 }
 0x682   :  { %5299 = vst.msk [vmem:[#allocation3 + $0xd0] sm:$0xff] %vm23_vm0, %v4775_v28  ;;  %5300 = vst.msk [vmem:[#allocation3 + $0xe8] sm:$0xff] %vm23_vm0, %v5284_v58  ;;  %v4440_v37 = vadd.f32 %v8017_v43, %v11221_v30  ;;  %v5310_v17 = vld [vmem:[#allocation3 + $0x18] sm:$0xff] }
 0x683   :  { %4750 = vst.msk [vmem:[#allocation3 + $0x48] sm:$0xff] %vm210_vm2, %v4706_v15 }
 0x684   :  { %v4585_v49 = vadd.f32 %v11290_v8, %v4440_v37  ;;  %5229 = vrot.lane.b32.xlu0 %v5188_v32, %s9080_s21  ;;  %4819 = vrot.lane.b32.xlu1 %v4775_v28, %s9079_s18 }
 0x685   :  { %v4802_v19 = vpop.permute.xlu1 %4801 }
 0x686   :  { %v4615_v33 = vmax.f32 %v4585_v49, 0.0  ;;  %4846 = vst.msk [vmem:[#allocation3 + $0x48] sm:$0xff] %vm307_vm3, %v4802_v19  ;;  %v8018_v9 = vpop.f32.mrb[90].mxu0 }
 0x687   :  { %v8019_v10 = vpop.f32.mrb[91].mxu0 }
 0x688   :  { %4631 = vst.msk [vmem:[#allocation2 + $0xe8] sm:$0xff] %vm23_vm0, %v4615_v33  ;;  %v8020_v50 = vadd.f32 %v8019_v10, %v8018_v9  ;;  %5039 = vrot.lane.b32.xlu0 %v4775_v28, %s9078_s17  ;;  %4725 = vrot.lane.b32.xlu1 %v5188_v32, %s9078_s17 }
 0x689   :  { %v5333_v6 = vld [vmem:[#allocation3 + $0xd0] sm:$0xff]  ;;  %v5336_v44 = vld [vmem:[#allocation3 + $0xe8] sm:$0xff]  ;;  %v5116_v8 = vpop.permute.xlu0 %5115  ;;  %v4896_v13 = vpop.permute.xlu1 %4895 }
 0x68a   :  { %8575 = vmatprep.mubr.msk.f32.mxu0 %vm23_vm0, %v5333_v6  ;;  %v4445_v39 = vadd.f32 %v8020_v50, %v11221_v30  ;;  %5163 = vst.msk [vmem:[#allocation3 + $0x8] sm:$0xff] %vm307_vm3, %v5116_v8 }
 0x68b   :  { %8576 = vmatmul.mubr.msk.f32.gmra.mrb[104].mxu0 %vm23_vm0, %v5336_v44  ;;  %4941 = vst.msk [vmem:[#allocation3 + $0x30] sm:$0xff] %vm404_vm4, %v4896_v13 }
 0x68c   :  { %v4590_v40 = vadd.f32 %v11288_v57, %v4445_v39  ;;  %5041 = vrot.lane.b32.xlu0 %v5284_v58, %s9078_s17  ;;  %4821 = vrot.lane.b32.xlu1 %v5284_v58, %s9079_s18 }
 0x68d   :  { %v5212_v36 = vpop.permute.xlu0 %5211  ;;  %v4708_v3 = vpop.permute.xlu1 %4707 }
 0x68e   :  { %v4616_v18 = vmax.f32 %v4590_v40, 0.0  ;;  %5259 = vst.msk [vmem:[#allocation3 + $0x8] sm:$0xff] %vm404_vm4, %v5212_v36  ;;  %v5351_v36 = vld [vmem:[#allocation3 + $0x160] sm:$0xff] }
 0x68f   :  { %4751 = vst.msk [vmem:[#allocation3 + $0x60] sm:$0xff] %vm210_vm2, %v4708_v3  ;;  %v5093_v23 = vld [vmem:[#allocation2 + $0xe6] sm:$0xff]  ;;  %v5354_v3 = vld [vmem:[#allocation3 + $0x178] sm:$0xff] }
 0x690   :  { %v5189_v63 = vld [vmem:[#allocation2 + $0xe8] sm:$0xff]  ;;  %4632 = vst.msk [vmem:[#allocation2 + $0xf0] sm:$0xff] %vm23_vm0, %v4616_v18  ;;  %5135 = vrot.lane.b32.xlu0 %v5093_v23, %s9079_s18  ;;  %4665 = vst.msk [vmem:[#allocation3 + $0x150] sm:$0xff] %vm23_vm0, %v5093_v23  ;;  %4915 = vrot.lane.b32.xlu1 %v5093_v23, %s9080_s21 }
 0x691   :  { %4983 = vst.msk [vmem:[#allocation3 + $0x128] sm:$0xff] %vm23_vm0, %v5189_v63  ;;  %v5118_v57 = vpop.permute.xlu0 %5117  ;;  %v4898_v22 = vpop.permute.xlu1 %4897 }
 0x692   :  { %5164 = vst.msk [vmem:[#allocation3 + $0x20] sm:$0xff] %vm307_vm3, %v5118_v57  ;;  %v5313_v58 = vld [vmem:[#allocation3 + $0x30] sm:$0xff] }
 0x693   :  { %4942 = vst.msk [vmem:[#allocation3 + $0x48] sm:$0xff] %vm404_vm4, %v4898_v22 }
 0x694   :  { %5231 = vrot.lane.b32.xlu0 %v5189_v63, %s9080_s21  ;;  %4727 = vrot.lane.b32.xlu1 %v5189_v63, %s9078_s17  ;;  %v5194_v63 = vld [vmem:[#allocation2 + $0x130] sm:$0xff] }
 0x695   :  { %v5214_v31 = vpop.permute.xlu0 %5213  ;;  %v4804_v42 = vpop.permute.xlu1 %4803  ;;  %v5308_v34 = vld [vmem:[#allocation3 + $0x8] sm:$0xff] }
 0x696   :  { %5260 = vst.msk [vmem:[#allocation3 + $0x20] sm:$0xff] %vm404_vm4, %v5214_v31  ;;  %5509 = vmatprep.mubr.f32.mxu1 %v5308_v34 }
 0x697   :  { %4847 = vst.msk [vmem:[#allocation3 + $0x60] sm:$0xff] %vm307_vm3, %v4804_v42  ;;  %5510 = vmatmul.mubr.f32.vlgmr.msra.gmra.mrb[96].mxu1 %v5307_v16  ;;  %v5094_v45 = vld [vmem:[#allocation2 + $0xee] sm:$0xff] }
 0x698   :  { %v5190_v52 = vld [vmem:[#allocation2 + $0xf0] sm:$0xff]  ;;  %v8021_v21 = vpop.f32.mrb[92].mxu0  ;;  %5137 = vrot.lane.b32.xlu0 %v5094_v45, %s9079_s18  ;;  %4666 = vst.msk [vmem:[#allocation3 + $0x168] sm:$0xff] %vm23_vm0, %v5094_v45  ;;  %4917 = vrot.lane.b32.xlu1 %v5094_v45, %s9080_s21 }
 0x699   :  { %v4777_v29 = vld [vmem:[#allocation2 + $0xea] sm:$0xff]  ;;  %v5286_v24 = vld [vmem:[#allocation2 + $0xf2] sm:$0xff]  ;;  %4984 = vst.msk [vmem:[#allocation3 + $0x140] sm:$0xff] %vm23_vm0, %v5190_v52  ;;  %v5024_v26 = vpop.permute.xlu0 %5023  ;;  %v4710_v12 = vpop.permute.xlu1 %4709 }
 0x69a   :  { %5301 = vst.msk [vmem:[#allocation3 + $0x100] sm:$0xff] %vm23_vm0, %v4777_v29  ;;  %5302 = vst.msk [vmem:[#allocation3 + $0x118] sm:$0xff] %vm23_vm0, %v5286_v24  ;;  %v8022_v35 = vpop.f32.mrb[93].mxu0  ;;  %v5316_v44 = vld [vmem:[#allocation3 + $0x48] sm:$0xff] }
 0x69b   :  { %5069 = vst.msk [vmem:[#allocation3 + $0x38] sm:$0xff] %vm210_vm2, %v5024_v26  ;;  %4752 = vst.msk [vmem:[#allocation3 + $0x78] sm:$0xff] %vm210_vm2, %v4710_v12  ;;  %v8023_v14 = vadd.f32 %v8022_v35, %v8021_v21 }
 0x69c   :  { %5233 = vrot.lane.b32.xlu0 %v5190_v52, %s9080_s21  ;;  %4823 = vrot.lane.b32.xlu1 %v4777_v29, %s9079_s18 }
 0x69d   :  { %v4450_v59 = vadd.f32 %v8023_v14, %v11221_v30  ;;  %v5026_v51 = vpop.permute.xlu0 %5025  ;;  %v4806_v27 = vpop.permute.xlu1 %4805  ;;  %v5311_v47 = vld [vmem:[#allocation3 + $0x20] sm:$0xff] }
 0x69e   :  { %5070 = vst.msk [vmem:[#allocation3 + $0x50] sm:$0xff] %vm210_vm2, %v5026_v51  ;;  %5514 = vmatprep.mubr.f32.mxu1 %v5311_v47  ;;  %v8024_v48 = vpop.f32.mrb[94].mxu0 }
 0x69f   :  { %4848 = vst.msk [vmem:[#allocation3 + $0x78] sm:$0xff] %vm307_vm3, %v4806_v27  ;;  %v4595_v7 = vadd.f32 %v11362_v20, %v4450_v59  ;;  %5515 = vmatmul.mubr.f32.gmra.mrb[98].mxu1 %v5310_v17  ;;  %v8025_v56 = vpop.f32.mrb[95].mxu0 }
 0x6a0   :  { %v8026_v55 = vadd.f32 %v8025_v56, %v8024_v48  ;;  %5043 = vrot.lane.b32.xlu0 %v4777_v29, %s9078_s17  ;;  %4729 = vrot.lane.b32.xlu1 %v5190_v52, %s9078_s17 }
 0x6a1   :  { %v5339_v54 = vld [vmem:[#allocation3 + $0x100] sm:$0xff]  ;;  %v5342_v46 = vld [vmem:[#allocation3 + $0x118] sm:$0xff]  ;;  %v4617_v61 = vmax.f32 %v4595_v7, 0.0  ;;  %v5120_v1 = vpop.permute.xlu0 %5119  ;;  %v4900_v25 = vpop.permute.xlu1 %4899 }
 0x6a2   :  { %8578 = vmatprep.mubr.msk.f32.mxu0 %vm23_vm0, %v5339_v54  ;;  %v4455_v2 = vadd.f32 %v8026_v55, %v11221_v30  ;;  %5165 = vst.msk [vmem:[#allocation3 + $0x38] sm:$0xff] %vm307_vm3, %v5120_v1 }
 0x6a3   :  { %8579 = vmatmul.mubr.msk.f32.gmra.mrb[106].mxu0 %vm23_vm0, %v5342_v46  ;;  %4943 = vst.msk [vmem:[#allocation3 + $0x60] sm:$0xff] %vm404_vm4, %v4900_v25 }
 0x6a4   :  { %4633 = vst.msk [vmem:[#allocation2 + $0x108] sm:$0xff] %vm23_vm0, %v4617_v61  ;;  %v4600_v20 = vadd.f32 %v11360_v4, %v4455_v2  ;;  %5045 = vrot.lane.b32.xlu0 %v5286_v24, %s9078_s17  ;;  %4825 = vrot.lane.b32.xlu1 %v5286_v24, %s9079_s18 }
 0x6a5   :  { %v5216_v41 = vpop.permute.xlu0 %5215  ;;  %v4712_v60 = vpop.permute.xlu1 %4711 }
 0x6a6   :  { %v4618_v5 = vmax.f32 %v4600_v20, 0.0  ;;  %5261 = vst.msk [vmem:[#allocation3 + $0x38] sm:$0xff] %vm404_vm4, %v5216_v41 }
 0x6a7   :  { %4753 = vst.msk [vmem:[#allocation3 + $0x90] sm:$0xff] %vm210_vm2, %v4712_v60 }
 0x6a8   :  { %4634 = vst.msk [vmem:[#allocation2 + $0x110] sm:$0xff] %vm23_vm0, %v4618_v5 }
 0x6a9   :  { %v5122_v30 = vpop.permute.xlu0 %5121  ;;  %v4902_v62 = vpop.permute.xlu1 %4901 }
 0x6aa   :  { %5166 = vst.msk [vmem:[#allocation3 + $0x50] sm:$0xff] %vm307_vm3, %v5122_v30  ;;  %v5319_v16 = vld [vmem:[#allocation3 + $0x60] sm:$0xff] }
 0x6ab   :  { %4944 = vst.msk [vmem:[#allocation3 + $0x78] sm:$0xff] %vm404_vm4, %v4902_v62  ;;  %v5095_v4 = vld [vmem:[#allocation2 + $0x106] sm:$0xff] }
 0x6ac   :  { %v5191_v0 = vld [vmem:[#allocation2 + $0x108] sm:$0xff]  ;;  %5139 = vrot.lane.b32.xlu0 %v5095_v4, %s9079_s18  ;;  %4919 = vrot.lane.b32.xlu1 %v5095_v4, %s9080_s21 }
 0x6ad   :  { %4985 = vst.msk [vmem:[#allocation3 + $0x158] sm:$0xff] %vm23_vm0, %v5191_v0  ;;  %v5218_v32 = vpop.permute.xlu0 %5217  ;;  %v4808_v28 = vpop.permute.xlu1 %4807  ;;  %v5314_v43 = vld [vmem:[#allocation3 + $0x38] sm:$0xff] }
 0x6ae   :  { %5262 = vst.msk [vmem:[#allocation3 + $0x50] sm:$0xff] %vm404_vm4, %v5218_v32  ;;  %5519 = vmatprep.mubr.f32.mxu1 %v5314_v43 }
 0x6af   :  { %4849 = vst.msk [vmem:[#allocation3 + $0x90] sm:$0xff] %vm307_vm3, %v4808_v28  ;;  %5520 = vmatmul.mubr.f32.gmra.mrb[100].mxu1 %v5313_v58  ;;  %v4874_v15 = vld [vmem:[#allocation2 + $0x10e] sm:$0xff] }
 0x6b0   :  { %5235 = vrot.lane.b32.xlu0 %v5191_v0, %s9080_s21  ;;  %v5192_v37 = vld [vmem:[#allocation2 + $0x110] sm:$0xff]  ;;  %4921 = vrot.lane.b32.xlu1 %v4874_v15, %s9080_s21 }
 0x6b1   :  { %v5287_v49 = vld [vmem:[#allocation2 + $0x10a] sm:$0xff]  ;;  %v5288_v19 = vld [vmem:[#allocation2 + $0x112] sm:$0xff]  ;;  %4986 = vst.msk [vmem:[#allocation3 + $0x170] sm:$0xff] %vm23_vm0, %v5192_v37  ;;  %v5028_v33 = vpop.permute.xlu0 %5027  ;;  %v4714_v9 = vpop.permute.xlu1 %4713 }
 0x6b2   :  { %5303 = vst.msk [vmem:[#allocation3 + $0x130] sm:$0xff] %vm23_vm0, %v5287_v49  ;;  %5304 = vst.msk [vmem:[#allocation3 + $0x148] sm:$0xff] %vm23_vm0, %v5288_v19  ;;  %v5322_v26 = vld [vmem:[#allocation3 + $0x78] sm:$0xff] }
 0x6b3   :  { %5071 = vst.msk [vmem:[#allocation3 + $0x68] sm:$0xff] %vm210_vm2, %v5028_v33  ;;  %4754 = vst.msk [vmem:[#allocation3 + $0xa8] sm:$0xff] %vm210_vm2, %v4714_v9 }
 0x6b4   :  { %5141 = vrot.lane.b32.xlu0 %v4874_v15, %s9079_s18 }
 0x6b5   :  { %v5030_v10 = vpop.permute.xlu0 %5029  ;;  %v4810_v6 = vpop.permute.xlu1 %4809  ;;  %v5317_v50 = vld [vmem:[#allocation3 + $0x50] sm:$0xff] }
 0x6b6   :  { %5072 = vst.msk [vmem:[#allocation3 + $0x80] sm:$0xff] %vm210_vm2, %v5030_v10  ;;  %5524 = vmatprep.mubr.f32.mxu1 %v5317_v50 }
 0x6b7   :  { %4850 = vst.msk [vmem:[#allocation3 + $0xa8] sm:$0xff] %vm307_vm3, %v4810_v6  ;;  %5525 = vmatmul.mubr.f32.gmra.mrb[102].mxu1 %v5316_v44 }
 0x6b8   :  { %5237 = vrot.lane.b32.xlu0 %v5192_v37, %s9080_s21 }
 0x6b9   :  { %v5345_v8 = vld [vmem:[#allocation3 + $0x130] sm:$0xff]  ;;  %v5348_v13 = vld [vmem:[#allocation3 + $0x148] sm:$0xff]  ;;  %v5124_v39 = vpop.permute.xlu0 %5123  ;;  %v4904_v40 = vpop.permute.xlu1 %4903 }
 0x6ba   :  { %8581 = vmatprep.mubr.msk.f32.mxu0 %vm23_vm0, %v5345_v8  ;;  %5167 = vst.msk [vmem:[#allocation3 + $0x68] sm:$0xff] %vm307_vm3, %v5124_v39 }
 0x6bb   :  { %8582 = vmatmul.mubr.msk.f32.gmra.mrb[108].mxu0 %vm23_vm0, %v5348_v13  ;;  %4945 = vst.msk [vmem:[#allocation3 + $0x90] sm:$0xff] %vm404_vm4, %v4904_v40 }
 0x6bc   :  { %8584 = vmatprep.mubr.msk.f32.mxu0 %vm23_vm0, %v5351_v36  ;;  %5047 = vrot.lane.b32.xlu0 %v5287_v49, %s9078_s17 }
 0x6bd   :  { %v5220_v18 = vpop.permute.xlu0 %5219  ;;  %v4716_v23 = vpop.permute.xlu1 %4715 }
 0x6be   :  { %5263 = vst.msk [vmem:[#allocation3 + $0x68] sm:$0xff] %vm404_vm4, %v5220_v18 }
 0x6bf   :  { %8585 = vmatmul.mubr.msk.f32.gmra.mrb[110].mxu0 %vm23_vm0, %v5354_v3  ;;  %4755 = vst.msk [vmem:[#allocation3 + $0xc0] sm:$0xff] %vm210_vm2, %v4716_v23 }
 0x6c0   :  { %5049 = vrot.lane.b32.xlu0 %v5288_v19, %s9078_s17 }
 0x6c1   :  { %v5126_v57 = vpop.permute.xlu0 %5125  ;;  %v4906_v22 = vpop.permute.xlu1 %4905 }
 0x6c2   :  { %5168 = vst.msk [vmem:[#allocation3 + $0x80] sm:$0xff] %vm307_vm3, %v5126_v57  ;;  %v5325_v7 = vld [vmem:[#allocation3 + $0x90] sm:$0xff] }
 0x6c3   :  { %4946 = vst.msk [vmem:[#allocation3 + $0xa8] sm:$0xff] %vm404_vm4, %v4906_v22 }
 0x6c4   :  { %5241 = vrot.lane.b32.xlu0 %v5194_v63, %s9080_s21 }
 0x6c5   :  { %v5222_v31 = vpop.permute.xlu0 %5221  ;;  %v4812_v42 = vpop.permute.xlu1 %4811  ;;  %v5320_v34 = vld [vmem:[#allocation3 + $0x68] sm:$0xff] }
 0x6c6   :  { %5264 = vst.msk [vmem:[#allocation3 + $0x80] sm:$0xff] %vm404_vm4, %v5222_v31  ;;  %5529 = vmatprep.mubr.f32.mxu1 %v5320_v34 }
 0x6c7   :  { %4851 = vst.msk [vmem:[#allocation3 + $0xc0] sm:$0xff] %vm307_vm3, %v4812_v42  ;;  %5530 = vmatmul.mubr.f32.gmra.mrb[104].mxu1 %v5319_v16 }
 0x6c9   :  { %v5032_v45 = vpop.permute.xlu0 %5031  ;;  %v4718_v52 = vpop.permute.xlu1 %4717 }
 0x6ca   :  { %5073 = vst.msk [vmem:[#allocation3 + $0x98] sm:$0xff] %vm210_vm2, %v5032_v45  ;;  %4756 = vst.msk [vmem:[#allocation3 + $0xd8] sm:$0xff] %vm210_vm2, %v4718_v52  ;;  %v5328_v1 = vld [vmem:[#allocation3 + $0xa8] sm:$0xff] }
 0x6cd   :  { %v5034_v29 = vpop.permute.xlu0 %5033  ;;  %v5323_v21 = vld [vmem:[#allocation3 + $0x80] sm:$0xff]  ;;  %v4814_v24 = vpop.permute.xlu1 %4813 }
 0x6ce   :  { %5074 = vst.msk [vmem:[#allocation3 + $0xb0] sm:$0xff] %vm210_vm2, %v5034_v29  ;;  %5534 = vmatprep.mubr.f32.mxu1 %v5323_v21 }
 0x6cf   :  { %4852 = vst.msk [vmem:[#allocation3 + $0xd8] sm:$0xff] %vm307_vm3, %v4814_v24  ;;  %5535 = vmatmul.mubr.f32.gmra.mrb[106].mxu1 %v5322_v26 }
 0x6d1   :  { %v5128_v12 = vpop.permute.xlu0 %5127  ;;  %v4908_v35 = vpop.permute.xlu1 %4907 }
 0x6d2   :  { %5169 = vst.msk [vmem:[#allocation3 + $0x98] sm:$0xff] %vm307_vm3, %v5128_v12 }
 0x6d3   :  { %4947 = vst.msk [vmem:[#allocation3 + $0xc0] sm:$0xff] %vm404_vm4, %v4908_v35 }
 0x6d5   :  { %v5224_v14 = vpop.permute.xlu0 %5223  ;;  %v4720_v59 = vpop.permute.xlu1 %4719 }
 0x6d6   :  { %5265 = vst.msk [vmem:[#allocation3 + $0x98] sm:$0xff] %vm404_vm4, %v5224_v14 }
 0x6d7   :  { %4757 = vst.msk [vmem:[#allocation3 + $0xf0] sm:$0xff] %vm210_vm2, %v4720_v59 }
 0x6d9   :  { %v5130_v51 = vpop.permute.xlu0 %5129  ;;  %v4910_v27 = vpop.permute.xlu1 %4909 }
 0x6da   :  { %5170 = vst.msk [vmem:[#allocation3 + $0xb0] sm:$0xff] %vm307_vm3, %v5130_v51  ;;  %v5331_v0 = vld [vmem:[#allocation3 + $0xc0] sm:$0xff] }
 0x6db   :  { %4948 = vst.msk [vmem:[#allocation3 + $0xd8] sm:$0xff] %vm404_vm4, %v4910_v27 }
 0x6dd   :  { %v5226_v47 = vpop.permute.xlu0 %5225  ;;  %v5326_v48 = vld [vmem:[#allocation3 + $0x98] sm:$0xff]  ;;  %v4816_v17 = vpop.permute.xlu1 %4815 }
 0x6de   :  { %5266 = vst.msk [vmem:[#allocation3 + $0xb0] sm:$0xff] %vm404_vm4, %v5226_v47  ;;  %5539 = vmatprep.mubr.f32.mxu1 %v5326_v48 }
 0x6df   :  { %4853 = vst.msk [vmem:[#allocation3 + $0xf0] sm:$0xff] %vm307_vm3, %v4816_v17  ;;  %5540 = vmatmul.mubr.f32.gmra.mrb[108].mxu1 %v5325_v7 }
 0x6e1   :  { %v5036_v56 = vpop.permute.xlu0 %5035  ;;  %v4722_v54 = vpop.permute.xlu1 %4721 }
 0x6e2   :  { %5075 = vst.msk [vmem:[#allocation3 + $0xc8] sm:$0xff] %vm210_vm2, %v5036_v56  ;;  %4758 = vst.msk [vmem:[#allocation3 + $0x108] sm:$0xff] %vm210_vm2, %v4722_v54  ;;  %v5334_v19 = vld [vmem:[#allocation3 + $0xd8] sm:$0xff] }
 0x6e5   :  { %v5038_v55 = vpop.permute.xlu0 %5037  ;;  %v5329_v46 = vld [vmem:[#allocation3 + $0xb0] sm:$0xff]  ;;  %v4818_v61 = vpop.permute.xlu1 %4817 }
 0x6e6   :  { %5076 = vst.msk [vmem:[#allocation3 + $0xe0] sm:$0xff] %vm210_vm2, %v5038_v55  ;;  %5544 = vmatprep.mubr.f32.mxu1 %v5329_v46  ;;  %v11655_v55 = vld [vmem:[%s12628_s2 + $0x4] ss:$0 sm:$0xff] }
 0x6e7   :  { %4854 = vst.msk [vmem:[#allocation3 + $0x108] sm:$0xff] %vm307_vm3, %v4818_v61  ;;  %5545 = vmatmul.mubr.f32.gmra.mrb[110].mxu1 %v5328_v1 }
 0x6ea   :  { %v5132_v25 = vpop.permute.xlu0 %5131  ;;  %v4912_v2 = vpop.permute.xlu1 %4911 }
 0x6eb   :  { %5171 = vst.msk [vmem:[#allocation3 + $0xc8] sm:$0xff] %vm307_vm3, %v5132_v25 }
 0x6ec   :  { %4949 = vst.msk [vmem:[#allocation3 + $0xf0] sm:$0xff] %vm404_vm4, %v4912_v2 }
 0x6ee   :  { %v5228_v20 = vpop.permute.xlu0 %5227  ;;  %v4724_v41 = vpop.permute.xlu1 %4723 }
 0x6ef   :  { %5267 = vst.msk [vmem:[#allocation3 + $0xc8] sm:$0xff] %vm404_vm4, %v5228_v20 }
 0x6f0   :  { %4759 = vst.msk [vmem:[#allocation3 + $0x120] sm:$0xff] %vm210_vm2, %v4724_v41 }
 0x6f2   :  { %v5134_v60 = vpop.permute.xlu0 %5133  ;;  %v4914_v5 = vpop.permute.xlu1 %4913 }
 0x6f3   :  { %5172 = vst.msk [vmem:[#allocation3 + $0xe0] sm:$0xff] %vm307_vm3, %v5134_v60  ;;  %v5337_v40 = vld [vmem:[#allocation3 + $0xf0] sm:$0xff] }
 0x6f4   :  { %4950 = vst.msk [vmem:[#allocation3 + $0x108] sm:$0xff] %vm404_vm4, %v4914_v5 }
 0x6f6   :  { %v5230_v30 = vpop.permute.xlu0 %5229  ;;  %v4820_v62 = vpop.permute.xlu1 %4819  ;;  %v5332_v4 = vld [vmem:[#allocation3 + $0xc8] sm:$0xff] }
 0x6f7   :  { %5268 = vst.msk [vmem:[#allocation3 + $0xe0] sm:$0xff] %vm404_vm4, %v5230_v30  ;;  %5549 = vmatprep.mubr.f32.mxu1 %v5332_v4 }
 0x6f8   :  { %4855 = vst.msk [vmem:[#allocation3 + $0x120] sm:$0xff] %vm307_vm3, %v4820_v62  ;;  %5550 = vmatmul.mubr.f32.gmra.mrb[112].mxu1 %v5331_v0 }
 0x6fa   :  { %v5040_v32 = vpop.permute.xlu0 %5039  ;;  %v4726_v28 = vpop.permute.xlu1 %4725 }
 0x6fb   :  { %5077 = vst.msk [vmem:[#allocation3 + $0xf8] sm:$0xff] %vm210_vm2, %v5040_v32  ;;  %4760 = vst.msk [vmem:[#allocation3 + $0x138] sm:$0xff] %vm210_vm2, %v4726_v28  ;;  %v5340_v31 = vld [vmem:[#allocation3 + $0x108] sm:$0xff] }
 0x6fc   :  { %v11602_v43 = vpop.f32.mrb[96].mxu0 }
 0x6fd   :  { %v11605_v58 = vpop.f32.mrb[97].mxu0 }
 0x6fe   :  { %v5042_v15 = vpop.permute.xlu0 %5041  ;;  %v5335_v37 = vld [vmem:[#allocation3 + $0xe0] sm:$0xff]  ;;  %v4822_v49 = vpop.permute.xlu1 %4821 }
 0x6ff   :  { %5078 = vst.msk [vmem:[#allocation3 + $0x110] sm:$0xff] %vm210_vm2, %v5042_v15  ;;  %5554 = vmatprep.mubr.f32.mxu1 %v5335_v37 }
 0x700   :  { %4856 = vst.msk [vmem:[#allocation3 + $0x138] sm:$0xff] %vm307_vm3, %v4822_v49  ;;  %5555 = vmatmul.mubr.f32.gmra.mrb[114].mxu1 %v5334_v19 }
 0x702   :  { %v5136_v33 = vpop.permute.xlu0 %5135  ;;  %v4916_v9 = vpop.permute.xlu1 %4915 }
 0x703   :  { %5173 = vst.msk [vmem:[#allocation3 + $0xf8] sm:$0xff] %vm307_vm3, %v5136_v33 }
 0x704   :  { %4951 = vst.msk [vmem:[#allocation3 + $0x120] sm:$0xff] %vm404_vm4, %v4916_v9 }
 0x706   :  { %v5232_v10 = vpop.permute.xlu0 %5231  ;;  %v4728_v6 = vpop.permute.xlu1 %4727 }
 0x707   :  { %5269 = vst.msk [vmem:[#allocation3 + $0xf8] sm:$0xff] %vm404_vm4, %v5232_v10 }
 0x708   :  { %4761 = vst.msk [vmem:[#allocation3 + $0x150] sm:$0xff] %vm210_vm2, %v4728_v6  ;;  %v6448_v6 = vld [vmem:[%s12629_s3 + $0x88] sm:$0xff] }
 0x70a   :  { %v5138_v50 = vpop.permute.xlu0 %5137  ;;  %v4918_v44 = vpop.permute.xlu1 %4917 }
 0x70b   :  { %5174 = vst.msk [vmem:[#allocation3 + $0x110] sm:$0xff] %vm307_vm3, %v5138_v50  ;;  %v5343_v24 = vld [vmem:[#allocation3 + $0x120] sm:$0xff] }
 0x70c   :  { %4952 = vst.msk [vmem:[#allocation3 + $0x138] sm:$0xff] %vm404_vm4, %v4918_v44  ;;  %v6431_v50 = vld [vmem:[%s12629_s3] sm:$0xff] }
 0x70e   :  { %v5234_v8 = vpop.permute.xlu0 %5233  ;;  %v5338_v13 = vld [vmem:[#allocation3 + $0xf8] sm:$0xff]  ;;  %v4824_v39 = vpop.permute.xlu1 %4823 }
 0x70f   :  { %5270 = vst.msk [vmem:[#allocation3 + $0x110] sm:$0xff] %vm404_vm4, %v5234_v8  ;;  %5559 = vmatprep.mubr.f32.mxu1 %v5338_v13  ;;  %v6432_v13 = vld [vmem:[%s12629_s3 + $0x8] sm:$0xff] }
 0x710   :  { %4857 = vst.msk [vmem:[#allocation3 + $0x150] sm:$0xff] %vm307_vm3, %v4824_v39  ;;  %5560 = vmatmul.mubr.f32.gmra.mrb[116].mxu1 %v5337_v40  ;;  %v6479_v39 = vld [vmem:[%s12629_s3 + $0x180] sm:$0xff]  ;;  %v6480_v40 = vld [vmem:[%s12629_s3 + $0x188] sm:$0xff] }
 0x712   :  { %v5044_v36 = vpop.permute.xlu0 %5043  ;;  %v4730_v3 = vpop.permute.xlu1 %4729 }
 0x713   :  { %5079 = vst.msk [vmem:[#allocation3 + $0x128] sm:$0xff] %vm210_vm2, %v5044_v36  ;;  %4762 = vst.msk [vmem:[#allocation3 + $0x168] sm:$0xff] %vm210_vm2, %v4730_v3  ;;  %v5346_v51 = vld [vmem:[#allocation3 + $0x138] sm:$0xff]  ;;  %v8789_v36 = vpack.c.bf16 %v6432_v13, %v6431_v50  ;;  %v8819_v3 = vpack.c.bf16 %v6480_v40, %v6479_v39 }
 0x714   :  { %v11618_v18 = vpop.f32.mrb[98].mxu0  ;;  %v6470_v13 = vld [vmem:[%s12629_s3 + $0x138] sm:$0xff] }
 0x715   :  { %v11621_v23 = vpop.f32.mrb[99].mxu0  ;;  %8820 = vmatprep.subr.bf16.mxu1 %v8819_v3  ;;  %v6455_v3 = vld [vmem:[%s12629_s3 + $0xc0] sm:$0xff] }
 0x716   :  { %v5046_v63 = vpop.permute.xlu0 %5045  ;;  %v5341_v57 = vld [vmem:[#allocation3 + $0x110] sm:$0xff]  ;;  %v4826_v22 = vpop.permute.xlu1 %4825 }
 0x717   :  { %5080 = vst.msk [vmem:[#allocation3 + $0x140] sm:$0xff] %vm210_vm2, %v5046_v63  ;;  %5564 = vmatprep.mubr.f32.mxu1 %v5341_v57  ;;  %v6463_v63 = vld [vmem:[%s12629_s3 + $0x100] sm:$0xff]  ;;  %v6464_v57 = vld [vmem:[%s12629_s3 + $0x108] sm:$0xff] }
 0x718   :  { %4858 = vst.msk [vmem:[#allocation3 + $0x168] sm:$0xff] %vm307_vm3, %v4826_v22  ;;  %5565 = vmatmul.mubr.f32.gmra.mrb[118].mxu1 %v5340_v31  ;;  %v6449_v22 = vld [vmem:[%s12629_s3 + $0x90] sm:$0xff] }
 0x71e   :  { %v5140_v42 = vpop.permute.xlu0 %5139  ;;  %v4920_v34 = vpop.permute.xlu1 %4919 }
 0x71f   :  { %5175 = vst.msk [vmem:[#allocation3 + $0x128] sm:$0xff] %vm307_vm3, %v5140_v42  ;;  %v8821_v42 = vpack.c.bf16 %v6464_v57, %v6463_v63  ;;  %v6456_v63 = vld [vmem:[%s12629_s3 + $0xc8] sm:$0xff] }
 0x720   :  { %4953 = vst.msk [vmem:[#allocation3 + $0x150] sm:$0xff] %vm404_vm4, %v4920_v34  ;;  %v6450_v34 = vld [vmem:[%s12629_s3 + $0x98] sm:$0xff] }
 0x721   :  { %8822 = vmatpush3.bf16.msra.mxu1 %v8821_v42  ;;  %v6440_v42 = vld [vmem:[%s12629_s3 + $0x48] sm:$0xff] }
 0x722   :  { %v5236_v16 = vpop.permute.xlu0 %5235  ;;  %v4922_v45 = vpop.permute.xlu1 %4921 }
 0x723   :  { %5271 = vst.msk [vmem:[#allocation3 + $0x128] sm:$0xff] %vm404_vm4, %v5236_v16  ;;  %4954 = vst.msk [vmem:[#allocation3 + $0x168] sm:$0xff] %vm404_vm4, %v4922_v45  ;;  %v6433_v16 = vld [vmem:[%s12629_s3 + $0x10] sm:$0xff]  ;;  %v6434_v45 = vld [vmem:[%s12629_s3 + $0x18] sm:$0xff] }
 0x726   :  { %v5142_v52 = vpop.permute.xlu0 %5141 }
 0x727   :  { %5176 = vst.msk [vmem:[#allocation3 + $0x140] sm:$0xff] %vm307_vm3, %v5142_v52  ;;  %v5349_v48 = vld [vmem:[#allocation3 + $0x150] sm:$0xff] }
 0x72a   :  { %v5238_v29 = vpop.permute.xlu0 %5237  ;;  %v5344_v21 = vld [vmem:[#allocation3 + $0x128] sm:$0xff] }
 0x72b   :  { %5272 = vst.msk [vmem:[#allocation3 + $0x140] sm:$0xff] %vm404_vm4, %v5238_v29  ;;  %5569 = vmatprep.mubr.f32.mxu1 %v5344_v21  ;;  %v8793_v29 = vpack.c.bf16 %v6434_v45, %v6433_v16  ;;  %v6481_v21 = vld [vmem:[%s12629_s3 + $0x190] sm:$0xff]  ;;  %v6487_v16 = vld [vmem:[%s12629_s3 + $0x1c0] sm:$0xff]  ;;  %v6488_v45 = vld [vmem:[%s12629_s3 + $0x1c8] sm:$0xff] }
 0x72c   :  { %5570 = vmatmul.mubr.f32.gmra.mrb[120].mxu1 %v5343_v24  ;;  %v11631_v26 = vpop.f32.mrb[100].mxu0  ;;  %v6482_v24 = vld [vmem:[%s12629_s3 + $0x198] sm:$0xff] }
 0x72d   :  { %v11633_v12 = vpop.f32.mrb[101].mxu0 }
 0x72e   :  { %v5048_v35 = vpop.permute.xlu0 %5047 }
 0x72f   :  { %5081 = vst.msk [vmem:[#allocation3 + $0x158] sm:$0xff] %vm210_vm2, %v5048_v35 }
 0x730   :  { %5177 = vst.msk [vmem:[#allocation3 + $0x158] sm:$0xff] %vm307_vm3, %v11443_v11 }
 0x731   :  { %5273 = vst.msk [vmem:[#allocation3 + $0x158] sm:$0xff] %vm404_vm4, %v11454_v38  ;;  %v5352_v38 = vld [vmem:[#allocation3 + $0x168] sm:$0xff] }
 0x732   :  { %v5050_v14 = vpop.permute.xlu0 %5049  ;;  %v5347_v59 = vld [vmem:[#allocation3 + $0x140] sm:$0xff] }
 0x733   :  { %5082 = vst.msk [vmem:[#allocation3 + $0x170] sm:$0xff] %vm210_vm2, %v5050_v14  ;;  %5574 = vmatprep.mubr.f32.mxu1 %v5347_v59  ;;  %v8823_v59 = vpack.c.bf16 %v6482_v24, %v6481_v21  ;;  %v6457_v21 = vld [vmem:[%s12629_s3 + $0xd0] sm:$0xff]  ;;  %v6458_v24 = vld [vmem:[%s12629_s3 + $0xd8] sm:$0xff] }
 0x734   :  { %5178 = vst.msk [vmem:[#allocation3 + $0x170] sm:$0xff] %vm307_vm3, %v11464_v53  ;;  %5575 = vmatmul.mubr.f32.gmra.mrb[122].mxu1 %v5346_v51  ;;  %v6465_v51 = vld [vmem:[%s12629_s3 + $0x110] sm:$0xff] }
 0x735   :  { %8824 = vmatprep.subr.bf16.mxu1 %v8823_v59  ;;  %v6441_v59 = vld [vmem:[%s12629_s3 + $0x50] sm:$0xff] }
 0x736   :  { %v5242_v27 = vpop.permute.xlu0 %5241 }
 0x737   :  { %5274 = vst.msk [vmem:[#allocation3 + $0x170] sm:$0xff] %vm404_vm4, %v5242_v27  ;;  %v6466_v27 = vld [vmem:[%s12629_s3 + $0x118] sm:$0xff] }
 0x738   :  { %v5350_v47 = vld [vmem:[#allocation3 + $0x158] sm:$0xff] }
 0x739   :  { %5579 = vmatprep.mubr.f32.mxu1 %v5350_v47 }
 0x73a   :  { %5580 = vmatmul.mubr.f32.gmra.mrb[124].mxu1 %v5349_v48  ;;  %v8825_v48 = vpack.c.bf16 %v6466_v27, %v6465_v51  ;;  %v6442_v51 = vld [vmem:[%s12629_s3 + $0x58] sm:$0xff] }
 0x73c   :  { %8826 = vmatpush3.bf16.msra.mxu1 %v8825_v48  ;;  %v6489_v48 = vld [vmem:[%s12629_s3 + $0x1d0] sm:$0xff] }
 0x73e   :  { %v5353_v11 = vld [vmem:[#allocation3 + $0x170] sm:$0xff] }
 0x73f   :  { %5584 = vmatprep.mubr.f32.mxu1 %v5353_v11  ;;  %v6451_v11 = vld [vmem:[%s12629_s3 + $0xa0] sm:$0xff] }
 0x740   :  { %5585 = vmatmul.mubr.f32.gmra.mrb[126].mxu1 %v5352_v38  ;;  %v6452_v38 = vld [vmem:[%s12629_s3 + $0xa8] sm:$0xff] }
 0x744   :  { %v11644_v17 = vpop.f32.mrb[102].mxu0 }
 0x745   :  { %v11646_v7 = vpop.f32.mrb[103].mxu0 }
 0x75e   :  { %v11648_v56 = vpop.f32.mrb[104].mxu0 }
 0x75f   :  { %v11650_v54 = vpop.f32.mrb[105].mxu0 }
 0x76a   :  { %v8079_v53 = vpop.f32.mrb[96].mxu1 }
 0x76b   :  { %v8080_v46 = vpop.f32.mrb[97].mxu1 }
 0x76c   :  { %v8081_v61 = vadd.f32 %v8080_v46, %v8079_v53 }
 0x76e   :  { %v5512_v1 = vadd.f32 %v8081_v61, %v11655_v55  ;;  %v8795_v61 = vpack.c.bf16 %v6452_v38, %v6451_v11  ;;  %v6490_v11 = vld [vmem:[%s12629_s3 + $0x1d8] sm:$0xff] }
 0x770   :  { %v5657_v25 = vadd.f32 %v11605_v58, %v5512_v1  ;;  %v6435_v1 = vld [vmem:[%s12629_s3 + $0x20] sm:$0xff] }
 0x772   :  { %v5735_v2 = vmax.f32 %v5657_v25, 0.0  ;;  %v8082_v20 = vpop.f32.mrb[98].mxu1  ;;  %v6436_v25 = vld [vmem:[%s12629_s3 + $0x28] sm:$0xff] }
 0x773   :  { %v8083_v41 = vpop.f32.mrb[99].mxu1 }
 0x774   :  { %5751 = vst.msk [vmem:[#allocation4] sm:$0xff] %vm23_vm0, %v5735_v2  ;;  %v8084_v60 = vadd.f32 %v8083_v41, %v8082_v20  ;;  %v8797_v20 = vpack.c.bf16 %v6436_v25, %v6435_v1  ;;  %v6483_v41 = vld [vmem:[%s12629_s3 + $0x1a0] sm:$0xff]  ;;  %v6474_v1 = vld [vmem:[%s12629_s3 + $0x158] sm:$0xff] }
 0x776   :  { %v11660_v5 = vpop.f32.mrb[106].mxu0  ;;  %v5517_v62 = vadd.f32 %v8084_v60, %v11655_v55  ;;  %v6484_v60 = vld [vmem:[%s12629_s3 + $0x1a8] sm:$0xff] }
 0x777   :  { %v11662_v30 = vpop.f32.mrb[107].mxu0 }
 0x778   :  { %v5662_v4 = vadd.f32 %v11602_v43, %v5517_v62  ;;  %v6447_v43 = vld [vmem:[%s12629_s3 + $0x80] sm:$0xff] }
 0x779   :  { %v8787_v8 = vpack.c.bf16 %v6448_v6, %v6447_v43  ;;  %v6437_v43 = vld [vmem:[%s12629_s3 + $0x30] sm:$0xff]  ;;  %v6486_v6 = vld [vmem:[%s12629_s3 + $0x1b8] sm:$0xff] }
 0x77a   :  { %v5736_v0 = vmax.f32 %v5662_v4, 0.0  ;;  %v8827_v4 = vpack.c.bf16 %v6484_v60, %v6483_v41  ;;  %v6459_v60 = vld [vmem:[%s12629_s3 + $0xe0] sm:$0xff] }
 0x77b   :  { %v7598_v32 = vld.sshfl [vmem:[#allocation4 + $0x2] sm:$0x3 pattern:$0x76325410]  ;;  %v5767_v28 = vld [vmem:[#allocation4] sm:$0x3]  ;;  %8788 = vmatprep.subr.bf16.mxu0 %v8787_v8 }
 0x77c   :  { %5752 = vst.msk [vmem:[#allocation4 + $0x8] sm:$0xff] %vm23_vm0, %v5736_v0  ;;  %5779 = vrot.lane.b32.xlu0 %v7598_v32, %s9078_s17  ;;  %v7599_v58 = vld.sshfl [vmem:[#allocation4 + $0x4] sm:$0x3 pattern:$0x76325410]  ;;  %8790 = vmatpush3.bf16.msra.mxu0 %v8789_v36  ;;  %v6468_v32 = vld [vmem:[%s12629_s3 + $0x128] sm:$0xff] }
 0x77d   :  { %5769 = vst.msk [vmem:[#allocation5] sm:$0x3] %vm5768_vm5, %v5767_v28  ;;  %v7600_v37 = vld.sshfl [vmem:[#allocation4 + $0x6] sm:$0x3 pattern:$0x76325410]  ;;  %8828 = vmatprep.subr.bf16.mxu1 %v8827_v4 }
 0x77e   :  { %v6467_v0 = vld [vmem:[%s12629_s3 + $0x120] sm:$0xff]  ;;  %v6469_v8 = vld [vmem:[%s12629_s3 + $0x130] sm:$0xff] }
 0x77f   :  { %v8829_v28 = vpack.c.bf16 %v6468_v32, %v6467_v0  ;;  %v8833_v36 = vpack.c.bf16 %v6470_v13, %v6469_v8  ;;  %v6460_v32 = vld [vmem:[%s12629_s3 + $0xe8] sm:$0xff]  ;;  %v6462_v13 = vld [vmem:[%s12629_s3 + $0xf8] sm:$0xff] }
 0x780   :  { %5793 = vrot.lane.b32.xlu0 %v7599_v58, %s9079_s18  ;;  %v6453_v58 = vld [vmem:[%s12629_s3 + $0xb0] sm:$0xff] }
 0x781   :  { %8830 = vmatpush3.bf16.msra.mxu1 %v8829_v28  ;;  %v6443_v28 = vld [vmem:[%s12629_s3 + $0x60] sm:$0xff] }
 0x782   :  { %v8085_v15 = vpop.f32.mrb[100].mxu1 }
 0x783   :  { %v8086_v49 = vpop.f32.mrb[101].mxu1  ;;  %v7601_v19 = vld.sshfl [vmem:[#allocation4 + $0xa] sm:$0x3 pattern:$0x76325410] }
 0x784   :  { %v8087_v33 = vadd.f32 %v8086_v49, %v8085_v15  ;;  %5807 = vrot.lane.b32.xlu0 %v7600_v37, %s9080_s21  ;;  %5823 = vrot.lane.b32.xlu1 %v7601_v19, %s9078_s17  ;;  %v5812_v9 = vld [vmem:[#allocation4 + $0x8] sm:$0x3]  ;;  %v7602_v10 = vld.sshfl [vmem:[#allocation4 + $0xc] sm:$0x3 pattern:$0x76325410] }
 0x785   :  { %5813 = vst.msk [vmem:[#allocation5 + $0x2] sm:$0x3] %vm5768_vm5, %v5812_v9  ;;  %v7603_v52 = vld.sshfl [vmem:[#allocation4 + $0xe] sm:$0x3 pattern:$0x76325410] }
 0x786   :  { %v5522_v44 = vadd.f32 %v8087_v33, %v11655_v55  ;;  %v6454_v15 = vld [vmem:[%s12629_s3 + $0xb8] sm:$0xff] }
 0x787   :  { %v8799_v19 = vpack.c.bf16 %v6454_v15, %v6453_v58  ;;  %v6438_v33 = vld [vmem:[%s12629_s3 + $0x38] sm:$0xff]  ;;  %v8811_v15 = vpack.c.bf16 %v6460_v32, %v6459_v60 }
 0x788   :  { %v5667_v31 = vadd.f32 %v11621_v23, %v5522_v44  ;;  %5836 = vrot.lane.b32.xlu1 %v7602_v10, %s9079_s18  ;;  %v8791_v23 = vpack.c.bf16 %v6450_v34, %v6449_v22  ;;  %v8801_v10 = vpack.c.bf16 %v6438_v33, %v6437_v43  ;;  %v8803_v22 = vpack.c.bf16 %v6456_v63, %v6455_v3  ;;  %v6492_v43 = vld [vmem:[%s12629_s3 + $0x1e8] sm:$0xff]  ;;  %v6493_v3 = vld [vmem:[%s12629_s3 + $0x1f0] sm:$0xff]  ;;  %v6494_v63 = vld [vmem:[%s12629_s3 + $0x1f8] sm:$0xff] }
 0x78a   :  { %v5737_v35 = vmax.f32 %v5667_v31, 0.0  ;;  %v8088_v14 = vpop.f32.mrb[102].mxu1  ;;  %8792 = vmatprep.subr.bf16.mxu0 %v8791_v23  ;;  %v6439_v31 = vld [vmem:[%s12629_s3 + $0x40] sm:$0xff]  ;;  %v8835_v23 = vpack.c.bf16 %v6488_v45, %v6487_v16 }
 0x78b   :  { %v8089_v47 = vpop.f32.mrb[103].mxu1  ;;  %8794 = vmatpush3.bf16.msra.mxu0 %v8793_v29  ;;  %v8805_v34 = vpack.c.bf16 %v6440_v42, %v6439_v31  ;;  %v6472_v29 = vld [vmem:[%s12629_s3 + $0x148] sm:$0xff]  ;;  %v8847_v31 = vpack.c.bf16 %v6494_v63, %v6493_v3  ;;  %v6477_v42 = vld [vmem:[%s12629_s3 + $0x170] sm:$0xff] }
 0x78c   :  { %5753 = vst.msk [vmem:[#allocation4 + $0x10] sm:$0xff] %vm23_vm0, %v5737_v35  ;;  %v8090_v53 = vadd.f32 %v8089_v47, %v8088_v14  ;;  %5849 = vrot.lane.b32.xlu1 %v7603_v52, %s9080_s21  ;;  %8796 = vmatprep.subr.bf16.mxu0 %v8795_v61  ;;  %v6471_v52 = vld [vmem:[%s12629_s3 + $0x140] sm:$0xff]  ;;  %v8807_v14 = vpack.c.bf16 %v6458_v24, %v6457_v21  ;;  %v6473_v61 = vld [vmem:[%s12629_s3 + $0x150] sm:$0xff] }
 0x78d   :  { %v8837_v35 = vpack.c.bf16 %v6472_v29, %v6471_v52  ;;  %v8809_v47 = vpack.c.bf16 %v6442_v51, %v6441_v59  ;;  %v8841_v41 = vpack.c.bf16 %v6474_v1, %v6473_v61  ;;  %v6511_v51 = vld [vmem:[%s12629_s3 + $0x280] sm:$0xff] }
 0x78e   :  { %v11732_v46 = vpop.f32.mrb[108].mxu0  ;;  %v5527_v62 = vadd.f32 %v8090_v53, %v11655_v55  ;;  %v8839_v53 = vpack.c.bf16 %v6490_v11, %v6489_v48  ;;  %v6544_v48 = vld [vmem:[%s12629_s3 + $0x388] sm:$0xff] }
 0x78f   :  { %v11740_v2 = vpop.f32.mrb[109].mxu0  ;;  %8798 = vmatpush3.bf16.msra.mxu0 %v8797_v20 }
 0x790   :  { %v5672_v37 = vadd.f32 %v11618_v18, %v5527_v62  ;;  %v6485_v18 = vld [vmem:[%s12629_s3 + $0x1b0] sm:$0xff]  ;;  %8800 = vmatprep.subr.bf16.mxu0 %v8799_v19  ;;  %v6491_v19 = vld [vmem:[%s12629_s3 + $0x1e0] sm:$0xff] }
 0x791   :  { %v8831_v44 = vpack.c.bf16 %v6486_v6, %v6485_v18  ;;  %v6475_v18 = vld [vmem:[%s12629_s3 + $0x160] sm:$0xff]  ;;  %v6476_v6 = vld [vmem:[%s12629_s3 + $0x168] sm:$0xff] }
 0x792   :  { %v11762_v49 = vpop.f32.mrb[110].mxu0  ;;  %v5738_v50 = vmax.f32 %v5672_v37, 0.0  ;;  %v6444_v37 = vld [vmem:[%s12629_s3 + $0x68] sm:$0xff]  ;;  %v8845_v8 = vpack.c.bf16 %v6476_v6, %v6475_v18 }
 0x793   :  { %v11770_v9 = vpop.f32.mrb[111].mxu0  ;;  %v7604_v39 = vld.sshfl [vmem:[#allocation4 + $0x12] sm:$0x3 pattern:$0x76325410]  ;;  %8832 = vmatprep.subr.bf16.mxu1 %v8831_v44  ;;  %8802 = vmatpush3.bf16.msra.mxu0 %v8801_v10  ;;  %v8813_v33 = vpack.c.bf16 %v6444_v37, %v6443_v28  ;;  %v8843_v10 = vpack.c.bf16 %v6492_v43, %v6491_v19 }
 0x794   :  { %v5853_v40 = vld [vmem:[#allocation4 + $0x10] sm:$0x3]  ;;  %5754 = vst.msk [vmem:[#allocation4 + $0x18] sm:$0xff] %vm23_vm0, %v5738_v50  ;;  %5864 = vrot.lane.b32.xlu0 %v7604_v39, %s9078_s17  ;;  %8834 = vmatpush3.bf16.msra.mxu1 %v8833_v36 }
 0x795   :  { %5854 = vst.msk [vmem:[#allocation5 + $0x4] sm:$0x3] %vm5768_vm5, %v5853_v40  ;;  %v7605_v57 = vld.sshfl [vmem:[#allocation4 + $0x14] sm:$0x3 pattern:$0x76325410]  ;;  %8804 = vmatprep.subr.bf16.mxu0 %v8803_v22  ;;  %8836 = vmatprep.subr.bf16.mxu1 %v8835_v23 }
 0x796   :  { %v7606_v27 = vld.sshfl [vmem:[#allocation4 + $0x16] sm:$0x3 pattern:$0x76325410]  ;;  %v6446_v40 = vld [vmem:[%s12629_s3 + $0x78] sm:$0xff] }
 0x797   :  { %8806 = vmatpush3.bf16.msra.mxu0 %v8805_v34  ;;  %v6461_v50 = vld [vmem:[%s12629_s3 + $0xf0] sm:$0xff]  ;;  %v6478_v34 = vld [vmem:[%s12629_s3 + $0x178] sm:$0xff] }
 0x798   :  { %5877 = vrot.lane.b32.xlu0 %v7605_v57, %s9079_s18  ;;  %8838 = vmatpush3.bf16.msra.mxu1 %v8837_v35  ;;  %v6445_v39 = vld [vmem:[%s12629_s3 + $0x70] sm:$0xff]  ;;  %v8815_v36 = vpack.c.bf16 %v6462_v13, %v6461_v50  ;;  %v8849_v52 = vpack.c.bf16 %v6478_v34, %v6477_v42 }
 0x799   :  { %8808 = vmatprep.subr.bf16.mxu0 %v8807_v14  ;;  %8840 = vmatprep.subr.bf16.mxu1 %v8839_v53 }
 0x79a   :  { %v8091_v38 = vpop.f32.mrb[104].mxu1 }
 0x79b   :  { %v8092_v25 = vpop.f32.mrb[105].mxu1  ;;  %v7607_v20 = vld.sshfl [vmem:[#allocation4 + $0x1a] sm:$0x3 pattern:$0x76325410]  ;;  %8810 = vmatpush3.bf16.msra.mxu0 %v8809_v47  ;;  %v6543_v47 = vld [vmem:[%s12629_s3 + $0x380] sm:$0xff] }
 0x79c   :  { %v8093_v62 = vadd.f32 %v8092_v25, %v8091_v38  ;;  %5890 = vrot.lane.b32.xlu0 %v7606_v27, %s9080_s21  ;;  %5905 = vrot.lane.b32.xlu1 %v7607_v20, %s9078_s17  ;;  %v5894_v4 = vld [vmem:[#allocation4 + $0x18] sm:$0x3]  ;;  %v7608_v0 = vld.sshfl [vmem:[#allocation4 + $0x1c] sm:$0x3 pattern:$0x76325410]  ;;  %v8883_v11 = vpack.c.bf16 %v6544_v48, %v6543_v47 }
 0x79d   :  { %5895 = vst.msk [vmem:[#allocation5 + $0x6] sm:$0x3] %vm5768_vm5, %v5894_v4  ;;  %8842 = vmatpush3.bf16.msra.mxu1 %v8841_v41  ;;  %8812 = vmatprep.subr.bf16.mxu0 %v8811_v15  ;;  %v7609_v45 = vld.sshfl [vmem:[#allocation4 + $0x1e] sm:$0x3 pattern:$0x76325410] }
 0x79e   :  { %v5532_v58 = vadd.f32 %v8093_v62, %v11655_v55  ;;  %8844 = vmatprep.subr.bf16.mxu1 %v8843_v10  ;;  %v6512_v27 = vld [vmem:[%s12629_s3 + $0x288] sm:$0xff] }
 0x79f   :  { %8814 = vmatpush3.bf16.msra.mxu0 %v8813_v33 }
 0x7a0   :  { %v5677_v44 = vadd.f32 %v11633_v12, %v5532_v58  ;;  %5918 = vrot.lane.b32.xlu1 %v7608_v0, %s9079_s18  ;;  %v8817_v12 = vpack.c.bf16 %v6446_v40, %v6445_v39  ;;  %8816 = vmatprep.subr.bf16.mxu0 %v8815_v36 }
 0x7a1   :  { %8846 = vmatpush3.bf16.msra.mxu1 %v8845_v8 }
 0x7a2   :  { %v5739_v57 = vmax.f32 %v5677_v44, 0.0  ;;  %v8094_v22 = vpop.f32.mrb[106].mxu1  ;;  %8848 = vmatprep.subr.bf16.mxu1 %v8847_v31 }
 0x7a3   :  { %v8095_v16 = vpop.f32.mrb[107].mxu1  ;;  %8818 = vmatpush3.bf16.msra.mxu0 %v8817_v12 }
 0x7a4   :  { %5755 = vst.msk [vmem:[#allocation4 + $0x20] sm:$0xff] %vm23_vm0, %v5739_v57  ;;  %v8096_v23 = vadd.f32 %v8095_v16, %v8094_v22  ;;  %5931 = vrot.lane.b32.xlu1 %v7609_v45, %s9080_s21 }
 0x7a5   :  { %8850 = vmatpush3.bf16.msra.mxu1 %v8849_v52 }
 0x7a6   :  { %v5537_v29 = vadd.f32 %v8096_v23, %v11655_v55  ;;  %8884 = vmatprep.subr.bf16.mxu1 %v8883_v11 }
 0x7a8   :  { %v5682_v21 = vadd.f32 %v11631_v26, %v5537_v29  ;;  %v8851_v26 = vpack.c.bf16 %v6512_v27, %v6511_v51 }
 0x7aa   :  { %v5740_v24 = vmax.f32 %v5682_v21, 0.0  ;;  %8852 = vmatprep.subr.bf16.mxu0 %v8851_v26 }
 0x7ab   :  { %v7610_v35 = vld.sshfl [vmem:[#allocation4 + $0x22] sm:$0x3 pattern:$0x76325410]  ;;  %v5935_v14 = vld [vmem:[#allocation4 + $0x20] sm:$0x3] }
 0x7ac   :  { %5756 = vst.msk [vmem:[#allocation4 + $0x28] sm:$0xff] %vm23_vm0, %v5740_v24  ;;  %5946 = vrot.lane.b32.xlu0 %v7610_v35, %s9078_s17  ;;  %v7611_v59 = vld.sshfl [vmem:[#allocation4 + $0x24] sm:$0x3 pattern:$0x76325410] }
 0x7ad   :  { %5936 = vst.msk [vmem:[#allocation5 + $0x8] sm:$0x3] %vm5768_vm5, %v5935_v14  ;;  %v7612_v53 = vld.sshfl [vmem:[#allocation4 + $0x26] sm:$0x3 pattern:$0x76325410] }
 0x7b0   :  { %5959 = vrot.lane.b32.xlu0 %v7611_v59, %s9079_s18 }
 0x7b2   :  { %v8097_v38 = vpop.f32.mrb[108].mxu1 }
 0x7b3   :  { %v8098_v61 = vpop.f32.mrb[109].mxu1  ;;  %v7613_v1 = vld.sshfl [vmem:[#allocation4 + $0x2a] sm:$0x3 pattern:$0x76325410] }
 0x7b4   :  { %v8099_v25 = vadd.f32 %v8098_v61, %v8097_v38  ;;  %5972 = vrot.lane.b32.xlu0 %v7612_v53, %s9080_s21  ;;  %5987 = vrot.lane.b32.xlu1 %v7613_v1, %s9078_s17  ;;  %v5976_v20 = vld [vmem:[#allocation4 + $0x28] sm:$0x3]  ;;  %v7614_v60 = vld.sshfl [vmem:[#allocation4 + $0x2c] sm:$0x3 pattern:$0x76325410] }
 0x7b5   :  { %5977 = vst.msk [vmem:[#allocation5 + $0xa] sm:$0x3] %vm5768_vm5, %v5976_v20  ;;  %v7615_v28 = vld.sshfl [vmem:[#allocation4 + $0x2e] sm:$0x3 pattern:$0x76325410] }
 0x7b6   :  { %v5542_v41 = vadd.f32 %v8099_v25, %v11655_v55 }
 0x7b8   :  { %v5687_v62 = vadd.f32 %v11646_v7, %v5542_v41  ;;  %6000 = vrot.lane.b32.xlu1 %v7614_v60, %s9079_s18 }
 0x7ba   :  { %v5741_v4 = vmax.f32 %v5687_v62, 0.0  ;;  %v8100_v0 = vpop.f32.mrb[110].mxu1 }
 0x7bb   :  { %v8101_v32 = vpop.f32.mrb[111].mxu1 }
 0x7bc   :  { %5757 = vst.msk [vmem:[#allocation4 + $0x30] sm:$0xff] %vm23_vm0, %v5741_v4  ;;  %v8102_v58 = vadd.f32 %v8101_v32, %v8100_v0  ;;  %6013 = vrot.lane.b32.xlu1 %v7615_v28, %s9080_s21 }
 0x7be   :  { %v5547_v15 = vadd.f32 %v8102_v58, %v11655_v55 }
 0x7c0   :  { %v5692_v37 = vadd.f32 %v11644_v17, %v5547_v15 }
 0x7c2   :  { %v5742_v19 = vmax.f32 %v5692_v37, 0.0 }
 0x7c3   :  { %v7616_v43 = vld.sshfl [vmem:[#allocation4 + $0x32] sm:$0x3 pattern:$0x76325410]  ;;  %v6017_v33 = vld [vmem:[#allocation4 + $0x30] sm:$0x3] }
 0x7c4   :  { %5758 = vst.msk [vmem:[#allocation4 + $0x38] sm:$0xff] %vm23_vm0, %v5742_v19  ;;  %6028 = vrot.lane.b32.xlu0 %v7616_v43, %s9078_s17  ;;  %v7617_v7 = vld.sshfl [vmem:[#allocation4 + $0x34] sm:$0x3 pattern:$0x76325410] }
 0x7c5   :  { %6018 = vst.msk [vmem:[#allocation5 + $0xc] sm:$0x3] %vm5768_vm5, %v6017_v33  ;;  %v7618_v10 = vld.sshfl [vmem:[#allocation4 + $0x36] sm:$0x3 pattern:$0x76325410] }
 0x7c8   :  { %6041 = vrot.lane.b32.xlu0 %v7617_v7, %s9079_s18 }
 0x7cb   :  { %v7619_v18 = vld.sshfl [vmem:[#allocation4 + $0x3a] sm:$0x3 pattern:$0x76325410]  ;;  %v8103_v6 = vpop.f32.mrb[112].mxu1 }
 0x7cc   :  { %6054 = vrot.lane.b32.xlu0 %v7618_v10, %s9080_s21  ;;  %6069 = vrot.lane.b32.xlu1 %v7619_v18, %s9078_s17  ;;  %v8104_v17 = vpop.f32.mrb[113].mxu1  ;;  %v6058_v44 = vld [vmem:[#allocation4 + $0x38] sm:$0x3] }
 0x7cd   :  { %v8105_v50 = vadd.f32 %v8104_v17, %v8103_v6  ;;  %6059 = vst.msk [vmem:[#allocation5 + $0xe] sm:$0x3] %vm5768_vm5, %v6058_v44  ;;  %v7620_v13 = vld.sshfl [vmem:[#allocation4 + $0x3c] sm:$0x3 pattern:$0x76325410] }
 0x7ce   :  { %v7621_v36 = vld.sshfl [vmem:[#allocation4 + $0x3e] sm:$0x3 pattern:$0x76325410] }
 0x7cf   :  { %v5552_v8 = vadd.f32 %v8105_v50, %v11655_v55 }
 0x7d0   :  { %6082 = vrot.lane.b32.xlu1 %v7620_v13, %s9079_s18 }
 0x7d1   :  { %v5697_v39 = vadd.f32 %v11650_v54, %v5552_v8 }
 0x7d3   :  { %v5743_v40 = vmax.f32 %v5697_v39, 0.0  ;;  %v8106_v12 = vpop.f32.mrb[114].mxu1 }
 0x7d4   :  { %6095 = vrot.lane.b32.xlu1 %v7621_v36, %s9080_s21  ;;  %v8107_v3 = vpop.f32.mrb[115].mxu1 }
 0x7d5   :  { %5759 = vst.msk [vmem:[#allocation4 + $0x40] sm:$0xff] %vm23_vm0, %v5743_v40  ;;  %v8108_v63 = vadd.f32 %v8107_v3, %v8106_v12 }
 0x7d7   :  { %v5557_v57 = vadd.f32 %v8108_v63, %v11655_v55 }
 0x7d9   :  { %v5702_v22 = vadd.f32 %v11648_v56, %v5557_v57 }
 0x7db   :  { %v5744_v31 = vmax.f32 %v5702_v22, 0.0  ;;  %v6702_v22 = vlaneseq }
 0x7dc   :  { %v7622_v42 = vld.sshfl [vmem:[#allocation4 + $0x42] sm:$0x3 pattern:$0x76325410]  ;;  %v6099_v34 = vld [vmem:[#allocation4 + $0x40] sm:$0x3] }
 0x7dd   :  { %5760 = vst.msk [vmem:[#allocation4 + $0x48] sm:$0xff] %vm23_vm0, %v5744_v31  ;;  %6110 = vrot.lane.b32.xlu0 %v7622_v42, %s9078_s17  ;;  %v7623_v54 = vld.sshfl [vmem:[#allocation4 + $0x44] sm:$0x3 pattern:$0x76325410] }
 0x7de   :  { %6100 = vst.msk [vmem:[#allocation5 + $0x10] sm:$0x3] %vm5768_vm5, %v6099_v34  ;;  %v7624_v45 = vld.sshfl [vmem:[#allocation4 + $0x46] sm:$0x3 pattern:$0x76325410] }
 0x7df   :  { %v9081_v34 = vmov 1983009808  }
 0x7e1   :  { %6123 = vrot.lane.b32.xlu0 %v7623_v54, %s9079_s18  ;;  %v6700_v54 = vunpack.c.l.s4 %v9081_v34  ;;  %v6549_v34 = vld [vmem:[%s12629_s3 + $0x3b0] sm:$0xff] }
 0x7e3   :  { %v8109_v16 = vpop.f32.mrb[116].mxu1 }
 0x7e4   :  { %v8110_v52 = vpop.f32.mrb[117].mxu1  ;;  %v7625_v23 = vld.sshfl [vmem:[#allocation4 + $0x4a] sm:$0x3 pattern:$0x76325410] }
 0x7e5   :  { %v8111_v29 = vadd.f32 %v8110_v52, %v8109_v16  ;;  %6151 = vrot.lane.b32.xlu1 %v7625_v23, %s9078_s17  ;;  %6136 = vrot.lane.b32.xlu0 %v7624_v45, %s9080_s21  ;;  %v6140_v56 = vld [vmem:[#allocation4 + $0x48] sm:$0x3]  ;;  %v7626_v24 = vld.sshfl [vmem:[#allocation4 + $0x4c] sm:$0x3 pattern:$0x76325410] }
 0x7e6   :  { %6141 = vst.msk [vmem:[#allocation5 + $0x12] sm:$0x3] %vm5768_vm5, %v6140_v56  ;;  %v7627_v27 = vld.sshfl [vmem:[#allocation4 + $0x4e] sm:$0x3 pattern:$0x76325410] }
 0x7e7   :  { %v5562_v21 = vadd.f32 %v8111_v29, %v11655_v55 }
 0x7e9   :  { %v5707_v35 = vadd.f32 %v11662_v30, %v5562_v21  ;;  %6164 = vrot.lane.b32.xlu1 %v7626_v24, %s9079_s18  ;;  %v6701_v21 = vunpack.c.0.s8 %v6700_v54  ;;  %v6550_v54 = vld [vmem:[%s12629_s3 + $0x3b8] sm:$0xff] }
 0x7eb   :  { %v5745_v14 = vmax.f32 %v5707_v35, 0.0  ;;  %v8112_v59 = vpop.f32.mrb[118].mxu1 }
 0x7ec   :  { %v8113_v51 = vpop.f32.mrb[119].mxu1 }
 0x7ed   :  { %5761 = vst.msk [vmem:[#allocation4 + $0x50] sm:$0xff] %vm23_vm0, %v5745_v14  ;;  %v8114_v26 = vadd.f32 %v8113_v51, %v8112_v59  ;;  %6177 = vrot.lane.b32.xlu1 %v7627_v27, %s9080_s21 }
 0x7ee   :  { %v5780_v47 = vpop.permute.xlu0 %5779 }
 0x7ef   :  { %v5567_v48 = vadd.f32 %v8114_v26, %v11655_v55  ;;  %5783 = vst.msk [vmem:[#allocation5] sm:$0x3] %vm5782_vm6, %v5780_v47  ;;  %v6495_v47 = vld [vmem:[%s12629_s3 + $0x200] sm:$0xff] }
 0x7f1   :  { %v5712_v30 = vadd.f32 %v11660_v5, %v5567_v48  ;;  %v6496_v48 = vld [vmem:[%s12629_s3 + $0x208] sm:$0xff] }
 0x7f2   :  { %v5794_v11 = vpop.permute.xlu0 %5793 }
 0x7f3   :  { %v5746_v38 = vmax.f32 %v5712_v30, 0.0  ;;  %5797 = vst.msk [vmem:[#allocation5] sm:$0x3] %vm5796_vm7, %v5794_v11 }
 0x7f4   :  { %v7628_v53 = vld.sshfl [vmem:[#allocation4 + $0x52] sm:$0x3 pattern:$0x76325410]  ;;  %v6181_v61 = vld [vmem:[#allocation4 + $0x50] sm:$0x3] }
 0x7f5   :  { %5762 = vst.msk [vmem:[#allocation4 + $0x58] sm:$0xff] %vm23_vm0, %v5746_v38  ;;  %6192 = vrot.lane.b32.xlu0 %v7628_v53, %s9078_s17  ;;  %v7629_v5 = vld.sshfl [vmem:[#allocation4 + $0x54] sm:$0x3 pattern:$0x76325410]  ;;  %v6527_v53 = vld [vmem:[%s12629_s3 + $0x300] sm:$0xff] }
 0x7f6   :  { %6182 = vst.msk [vmem:[#allocation5 + $0x14] sm:$0x3] %vm5768_vm5, %v6181_v61  ;;  %v5808_v1 = vpop.permute.xlu0 %5807  ;;  %v5824_v25 = vpop.permute.xlu1 %5823  ;;  %v7630_v41 = vld.sshfl [vmem:[#allocation4 + $0x56] sm:$0x3 pattern:$0x76325410] }
 0x7f7   :  { %5811 = vst.msk [vmem:[#allocation5] sm:$0x3] %vm5810_vm8, %v5808_v1  ;;  %v6528_v61 = vld [vmem:[%s12629_s3 + $0x308] sm:$0xff]  ;;  %v6513_v1 = vld [vmem:[%s12629_s3 + $0x290] sm:$0xff] }
 0x7f8   :  { %5826 = vst.msk [vmem:[#allocation5 + $0x2] sm:$0x3] %vm5782_vm6, %v5824_v25  ;;  %v6514_v25 = vld [vmem:[%s12629_s3 + $0x298] sm:$0xff] }
 0x7f9   :  { %6205 = vrot.lane.b32.xlu0 %v7629_v5, %s9079_s18  ;;  %v6497_v5 = vld [vmem:[%s12629_s3 + $0x210] sm:$0xff] }
 0x7fa   :  { %v5837_v20 = vpop.permute.xlu1 %5836 }
 0x7fb   :  { %5839 = vst.msk [vmem:[#allocation5 + $0x2] sm:$0x3] %vm5796_vm7, %v5837_v20 }
 0x7fc   :  { %v7631_v60 = vld.sshfl [vmem:[#allocation4 + $0x5a] sm:$0x3 pattern:$0x76325410]  ;;  %v6222_v62 = vld [vmem:[#allocation4 + $0x58] sm:$0x3] }
 0x7fd   :  { %6233 = vrot.lane.b32.xlu1 %v7631_v60, %s9078_s17  ;;  %6218 = vrot.lane.b32.xlu0 %v7630_v41, %s9080_s21  ;;  %6223 = vst.msk [vmem:[#allocation5 + $0x16] sm:$0x3] %vm5768_vm5, %v6222_v62  ;;  %v7632_v58 = vld.sshfl [vmem:[#allocation4 + $0x5c] sm:$0x3 pattern:$0x76325410]  ;;  %v8853_v62 = vpack.c.bf16 %v6496_v48, %v6495_v47 }
 0x7fe   :  { %v5850_v4 = vpop.permute.xlu1 %5849  ;;  %v7633_v19 = vld.sshfl [vmem:[#allocation4 + $0x5e] sm:$0x3 pattern:$0x76325410]  ;;  %v6503_v47 = vld [vmem:[%s12629_s3 + $0x240] sm:$0xff]  ;;  %v6504_v48 = vld [vmem:[%s12629_s3 + $0x248] sm:$0xff] }
 0x7ff   :  { %v8115_v0 = vpop.f32.mrb[120].mxu1  ;;  %5852 = vst.msk [vmem:[#allocation5 + $0x2] sm:$0x3] %vm5810_vm8, %v5850_v4  ;;  %v6545_v4 = vld [vmem:[%s12629_s3 + $0x390] sm:$0xff] }
 0x800   :  { %v8116_v32 = vpop.f32.mrb[121].mxu1 }
 0x801   :  { %v8117_v28 = vadd.f32 %v8116_v32, %v8115_v0  ;;  %6246 = vrot.lane.b32.xlu1 %v7632_v58, %s9079_s18  ;;  %v6546_v0 = vld [vmem:[%s12629_s3 + $0x398] sm:$0xff]  ;;  %v6515_v58 = vld [vmem:[%s12629_s3 + $0x2a0] sm:$0xff] }
 0x803   :  { %v5572_v15 = vadd.f32 %v8117_v28, %v11655_v55  ;;  %v6498_v28 = vld [vmem:[%s12629_s3 + $0x218] sm:$0xff] }
 0x805   :  { %v5717_v37 = vadd.f32 %v11740_v2, %v5572_v15  ;;  %6259 = vrot.lane.b32.xlu1 %v7633_v19, %s9080_s21  ;;  %v6516_v15 = vld [vmem:[%s12629_s3 + $0x2a8] sm:$0xff] }
 0x806   :  { %v5865_v33 = vpop.permute.xlu0 %5864 }
 0x807   :  { %v5747_v43 = vmax.f32 %v5717_v37, 0.0  ;;  %v8118_v7 = vpop.f32.mrb[122].mxu1  ;;  %5867 = vst.msk [vmem:[#allocation5 + $0x4] sm:$0x3] %vm5782_vm6, %v5865_v33  ;;  %v8855_v33 = vpack.c.bf16 %v6514_v25, %v6513_v1  ;;  %v6536_v1 = vld [vmem:[%s12629_s3 + $0x348] sm:$0xff]  ;;  %v8869_v25 = vpack.c.bf16 %v6504_v48, %v6503_v47  ;;  %v6578_v47 = vld [vmem:[%s12629_s3 + $0x498] sm:$0xff] }
 0x808   :  { %v8119_v10 = vpop.f32.mrb[123].mxu1  ;;  %v6591_v48 = vld [vmem:[%s12629_s3 + $0x500] sm:$0xff] }
 0x809   :  { %5763 = vst.msk [vmem:[#allocation4 + $0x60] sm:$0xff] %vm23_vm0, %v5747_v43  ;;  %v8120_v18 = vadd.f32 %v8119_v10, %v8118_v7  ;;  %v8885_v43 = vpack.c.bf16 %v6528_v61, %v6527_v53  ;;  %v8887_v10 = vpack.c.bf16 %v6546_v0, %v6545_v4  ;;  %v6535_v61 = vld [vmem:[%s12629_s3 + $0x340] sm:$0xff] }
 0x80a   :  { %v5878_v17 = vpop.permute.xlu0 %5877  ;;  %v8901_v4 = vpack.c.bf16 %v6536_v1, %v6535_v61  ;;  %v6523_v0 = vld [vmem:[%s12629_s3 + $0x2e0] sm:$0xff]  ;;  %v6609_v61 = vld [vmem:[%s12629_s3 + $0x590] sm:$0xff]  ;;  %v6610_v1 = vld [vmem:[%s12629_s3 + $0x598] sm:$0xff] }
 0x80b   :  { %v5577_v6 = vadd.f32 %v8120_v18, %v11655_v55  ;;  %5880 = vst.msk [vmem:[#allocation5 + $0x4] sm:$0x3] %vm5796_vm7, %v5878_v17  ;;  %v6529_v18 = vld [vmem:[%s12629_s3 + $0x310] sm:$0xff] }
 0x80d   :  { %v5722_v50 = vadd.f32 %v11732_v46, %v5577_v6  ;;  %v8121_v2 = vpop.f32.mrb[124].mxu1  ;;  %v6530_v6 = vld [vmem:[%s12629_s3 + $0x318] sm:$0xff] }
 0x80e   :  { %v8122_v44 = vpop.f32.mrb[125].mxu1  ;;  %v5891_v39 = vpop.permute.xlu0 %5890 }
 0x80f   :  { %v5748_v8 = vmax.f32 %v5722_v50, 0.0  ;;  %v8123_v13 = vadd.f32 %v8122_v44, %v8121_v2  ;;  %v5906_v40 = vpop.permute.xlu1 %5905  ;;  %5893 = vst.msk [vmem:[#allocation5 + $0x4] sm:$0x3] %vm5810_vm8, %v5891_v39  ;;  %v8857_v50 = vpack.c.bf16 %v6498_v28, %v6497_v5  ;;  %v6547_v2 = vld [vmem:[%s12629_s3 + $0x3a0] sm:$0xff]  ;;  %v6548_v44 = vld [vmem:[%s12629_s3 + $0x3a8] sm:$0xff]  ;;  %v8859_v39 = vpack.c.bf16 %v6516_v15, %v6515_v58  ;;  %v6553_v5 = vld [vmem:[%s12629_s3 + $0x3d0] sm:$0xff] }
 0x810   :  { %5908 = vst.msk [vmem:[#allocation5 + $0x6] sm:$0x3] %vm5782_vm6, %v5906_v40  ;;  %v7634_v36 = vld.sshfl [vmem:[#allocation4 + $0x62] sm:$0x3 pattern:$0x76325410] }
 0x811   :  { %v6263_v12 = vld [vmem:[#allocation4 + $0x60] sm:$0x3]  ;;  %5764 = vst.msk [vmem:[#allocation4 + $0x68] sm:$0xff] %vm23_vm0, %v5748_v8  ;;  %6274 = vrot.lane.b32.xlu0 %v7634_v36, %s9078_s17  ;;  %v5582_v3 = vadd.f32 %v8123_v13, %v11655_v55  ;;  %v6500_v36 = vld [vmem:[%s12629_s3 + $0x228] sm:$0xff]  ;;  %v6537_v58 = vld [vmem:[%s12629_s3 + $0x350] sm:$0xff] }
 0x812   :  { %6264 = vst.msk [vmem:[#allocation5 + $0x18] sm:$0x3] %vm5768_vm5, %v6263_v12  ;;  %v7635_v42 = vld.sshfl [vmem:[#allocation4 + $0x64] sm:$0x3 pattern:$0x76325410] }
 0x813   :  { %v5727_v46 = vadd.f32 %v11770_v9, %v5582_v3  ;;  %v5919_v63 = vpop.permute.xlu1 %5918  ;;  %v8124_v57 = vpop.f32.mrb[126].mxu1  ;;  %v7636_v29 = vld.sshfl [vmem:[#allocation4 + $0x66] sm:$0x3 pattern:$0x76325410]  ;;  %v6703_v9 = vshrl.u32 %v6702_v22, 7  ;;  %v8889_v3 = vpack.c.bf16 %v6530_v6, %v6529_v18 }
 0x814   :  { %5921 = vst.msk [vmem:[#allocation5 + $0x6] sm:$0x3] %vm5796_vm7, %v5919_v63  ;;  %v8125_v31 = vpop.f32.mrb[127].mxu1  ;;  %v6499_v40 = vld [vmem:[%s12629_s3 + $0x220] sm:$0xff]  ;;  %v6518_v63 = vld [vmem:[%s12629_s3 + $0x2b8] sm:$0xff]  ;;  %v6508_v18 = vld [vmem:[%s12629_s3 + $0x268] sm:$0xff] }
 0x815   :  { %v5749_v16 = vmax.f32 %v5727_v46, 0.0  ;;  %v8126_v45 = vadd.f32 %v8125_v31, %v8124_v57  ;;  %6287 = vrot.lane.b32.xlu0 %v7635_v42, %s9079_s18  ;;  %v11986_v51 = vsub.s32 %v6701_v21, %v6703_v9  ;;  %v6517_v46 = vld [vmem:[%s12629_s3 + $0x2b0] sm:$0xff]  ;;  %v8891_v57 = vpack.c.bf16 %v6548_v44, %v6547_v2  ;;  %v6531_v22 = vld [vmem:[%s12629_s3 + $0x320] sm:$0xff]  ;;  %v6532_v31 = vld [vmem:[%s12629_s3 + $0x328] sm:$0xff] }
 0x816   :  { %v8861_v42 = vpack.c.bf16 %v6500_v36, %v6499_v40  ;;  %v8893_v9 = vpack.c.bf16 %v6532_v31, %v6531_v22  ;;  %v6520_v21 = vld [vmem:[%s12629_s3 + $0x2c8] sm:$0xff]  ;;  %v6538_v15 = vld [vmem:[%s12629_s3 + $0x358] sm:$0xff]  ;;  %v6539_v44 = vld [vmem:[%s12629_s3 + $0x360] sm:$0xff] }
 0x817   :  { %5765 = vst.msk [vmem:[#allocation4 + $0x70] sm:$0xff] %vm23_vm0, %v5749_v16  ;;  %v5587_v52 = vadd.f32 %v8126_v45, %v11655_v55  ;;  %v5932_v23 = vpop.permute.xlu1 %5931  ;;  %v8863_v45 = vpack.c.bf16 %v6518_v63, %v6517_v46  ;;  %v8905_v6 = vpack.c.bf16 %v6538_v15, %v6537_v58  ;;  %v6558_v40 = vld [vmem:[%s12629_s3 + $0x3f8] sm:$0xff]  ;;  %v6576_v22 = vld [vmem:[%s12629_s3 + $0x488] sm:$0xff] }
 0x818   :  { %5934 = vst.msk [vmem:[#allocation5 + $0x6] sm:$0x3] %vm5810_vm8, %v5932_v23  ;;  %v7637_v56 = vld.sshfl [vmem:[#allocation4 + $0x6a] sm:$0x3 pattern:$0x76325410] }
 0x819   :  { %v6304_v24 = vld [vmem:[#allocation4 + $0x68] sm:$0x3]  ;;  %v5732_v35 = vadd.f32 %v11762_v49, %v5587_v52  ;;  %6315 = vrot.lane.b32.xlu1 %v7637_v56, %s9078_s17  ;;  %6300 = vrot.lane.b32.xlu0 %v7636_v29, %s9080_s21  ;;  %v7638_v59 = vld.sshfl [vmem:[#allocation4 + $0x6c] sm:$0x3 pattern:$0x76325410] }
 0x81a   :  { %6305 = vst.msk [vmem:[#allocation5 + $0x1a] sm:$0x3] %vm5768_vm5, %v6304_v24  ;;  %v7639_v30 = vld.sshfl [vmem:[#allocation4 + $0x6e] sm:$0x3 pattern:$0x76325410]  ;;  %v8895_v24 = vpack.c.bf16 %v6550_v54, %v6549_v34 }
 0x81b   :  { %v5750_v14 = vmax.f32 %v5732_v35, 0.0  ;;  %v6501_v52 = vld [vmem:[%s12629_s3 + $0x230] sm:$0xff]  ;;  %v6502_v23 = vld [vmem:[%s12629_s3 + $0x238] sm:$0xff]  ;;  %v6519_v56 = vld [vmem:[%s12629_s3 + $0x2c0] sm:$0xff] }
 0x81c   :  { %v6533_v35 = vld [vmem:[%s12629_s3 + $0x330] sm:$0xff]  ;;  %v6510_v46 = vld [vmem:[%s12629_s3 + $0x278] sm:$0xff] }
 0x81d   :  { %5766 = vst.msk [vmem:[#allocation4 + $0x78] sm:$0xff] %vm23_vm0, %v5750_v14  ;;  %6328 = vrot.lane.b32.xlu1 %v7638_v59, %s9079_s18  ;;  %v6534_v14 = vld [vmem:[%s12629_s3 + $0x338] sm:$0xff]  ;;  %v8865_v59 = vpack.c.bf16 %v6502_v23, %v6501_v52 }
 0x81e   :  { %v7640_v55 = vld.sshfl [vmem:[#allocation4 + $0x72] sm:$0x3 pattern:$0x76325410]  ;;  %v6345_v27 = vld [vmem:[#allocation4 + $0x70] sm:$0x3]  ;;  %v5947_v26 = vpop.permute.xlu0 %5946 }
 0x81f   :  { %6356 = vrot.lane.b32.xlu0 %v7640_v55, %s9078_s17  ;;  %v6427_v49 = vld [vmem:[#allocation5] sm:$0xff]  ;;  %6346 = vst.msk [vmem:[#allocation5 + $0x1c] sm:$0x3] %vm5768_vm5, %v6345_v27  ;;  %v6552_v27 = vld [vmem:[%s12629_s3 + $0x3c8] sm:$0xff]  ;;  %v6542_v34 = vld [vmem:[%s12629_s3 + $0x378] sm:$0xff] }
 0x820   :  { %5949 = vst.msk [vmem:[#allocation5 + $0x8] sm:$0x3] %vm5782_vm6, %v5947_v26  ;;  %v6705_v11 = vrot.slane %v6427_v49, %v11986_v51  ;;  %v6698_v38 = vcombine.high %v6427_v49, %v6427_v49  ;;  %v7641_v20 = vld.sshfl [vmem:[#allocation4 + $0x74] sm:$0x3 pattern:$0x76325410]  ;;  %v8867_v49 = vpack.c.bf16 %v6520_v21, %v6519_v56 }
 0x821   :  { %6341 = vrot.lane.b32.xlu1 %v7639_v30, %s9080_s21  ;;  %v7642_v17 = vld.sshfl [vmem:[#allocation4 + $0x76] sm:$0x3 pattern:$0x76325410]  ;;  %v6551_v55 = vld [vmem:[%s12629_s3 + $0x3c0] sm:$0xff]  ;;  %v8897_v30 = vpack.c.bf16 %v6534_v14, %v6533_v35  ;;  %v6594_v58 = vld [vmem:[%s12629_s3 + $0x518] sm:$0xff] }
 0x822   :  { %v6713_v41 = vcombine.high %v6705_v11, %v6705_v11  ;;  %v6712_v60 = vrot.slane %v6698_v38, %v11986_v51  ;;  %v5960_v32 = vpop.permute.xlu0 %5959  ;;  %v6522_v38 = vld [vmem:[%s12629_s3 + $0x2d8] sm:$0xff]  ;;  %v8899_v53 = vpack.c.bf16 %v6552_v27, %v6551_v55  ;;  %v6559_v14 = vld [vmem:[%s12629_s3 + $0x400] sm:$0xff] }
 0x823   :  { %6369 = vrot.lane.b32.xlu0 %v7641_v20, %s9079_s18  ;;  %5962 = vst.msk [vmem:[#allocation5 + $0x8] sm:$0x3] %vm5796_vm7, %v5960_v32  ;;  %v6554_v20 = vld [vmem:[%s12629_s3 + $0x3d8] sm:$0xff]  ;;  %v6524_v32 = vld [vmem:[%s12629_s3 + $0x2e8] sm:$0xff] }
 0x824   :  { %6846 = vmatprep.mubr.f32.mxu0 %v6713_v41  ;;  %v7643_v37 = vld.sshfl [vmem:[#allocation4 + $0x7a] sm:$0x3 pattern:$0x76325410]  ;;  %v6714_v19 = vcombine.high %v6712_v60, %v6712_v60  ;;  %v6386_v7 = vld [vmem:[#allocation4 + $0x78] sm:$0x3]  ;;  %v8903_v28 = vpack.c.bf16 %v6554_v20, %v6553_v5 }
 0x825   :  { %6847 = vmatmul.mubr.f32.vlgmr.msra.gmra.mrb[112].mxu0 %v6705_v11  ;;  %6397 = vrot.lane.b32.xlu1 %v7643_v37, %s9078_s17  ;;  %6387 = vst.msk [vmem:[#allocation5 + $0x1e] sm:$0x3] %vm5768_vm5, %v6386_v7  ;;  %v7644_v12 = vld.sshfl [vmem:[#allocation4 + $0x7c] sm:$0x3 pattern:$0x76325410]  ;;  %v8875_v7 = vpack.c.bf16 %v6524_v32, %v6523_v0  ;;  %v8951_v32 = vpack.c.bf16 %v6610_v1, %v6609_v61 }
 0x826   :  { %6916 = vmatprep.mubr.f32.mxu1 %v6714_v19  ;;  %8854 = vmatpush3.bf16.msra.mxu0 %v8853_v62  ;;  %v5973_v8 = vpop.permute.xlu0 %5972  ;;  %v5988_v13 = vpop.permute.xlu1 %5987  ;;  %v7645_v29 = vld.sshfl [vmem:[#allocation4 + $0x7e] sm:$0x3 pattern:$0x76325410]  ;;  %v6521_v11 = vld [vmem:[%s12629_s3 + $0x2d0] sm:$0xff]  ;;  %v6555_v19 = vld [vmem:[%s12629_s3 + $0x3e0] sm:$0xff] }
 0x827   :  { %6917 = vmatmul.mubr.f32.vlgmr.msra.gmra.mrb[128].mxu1 %v6712_v60  ;;  %6382 = vrot.lane.b32.xlu0 %v7642_v17, %s9080_s21  ;;  %5975 = vst.msk [vmem:[#allocation5 + $0x8] sm:$0x3] %vm5810_vm8, %v5973_v8  ;;  %v8871_v41 = vpack.c.bf16 %v6522_v38, %v6521_v11  ;;  %v6505_v60 = vld [vmem:[%s12629_s3 + $0x250] sm:$0xff]  ;;  %v6506_v62 = vld [vmem:[%s12629_s3 + $0x258] sm:$0xff]  ;;  %v6540_v8 = vld [vmem:[%s12629_s3 + $0x368] sm:$0xff] }
 0x828   :  { %5990 = vst.msk [vmem:[#allocation5 + $0xa] sm:$0x3] %vm5782_vm6, %v5988_v13  ;;  %8886 = vmatpush3.bf16.msra.mxu1 %v8885_v43  ;;  %8856 = vmatprep.subr.bf16.mxu0 %v8855_v33  ;;  %v8873_v37 = vpack.c.bf16 %v6506_v62, %v6505_v60  ;;  %v6556_v43 = vld [vmem:[%s12629_s3 + $0x3e8] sm:$0xff]  ;;  %v6525_v17 = vld [vmem:[%s12629_s3 + $0x2f0] sm:$0xff]  ;;  %v8909_v63 = vpack.c.bf16 %v6540_v8, %v6539_v44  ;;  %v6562_v20 = vld [vmem:[%s12629_s3 + $0x418] sm:$0xff] }
 0x829   :  { %6410 = vrot.lane.b32.xlu1 %v7644_v12, %s9079_s18  ;;  %8888 = vmatprep.subr.bf16.mxu1 %v8887_v10  ;;  %v6507_v10 = vld [vmem:[%s12629_s3 + $0x260] sm:$0xff]  ;;  %v8907_v2 = vpack.c.bf16 %v6556_v43, %v6555_v19  ;;  %v6561_v5 = vld [vmem:[%s12629_s3 + $0x410] sm:$0xff]  ;;  %v6580_v0 = vld [vmem:[%s12629_s3 + $0x4a8] sm:$0xff] }
 0x82a   :  { %8858 = vmatpush3.bf16.msra.mxu0 %v8857_v50  ;;  %v6001_v16 = vpop.permute.xlu1 %6000  ;;  %v6526_v50 = vld [vmem:[%s12629_s3 + $0x2f8] sm:$0xff]  ;;  %v8877_v13 = vpack.c.bf16 %v6508_v18, %v6507_v10  ;;  %v8921_v15 = vpack.c.bf16 %v6562_v20, %v6561_v5  ;;  %v6612_v19 = vld [vmem:[%s12629_s3 + $0x5a8] sm:$0xff]  ;;  %v6595_v44 = vld [vmem:[%s12629_s3 + $0x520] sm:$0xff] }
 0x82b   :  { %8860 = vmatprep.subr.bf16.mxu0 %v8859_v39  ;;  %6003 = vst.msk [vmem:[#allocation5 + $0xa] sm:$0x3] %vm5796_vm7, %v6001_v16  ;;  %v6557_v39 = vld [vmem:[%s12629_s3 + $0x3f0] sm:$0xff]  ;;  %v8879_v12 = vpack.c.bf16 %v6526_v50, %v6525_v17  ;;  %v6607_v16 = vld [vmem:[%s12629_s3 + $0x580] sm:$0xff]  ;;  %v6582_v50 = vld [vmem:[%s12629_s3 + $0x4b8] sm:$0xff] }
 0x82c   :  { %8890 = vmatpush3.bf16.msra.mxu1 %v8889_v3  ;;  %v6509_v3 = vld [vmem:[%s12629_s3 + $0x270] sm:$0xff]  ;;  %v8911_v31 = vpack.c.bf16 %v6558_v40, %v6557_v39  ;;  %v6596_v8 = vld [vmem:[%s12629_s3 + $0x528] sm:$0xff]  ;;  %v6614_v40 = vld [vmem:[%s12629_s3 + $0x5b8] sm:$0xff] }
 0x82d   :  { %6423 = vrot.lane.b32.xlu1 %v7645_v29, %s9080_s21  ;;  %8892 = vmatprep.subr.bf16.mxu1 %v8891_v57  ;;  %v6575_v57 = vld [vmem:[%s12629_s3 + $0x480] sm:$0xff]  ;;  %v8881_v54 = vpack.c.bf16 %v6510_v46, %v6509_v3  ;;  %v6581_v17 = vld [vmem:[%s12629_s3 + $0x4b0] sm:$0xff]  ;;  %v6566_v3 = vld [vmem:[%s12629_s3 + $0x438] sm:$0xff] }
 0x82e   :  { %8862 = vmatpush3.bf16.msra.mxu0 %v8861_v42  ;;  %v6014_v26 = vpop.permute.xlu1 %6013  ;;  %v6541_v42 = vld [vmem:[%s12629_s3 + $0x370] sm:$0xff]  ;;  %v8915_v29 = vpack.c.bf16 %v6576_v22, %v6575_v57  ;;  %v6583_v57 = vld [vmem:[%s12629_s3 + $0x4c0] sm:$0xff]  ;;  %v6584_v22 = vld [vmem:[%s12629_s3 + $0x4c8] sm:$0xff] }
 0x82f   :  { %8864 = vmatprep.subr.bf16.mxu0 %v8863_v45  ;;  %6016 = vst.msk [vmem:[#allocation5 + $0xa] sm:$0x3] %vm5810_vm8, %v6014_v26  ;;  %v6608_v45 = vld [vmem:[%s12629_s3 + $0x588] sm:$0xff]  ;;  %v6613_v39 = vld [vmem:[%s12629_s3 + $0x5b0] sm:$0xff]  ;;  %v6602_v1 = vld [vmem:[%s12629_s3 + $0x558] sm:$0xff] }
 0x830   :  { %8894 = vmatpush3.bf16.msra.mxu1 %v8893_v9  ;;  %v8913_v9 = vpack.c.bf16 %v6542_v34, %v6541_v42  ;;  %v8947_v56 = vpack.c.bf16 %v6608_v45, %v6607_v16  ;;  %v6597_v42 = vld [vmem:[%s12629_s3 + $0x530] sm:$0xff]  ;;  %v6598_v34 = vld [vmem:[%s12629_s3 + $0x538] sm:$0xff]  ;;  %v6615_v16 = vld [vmem:[%s12629_s3 + $0x5c0] sm:$0xff] }
 0x831   :  { %8896 = vmatprep.subr.bf16.mxu1 %v8895_v24  ;;  %v6616_v45 = vld [vmem:[%s12629_s3 + $0x5c8] sm:$0xff]  ;;  %v6601_v61 = vld [vmem:[%s12629_s3 + $0x550] sm:$0xff]  ;;  %v6619_v5 = vld [vmem:[%s12629_s3 + $0x5e0] sm:$0xff] }
 0x832   :  { %8866 = vmatpush3.bf16.msra.mxu0 %v8865_v59  ;;  %v6560_v59 = vld [vmem:[%s12629_s3 + $0x408] sm:$0xff] }
 0x833   :  { %8868 = vmatprep.subr.bf16.mxu0 %v8867_v49  ;;  %v6577_v49 = vld [vmem:[%s12629_s3 + $0x490] sm:$0xff]  ;;  %v6620_v20 = vld [vmem:[%s12629_s3 + $0x5e8] sm:$0xff] }
 0x834   :  { %8898 = vmatpush3.bf16.msra.mxu1 %v8897_v30  ;;  %v6592_v30 = vld [vmem:[%s12629_s3 + $0x508] sm:$0xff] }
 0x835   :  { %8900 = vmatprep.subr.bf16.mxu1 %v8899_v53  ;;  %v8917_v53 = vpack.c.bf16 %v6560_v59, %v6559_v14  ;;  %v8949_v62 = vpack.c.bf16 %v6592_v30, %v6591_v48  ;;  %v6599_v14 = vld [vmem:[%s12629_s3 + $0x540] sm:$0xff]  ;;  %v6600_v59 = vld [vmem:[%s12629_s3 + $0x548] sm:$0xff]  ;;  %v6570_v48 = vld [vmem:[%s12629_s3 + $0x458] sm:$0xff] }
 0x836   :  { %8870 = vmatpush3.bf16.msra.mxu0 %v8869_v25  ;;  %v6029_v33 = vpop.permute.xlu0 %6028  ;;  %v8919_v25 = vpack.c.bf16 %v6578_v47, %v6577_v49  ;;  %v6569_v47 = vld [vmem:[%s12629_s3 + $0x450] sm:$0xff]  ;;  %v8965_v30 = vpack.c.bf16 %v6600_v59, %v6599_v14  ;;  %v6674_v59 = vld [vmem:[%s12629_s3 + $0x798] sm:$0xff] }
 0x837   :  { %8872 = vmatprep.subr.bf16.mxu0 %v8871_v41  ;;  %6031 = vst.msk [vmem:[#allocation5 + $0xc] sm:$0x3] %vm5782_vm6, %v6029_v33  ;;  %v6563_v33 = vld [vmem:[%s12629_s3 + $0x420] sm:$0xff]  ;;  %v6673_v14 = vld [vmem:[%s12629_s3 + $0x790] sm:$0xff] }
 0x838   :  { %8902 = vmatpush3.bf16.msra.mxu1 %v8901_v4  ;;  %v6579_v4 = vld [vmem:[%s12629_s3 + $0x4a0] sm:$0xff] }
 0x839   :  { %8904 = vmatprep.subr.bf16.mxu1 %v8903_v28  ;;  %v6593_v28 = vld [vmem:[%s12629_s3 + $0x510] sm:$0xff]  ;;  %v8923_v43 = vpack.c.bf16 %v6580_v0, %v6579_v4  ;;  %v8969_v0 = vpack.c.bf16 %v6602_v1, %v6601_v61 }
 0x83a   :  { %8874 = vmatpush3.bf16.msra.mxu0 %v8873_v37  ;;  %v6042_v36 = vpop.permute.xlu0 %6041  ;;  %v6611_v37 = vld [vmem:[%s12629_s3 + $0x5a0] sm:$0xff] }
 0x83b   :  { %8876 = vmatprep.subr.bf16.mxu0 %v8875_v7  ;;  %6044 = vst.msk [vmem:[#allocation5 + $0xc] sm:$0x3] %vm5796_vm7, %v6042_v36  ;;  %v6564_v7 = vld [vmem:[%s12629_s3 + $0x428] sm:$0xff]  ;;  %v8927_v36 = vpack.c.bf16 %v6582_v50, %v6581_v17  ;;  %v6639_v50 = vld [vmem:[%s12629_s3 + $0x680] sm:$0xff] }
 0x83c   :  { %8906 = vmatpush3.bf16.msra.mxu1 %v8905_v6  ;;  %v8953_v6 = vpack.c.bf16 %v6594_v58, %v6593_v28  ;;  %v6590_v28 = vld [vmem:[%s12629_s3 + $0x4f8] sm:$0xff]  ;;  %v8971_v58 = vpack.c.bf16 %v6620_v20, %v6619_v5  ;;  %v6676_v5 = vld [vmem:[%s12629_s3 + $0x7a8] sm:$0xff] }
 0x83d   :  { %8908 = vmatprep.subr.bf16.mxu1 %v8907_v2  ;;  %v8955_v2 = vpack.c.bf16 %v6612_v19, %v6611_v37  ;;  %v6604_v37 = vld [vmem:[%s12629_s3 + $0x568] sm:$0xff] }
 0x83e   :  { %8878 = vmatpush3.bf16.msra.mxu0 %v8877_v13  ;;  %v6055_v52 = vpop.permute.xlu0 %6054  ;;  %v6070_v23 = vpop.permute.xlu1 %6069  ;;  %v8925_v13 = vpack.c.bf16 %v6564_v7, %v6563_v33  ;;  %v6622_v33 = vld [vmem:[%s12629_s3 + $0x5f8] sm:$0xff] }
 0x83f   :  { %8880 = vmatprep.subr.bf16.mxu0 %v8879_v12  ;;  %6057 = vst.msk [vmem:[#allocation5 + $0xc] sm:$0x3] %vm5810_vm8, %v6055_v52  ;;  %v6565_v12 = vld [vmem:[%s12629_s3 + $0x430] sm:$0xff]  ;;  %v8931_v52 = vpack.c.bf16 %v6584_v22, %v6583_v57 }
 0x840   :  { %6072 = vst.msk [vmem:[#allocation5 + $0xe] sm:$0x3] %vm5782_vm6, %v6070_v23  ;;  %8910 = vmatpush3.bf16.msra.mxu1 %v8909_v63  ;;  %v8957_v63 = vpack.c.bf16 %v6596_v8, %v6595_v44  ;;  %v6567_v23 = vld [vmem:[%s12629_s3 + $0x440] sm:$0xff]  ;;  %v6605_v8 = vld [vmem:[%s12629_s3 + $0x570] sm:$0xff] }
 0x841   :  { %8912 = vmatprep.subr.bf16.mxu1 %v8911_v31  ;;  %v8959_v31 = vpack.c.bf16 %v6614_v40, %v6613_v39  ;;  %v6671_v40 = vld [vmem:[%s12629_s3 + $0x780] sm:$0xff] }
 0x842   :  { %8882 = vmatpush3.bf16.msra.mxu0 %v8881_v54  ;;  %v6083_v21 = vpop.permute.xlu1 %6082  ;;  %v8929_v54 = vpack.c.bf16 %v6566_v3, %v6565_v12 }
 0x843   :  { %8916 = vmatprep.subr.bf16.mxu0 %v8915_v29  ;;  %6085 = vst.msk [vmem:[#allocation5 + $0xe] sm:$0x3] %vm5796_vm7, %v6083_v21  ;;  %v6568_v29 = vld [vmem:[%s12629_s3 + $0x448] sm:$0xff]  ;;  %v6585_v21 = vld [vmem:[%s12629_s3 + $0x4d0] sm:$0xff] }
 0x844   :  { %8914 = vmatpush3.bf16.msra.mxu1 %v8913_v9 }
 0x845   :  { %8948 = vmatprep.subr.bf16.mxu1 %v8947_v56  ;;  %v8961_v56 = vpack.c.bf16 %v6598_v34, %v6597_v42  ;;  %v6623_v34 = vld [vmem:[%s12629_s3 + $0x600] sm:$0xff] }
 0x846   :  { %v6096_v24 = vpop.permute.xlu1 %6095 }
 0x847   :  { %6098 = vst.msk [vmem:[#allocation5 + $0xe] sm:$0x3] %vm5810_vm8, %v6096_v24  ;;  %v6586_v24 = vld [vmem:[%s12629_s3 + $0x4d8] sm:$0xff] }
 0x848   :  { %v8935_v49 = vpack.c.bf16 %v6586_v24, %v6585_v21 }
 0x84e   :  { %v6428_v35 = vld [vmem:[#allocation5 + $0x8] sm:$0xff] }
 0x84f   :  { %v6111_v55 = vpop.permute.xlu0 %6110  ;;  %v6722_v27 = vrot.slane %v6428_v35, %v11986_v51  ;;  %v6715_v26 = vcombine.high %v6428_v35, %v6428_v35  ;;  %v8963_v35 = vpack.c.bf16 %v6616_v45, %v6615_v16 }
 0x850   :  { %6113 = vst.msk [vmem:[#allocation5 + $0x10] sm:$0x3] %vm5782_vm6, %v6111_v55  ;;  %v8933_v55 = vpack.c.bf16 %v6568_v29, %v6567_v23  ;;  %v6642_v23 = vld [vmem:[%s12629_s3 + $0x698] sm:$0xff]  ;;  %v6655_v29 = vld [vmem:[%s12629_s3 + $0x700] sm:$0xff] }
 0x851   :  { %v6730_v11 = vcombine.high %v6722_v27, %v6722_v27  ;;  %v6729_v38 = vrot.slane %v6715_v26, %v11986_v51  ;;  %v6618_v26 = vld [vmem:[%s12629_s3 + $0x5d8] sm:$0xff] }
 0x853   :  { %6986 = vmatprep.mubr.f32.mxu0 %v6730_v11  ;;  %v6124_v41 = vpop.permute.xlu0 %6123  ;;  %v6731_v60 = vcombine.high %v6729_v38, %v6729_v38  ;;  %v6587_v11 = vld [vmem:[%s12629_s3 + $0x4e0] sm:$0xff] }
 0x854   :  { %6987 = vmatmul.mubr.f32.vlgmr.msra.gmra.mrb[114].mxu0 %v6722_v27  ;;  %6126 = vst.msk [vmem:[#allocation5 + $0x10] sm:$0x3] %vm5796_vm7, %v6124_v41  ;;  %v6617_v27 = vld [vmem:[%s12629_s3 + $0x5d0] sm:$0xff] }
 0x855   :  { %7056 = vmatprep.mubr.f32.mxu1 %v6731_v60  ;;  %8918 = vmatpush3.bf16.msra.mxu0 %v8917_v53  ;;  %v8967_v53 = vpack.c.bf16 %v6618_v26, %v6617_v27  ;;  %v6571_v60 = vld [vmem:[%s12629_s3 + $0x460] sm:$0xff]  ;;  %v6625_v27 = vld [vmem:[%s12629_s3 + $0x610] sm:$0xff]  ;;  %v6626_v26 = vld [vmem:[%s12629_s3 + $0x618] sm:$0xff] }
 0x856   :  { %7057 = vmatmul.mubr.f32.vlgmr.msra.gmra.mrb[130].mxu1 %v6729_v38  ;;  %8920 = vmatprep.subr.bf16.mxu0 %v8919_v25  ;;  %v6588_v38 = vld [vmem:[%s12629_s3 + $0x4e8] sm:$0xff]  ;;  %v8937_v25 = vpack.c.bf16 %v6570_v48, %v6569_v47  ;;  %v6643_v48 = vld [vmem:[%s12629_s3 + $0x6a0] sm:$0xff]  ;;  %v8985_v1 = vpack.c.bf16 %v6626_v26, %v6625_v27  ;;  %v6666_v27 = vld [vmem:[%s12629_s3 + $0x758] sm:$0xff] }
 0x857   :  { %v6152_v10 = vpop.permute.xlu1 %6151  ;;  %v6137_v18 = vpop.permute.xlu0 %6136  ;;  %8950 = vmatpush3.bf16.msra.mxu1 %v8949_v62  ;;  %v8939_v41 = vpack.c.bf16 %v6588_v38, %v6587_v11  ;;  %v6572_v62 = vld [vmem:[%s12629_s3 + $0x468] sm:$0xff]  ;;  %v9015_v11 = vpack.c.bf16 %v6674_v59, %v6673_v14  ;;  %v6657_v38 = vld [vmem:[%s12629_s3 + $0x710] sm:$0xff] }
 0x858   :  { %6154 = vst.msk [vmem:[#allocation5 + $0x12] sm:$0x3] %vm5782_vm6, %v6152_v10  ;;  %8952 = vmatprep.subr.bf16.mxu1 %v8951_v32  ;;  %v6589_v32 = vld [vmem:[%s12629_s3 + $0x4f0] sm:$0xff]  ;;  %v8941_v19 = vpack.c.bf16 %v6572_v62, %v6571_v60  ;;  %v6628_v60 = vld [vmem:[%s12629_s3 + $0x628] sm:$0xff] }
 0x859   :  { %6139 = vst.msk [vmem:[#allocation5 + $0x10] sm:$0x3] %vm5810_vm8, %v6137_v18  ;;  %8922 = vmatpush3.bf16.msra.mxu0 %v8921_v15  ;;  %v6603_v15 = vld [vmem:[%s12629_s3 + $0x560] sm:$0xff]  ;;  %v8943_v7 = vpack.c.bf16 %v6590_v28, %v6589_v32  ;;  %v6573_v10 = vld [vmem:[%s12629_s3 + $0x470] sm:$0xff]  ;;  %v6574_v18 = vld [vmem:[%s12629_s3 + $0x478] sm:$0xff] }
 0x85a   :  { %8924 = vmatprep.subr.bf16.mxu0 %v8923_v43  ;;  %v6621_v43 = vld [vmem:[%s12629_s3 + $0x5f0] sm:$0xff]  ;;  %v8973_v17 = vpack.c.bf16 %v6604_v37, %v6603_v15  ;;  %v8945_v39 = vpack.c.bf16 %v6574_v18, %v6573_v10  ;;  %v6659_v28 = vld [vmem:[%s12629_s3 + $0x720] sm:$0xff]  ;;  %v6630_v18 = vld [vmem:[%s12629_s3 + $0x638] sm:$0xff] }
 0x85b   :  { %v6165_v46 = vpop.permute.xlu1 %6164  ;;  %8954 = vmatpush3.bf16.msra.mxu1 %v8953_v6  ;;  %v8975_v44 = vpack.c.bf16 %v6622_v33, %v6621_v43  ;;  %v6677_v43 = vld [vmem:[%s12629_s3 + $0x7b0] sm:$0xff]  ;;  %v6678_v33 = vld [vmem:[%s12629_s3 + $0x7b8] sm:$0xff]  ;;  %v6652_v14 = vld [vmem:[%s12629_s3 + $0x6e8] sm:$0xff] }
 0x85c   :  { %6167 = vst.msk [vmem:[#allocation5 + $0x12] sm:$0x3] %vm5796_vm7, %v6165_v46  ;;  %8956 = vmatprep.subr.bf16.mxu1 %v8955_v2  ;;  %v6640_v2 = vld [vmem:[%s12629_s3 + $0x688] sm:$0xff]  ;;  %v6629_v10 = vld [vmem:[%s12629_s3 + $0x630] sm:$0xff] }
 0x85d   :  { %8926 = vmatpush3.bf16.msra.mxu0 %v8925_v13  ;;  %v6606_v13 = vld [vmem:[%s12629_s3 + $0x578] sm:$0xff]  ;;  %v8979_v12 = vpack.c.bf16 %v6640_v2, %v6639_v50  ;;  %v6648_v50 = vld [vmem:[%s12629_s3 + $0x6c8] sm:$0xff]  ;;  %v9023_v2 = vpack.c.bf16 %v6678_v33, %v6677_v43 }
 0x85e   :  { %8928 = vmatprep.subr.bf16.mxu0 %v8927_v36  ;;  %v6672_v36 = vld [vmem:[%s12629_s3 + $0x788] sm:$0xff]  ;;  %v6670_v43 = vld [vmem:[%s12629_s3 + $0x778] sm:$0xff] }
 0x85f   :  { %v6178_v9 = vpop.permute.xlu1 %6177  ;;  %8958 = vmatpush3.bf16.msra.mxu1 %v8957_v63  ;;  %v8977_v63 = vpack.c.bf16 %v6606_v13, %v6605_v8  ;;  %v9011_v57 = vpack.c.bf16 %v6672_v36, %v6671_v40  ;;  %v6662_v8 = vld [vmem:[%s12629_s3 + $0x738] sm:$0xff]  ;;  %v6679_v40 = vld [vmem:[%s12629_s3 + $0x7c0] sm:$0xff]  ;;  %v6680_v36 = vld [vmem:[%s12629_s3 + $0x7c8] sm:$0xff] }
 0x860   :  { %6180 = vst.msk [vmem:[#allocation5 + $0x12] sm:$0x3] %vm5810_vm8, %v6178_v9  ;;  %8960 = vmatprep.subr.bf16.mxu1 %v8959_v31  ;;  %v6656_v9 = vld [vmem:[%s12629_s3 + $0x708] sm:$0xff] }
 0x861   :  { %8930 = vmatpush3.bf16.msra.mxu0 %v8929_v54  ;;  %v6624_v54 = vld [vmem:[%s12629_s3 + $0x608] sm:$0xff]  ;;  %v9013_v47 = vpack.c.bf16 %v6656_v9, %v6655_v29  ;;  %v6633_v9 = vld [vmem:[%s12629_s3 + $0x650] sm:$0xff] }
 0x862   :  { %8932 = vmatprep.subr.bf16.mxu0 %v8931_v52  ;;  %v6641_v52 = vld [vmem:[%s12629_s3 + $0x690] sm:$0xff] }
 0x863   :  { %8962 = vmatpush3.bf16.msra.mxu1 %v8961_v56 }
 0x864   :  { %8964 = vmatprep.subr.bf16.mxu1 %v8963_v35  ;;  %v8981_v35 = vpack.c.bf16 %v6624_v54, %v6623_v34  ;;  %v6663_v34 = vld [vmem:[%s12629_s3 + $0x740] sm:$0xff]  ;;  %v6664_v54 = vld [vmem:[%s12629_s3 + $0x748] sm:$0xff] }
 0x865   :  { %8934 = vmatpush3.bf16.msra.mxu0 %v8933_v55  ;;  %v8983_v55 = vpack.c.bf16 %v6642_v23, %v6641_v52  ;;  %v6681_v52 = vld [vmem:[%s12629_s3 + $0x7d0] sm:$0xff]  ;;  %v6682_v23 = vld [vmem:[%s12629_s3 + $0x7d8] sm:$0xff] }
 0x866   :  { %8936 = vmatprep.subr.bf16.mxu0 %v8935_v49  ;;  %v9031_v59 = vpack.c.bf16 %v6682_v23, %v6681_v52 }
 0x867   :  { %v6193_v4 = vpop.permute.xlu0 %6192  ;;  %8966 = vmatpush3.bf16.msra.mxu1 %v8965_v30  ;;  %v6644_v30 = vld [vmem:[%s12629_s3 + $0x6a8] sm:$0xff] }
 0x868   :  { %6195 = vst.msk [vmem:[#allocation5 + $0x14] sm:$0x3] %vm5782_vm6, %v6193_v4  ;;  %8968 = vmatprep.subr.bf16.mxu1 %v8967_v53  ;;  %v6658_v53 = vld [vmem:[%s12629_s3 + $0x718] sm:$0xff]  ;;  %v8987_v20 = vpack.c.bf16 %v6644_v30, %v6643_v48  ;;  %v6645_v4 = vld [vmem:[%s12629_s3 + $0x6b0] sm:$0xff]  ;;  %v6684_v48 = vld [vmem:[%s12629_s3 + $0x7e8] sm:$0xff] }
 0x869   :  { %8938 = vmatpush3.bf16.msra.mxu0 %v8937_v25  ;;  %v6675_v25 = vld [vmem:[%s12629_s3 + $0x7a0] sm:$0xff]  ;;  %v9017_v62 = vpack.c.bf16 %v6658_v53, %v6657_v38  ;;  %v6636_v38 = vld [vmem:[%s12629_s3 + $0x668] sm:$0xff] }
 0x86a   :  { %8940 = vmatprep.subr.bf16.mxu0 %v8939_v41  ;;  %v6627_v41 = vld [vmem:[%s12629_s3 + $0x620] sm:$0xff]  ;;  %v9019_v32 = vpack.c.bf16 %v6676_v5, %v6675_v25  ;;  %v6654_v25 = vld [vmem:[%s12629_s3 + $0x6f8] sm:$0xff] }
 0x86b   :  { %v6206_v6 = vpop.permute.xlu0 %6205  ;;  %8970 = vmatpush3.bf16.msra.mxu1 %v8969_v0  ;;  %v6646_v0 = vld [vmem:[%s12629_s3 + $0x6b8] sm:$0xff] }
 0x86c   :  { %6208 = vst.msk [vmem:[#allocation5 + $0x14] sm:$0x3] %vm5796_vm7, %v6206_v6  ;;  %8972 = vmatprep.subr.bf16.mxu1 %v8971_v58  ;;  %v6660_v58 = vld [vmem:[%s12629_s3 + $0x728] sm:$0xff] }
 0x86d   :  { %8942 = vmatpush3.bf16.msra.mxu0 %v8941_v19  ;;  %v8989_v19 = vpack.c.bf16 %v6628_v60, %v6627_v41  ;;  %v9021_v6 = vpack.c.bf16 %v6660_v58, %v6659_v28  ;;  %v6668_v41 = vld [vmem:[%s12629_s3 + $0x768] sm:$0xff]  ;;  %v6637_v28 = vld [vmem:[%s12629_s3 + $0x670] sm:$0xff]  ;;  %v6638_v58 = vld [vmem:[%s12629_s3 + $0x678] sm:$0xff] }
 0x86e   :  { %8944 = vmatprep.subr.bf16.mxu0 %v8943_v7  ;;  %v8991_v7 = vpack.c.bf16 %v6646_v0, %v6645_v4  ;;  %v6685_v4 = vld [vmem:[%s12629_s3 + $0x7f0] sm:$0xff]  ;;  %v6686_v0 = vld [vmem:[%s12629_s3 + $0x7f8] sm:$0xff] }
 0x86f   :  { %v6234_v3 = vpop.permute.xlu1 %6233  ;;  %v6219_v46 = vpop.permute.xlu0 %6218  ;;  %8974 = vmatpush3.bf16.msra.mxu1 %v8973_v17  ;;  %v6647_v17 = vld [vmem:[%s12629_s3 + $0x6c0] sm:$0xff] }
 0x870   :  { %6236 = vst.msk [vmem:[#allocation5 + $0x16] sm:$0x3] %vm5782_vm6, %v6234_v3  ;;  %8976 = vmatprep.subr.bf16.mxu1 %v8975_v44  ;;  %v6661_v44 = vld [vmem:[%s12629_s3 + $0x730] sm:$0xff]  ;;  %v6631_v3 = vld [vmem:[%s12629_s3 + $0x640] sm:$0xff] }
 0x871   :  { %6221 = vst.msk [vmem:[#allocation5 + $0x14] sm:$0x3] %vm5810_vm8, %v6219_v46  ;;  %8946 = vmatpush3.bf16.msra.mxu0 %v8945_v39  ;;  %v8993_v39 = vpack.c.bf16 %v6630_v18, %v6629_v10  ;;  %v6632_v46 = vld [vmem:[%s12629_s3 + $0x648] sm:$0xff] }
 0x872   :  { %8980 = vmatprep.subr.bf16.mxu0 %v8979_v12  ;;  %v8995_v12 = vpack.c.bf16 %v6648_v50, %v6647_v17 }
 0x873   :  { %v6247_v22 = vpop.permute.xlu1 %6246  ;;  %8978 = vmatpush3.bf16.msra.mxu1 %v8977_v63 }
 0x874   :  { %6249 = vst.msk [vmem:[#allocation5 + $0x16] sm:$0x3] %vm5796_vm7, %v6247_v22  ;;  %9012 = vmatprep.subr.bf16.mxu1 %v9011_v57  ;;  %v9025_v57 = vpack.c.bf16 %v6662_v8, %v6661_v44  ;;  %v6649_v22 = vld [vmem:[%s12629_s3 + $0x6d0] sm:$0xff] }
 0x877   :  { %v6260_v31 = vpop.permute.xlu1 %6259 }
 0x878   :  { %6262 = vst.msk [vmem:[#allocation5 + $0x16] sm:$0x3] %vm5810_vm8, %v6260_v31  ;;  %v6650_v31 = vld [vmem:[%s12629_s3 + $0x6d8] sm:$0xff] }
 0x879   :  { %v8999_v29 = vpack.c.bf16 %v6650_v31, %v6649_v22 }
 0x87f   :  { %v6429_v42 = vld [vmem:[#allocation5 + $0x10] sm:$0xff] }
 0x880   :  { %v6739_v16 = vrot.slane %v6429_v42, %v11986_v51  ;;  %v6732_v45 = vcombine.high %v6429_v42, %v6429_v42  ;;  %v9027_v42 = vpack.c.bf16 %v6680_v36, %v6679_v40 }
 0x882   :  { %v6747_v21 = vcombine.high %v6739_v16, %v6739_v16  ;;  %v6746_v24 = vrot.slane %v6732_v45, %v11986_v51  ;;  %v8997_v45 = vpack.c.bf16 %v6632_v46, %v6631_v3 }
 0x883   :  { %v6275_v56 = vpop.permute.xlu0 %6274 }
 0x884   :  { %6277 = vst.msk [vmem:[#allocation5 + $0x18] sm:$0x3] %vm5782_vm6, %v6275_v56  ;;  %7126 = vmatprep.mubr.f32.mxu0 %v6747_v21  ;;  %v6748_v49 = vcombine.high %v6746_v24, %v6746_v24  ;;  %v6634_v56 = vld [vmem:[%s12629_s3 + $0x658] sm:$0xff] }
 0x885   :  { %7127 = vmatmul.mubr.f32.vlgmr.msra.gmra.mrb[116].mxu0 %v6739_v16 }
 0x886   :  { %7196 = vmatprep.mubr.f32.mxu1 %v6748_v49  ;;  %8982 = vmatpush3.bf16.msra.mxu0 %v8981_v35  ;;  %v6651_v35 = vld [vmem:[%s12629_s3 + $0x6e0] sm:$0xff]  ;;  %v9001_v49 = vpack.c.bf16 %v6634_v56, %v6633_v9 }
 0x887   :  { %v6288_v61 = vpop.permute.xlu0 %6287  ;;  %7197 = vmatmul.mubr.f32.vlgmr.msra.gmra.mrb[132].mxu1 %v6746_v24  ;;  %8984 = vmatprep.subr.bf16.mxu0 %v8983_v55  ;;  %v9029_v24 = vpack.c.bf16 %v6664_v54, %v6663_v34  ;;  %v6665_v55 = vld [vmem:[%s12629_s3 + $0x750] sm:$0xff]  ;;  %v9003_v30 = vpack.c.bf16 %v6652_v14, %v6651_v35 }
 0x888   :  { %6290 = vst.msk [vmem:[#allocation5 + $0x18] sm:$0x3] %vm5796_vm7, %v6288_v61  ;;  %9014 = vmatpush3.bf16.msra.mxu1 %v9013_v47  ;;  %v6683_v47 = vld [vmem:[%s12629_s3 + $0x7e0] sm:$0xff]  ;;  %v9033_v61 = vpack.c.bf16 %v6666_v27, %v6665_v55 }
 0x889   :  { %9016 = vmatprep.subr.bf16.mxu1 %v9015_v11  ;;  %v6635_v11 = vld [vmem:[%s12629_s3 + $0x660] sm:$0xff]  ;;  %v9035_v5 = vpack.c.bf16 %v6684_v48, %v6683_v47 }
 0x88a   :  { %8986 = vmatpush3.bf16.msra.mxu0 %v8985_v1  ;;  %v6653_v1 = vld [vmem:[%s12629_s3 + $0x6f0] sm:$0xff] }
 0x88b   :  { %v6316_v15 = vpop.permute.xlu1 %6315  ;;  %v6301_v37 = vpop.permute.xlu0 %6300  ;;  %8988 = vmatprep.subr.bf16.mxu0 %v8987_v20  ;;  %v6667_v20 = vld [vmem:[%s12629_s3 + $0x760] sm:$0xff] }
 0x88c   :  { %6318 = vst.msk [vmem:[#allocation5 + $0x1a] sm:$0x3] %vm5782_vm6, %v6316_v15  ;;  %9018 = vmatpush3.bf16.msra.mxu1 %v9017_v62  ;;  %v9005_v62 = vpack.c.bf16 %v6636_v38, %v6635_v11  ;;  %v9037_v15 = vpack.c.bf16 %v6668_v41, %v6667_v20 }
 0x88d   :  { %6303 = vst.msk [vmem:[#allocation5 + $0x18] sm:$0x3] %vm5810_vm8, %v6301_v37  ;;  %9020 = vmatprep.subr.bf16.mxu1 %v9019_v32  ;;  %v9007_v32 = vpack.c.bf16 %v6654_v25, %v6653_v1  ;;  %v9039_v37 = vpack.c.bf16 %v6686_v0, %v6685_v4 }
 0x88e   :  { %8990 = vmatpush3.bf16.msra.mxu0 %v8989_v19  ;;  %v6669_v19 = vld [vmem:[%s12629_s3 + $0x770] sm:$0xff] }
 0x88f   :  { %v6329_v13 = vpop.permute.xlu1 %6328  ;;  %8992 = vmatprep.subr.bf16.mxu0 %v8991_v7  ;;  %v9009_v7 = vpack.c.bf16 %v6638_v58, %v6637_v28  ;;  %v9041_v10 = vpack.c.bf16 %v6670_v43, %v6669_v19 }
 0x890   :  { %6331 = vst.msk [vmem:[#allocation5 + $0x1a] sm:$0x3] %vm5796_vm7, %v6329_v13  ;;  %9022 = vmatpush3.bf16.msra.mxu1 %v9021_v6  ;;  %v7646_v13 = vld [vmem:[%s12630_s4] ss:$0 sm:$0xff]  ;;  %s9082_s4 = smov [#allocation6]  }
 0x891   :  { %v6357_v63 = vpop.permute.xlu0 %6356  ;;  %9024 = vmatprep.subr.bf16.mxu1 %v9023_v2  ;;  %s7357_s8 = sshll.u32 %s9082_s4, 4  ;;  %s7358_s8 = int_to_ptr.vmem [resolvable:$true] %s7357_s8 }
 0x892   :  { %6359 = vst.msk [vmem:[#allocation5 + $0x1c] sm:$0x3] %vm5782_vm6, %v6357_v63  ;;  %8994 = vmatpush3.bf16.msra.mxu0 %v8993_v39  ;;  %s9053_s9 = scalar_lea.vmem %s7358_s8, 32  ;;  %p9058_p1 = scmp.lt.s32.totalorder %s7358_s8, %s7358_s8 }
 0x893   :  { %v6342_v16 = vpop.permute.xlu1 %6341  ;;  %8996 = vmatprep.subr.bf16.mxu0 %v8995_v12  ;;  %p9054_p0 = scmp.ne.s32.totalorder %s7358_s8, %s9053_s9  ;;  %p9059_p2 = scmp.lt.s32.totalorder %s9053_s9, %s9053_s9 }
 0x894   :  { %6344 = vst.msk [vmem:[#allocation5 + $0x1a] sm:$0x3] %vm5810_vm8, %v6342_v16  ;;  %9026 = vmatpush3.bf16.msra.mxu1 %v9025_v57 }
 0x895   :  { %v6370_v21 = vpop.permute.xlu0 %6369  ;;  %9028 = vmatprep.subr.bf16.mxu1 %v9027_v42  ;;  %p9060_p3 = por %p9059_p2, %p9058_p1 }
 0x896   :  { %6372 = vst.msk [vmem:[#allocation5 + $0x1c] sm:$0x3] %vm5796_vm7, %v6370_v21  ;;  %8998 = vmatpush3.bf16.msra.mxu0 %v8997_v45 }
 0x897   :  { %v6398_v26 = vpop.permute.xlu1 %6397  ;;  %9000 = vmatprep.subr.bf16.mxu0 %v8999_v29  ;;  %p9061_p4 = pnand %p9060_p3, %p9054_p0 }
 0x898   :  { %6400 = vst.msk [vmem:[#allocation5 + $0x1e] sm:$0x3] %vm5782_vm6, %v6398_v26  ;;  %9030 = vmatpush3.bf16.msra.mxu1 %v9029_v24 }
 0x899   :  { %v6383_v53 = vpop.permute.xlu0 %6382  ;;  %9032 = vmatprep.subr.bf16.mxu1 %v9031_v59 }
 0x89a   :  { %6385 = vst.msk [vmem:[#allocation5 + $0x1c] sm:$0x3] %vm5810_vm8, %v6383_v53  ;;  %9002 = vmatpush3.bf16.msra.mxu0 %v9001_v49 }
 0x89b   :  { %v6411_v60 = vpop.permute.xlu1 %6410  ;;  %9004 = vmatprep.subr.bf16.mxu0 %v9003_v30 }
 0x89c   :  { %6413 = vst.msk [vmem:[#allocation5 + $0x1e] sm:$0x3] %vm5796_vm7, %v6411_v60  ;;  %9034 = vmatpush3.bf16.msra.mxu1 %v9033_v61 }
 0x89d   :  { %9036 = vmatprep.subr.bf16.mxu1 %v9035_v5 }
 0x89e   :  { %9006 = vmatpush3.bf16.msra.mxu0 %v9005_v62 }
 0x89f   :  { %v6424_v33 = vpop.permute.xlu1 %6423  ;;  %9008 = vmatprep.subr.bf16.mxu0 %v9007_v32 }
 0x8a0   :  { %6426 = vst.msk [vmem:[#allocation5 + $0x1e] sm:$0x3] %vm5810_vm8, %v6424_v33  ;;  %9038 = vmatpush3.bf16.msra.mxu1 %v9037_v15 }
 0x8a1   :  { %9040 = vmatprep.subr.bf16.mxu1 %v9039_v37 }
 0x8a2   :  { %9010 = vmatpush3.bf16.msra.mxu0 %v9009_v7 }
 0x8a4   :  { %9042 = vmatpush3.bf16.msra.mxu1 %v9041_v10 }
 0x8a7   :  { %v6430_v18 = vld [vmem:[#allocation5 + $0x18] sm:$0xff] }
 0x8a8   :  { %v6756_v6 = vrot.slane %v6430_v18, %v11986_v51  ;;  %v6749_v17 = vcombine.high %v6430_v18, %v6430_v18 }
 0x8aa   :  { %v6764_v50 = vcombine.high %v6756_v6, %v6756_v6  ;;  %v6763_v2 = vrot.slane %v6749_v17, %v11986_v51 }
 0x8ac   :  { %7266 = vmatprep.mubr.f32.mxu0 %v6764_v50  ;;  %v6765_v44 = vcombine.high %v6763_v2, %v6763_v2 }
 0x8ad   :  { %7267 = vmatmul.mubr.f32.vlgmr.msra.gmra.mrb[118].mxu0 %v6756_v6 }
 0x8ae   :  { %7336 = vmatprep.mubr.f32.mxu1 %v6765_v44 }
 0x8af   :  { %7337 = vmatmul.mubr.f32.vlgmr.msra.gmra.mrb[134].mxu1 %v6763_v2 }
 0x8f8   :  { %v8179_v8 = vpop.f32.mrb[112].mxu0 }
 0x8f9   :  { %v8180_v39 = vpop.f32.mrb[113].mxu0 }
 0x8fa   :  { %v8181_v40 = vadd.f32 %v8180_v39, %v8179_v8  ;;  %v8214_v36 = vpop.f32.mrb[128].mxu1 }
 0x8fb   :  { %v8215_v12 = vpop.f32.mrb[129].mxu1 }
 0x8fc   :  { %v6849_v3 = vadd.f32 %v8181_v40, %v7646_v13  ;;  %v8216_v46 = vadd.f32 %v8215_v12, %v8214_v36 }
 0x8fe   :  { %v6919_v63 = vadd.f32 %v8216_v46, %v6849_v3 }
 0x927   :  { %v8249_v57 = vpop.f32.mrb[114].mxu0 }
 0x928   :  { %v8250_v22 = vpop.f32.mrb[115].mxu0 }
 0x929   :  { %v8251_v51 = vadd.f32 %v8250_v22, %v8249_v57  ;;  %v8284_v31 = vpop.f32.mrb[130].mxu1 }
 0x92a   :  { %v8285_v42 = vpop.f32.mrb[131].mxu1 }
 0x92b   :  { %v6989_v34 = vadd.f32 %v8251_v51, %v6919_v63  ;;  %v8286_v54 = vadd.f32 %v8285_v42, %v8284_v31 }
 0x92d   :  { %v7059_v16 = vadd.f32 %v8286_v54, %v6989_v34 }
 0x958   :  { %v8319_v45 = vpop.f32.mrb[116].mxu0 }
 0x959   :  { %v8320_v52 = vpop.f32.mrb[117].mxu0 }
 0x95a   :  { %v8321_v23 = vadd.f32 %v8320_v52, %v8319_v45  ;;  %v8354_v29 = vpop.f32.mrb[132].mxu1 }
 0x95b   :  { %v8355_v9 = vpop.f32.mrb[133].mxu1 }
 0x95c   :  { %v7129_v56 = vadd.f32 %v8321_v23, %v7059_v16  ;;  %v8356_v21 = vadd.f32 %v8355_v9, %v8354_v29 }
 0x95e   :  { %v7199_v24 = vadd.f32 %v8356_v21, %v7129_v56 }
 0x980   :  { %v8389_v35 = vpop.f32.mrb[118].mxu0 }
 0x981   :  { %v8390_v14 = vpop.f32.mrb[119].mxu0 }
 0x982   :  { %v8391_v59 = vadd.f32 %v8390_v14, %v8389_v35  ;;  %v8424_v55 = vpop.f32.mrb[134].mxu1 }
 0x983   :  { %v8425_v27 = vpop.f32.mrb[135].mxu1 }
 0x984   :  { %v7269_v26 = vadd.f32 %v8391_v59, %v7199_v24  ;;  %v8426_v49 = vadd.f32 %v8425_v27, %v8424_v55 }
 0x986   :  { %v7339_v47 = vadd.f32 %v8426_v49, %v7269_v26 }
 0x988   :  { %9051 = vtanh.f32 %v7339_v47  ;;  %7343 = vst.msk [vmem:[#allocation6] sm:$0x3] %vm7342_vm9, %v7339_v47 }
 0x989   :  { %9064 = shalt.err (!%p9061_p4)
}
 0x98a   :  { %s9065_s12 = scalar_lea.hbm %s12631_s5, 32 }
 0x98b   :  { %p9066_p5 = scmp.ne.s32.totalorder %s12631_s5, %s9065_s12  ;;  %p9069_p6 = scmp.lt.u32.totalorder %s9065_s12, %s12631_s5 }
 0x98d   :  { %p9071_p7 = pnand %p9069_p6, %p9066_p5 }
 0x98f   :  { %9074 = shalt.err (!%p9071_p7)
}
 0x990   :  { %7360 = dma.vmem_to_hbm [thread:$0]  %s7358_s8, 32, %s12631_s5, [#allocation7]   ;;  %vm7349_vm10 = vcmask 1024  }
 0x992   :  { %v9052_v48 = vpop.eup %9051 }
 0x993   :  { %7346 = vrot.lane.b32.xlu0 %v9052_v48, %s9079_s18 }
 0xa05   :  { %v7347_v30 = vpop.permute.xlu0 %7346 }
 0xa06   :  { %7350 = vst.msk [vmem:[%s12632_s6] sm:$0x3] %vm7349_vm10, %v7347_v30 }
 0xa07   :  { %9075 = dma.done.wait [#allocation7], 32  }
 0xa08   :  { %9076 = vsyncadd [#allocation7], 4294967264 }
 0xa09   :  { %7368 = vsyncpa [#allocation7], 1 }

</bundles_post_ra>
